<compile_context>
chip_gen: v5e
topology: v5e:2x2
jax: 0.10.0
libtpu: 0.0.40
codegen_flags: <defaults>
</compile_context>

<pallas_src>
import numpy as np
import jax
import jax.numpy as jnp
from jax.experimental import pallas as pl
from jax.experimental.pallas import tpu as pltpu

EPS = 1e-5


# --------------------------------------------------------------------------
# Synthetic deterministic graph (stand-in for the ST-GCN `Graph` class)
# --------------------------------------------------------------------------
def make_graph_A(V, hop_size):
    adj = np.zeros((V, V), dtype=np.float64)
    for i in range(V - 1):
        adj[i, i + 1] = 1.0
        adj[i + 1, i] = 1.0
    np.fill_diagonal(adj, 1.0)
    hop = np.full((V, V), np.inf)
    powers = [np.linalg.matrix_power(adj, d) for d in range(hop_size + 1)]
    for d in range(hop_size, -1, -1):
        hop[powers[d] > 0] = d
    mask = (hop <= hop_size).astype(np.float64)
    deg = mask.sum(axis=1, keepdims=True)
    norm_adj = mask / deg
    A = np.zeros((hop_size + 1, V, V), dtype=np.float32)
    for k in range(hop_size + 1):
        A[k][hop == k] = norm_adj[hop == k]
    return jnp.asarray(A)


# --------------------------------------------------------------------------
# Parameter initialization (deterministic, shapes follow the module __init__)
# --------------------------------------------------------------------------
def init_params(key, in_channels, num_classes, A_shape, t_ks):
    K, V, _ = A_shape
    keys = iter(jax.random.split(key, 64))

    def nrm(shape, s=0.1):
        return jax.random.normal(next(keys), shape, jnp.float32) * s

    def uni(shape, lo, hi):
        return jax.random.uniform(next(keys), shape, jnp.float32, lo, hi)

    def bn(c):
        return dict(gamma=uni((c,), 0.8, 1.2), beta=nrm((c,), 0.1),
                    mean=nrm((c,), 0.1), var=uni((c,), 0.5, 1.5))

    def stgc(cin, cout):
        return dict(
            w1=nrm((cout * K, cin)), b1=nrm((cout * K,), 0.05),
            M=jnp.ones((K, V, V), jnp.float32),
            bn1=bn(cout),
            w2=nrm((cout, cout, t_ks)), b2=nrm((cout,), 0.05),
            bn2=bn(cout),
        )

    params = dict(
        bn0=bn(V * in_channels),
        stgc1=stgc(in_channels, 32),
        # stgc2 / stgc6 exist in __init__ but are unused in forward — skipped.
        stgc3=stgc(32, 32),
        stgc4=stgc(32, 64),
        stgc5=stgc(64, 64),
        fc_w=nrm((1, 32)), fc_b=nrm((1,), 0.05),
        cls_w=nrm((num_classes, 32)), cls_b=nrm((num_classes,), 0.05),
    )
    return params


def bn_affine(gamma, beta, mean, var):
    scale = gamma / jnp.sqrt(var + EPS)
    shift = beta - mean * scale
    return scale, shift


def _pick_batch_block(N, requested=None):
    if requested is not None:
        assert N % requested == 0, "batch_block must divide N"
        return requested
    for b in (8, 4, 2):
        if N % b == 0:
            return b
    return 1


# --------------------------------------------------------------------------
# Host-side folding of one STGC block into lane-dense kernel operands
# --------------------------------------------------------------------------
def _prep_stgc(p, A, T_in, stride, B, dot_dtype):
    K, V, _ = A.shape
    w1 = p['w1']
    C_out = w1.shape[0] // K
    t_ks = p['w2'].shape[2]
    pad = (t_ks - 1) // 2
    T_out = (T_in + 2 * pad - t_ks) // stride + 1

    s1, h1 = bn_affine(**p['bn1'])
    s2, h2 = bn_affine(**p['bn2'])
    A_eff = A * p['M']                                    # (K, V, V)

    # (a) 1x1 conv weight with BN1 scale folded into rows (row = k*C_out + c).
    w1_eff = (w1 * jnp.tile(s1, K)[:, None]).astype(dot_dtype)

    # (b) K-hop graph aggregation fused into ONE operand: rows stacked over k,
    #     each block = kron(I_{B*T_in}, A_k*M_k) so batch and time ride the
    #     lane axis for free.  Contraction depth = K*B*T_in*V.
    eye_bt = jnp.eye(B * T_in, dtype=jnp.float32)
    AbigK = jnp.concatenate(
        [jnp.kron(eye_bt, A_eff[k]) for k in range(K)], axis=0).astype(dot_dtype)

    # (c) conv bias pushed through the aggregation + BN1 shift (kept in f32).
    colsum = jnp.sum(A_eff, axis=1)                       # (K, V): sum_v A[k,v,w]
    b1 = p['b1'].reshape(K, C_out)
    post_b1 = jnp.einsum('kc,kw->cw', b1, colsum)         # (C_out, V)
    h1_cv = s1[:, None] * post_b1 + h1[:, None]           # (C_out, V)
    H1 = jnp.tile(h1_cv[:, None, :], (1, B * T_in, 1)).reshape(C_out, B * T_in * V)

    # (d) temporal taps concatenated along the contraction axis, BN2 folded in.
    w2cat = jnp.concatenate(
        [s2[:, None] * p['w2'][:, :, tau] for tau in range(t_ks)],
        axis=1).astype(dot_dtype)                         # (C_out, t_ks*C_out)
    H2 = (s2 * p['b2'] + h2).reshape(C_out, 1)            # f32

    # (e) zero-padding masks for the rolled taps (valid-time lanes, tiled B).
    t_idx = jnp.arange(T_in)
    rows = []
    for tau in range(t_ks):
        ok = ((t_idx + tau - pad >= 0) &
              (t_idx + tau - pad <= T_in - 1)).astype(jnp.float32)
        rows.append(jnp.tile(jnp.repeat(ok, V), B))
    mask = jnp.stack(rows)                                # (t_ks, B*T_in*V)

    tensors = [w1_eff, AbigK, H1, w2cat, H2, mask]

    # (f) stride selection ONLY for the strided block (block-diag over batch).
    if stride > 1:
        tsel = (jnp.arange(T_in)[:, None] ==
                stride * jnp.arange(T_out)[None, :]).astype(jnp.float32)
        Ssel = jnp.kron(jnp.eye(B, dtype=jnp.float32),
                        jnp.kron(tsel, jnp.eye(V, dtype=jnp.float32))
                        ).astype(dot_dtype)               # (B*T_in*V, B*T_out*V)
        tensors.append(Ssel)

    meta = dict(K=K, C_out=C_out, t_ks=t_ks, pad=pad, stride=stride,
                T_in=T_in, T_out=T_out, n_refs=len(tensors))
    return tensors, meta, T_out


# --------------------------------------------------------------------------
# In-kernel STGC block on a VMEM-resident lane-dense activation slab
# --------------------------------------------------------------------------
def _stgc_block_body(xv, refs, meta, V, dot_dtype):
    K, C_out, t_ks, pad = meta['K'], meta['C_out'], meta['t_ks'], meta['pad']
    if meta['stride'] > 1:
        w1_ref, a_ref, h1_ref, w2_ref, h2_ref, m_ref, sel_ref = refs
    else:
        w1_ref, a_ref, h1_ref, w2_ref, h2_ref, m_ref = refs
        sel_ref = None

    # 1x1 conv over channels (weights shared across the B*T*V lane axis).
    y = jnp.dot(w1_ref[...], xv.astype(dot_dtype),
                preferred_element_type=jnp.float32)            # (K*C_out, B*T*V)

    # K-hop spatial aggregation fused into ONE MXU pass: lane-concat the hop
    # outputs and contract against the row-stacked kron(I_{B*T}, A_k) operand.
    ycat = jnp.concatenate(
        [y[k * C_out:(k + 1) * C_out, :] for k in range(K)], axis=1)
    z = jnp.dot(ycat.astype(dot_dtype), a_ref[...],
                preferred_element_type=jnp.float32)            # (C_out, B*T*V)

    z = z + h1_ref[...]                 # conv bias through A + BN1 (eval, folded)
    z = z * jax.nn.sigmoid(z)           # SiLU (Dropout eval-mode -> identity)

    # Temporal conv: taps via XLU lane rolls + VPU padding masks, then ONE
    # channel-mix dot with contraction t_ks*C_out.  Cross-batch wraparound of
    # the roll lands exactly on masked (padded) lanes, so it is harmless.
    ntv = z.shape[1]
    parts = []
    for tau in range(t_ks):
        shift = ((pad - tau) * V) % ntv
        zs = pltpu.roll(z, shift=shift, axis=1) if shift != 0 else z
        if tau != pad:
            zs = zs * m_ref[tau:tau + 1, :]
        parts.append(zs)
    zcat = jnp.concatenate(parts, axis=0)                      # (t_ks*C_out, B*T*V)
    out = jnp.dot(w2_ref[...], zcat.astype(dot_dtype),
                  preferred_element_type=jnp.float32)          # (C_out, B*T*V)

    if sel_ref is not None:             # stride-2 block: keep strided time cols
        out = jnp.dot(out.astype(dot_dtype), sel_ref[...],
                      preferred_element_type=jnp.float32)      # (C_out, B*T_out*V)

    out = out + h2_ref[...]             # conv bias + BN2 (eval, folded)
    return out * jax.nn.sigmoid(out)    # SiLU


def _make_kernel(plan, V, dot_dtype):
    def kernel(*refs):
        x_ref, s0_ref, h0_ref = refs[:3]
        out_ref = refs[-1]
        pos = 3

        # Input BatchNorm1d (eval) as a per-(c, v) affine on the lane-dense slab.
        xv = x_ref[...] * s0_ref[...] + h0_ref[...]

        # Four STGC blocks; activations never leave VMEM / vregs.
        for meta in plan:
            n = meta['n_refs']
            xv = _stgc_block_body(xv, refs[pos:pos + n], meta, V, dot_dtype)
            pos += n

        whead_ref, bhead_ref, ppool_ref = refs[pos:pos + 3]

        # Head: mean-pool over (T, V) per batch element (one tiny dot), then the
        # fc (sigmoid score) and 1x1 classifier fused into one weight and ONE
        # lane-oriented store of shape (1+num_classes, B).
        pooled = jnp.dot(xv.astype(dot_dtype), ppool_ref[...],
                         preferred_element_type=jnp.float32)   # (C_last, B)
        head = jnp.dot(whead_ref[...], pooled.astype(dot_dtype),
                       preferred_element_type=jnp.float32) + bhead_ref[...]
        row = jax.lax.broadcasted_iota(jnp.int32, head.shape, 0)
        out_ref[...] = jnp.where(row == 0, jax.nn.sigmoid(head), head)

    return kernel


# --------------------------------------------------------------------------
# Full forward: ONE pallas_call, batch-blocked grid ("parallel" for megacore)
# --------------------------------------------------------------------------
def st_gcn_forward(x, params, A, *, batch_block=None, dot_dtype=jnp.bfloat16):
    N, C_in, T, V = x.shape
    num_classes = params['cls_w'].shape[0]
    B = _pick_batch_block(N, batch_block)
    G = N // B

    # Lane-dense input slab: (G, C_in, B*T*V) with lane order (b, t, v).
    x_l = x.reshape(G, B, C_in, T * V).transpose(0, 2, 1, 3) \
           .reshape(G, C_in, B * T * V)

    # Input BatchNorm1d over V*C channels -> per-(c, v) affine, tiled over (T, B).
    g_, b_, m_, v_ = (params['bn0'][k] for k in ('gamma', 'beta', 'mean', 'var'))
    s1d = g_ / jnp.sqrt(v_ + EPS)
    h1d = b_ - m_ * s1d
    s_cv = s1d.reshape(V, C_in).T                         # (C, V)
    h_cv = h1d.reshape(V, C_in).T
    s0 = jnp.tile(jnp.tile(s_cv[:, None, :], (1, T, 1)).reshape(C_in, T * V), (1, B))
    h0 = jnp.tile(jnp.tile(h_cv[:, None, :], (1, T, 1)).reshape(C_in, T * V), (1, B))
    # TODO(synk): for large T, broadcast s0/h0/H1 from (C, V) inside the kernel
    #             instead of host-tiling (negligible at T=8).

    args = [x_l, s0, h0]
    in_specs = [
        pl.BlockSpec((None, C_in, B * T * V), lambda n: (n, 0, 0)),
        pl.BlockSpec(s0.shape, lambda n: (0, 0)),
        pl.BlockSpec(h0.shape, lambda n: (0, 0)),
    ]

    plan = []
    t_cur = T
    for name, stride in (('stgc1', 1), ('stgc3', 1), ('stgc4', 2), ('stgc5', 1)):
        tensors, meta, t_cur = _prep_stgc(params[name], A, t_cur, stride, B, dot_dtype)
        plan.append(meta)
        for arr in tensors:
            args.append(arr)
            in_specs.append(
                pl.BlockSpec(arr.shape, lambda n, _nd=arr.ndim: (0,) * _nd))

    # Fused head operands: [fc; cls] stacked, zero-padded to the full channel
    # width so the 32-channel feature slice is free; block-diag mean-pool.
    C_last = plan[-1]['C_out']
    fc_in = params['fc_w'].shape[1]
    whead = jnp.concatenate([params['fc_w'], params['cls_w']], axis=0)
    whead_pad = jnp.concatenate(
        [jnp.zeros((1 + num_classes, C_last - fc_in), jnp.float32), whead],
        axis=1).astype(dot_dtype)                                  # (1+nc, C_last)
    bhead = jnp.concatenate([params['fc_b'], params['cls_b']]) \
               .reshape(1 + num_classes, 1)                        # f32
    Gp = t_cur * V
    ppool = jnp.kron(jnp.eye(B, dtype=jnp.float32),
                     jnp.full((Gp, 1), 1.0 / Gp, jnp.float32)).astype(dot_dtype)

    args += [whead_pad, bhead, ppool]
    in_specs += [pl.BlockSpec(whead_pad.shape, lambda n: (0, 0)),
                 pl.BlockSpec(bhead.shape, lambda n: (0, 0)),
                 pl.BlockSpec(ppool.shape, lambda n: (0, 0))]

    out = pl.pallas_call(
        _make_kernel(plan, V, dot_dtype),
        out_shape=jax.ShapeDtypeStruct((G, 1 + num_classes, B), jnp.float32),
        grid=(G,),
        in_specs=in_specs,
        out_specs=pl.BlockSpec((None, 1 + num_classes, B), lambda n: (n, 0, 0)),
        compiler_params=pltpu.CompilerParams(
            dimension_semantics=("parallel",)),
    )(*args)

    out = jnp.transpose(out, (0, 2, 1)).reshape(N, 1 + num_classes)
    return out[:, :1], out[:, 1:]


# --------------------------------------------------------------------------
# Pure-JAX reference (mirrors the PyTorch forward, eval mode) for validation
# --------------------------------------------------------------------------
def ref_forward(x, params, A):
    N, C, T, V = x.shape
    g, b, m, v = (params['bn0'][k] for k in ('gamma', 'beta', 'mean', 'var'))
    xp = jnp.transpose(x, (0, 3, 1, 2)).reshape(N, V * C, T)
    xp = (xp - m[None, :, None]) / jnp.sqrt(v + EPS)[None, :, None] \
        * g[None, :, None] + b[None, :, None]
    x = jnp.transpose(xp.reshape(N, V, C, T), (0, 2, 3, 1))

    def bn2d(z, bn):
        return (z - bn['mean'][None, :, None, None]) \
            / jnp.sqrt(bn['var'] + EPS)[None, :, None, None] \
            * bn['gamma'][None, :, None, None] + bn['beta'][None, :, None, None]

    def block(x, p, stride):
        K = A.shape[0]
        A_eff = A * p['M']
        y = jnp.einsum('oc,nctv->notv', p['w1'], x) + p['b1'][None, :, None, None]
        n, kc, t, vv = y.shape
        cout = kc // K
        y = y.reshape(n, K, cout, t, vv)
        z = jnp.einsum('nkctv,kvw->nctw', y, A_eff)
        z = bn2d(z, p['bn1'])
        z = z * jax.nn.sigmoid(z)
        w2 = p['w2'][:, :, :, None]
        t_ks = w2.shape[2]
        pad = (t_ks - 1) // 2
        z = jax.lax.conv_general_dilated(
            z, w2, window_strides=(stride, 1), padding=((pad, pad), (0, 0)),
            dimension_numbers=('NCHW', 'OIHW', 'NCHW'))
        z = z + p['b2'][None, :, None, None]
        z = bn2d(z, p['bn2'])
        return z * jax.nn.sigmoid(z)

    x = block(x, params['stgc1'], 1)
    x = block(x, params['stgc3'], 1)
    x = block(x, params['stgc4'], 2)
    x = block(x, params['stgc5'], 1)
    pooled = jnp.mean(x, axis=(2, 3))        # (N, 64)
    feat = pooled[:, 32:]
    score = jax.nn.sigmoid(feat @ params['fc_w'].T + params['fc_b'][None, :])
    cls = feat @ params['cls_w'].T + params['cls_b'][None, :]
    return score, cls


# --------------------------------------------------------------------------
if __name__ == "__main__":
    num_classes = 5
    in_channels = 4
    t_kernel_size = 3
    hop_size = 1
    N, T, V = 2, 8, 16

    A = make_graph_A(V, hop_size)            # (hop_size+1, V, V)
    key = jax.random.PRNGKey(0)
    kp, kx = jax.random.split(key)
    params = init_params(kp, in_channels, num_classes, A.shape, t_kernel_size)
    x = jax.random.normal(kx, (N, in_channels, T, V), jnp.float32)

    # f32-operand path: strict semantics check against the pure-JAX reference.
    fwd_f32 = jax.jit(lambda xin: st_gcn_forward(xin, params, A,
                                                 dot_dtype=jnp.float32))
    score32, cls32 = fwd_f32(x)
    jax.block_until_ready((score32, cls32))

    # bf16-operand path (default / fast): MXU-native operands, f32 accumulation.
    fwd_bf16 = jax.jit(lambda xin: st_gcn_forward(xin, params, A,
                                                  dot_dtype=jnp.bfloat16))
    score16, cls16 = fwd_bf16(x)
    jax.block_until_ready((score16, cls16))

    score_ref, cls_ref = ref_forward(x, params, A)
    assert score32.shape == (N, 1) and cls32.shape == (N, num_classes)
    np.testing.assert_allclose(np.asarray(score32), np.asarray(score_ref),
                               rtol=1e-3, atol=1e-3)
    np.testing.assert_allclose(np.asarray(cls32), np.asarray(cls_ref),
                               rtol=1e-3, atol=1e-3)
    # bf16 operands keep f32 accumulation and f32 bias/SiLU math; tolerance is
    # loosened accordingly (operand rounding ~0.4% across 4 blocks).
    np.testing.assert_allclose(np.asarray(score16), np.asarray(score_ref),
                               rtol=2e-2, atol=2e-2)
    np.testing.assert_allclose(np.asarray(cls16), np.asarray(cls_ref),
                               rtol=2e-2, atol=2e-2)
    print("KERNEL_OK")
</pallas_src>

<mosaic_0001>
module attributes {stable_mosaic.version = 11 : i64} {
  func.func @kernel(%arg0: i32, %arg1: memref<1x4x256xf32, #tpu.memory_space<vmem>>, %arg2: memref<4x256xf32, #tpu.memory_space<vmem>>, %arg3: memref<4x256xf32, #tpu.memory_space<vmem>>, %arg4: memref<64x4xf32, #tpu.memory_space<vmem>>, %arg5: memref<512x256xf32, #tpu.memory_space<vmem>>, %arg6: memref<32x256xf32, #tpu.memory_space<vmem>>, %arg7: memref<32x96xf32, #tpu.memory_space<vmem>>, %arg8: memref<32x1xf32, #tpu.memory_space<vmem>>, %arg9: memref<3x256xf32, #tpu.memory_space<vmem>>, %arg10: memref<64x32xf32, #tpu.memory_space<vmem>>, %arg11: memref<512x256xf32, #tpu.memory_space<vmem>>, %arg12: memref<32x256xf32, #tpu.memory_space<vmem>>, %arg13: memref<32x96xf32, #tpu.memory_space<vmem>>, %arg14: memref<32x1xf32, #tpu.memory_space<vmem>>, %arg15: memref<3x256xf32, #tpu.memory_space<vmem>>, %arg16: memref<128x32xf32, #tpu.memory_space<vmem>>, %arg17: memref<512x256xf32, #tpu.memory_space<vmem>>, %arg18: memref<64x256xf32, #tpu.memory_space<vmem>>, %arg19: memref<64x192xf32, #tpu.memory_space<vmem>>, %arg20: memref<64x1xf32, #tpu.memory_space<vmem>>, %arg21: memref<3x256xf32, #tpu.memory_space<vmem>>, %arg22: memref<256x128xf32, #tpu.memory_space<vmem>>, %arg23: memref<128x64xf32, #tpu.memory_space<vmem>>, %arg24: memref<256x128xf32, #tpu.memory_space<vmem>>, %arg25: memref<64x128xf32, #tpu.memory_space<vmem>>, %arg26: memref<64x192xf32, #tpu.memory_space<vmem>>, %arg27: memref<64x1xf32, #tpu.memory_space<vmem>>, %arg28: memref<3x128xf32, #tpu.memory_space<vmem>>, %arg29: memref<6x64xf32, #tpu.memory_space<vmem>>, %arg30: memref<6x1xf32, #tpu.memory_space<vmem>>, %arg31: memref<128x2xf32, #tpu.memory_space<vmem>>, %arg32: memref<1x6x2xf32, #tpu.memory_space<vmem>>) attributes {dimension_semantics = [#tpu.dimension_semantics<parallel>], iteration_bounds = array<i64: 1>, scalar_prefetch = 0 : i64, scratch_operands = 0 : i64, tpu.core_type = #tpu.core_type<tc>, window_params = [{transform_indices = @transform_0, window_bounds = array<i64: 1, 4, 256>}, {pipeline_mode = #tpu.pipeline_mode<synchronous>, transform_indices = @transform_1, window_bounds = array<i64: 4, 256>}, {pipeline_mode = #tpu.pipeline_mode<synchronous>, transform_indices = @transform_2, window_bounds = array<i64: 4, 256>}, {pipeline_mode = #tpu.pipeline_mode<synchronous>, transform_indices = @transform_3, window_bounds = array<i64: 64, 4>}, {pipeline_mode = #tpu.pipeline_mode<synchronous>, transform_indices = @transform_4, window_bounds = array<i64: 512, 256>}, {pipeline_mode = #tpu.pipeline_mode<synchronous>, transform_indices = @transform_5, window_bounds = array<i64: 32, 256>}, {pipeline_mode = #tpu.pipeline_mode<synchronous>, transform_indices = @transform_6, window_bounds = array<i64: 32, 96>}, {pipeline_mode = #tpu.pipeline_mode<synchronous>, transform_indices = @transform_7, window_bounds = array<i64: 32, 1>}, {pipeline_mode = #tpu.pipeline_mode<synchronous>, transform_indices = @transform_8, window_bounds = array<i64: 3, 256>}, {pipeline_mode = #tpu.pipeline_mode<synchronous>, transform_indices = @transform_9, window_bounds = array<i64: 64, 32>}, {pipeline_mode = #tpu.pipeline_mode<synchronous>, transform_indices = @transform_10, window_bounds = array<i64: 512, 256>}, {pipeline_mode = #tpu.pipeline_mode<synchronous>, transform_indices = @transform_11, window_bounds = array<i64: 32, 256>}, {pipeline_mode = #tpu.pipeline_mode<synchronous>, transform_indices = @transform_12, window_bounds = array<i64: 32, 96>}, {pipeline_mode = #tpu.pipeline_mode<synchronous>, transform_indices = @transform_13, window_bounds = array<i64: 32, 1>}, {pipeline_mode = #tpu.pipeline_mode<synchronous>, transform_indices = @transform_14, window_bounds = array<i64: 3, 256>}, {pipeline_mode = #tpu.pipeline_mode<synchronous>, transform_indices = @transform_15, window_bounds = array<i64: 128, 32>}, {pipeline_mode = #tpu.pipeline_mode<synchronous>, transform_indices = @transform_16, window_bounds = array<i64: 512, 256>}, {pipeline_mode = #tpu.pipeline_mode<synchronous>, transform_indices = @transform_17, window_bounds = array<i64: 64, 256>}, {pipeline_mode = #tpu.pipeline_mode<synchronous>, transform_indices = @transform_18, window_bounds = array<i64: 64, 192>}, {pipeline_mode = #tpu.pipeline_mode<synchronous>, transform_indices = @transform_19, window_bounds = array<i64: 64, 1>}, {pipeline_mode = #tpu.pipeline_mode<synchronous>, transform_indices = @transform_20, window_bounds = array<i64: 3, 256>}, {pipeline_mode = #tpu.pipeline_mode<synchronous>, transform_indices = @transform_21, window_bounds = array<i64: 256, 128>}, {pipeline_mode = #tpu.pipeline_mode<synchronous>, transform_indices = @transform_22, window_bounds = array<i64: 128, 64>}, {pipeline_mode = #tpu.pipeline_mode<synchronous>, transform_indices = @transform_23, window_bounds = array<i64: 256, 128>}, {pipeline_mode = #tpu.pipeline_mode<synchronous>, transform_indices = @transform_24, window_bounds = array<i64: 64, 128>}, {pipeline_mode = #tpu.pipeline_mode<synchronous>, transform_indices = @transform_25, window_bounds = array<i64: 64, 192>}, {pipeline_mode = #tpu.pipeline_mode<synchronous>, transform_indices = @transform_26, window_bounds = array<i64: 64, 1>}, {pipeline_mode = #tpu.pipeline_mode<synchronous>, transform_indices = @transform_27, window_bounds = array<i64: 3, 128>}, {pipeline_mode = #tpu.pipeline_mode<synchronous>, transform_indices = @transform_28, window_bounds = array<i64: 6, 64>}, {pipeline_mode = #tpu.pipeline_mode<synchronous>, transform_indices = @transform_29, window_bounds = array<i64: 6, 1>}, {pipeline_mode = #tpu.pipeline_mode<synchronous>, transform_indices = @transform_30, window_bounds = array<i64: 128, 2>}, {transform_indices = @transform_31, window_bounds = array<i64: 1, 6, 2>}]} {
    %c0 = arith.constant 0 : index
    %c0_0 = arith.constant 0 : index
    %c0_1 = arith.constant 0 : index
    %0 = vector.load %arg1[%c0, %c0_0, %c0_1] : memref<1x4x256xf32, #tpu.memory_space<vmem>>, vector<1x4x256xf32>
    %1 = vector.shape_cast %0 : vector<1x4x256xf32> to vector<4x256xf32>
    %c0_2 = arith.constant 0 : index
    %c0_3 = arith.constant 0 : index
    %2 = vector.load %arg2[%c0_2, %c0_3] : memref<4x256xf32, #tpu.memory_space<vmem>>, vector<4x256xf32>
    %3 = arith.mulf %1, %2 : vector<4x256xf32>
    %c0_4 = arith.constant 0 : index
    %c0_5 = arith.constant 0 : index
    %4 = vector.load %arg3[%c0_4, %c0_5] : memref<4x256xf32, #tpu.memory_space<vmem>>, vector<4x256xf32>
    %5 = arith.addf %3, %4 : vector<4x256xf32>
    %c0_6 = arith.constant 0 : index
    %c0_7 = arith.constant 0 : index
    %6 = vector.load %arg4[%c0_6, %c0_7] : memref<64x4xf32, #tpu.memory_space<vmem>>, vector<64x4xf32>
    %cst = arith.constant dense<0.000000e+00> : vector<64x256xf32>
    %7 = tpu.matmul %6, %5, %cst {dimension_numbers = #tpu.dot_dimension_numbers<[1], [0], [0], [1], [0, 0, 1, 1], [], []>} : vector<64x4xf32>, vector<4x256xf32>, vector<64x256xf32> -> vector<64x256xf32>
    %8 = vector.extract_strided_slice %7 {offsets = [0, 0], sizes = [32, 256], strides = [1, 1]} : vector<64x256xf32> to vector<32x256xf32>
    %9 = vector.extract_strided_slice %7 {offsets = [32, 0], sizes = [32, 256], strides = [1, 1]} : vector<64x256xf32> to vector<32x256xf32>
    %10 = tpu.concatenate %8, %9 in 1 : vector<32x256xf32>, vector<32x256xf32> -> vector<32x512xf32>
    %c0_8 = arith.constant 0 : index
    %c0_9 = arith.constant 0 : index
    %11 = vector.load %arg5[%c0_8, %c0_9] : memref<512x256xf32, #tpu.memory_space<vmem>>, vector<512x256xf32>
    %cst_10 = arith.constant dense<0.000000e+00> : vector<32x256xf32>
    %12 = tpu.matmul %10, %11, %cst_10 {dimension_numbers = #tpu.dot_dimension_numbers<[1], [0], [0], [1], [0, 0, 1, 1], [], []>} : vector<32x512xf32>, vector<512x256xf32>, vector<32x256xf32> -> vector<32x256xf32>
    %c0_11 = arith.constant 0 : index
    %c0_12 = arith.constant 0 : index
    %13 = vector.load %arg6[%c0_11, %c0_12] : memref<32x256xf32, #tpu.memory_space<vmem>>, vector<32x256xf32>
    %14 = arith.addf %12, %13 : vector<32x256xf32>
    %15 = arith.negf %14 : vector<32x256xf32>
    %16 = math.exp %15 : vector<32x256xf32>
    %cst_13 = arith.constant 1.000000e+00 : f32
    %17 = vector.broadcast %cst_13 : f32 to vector<32x256xf32>
    %18 = arith.addf %17, %16 : vector<32x256xf32>
    %19 = arith.divf %17, %18 : vector<32x256xf32>
    %20 = arith.mulf %14, %19 : vector<32x256xf32>
    %c16_i32 = arith.constant 16 : i32
    %21 = tpu.dynamic_rotate %20 by %c16_i32 dim 1 : vector<32x256xf32>, i32 -> vector<32x256xf32>
    %c0_14 = arith.constant 0 : index
    %c0_15 = arith.constant 0 : index
    %22 = vector.load %arg9[%c0_14, %c0_15] : memref<3x256xf32, #tpu.memory_space<vmem>>, vector<1x256xf32>
    %23 = vector.broadcast %22 : vector<1x256xf32> to vector<32x256xf32>
    %24 = arith.mulf %21, %23 : vector<32x256xf32>
    %c240_i32 = arith.constant 240 : i32
    %25 = tpu.dynamic_rotate %20 by %c240_i32 dim 1 : vector<32x256xf32>, i32 -> vector<32x256xf32>
    %c2 = arith.constant 2 : index
    %c0_16 = arith.constant 0 : index
    %26 = vector.load %arg9[%c2, %c0_16] : memref<3x256xf32, #tpu.memory_space<vmem>>, vector<1x256xf32>
    %27 = vector.broadcast %26 : vector<1x256xf32> to vector<32x256xf32>
    %28 = arith.mulf %25, %27 : vector<32x256xf32>
    %29 = tpu.concatenate %24, %20, %28 in 0 : vector<32x256xf32>, vector<32x256xf32>, vector<32x256xf32> -> vector<96x256xf32>
    %c0_17 = arith.constant 0 : index
    %c0_18 = arith.constant 0 : index
    %30 = vector.load %arg7[%c0_17, %c0_18] : memref<32x96xf32, #tpu.memory_space<vmem>>, vector<32x96xf32>
    %cst_19 = arith.constant dense<0.000000e+00> : vector<32x256xf32>
    %31 = tpu.matmul %30, %29, %cst_19 {dimension_numbers = #tpu.dot_dimension_numbers<[1], [0], [0], [1], [0, 0, 1, 1], [], []>} : vector<32x96xf32>, vector<96x256xf32>, vector<32x256xf32> -> vector<32x256xf32>
    %c0_20 = arith.constant 0 : index
    %c0_21 = arith.constant 0 : index
    %32 = vector.load %arg8[%c0_20, %c0_21] : memref<32x1xf32, #tpu.memory_space<vmem>>, vector<32x1xf32>
    %33 = vector.broadcast %32 : vector<32x1xf32> to vector<32x256xf32>
    %34 = arith.addf %31, %33 : vector<32x256xf32>
    %35 = arith.negf %34 : vector<32x256xf32>
    %36 = math.exp %35 : vector<32x256xf32>
    %cst_22 = arith.constant 1.000000e+00 : f32
    %37 = vector.broadcast %cst_22 : f32 to vector<32x256xf32>
    %38 = arith.addf %37, %36 : vector<32x256xf32>
    %39 = arith.divf %37, %38 : vector<32x256xf32>
    %40 = arith.mulf %34, %39 : vector<32x256xf32>
    %c0_23 = arith.constant 0 : index
    %c0_24 = arith.constant 0 : index
    %41 = vector.load %arg10[%c0_23, %c0_24] : memref<64x32xf32, #tpu.memory_space<vmem>>, vector<64x32xf32>
    %cst_25 = arith.constant dense<0.000000e+00> : vector<64x256xf32>
    %42 = tpu.matmul %41, %40, %cst_25 {dimension_numbers = #tpu.dot_dimension_numbers<[1], [0], [0], [1], [0, 0, 1, 1], [], []>} : vector<64x32xf32>, vector<32x256xf32>, vector<64x256xf32> -> vector<64x256xf32>
    %43 = vector.extract_strided_slice %42 {offsets = [0, 0], sizes = [32, 256], strides = [1, 1]} : vector<64x256xf32> to vector<32x256xf32>
    %44 = vector.extract_strided_slice %42 {offsets = [32, 0], sizes = [32, 256], strides = [1, 1]} : vector<64x256xf32> to vector<32x256xf32>
    %45 = tpu.concatenate %43, %44 in 1 : vector<32x256xf32>, vector<32x256xf32> -> vector<32x512xf32>
    %c0_26 = arith.constant 0 : index
    %c0_27 = arith.constant 0 : index
    %46 = vector.load %arg11[%c0_26, %c0_27] : memref<512x256xf32, #tpu.memory_space<vmem>>, vector<512x256xf32>
    %cst_28 = arith.constant dense<0.000000e+00> : vector<32x256xf32>
    %47 = tpu.matmul %45, %46, %cst_28 {dimension_numbers = #tpu.dot_dimension_numbers<[1], [0], [0], [1], [0, 0, 1, 1], [], []>} : vector<32x512xf32>, vector<512x256xf32>, vector<32x256xf32> -> vector<32x256xf32>
    %c0_29 = arith.constant 0 : index
    %c0_30 = arith.constant 0 : index
    %48 = vector.load %arg12[%c0_29, %c0_30] : memref<32x256xf32, #tpu.memory_space<vmem>>, vector<32x256xf32>
    %49 = arith.addf %47, %48 : vector<32x256xf32>
    %50 = arith.negf %49 : vector<32x256xf32>
    %51 = math.exp %50 : vector<32x256xf32>
    %cst_31 = arith.constant 1.000000e+00 : f32
    %52 = vector.broadcast %cst_31 : f32 to vector<32x256xf32>
    %53 = arith.addf %52, %51 : vector<32x256xf32>
    %54 = arith.divf %52, %53 : vector<32x256xf32>
    %55 = arith.mulf %49, %54 : vector<32x256xf32>
    %c16_i32_32 = arith.constant 16 : i32
    %56 = tpu.dynamic_rotate %55 by %c16_i32_32 dim 1 : vector<32x256xf32>, i32 -> vector<32x256xf32>
    %c0_33 = arith.constant 0 : index
    %c0_34 = arith.constant 0 : index
    %57 = vector.load %arg15[%c0_33, %c0_34] : memref<3x256xf32, #tpu.memory_space<vmem>>, vector<1x256xf32>
    %58 = vector.broadcast %57 : vector<1x256xf32> to vector<32x256xf32>
    %59 = arith.mulf %56, %58 : vector<32x256xf32>
    %c240_i32_35 = arith.constant 240 : i32
    %60 = tpu.dynamic_rotate %55 by %c240_i32_35 dim 1 : vector<32x256xf32>, i32 -> vector<32x256xf32>
    %c2_36 = arith.constant 2 : index
    %c0_37 = arith.constant 0 : index
    %61 = vector.load %arg15[%c2_36, %c0_37] : memref<3x256xf32, #tpu.memory_space<vmem>>, vector<1x256xf32>
    %62 = vector.broadcast %61 : vector<1x256xf32> to vector<32x256xf32>
    %63 = arith.mulf %60, %62 : vector<32x256xf32>
    %64 = tpu.concatenate %59, %55, %63 in 0 : vector<32x256xf32>, vector<32x256xf32>, vector<32x256xf32> -> vector<96x256xf32>
    %c0_38 = arith.constant 0 : index
    %c0_39 = arith.constant 0 : index
    %65 = vector.load %arg13[%c0_38, %c0_39] : memref<32x96xf32, #tpu.memory_space<vmem>>, vector<32x96xf32>
    %cst_40 = arith.constant dense<0.000000e+00> : vector<32x256xf32>
    %66 = tpu.matmul %65, %64, %cst_40 {dimension_numbers = #tpu.dot_dimension_numbers<[1], [0], [0], [1], [0, 0, 1, 1], [], []>} : vector<32x96xf32>, vector<96x256xf32>, vector<32x256xf32> -> vector<32x256xf32>
    %c0_41 = arith.constant 0 : index
    %c0_42 = arith.constant 0 : index
    %67 = vector.load %arg14[%c0_41, %c0_42] : memref<32x1xf32, #tpu.memory_space<vmem>>, vector<32x1xf32>
    %68 = vector.broadcast %67 : vector<32x1xf32> to vector<32x256xf32>
    %69 = arith.addf %66, %68 : vector<32x256xf32>
    %70 = arith.negf %69 : vector<32x256xf32>
    %71 = math.exp %70 : vector<32x256xf32>
    %cst_43 = arith.constant 1.000000e+00 : f32
    %72 = vector.broadcast %cst_43 : f32 to vector<32x256xf32>
    %73 = arith.addf %72, %71 : vector<32x256xf32>
    %74 = arith.divf %72, %73 : vector<32x256xf32>
    %75 = arith.mulf %69, %74 : vector<32x256xf32>
    %c0_44 = arith.constant 0 : index
    %c0_45 = arith.constant 0 : index
    %76 = vector.load %arg16[%c0_44, %c0_45] : memref<128x32xf32, #tpu.memory_space<vmem>>, vector<128x32xf32>
    %cst_46 = arith.constant dense<0.000000e+00> : vector<128x256xf32>
    %77 = tpu.matmul %76, %75, %cst_46 {dimension_numbers = #tpu.dot_dimension_numbers<[1], [0], [0], [1], [0, 0, 1, 1], [], []>} : vector<128x32xf32>, vector<32x256xf32>, vector<128x256xf32> -> vector<128x256xf32>
    %78 = vector.extract_strided_slice %77 {offsets = [0, 0], sizes = [64, 256], strides = [1, 1]} : vector<128x256xf32> to vector<64x256xf32>
    %79 = vector.extract_strided_slice %77 {offsets = [64, 0], sizes = [64, 256], strides = [1, 1]} : vector<128x256xf32> to vector<64x256xf32>
    %80 = tpu.concatenate %78, %79 in 1 : vector<64x256xf32>, vector<64x256xf32> -> vector<64x512xf32>
    %c0_47 = arith.constant 0 : index
    %c0_48 = arith.constant 0 : index
    %81 = vector.load %arg17[%c0_47, %c0_48] : memref<512x256xf32, #tpu.memory_space<vmem>>, vector<512x256xf32>
    %cst_49 = arith.constant dense<0.000000e+00> : vector<64x256xf32>
    %82 = tpu.matmul %80, %81, %cst_49 {dimension_numbers = #tpu.dot_dimension_numbers<[1], [0], [0], [1], [0, 0, 1, 1], [], []>} : vector<64x512xf32>, vector<512x256xf32>, vector<64x256xf32> -> vector<64x256xf32>
    %c0_50 = arith.constant 0 : index
    %c0_51 = arith.constant 0 : index
    %83 = vector.load %arg18[%c0_50, %c0_51] : memref<64x256xf32, #tpu.memory_space<vmem>>, vector<64x256xf32>
    %84 = arith.addf %82, %83 : vector<64x256xf32>
    %85 = arith.negf %84 : vector<64x256xf32>
    %86 = math.exp %85 : vector<64x256xf32>
    %cst_52 = arith.constant 1.000000e+00 : f32
    %87 = vector.broadcast %cst_52 : f32 to vector<64x256xf32>
    %88 = arith.addf %87, %86 : vector<64x256xf32>
    %89 = arith.divf %87, %88 : vector<64x256xf32>
    %90 = arith.mulf %84, %89 : vector<64x256xf32>
    %c16_i32_53 = arith.constant 16 : i32
    %91 = tpu.dynamic_rotate %90 by %c16_i32_53 dim 1 : vector<64x256xf32>, i32 -> vector<64x256xf32>
    %c0_54 = arith.constant 0 : index
    %c0_55 = arith.constant 0 : index
    %92 = vector.load %arg21[%c0_54, %c0_55] : memref<3x256xf32, #tpu.memory_space<vmem>>, vector<1x256xf32>
    %93 = vector.broadcast %92 : vector<1x256xf32> to vector<64x256xf32>
    %94 = arith.mulf %91, %93 : vector<64x256xf32>
    %c240_i32_56 = arith.constant 240 : i32
    %95 = tpu.dynamic_rotate %90 by %c240_i32_56 dim 1 : vector<64x256xf32>, i32 -> vector<64x256xf32>
    %c2_57 = arith.constant 2 : index
    %c0_58 = arith.constant 0 : index
    %96 = vector.load %arg21[%c2_57, %c0_58] : memref<3x256xf32, #tpu.memory_space<vmem>>, vector<1x256xf32>
    %97 = vector.broadcast %96 : vector<1x256xf32> to vector<64x256xf32>
    %98 = arith.mulf %95, %97 : vector<64x256xf32>
    %99 = tpu.concatenate %94, %90, %98 in 0 : vector<64x256xf32>, vector<64x256xf32>, vector<64x256xf32> -> vector<192x256xf32>
    %c0_59 = arith.constant 0 : index
    %c0_60 = arith.constant 0 : index
    %100 = vector.load %arg19[%c0_59, %c0_60] : memref<64x192xf32, #tpu.memory_space<vmem>>, vector<64x192xf32>
    %cst_61 = arith.constant dense<0.000000e+00> : vector<64x256xf32>
    %101 = tpu.matmul %100, %99, %cst_61 {dimension_numbers = #tpu.dot_dimension_numbers<[1], [0], [0], [1], [0, 0, 1, 1], [], []>} : vector<64x192xf32>, vector<192x256xf32>, vector<64x256xf32> -> vector<64x256xf32>
    %c0_62 = arith.constant 0 : index
    %c0_63 = arith.constant 0 : index
    %102 = vector.load %arg22[%c0_62, %c0_63] : memref<256x128xf32, #tpu.memory_space<vmem>>, vector<256x128xf32>
    %cst_64 = arith.constant dense<0.000000e+00> : vector<64x128xf32>
    %103 = tpu.matmul %101, %102, %cst_64 {dimension_numbers = #tpu.dot_dimension_numbers<[1], [0], [0], [1], [0, 0, 1, 1], [], []>} : vector<64x256xf32>, vector<256x128xf32>, vector<64x128xf32> -> vector<64x128xf32>
    %c0_65 = arith.constant 0 : index
    %c0_66 = arith.constant 0 : index
    %104 = vector.load %arg20[%c0_65, %c0_66] : memref<64x1xf32, #tpu.memory_space<vmem>>, vector<64x1xf32>
    %105 = vector.broadcast %104 : vector<64x1xf32> to vector<64x128xf32>
    %106 = arith.addf %103, %105 : vector<64x128xf32>
    %107 = arith.negf %106 : vector<64x128xf32>
    %108 = math.exp %107 : vector<64x128xf32>
    %cst_67 = arith.constant 1.000000e+00 : f32
    %109 = vector.broadcast %cst_67 : f32 to vector<64x128xf32>
    %110 = arith.addf %109, %108 : vector<64x128xf32>
    %111 = arith.divf %109, %110 : vector<64x128xf32>
    %112 = arith.mulf %106, %111 : vector<64x128xf32>
    %c0_68 = arith.constant 0 : index
    %c0_69 = arith.constant 0 : index
    %113 = vector.load %arg23[%c0_68, %c0_69] : memref<128x64xf32, #tpu.memory_space<vmem>>, vector<128x64xf32>
    %cst_70 = arith.constant dense<0.000000e+00> : vector<128x128xf32>
    %114 = tpu.matmul %113, %112, %cst_70 {dimension_numbers = #tpu.dot_dimension_numbers<[1], [0], [0], [1], [0, 0, 1, 1], [], []>} : vector<128x64xf32>, vector<64x128xf32>, vector<128x128xf32> -> vector<128x128xf32>
    %115 = vector.extract_strided_slice %114 {offsets = [0, 0], sizes = [64, 128], strides = [1, 1]} : vector<128x128xf32> to vector<64x128xf32>
    %116 = vector.extract_strided_slice %114 {offsets = [64, 0], sizes = [64, 128], strides = [1, 1]} : vector<128x128xf32> to vector<64x128xf32>
    %117 = tpu.concatenate %115, %116 in 1 : vector<64x128xf32>, vector<64x128xf32> -> vector<64x256xf32>
    %c0_71 = arith.constant 0 : index
    %c0_72 = arith.constant 0 : index
    %118 = vector.load %arg24[%c0_71, %c0_72] : memref<256x128xf32, #tpu.memory_space<vmem>>, vector<256x128xf32>
    %cst_73 = arith.constant dense<0.000000e+00> : vector<64x128xf32>
    %119 = tpu.matmul %117, %118, %cst_73 {dimension_numbers = #tpu.dot_dimension_numbers<[1], [0], [0], [1], [0, 0, 1, 1], [], []>} : vector<64x256xf32>, vector<256x128xf32>, vector<64x128xf32> -> vector<64x128xf32>
    %c0_74 = arith.constant 0 : index
    %c0_75 = arith.constant 0 : index
    %120 = vector.load %arg25[%c0_74, %c0_75] : memref<64x128xf32, #tpu.memory_space<vmem>>, vector<64x128xf32>
    %121 = arith.addf %119, %120 : vector<64x128xf32>
    %122 = arith.negf %121 : vector<64x128xf32>
    %123 = math.exp %122 : vector<64x128xf32>
    %cst_76 = arith.constant 1.000000e+00 : f32
    %124 = vector.broadcast %cst_76 : f32 to vector<64x128xf32>
    %125 = arith.addf %124, %123 : vector<64x128xf32>
    %126 = arith.divf %124, %125 : vector<64x128xf32>
    %127 = arith.mulf %121, %126 : vector<64x128xf32>
    %c16_i32_77 = arith.constant 16 : i32
    %128 = tpu.dynamic_rotate %127 by %c16_i32_77 dim 1 : vector<64x128xf32>, i32 -> vector<64x128xf32>
    %c0_78 = arith.constant 0 : index
    %c0_79 = arith.constant 0 : index
    %129 = vector.load %arg28[%c0_78, %c0_79] : memref<3x128xf32, #tpu.memory_space<vmem>>, vector<1x128xf32>
    %130 = vector.broadcast %129 : vector<1x128xf32> to vector<64x128xf32>
    %131 = arith.mulf %128, %130 : vector<64x128xf32>
    %c112_i32 = arith.constant 112 : i32
    %132 = tpu.dynamic_rotate %127 by %c112_i32 dim 1 : vector<64x128xf32>, i32 -> vector<64x128xf32>
    %c2_80 = arith.constant 2 : index
    %c0_81 = arith.constant 0 : index
    %133 = vector.load %arg28[%c2_80, %c0_81] : memref<3x128xf32, #tpu.memory_space<vmem>>, vector<1x128xf32>
    %134 = vector.broadcast %133 : vector<1x128xf32> to vector<64x128xf32>
    %135 = arith.mulf %132, %134 : vector<64x128xf32>
    %136 = tpu.concatenate %131, %127, %135 in 0 : vector<64x128xf32>, vector<64x128xf32>, vector<64x128xf32> -> vector<192x128xf32>
    %c0_82 = arith.constant 0 : index
    %c0_83 = arith.constant 0 : index
    %137 = vector.load %arg26[%c0_82, %c0_83] : memref<64x192xf32, #tpu.memory_space<vmem>>, vector<64x192xf32>
    %cst_84 = arith.constant dense<0.000000e+00> : vector<64x128xf32>
    %138 = tpu.matmul %137, %136, %cst_84 {dimension_numbers = #tpu.dot_dimension_numbers<[1], [0], [0], [1], [0, 0, 1, 1], [], []>} : vector<64x192xf32>, vector<192x128xf32>, vector<64x128xf32> -> vector<64x128xf32>
    %c0_85 = arith.constant 0 : index
    %c0_86 = arith.constant 0 : index
    %139 = vector.load %arg27[%c0_85, %c0_86] : memref<64x1xf32, #tpu.memory_space<vmem>>, vector<64x1xf32>
    %140 = vector.broadcast %139 : vector<64x1xf32> to vector<64x128xf32>
    %141 = arith.addf %138, %140 : vector<64x128xf32>
    %142 = arith.negf %141 : vector<64x128xf32>
    %143 = math.exp %142 : vector<64x128xf32>
    %cst_87 = arith.constant 1.000000e+00 : f32
    %144 = vector.broadcast %cst_87 : f32 to vector<64x128xf32>
    %145 = arith.addf %144, %143 : vector<64x128xf32>
    %146 = arith.divf %144, %145 : vector<64x128xf32>
    %147 = arith.mulf %141, %146 : vector<64x128xf32>
    %c0_88 = arith.constant 0 : index
    %c0_89 = arith.constant 0 : index
    %148 = vector.load %arg31[%c0_88, %c0_89] : memref<128x2xf32, #tpu.memory_space<vmem>>, vector<128x2xf32>
    %cst_90 = arith.constant dense<0.000000e+00> : vector<64x2xf32>
    %149 = tpu.matmul %147, %148, %cst_90 {dimension_numbers = #tpu.dot_dimension_numbers<[1], [0], [0], [1], [0, 0, 1, 1], [], []>} : vector<64x128xf32>, vector<128x2xf32>, vector<64x2xf32> -> vector<64x2xf32>
    %c0_91 = arith.constant 0 : index
    %c0_92 = arith.constant 0 : index
    %150 = vector.load %arg29[%c0_91, %c0_92] : memref<6x64xf32, #tpu.memory_space<vmem>>, vector<6x64xf32>
    %cst_93 = arith.constant dense<0.000000e+00> : vector<6x2xf32>
    %151 = tpu.matmul %150, %149, %cst_93 {dimension_numbers = #tpu.dot_dimension_numbers<[1], [0], [0], [1], [0, 0, 1, 1], [], []>} : vector<6x64xf32>, vector<64x2xf32>, vector<6x2xf32> -> vector<6x2xf32>
    %c0_94 = arith.constant 0 : index
    %c0_95 = arith.constant 0 : index
    %152 = vector.load %arg30[%c0_94, %c0_95] : memref<6x1xf32, #tpu.memory_space<vmem>>, vector<6x1xf32>
    %153 = vector.broadcast %152 : vector<6x1xf32> to vector<6x2xf32>
    %154 = arith.addf %151, %153 : vector<6x2xf32>
    %155 = tpu.iota {dimensions = array<i32: 0>} : vector<6x2xi32>
    %c0_i32 = arith.constant 0 : i32
    %156 = vector.broadcast %c0_i32 : i32 to vector<6x2xi32>
    %157 = arith.cmpi eq, %155, %156 : vector<6x2xi32>
    %158 = arith.negf %154 : vector<6x2xf32>
    %159 = math.exp %158 : vector<6x2xf32>
    %cst_96 = arith.constant 1.000000e+00 : f32
    %160 = vector.broadcast %cst_96 : f32 to vector<6x2xf32>
    %161 = arith.addf %160, %159 : vector<6x2xf32>
    %162 = arith.divf %160, %161 : vector<6x2xf32>
    %163 = arith.select %157, %162, %154 : vector<6x2xi1>, vector<6x2xf32>
    %c0_97 = arith.constant 0 : index
    %c0_98 = arith.constant 0 : index
    %c0_99 = arith.constant 0 : index
    %164 = vector.load %arg32[%c0_97, %c0_98, %c0_99] : memref<1x6x2xf32, #tpu.memory_space<vmem>>, vector<1x6x2xf32>
    %165 = vector.shape_cast %164 : vector<1x6x2xf32> to vector<6x2xf32>
    %166 = vector.shape_cast %163 : vector<6x2xf32> to vector<1x6x2xf32>
    tpu.vector_store %arg32[%c0_97, %c0_98, %c0_99], %166 {strides = array<i32>} : memref<1x6x2xf32, #tpu.memory_space<vmem>>, vector<1x6x2xf32>,
    return
  }
  func.func @transform_0(%arg0: i32) -> (i32, i32, i32) {
    %c0_i32 = arith.constant 0 : i32
    %c0_i32_0 = arith.constant 0 : i32
    %c0_i32_1 = arith.constant 0 : i32
    return %arg0, %c0_i32, %c0_i32_0 : i32, i32, i32
  }
  func.func @transform_1(%arg0: i32) -> (i32, i32) {
    %c0_i32 = arith.constant 0 : i32
    %c0_i32_0 = arith.constant 0 : i32
    %c0_i32_1 = arith.constant 0 : i32
    return %c0_i32, %c0_i32_0 : i32, i32
  }
  func.func @transform_2(%arg0: i32) -> (i32, i32) {
    %c0_i32 = arith.constant 0 : i32
    %c0_i32_0 = arith.constant 0 : i32
    %c0_i32_1 = arith.constant 0 : i32
    return %c0_i32, %c0_i32_0 : i32, i32
  }
  func.func @transform_3(%arg0: i32) -> (i32, i32) {
    %c0_i32 = arith.constant 0 : i32
    %c0_i32_0 = arith.constant 0 : i32
    %c0_i32_1 = arith.constant 0 : i32
    return %c0_i32, %c0_i32_0 : i32, i32
  }
  func.func @transform_4(%arg0: i32) -> (i32, i32) {
    %c0_i32 = arith.constant 0 : i32
    %c0_i32_0 = arith.constant 0 : i32
    %c0_i32_1 = arith.constant 0 : i32
    return %c0_i32, %c0_i32_0 : i32, i32
  }
  func.func @transform_5(%arg0: i32) -> (i32, i32) {
    %c0_i32 = arith.constant 0 : i32
    %c0_i32_0 = arith.constant 0 : i32
    %c0_i32_1 = arith.constant 0 : i32
    return %c0_i32, %c0_i32_0 : i32, i32
  }
  func.func @transform_6(%arg0: i32) -> (i32, i32) {
    %c0_i32 = arith.constant 0 : i32
    %c0_i32_0 = arith.constant 0 : i32
    %c0_i32_1 = arith.constant 0 : i32
    return %c0_i32, %c0_i32_0 : i32, i32
  }
  func.func @transform_7(%arg0: i32) -> (i32, i32) {
    %c0_i32 = arith.constant 0 : i32
    %c0_i32_0 = arith.constant 0 : i32
    %c0_i32_1 = arith.constant 0 : i32
    return %c0_i32, %c0_i32_0 : i32, i32
  }
  func.func @transform_8(%arg0: i32) -> (i32, i32) {
    %c0_i32 = arith.constant 0 : i32
    %c0_i32_0 = arith.constant 0 : i32
    %c0_i32_1 = arith.constant 0 : i32
    return %c0_i32, %c0_i32_0 : i32, i32
  }
  func.func @transform_9(%arg0: i32) -> (i32, i32) {
    %c0_i32 = arith.constant 0 : i32
    %c0_i32_0 = arith.constant 0 : i32
    %c0_i32_1 = arith.constant 0 : i32
    return %c0_i32, %c0_i32_0 : i32, i32
  }
  func.func @transform_10(%arg0: i32) -> (i32, i32) {
    %c0_i32 = arith.constant 0 : i32
    %c0_i32_0 = arith.constant 0 : i32
    %c0_i32_1 = arith.constant 0 : i32
    return %c0_i32, %c0_i32_0 : i32, i32
  }
  func.func @transform_11(%arg0: i32) -> (i32, i32) {
    %c0_i32 = arith.constant 0 : i32
    %c0_i32_0 = arith.constant 0 : i32
    %c0_i32_1 = arith.constant 0 : i32
    return %c0_i32, %c0_i32_0 : i32, i32
  }
  func.func @transform_12(%arg0: i32) -> (i32, i32) {
    %c0_i32 = arith.constant 0 : i32
    %c0_i32_0 = arith.constant 0 : i32
    %c0_i32_1 = arith.constant 0 : i32
    return %c0_i32, %c0_i32_0 : i32, i32
  }
  func.func @transform_13(%arg0: i32) -> (i32, i32) {
    %c0_i32 = arith.constant 0 : i32
    %c0_i32_0 = arith.constant 0 : i32
    %c0_i32_1 = arith.constant 0 : i32
    return %c0_i32, %c0_i32_0 : i32, i32
  }
  func.func @transform_14(%arg0: i32) -> (i32, i32) {
    %c0_i32 = arith.constant 0 : i32
    %c0_i32_0 = arith.constant 0 : i32
    %c0_i32_1 = arith.constant 0 : i32
    return %c0_i32, %c0_i32_0 : i32, i32
  }
  func.func @transform_15(%arg0: i32) -> (i32, i32) {
    %c0_i32 = arith.constant 0 : i32
    %c0_i32_0 = arith.constant 0 : i32
    %c0_i32_1 = arith.constant 0 : i32
    return %c0_i32, %c0_i32_0 : i32, i32
  }
  func.func @transform_16(%arg0: i32) -> (i32, i32) {
    %c0_i32 = arith.constant 0 : i32
    %c0_i32_0 = arith.constant 0 : i32
    %c0_i32_1 = arith.constant 0 : i32
    return %c0_i32, %c0_i32_0 : i32, i32
  }
  func.func @transform_17(%arg0: i32) -> (i32, i32) {
    %c0_i32 = arith.constant 0 : i32
    %c0_i32_0 = arith.constant 0 : i32
    %c0_i32_1 = arith.constant 0 : i32
    return %c0_i32, %c0_i32_0 : i32, i32
  }
  func.func @transform_18(%arg0: i32) -> (i32, i32) {
    %c0_i32 = arith.constant 0 : i32
    %c0_i32_0 = arith.constant 0 : i32
    %c0_i32_1 = arith.constant 0 : i32
    return %c0_i32, %c0_i32_0 : i32, i32
  }
  func.func @transform_19(%arg0: i32) -> (i32, i32) {
    %c0_i32 = arith.constant 0 : i32
    %c0_i32_0 = arith.constant 0 : i32
    %c0_i32_1 = arith.constant 0 : i32
    return %c0_i32, %c0_i32_0 : i32, i32
  }
  func.func @transform_20(%arg0: i32) -> (i32, i32) {
    %c0_i32 = arith.constant 0 : i32
    %c0_i32_0 = arith.constant 0 : i32
    %c0_i32_1 = arith.constant 0 : i32
    return %c0_i32, %c0_i32_0 : i32, i32
  }
  func.func @transform_21(%arg0: i32) -> (i32, i32) {
    %c0_i32 = arith.constant 0 : i32
    %c0_i32_0 = arith.constant 0 : i32
    %c0_i32_1 = arith.constant 0 : i32
    return %c0_i32, %c0_i32_0 : i32, i32
  }
  func.func @transform_22(%arg0: i32) -> (i32, i32) {
    %c0_i32 = arith.constant 0 : i32
    %c0_i32_0 = arith.constant 0 : i32
    %c0_i32_1 = arith.constant 0 : i32
    return %c0_i32, %c0_i32_0 : i32, i32
  }
  func.func @transform_23(%arg0: i32) -> (i32, i32) {
    %c0_i32 = arith.constant 0 : i32
    %c0_i32_0 = arith.constant 0 : i32
    %c0_i32_1 = arith.constant 0 : i32
    return %c0_i32, %c0_i32_0 : i32, i32
  }
  func.func @transform_24(%arg0: i32) -> (i32, i32) {
    %c0_i32 = arith.constant 0 : i32
    %c0_i32_0 = arith.constant 0 : i32
    %c0_i32_1 = arith.constant 0 : i32
    return %c0_i32, %c0_i32_0 : i32, i32
  }
  func.func @transform_25(%arg0: i32) -> (i32, i32) {
    %c0_i32 = arith.constant 0 : i32
    %c0_i32_0 = arith.constant 0 : i32
    %c0_i32_1 = arith.constant 0 : i32
    return %c0_i32, %c0_i32_0 : i32, i32
  }
  func.func @transform_26(%arg0: i32) -> (i32, i32) {
    %c0_i32 = arith.constant 0 : i32
    %c0_i32_0 = arith.constant 0 : i32
    %c0_i32_1 = arith.constant 0 : i32
    return %c0_i32, %c0_i32_0 : i32, i32
  }
  func.func @transform_27(%arg0: i32) -> (i32, i32) {
    %c0_i32 = arith.constant 0 : i32
    %c0_i32_0 = arith.constant 0 : i32
    %c0_i32_1 = arith.constant 0 : i32
    return %c0_i32, %c0_i32_0 : i32, i32
  }
  func.func @transform_28(%arg0: i32) -> (i32, i32) {
    %c0_i32 = arith.constant 0 : i32
    %c0_i32_0 = arith.constant 0 : i32
    %c0_i32_1 = arith.constant 0 : i32
    return %c0_i32, %c0_i32_0 : i32, i32
  }
  func.func @transform_29(%arg0: i32) -> (i32, i32) {
    %c0_i32 = arith.constant 0 : i32
    %c0_i32_0 = arith.constant 0 : i32
    %c0_i32_1 = arith.constant 0 : i32
    return %c0_i32, %c0_i32_0 : i32, i32
  }
  func.func @transform_30(%arg0: i32) -> (i32, i32) {
    %c0_i32 = arith.constant 0 : i32
    %c0_i32_0 = arith.constant 0 : i32
    %c0_i32_1 = arith.constant 0 : i32
    return %c0_i32, %c0_i32_0 : i32, i32
  }
  func.func @transform_31(%arg0: i32) -> (i32, i32, i32) {
    %c0_i32 = arith.constant 0 : i32
    %c0_i32_0 = arith.constant 0 : i32
    %c0_i32_1 = arith.constant 0 : i32
    return %arg0, %c0_i32, %c0_i32_0 : i32, i32, i32
  }
}

</mosaic_0001>

<bundles_post_ra>
// kernel: tile.154
= control target key start
LH: loop header
LB: loop body
LE: loop exit
PB: predicated region body
PF: predicated region fallthrough
CT: control target
= control target key end

     0   :  { %s22_s0 = inlined_call_operand.vmem [shape: f32[64], index: 0, kind: input, shape index: {}]   ;;  %s23_s1 = inlined_call_operand.vmem [shape: f32[2,64], index: 1, kind: output, shape index: {}]  }
   0x1   :  { %v4_v0 = vld [vmem:[%s22_s0] ss:$0 sm:$0xff] }
   0x2   :  { %5 = vst [vmem:[%s23_s1] sm:$0x3] %v4_v0 }

// kernel: mul.192
= control target key start
LH: loop header
LB: loop body
LE: loop exit
PB: predicated region body
PF: predicated region fallthrough
CT: control target
= control target key end

     0   :  { %vm7_vm0 = vcmask 523264   ;;  %vm13_vm1 = vcmask 1048064   ;;  %s39_s0 = inlined_call_operand.vmem [shape: f32[2,64], index: 0, kind: input, shape index: {}]   ;;  %s40_s1 = inlined_call_operand.vmem [shape: f32[128], index: 1, kind: output, shape index: {}]  }
   0x1   :  { %v4_v0 = vld [vmem:[%s39_s0] sm:$0x3]  ;;  %s22_s0 = smov 64  }
   0x2   :  { %5 = vst [vmem:[#allocation1] sm:$0x3] %v4_v0 }
   0x9   :  { %v10_v1 = vld [vmem:[#allocation1 + $0x1] sm:$0x1]   ;;  %v6_v2 = vld [vmem:[#allocation1] sm:$0x1]  }
   0xa   :  { %11 = vrot.lane.b32.xlu0 %v10_v1, %s22_s0  ;;  %8 = vst.msk [vmem:[#allocation0] sm:$0x1] %vm7_vm0, %v6_v2  }
  0x7c   :  { %v12_v3 = vpop.permute.xlu0 %11  }
  0x7d   :  { %14 = vst.msk [vmem:[#allocation0] sm:$0x1] %vm13_vm1, %v12_v3  }
  0x84   :  { %v17_v4 = vld [vmem:[#allocation0] sm:$0x1] }
  0x85   :  { %20 = vst [vmem:[%s40_s1] sm:$0x1] %v17_v4 }

// kernel: tile.114
= control target key start
LH: loop header
LB: loop body
LE: loop exit
PB: predicated region body
PF: predicated region fallthrough
CT: control target
= control target key end

     0   :  { %s22_s0 = inlined_call_operand.vmem [shape: f32[32], index: 0, kind: input, shape index: {}]   ;;  %s23_s1 = inlined_call_operand.vmem [shape: f32[2,32], index: 1, kind: output, shape index: {}]  }
   0x1   :  { %v4_v0 = vld [vmem:[%s22_s0] ss:$0 sm:$0xff] }
   0x2   :  { %5 = vst [vmem:[%s23_s1] sm:$0x3] %v4_v0 }

// kernel: mul.152
= control target key start
LH: loop header
LB: loop body
LE: loop exit
PB: predicated region body
PF: predicated region fallthrough
CT: control target
= control target key end

     0   :  { %vm7_vm0 = vcmask 261120   ;;  %vm13_vm1 = vcmask 523520   ;;  %s39_s0 = inlined_call_operand.vmem [shape: f32[2,32], index: 0, kind: input, shape index: {}]   ;;  %s40_s1 = inlined_call_operand.vmem [shape: f32[64], index: 1, kind: output, shape index: {}]  }
   0x1   :  { %v4_v0 = vld [vmem:[%s39_s0] sm:$0x3]  ;;  %s22_s0 = smov 32  }
   0x2   :  { %5 = vst [vmem:[#allocation1] sm:$0x3] %v4_v0 }
   0x9   :  { %v10_v1 = vld [vmem:[#allocation1 + $0x1] sm:$0x1]   ;;  %v6_v2 = vld [vmem:[#allocation1] sm:$0x1]  }
   0xa   :  { %11 = vrot.lane.b32.xlu0 %v10_v1, %s22_s0  ;;  %8 = vst.msk [vmem:[#allocation0] sm:$0x1] %vm7_vm0, %v6_v2  }
  0x7c   :  { %v12_v3 = vpop.permute.xlu0 %11  }
  0x7d   :  { %14 = vst.msk [vmem:[#allocation0] sm:$0x1] %vm13_vm1, %v12_v3  }
  0x84   :  { %v17_v4 = vld [vmem:[#allocation0] sm:$0x1] }
  0x85   :  { %20 = vst [vmem:[%s40_s1] sm:$0x1] %v17_v4 }

// kernel: tile.121
= control target key start
LH: loop header
LB: loop body
LE: loop exit
PB: predicated region body
PF: predicated region fallthrough
CT: control target
= control target key end

     0   :  { %s67_s10 = smov 112   ;;  %s68_s11 = smov 80   ;;  %vm3_vm0 = vcmask 130048   ;;  %vm9_vm1 = vcmask 1048448   ;;  %vm15_vm2 = vcmask 917248   ;;  %vm21_vm3 = vcmask 786048   ;;  %s111_s0 = inlined_call_operand.vmem [shape: f32[8,16], index: 0, kind: input, shape index: {}]   ;;  %s112_s1 = inlined_call_operand.vmem [shape: f32[128], index: 1, kind: output, shape index: {}]  }
   0x1   :  { %v53_v0 = vld [vmem:[%s111_s0 + $0x7] sm:$0x1]   ;;  %v55_v1 = vld [vmem:[%s111_s0 + $0x5] sm:$0x1]   ;;  %v57_v2 = vld [vmem:[%s111_s0 + $0x3] sm:$0x1]  }
   0x2   :  { %7 = vrot.lane.b32.xlu0 %v53_v0, %s67_s10  ;;  %19 = vrot.lane.b32.xlu1 %v55_v1, %s68_s11  ;;  %s69_s14 = smov 48   ;;  %v54_v3 = vld [vmem:[%s111_s0 + $0x6] sm:$0x1]   ;;  %v56_v4 = vld [vmem:[%s111_s0 + $0x4] sm:$0x1]   ;;  %s70_s21 = smov 96  }
   0x3   :  { %31 = vrot.lane.b32.xlu2 %v57_v2, %s69_s14  ;;  %v58_v5 = vld [vmem:[%s111_s0 + $0x2] sm:$0x1]   ;;  %s71_s22 = smov 64   ;;  %s72_s23 = smov 32   ;;  %v59_v6 = vld [vmem:[%s111_s0 + $0x1] sm:$0x1]  }
   0x4   :  { %s73_s26 = smov 16   ;;  %v2_v7 = vld [vmem:[%s111_s0] sm:$0x1]   ;;  %vm27_vm4 = vcmask 654848   ;;  %vm33_vm5 = vcmask 523648   ;;  %vm39_vm6 = vcmask 392448  }
   0x5   :  { %4 = vst.msk [vmem:[#allocation0] sm:$0x1] %vm3_vm0, %v2_v7   ;;  %vm45_vm7 = vcmask 261248  }
   0xa   :  { %13 = vrot.lane.b32.xlu0 %v54_v3, %s70_s21  ;;  %25 = vrot.lane.b32.xlu1 %v56_v4, %s71_s22 }
   0xb   :  { %37 = vrot.lane.b32.xlu2 %v58_v5, %s72_s23 }
  0x12   :  { %43 = vrot.lane.b32.xlu0 %v59_v6, %s73_s26 }
  0x5d   :  { %v32_v8 = vpop.permute.xlu2 %31  }
  0x65   :  { %v38_v9 = vpop.permute.xlu2 %37  }
  0x74   :  { %v8_v10 = vpop.permute.xlu0 %7   ;;  %v20_v11 = vpop.permute.xlu1 %19  }
  0x75   :  { %10 = vst.msk [vmem:[#allocation0] sm:$0x1] %vm9_vm1, %v8_v10  }
  0x7c   :  { %v14_v12 = vpop.permute.xlu0 %13   ;;  %v26_v13 = vpop.permute.xlu1 %25  }
  0x7d   :  { %16 = vst.msk [vmem:[#allocation0] sm:$0x1] %vm15_vm2, %v14_v12  }
  0x7e   :  { %22 = vst.msk [vmem:[#allocation0] sm:$0x1] %vm21_vm3, %v20_v11  }
  0x7f   :  { %28 = vst.msk [vmem:[#allocation0] sm:$0x1] %vm27_vm4, %v26_v13  }
  0x80   :  { %34 = vst.msk [vmem:[#allocation0] sm:$0x1] %vm33_vm5, %v32_v8  }
  0x81   :  { %40 = vst.msk [vmem:[#allocation0] sm:$0x1] %vm39_vm6, %v38_v9  }
  0x84   :  { %v44_v14 = vpop.permute.xlu0 %43  }
  0x85   :  { %46 = vst.msk [vmem:[#allocation0] sm:$0x1] %vm45_vm7, %v44_v14  }
  0x8c   :  { %v49_v15 = vld [vmem:[#allocation0] sm:$0x1] }
  0x8d   :  { %52 = vst [vmem:[%s112_s1] sm:$0x1] %v49_v15 }

// kernel: tile.122
= control target key start
LH: loop header
LB: loop body
LE: loop exit
PB: predicated region body
PF: predicated region fallthrough
CT: control target
= control target key end

     0   :  { %s22_s0 = inlined_call_operand.vmem [shape: f32[128], index: 0, kind: input, shape index: {}]   ;;  %s23_s1 = inlined_call_operand.vmem [shape: f32[2,128], index: 1, kind: output, shape index: {}]  }
   0x1   :  { %v4_v0 = vld [vmem:[%s22_s0] ss:$0 sm:$0xff] }
   0x2   :  { %5 = vst [vmem:[%s23_s1] sm:$0x3] %v4_v0 }

// kernel: tile.181
= control target key start
LH: loop header
LB: loop body
LE: loop exit
PB: predicated region body
PF: predicated region fallthrough
CT: control target
= control target key end

     0   :  { %s37_s8 = smov 16   ;;  %s38_s9 = smov 32   ;;  %vm7_vm0 = vcmask 130048   ;;  %vm13_vm1 = vcmask 523648   ;;  %vm19_vm2 = vcmask 392448   ;;  %vm25_vm3 = vcmask 261248   ;;  %s55_s0 = inlined_call_operand.vmem [shape: f32[4,16], index: 0, kind: input, shape index: {}]   ;;  %s56_s1 = inlined_call_operand.vmem [shape: f32[64], index: 1, kind: output, shape index: {}]  }
   0x1   :  { %v4_v0 = vld [vmem:[%s55_s0] sm:$0xf]  ;;  %s36_s0 = smov 48  }
   0x2   :  { %5 = vst [vmem:[#allocation1] sm:$0xf] %v4_v0 }
   0x9   :  { %v10_v1 = vld [vmem:[#allocation1 + $0x3] sm:$0x1]   ;;  %v22_v2 = vld [vmem:[#allocation1 + $0x1] sm:$0x1]   ;;  %v16_v3 = vld [vmem:[#allocation1 + $0x2] sm:$0x1]  }
   0xa   :  { %11 = vrot.lane.b32.xlu0 %v10_v1, %s36_s0  ;;  %23 = vrot.lane.b32.xlu1 %v22_v2, %s37_s8  ;;  %v6_v4 = vld [vmem:[#allocation1] sm:$0x1]  }
   0xb   :  { %8 = vst.msk [vmem:[#allocation0] sm:$0x1] %vm7_vm0, %v6_v4  }
  0x12   :  { %17 = vrot.lane.b32.xlu0 %v16_v3, %s38_s9 }
  0x7c   :  { %v12_v5 = vpop.permute.xlu0 %11   ;;  %v24_v6 = vpop.permute.xlu1 %23  }
  0x7d   :  { %14 = vst.msk [vmem:[#allocation0] sm:$0x1] %vm13_vm1, %v12_v5  }
  0x84   :  { %v18_v7 = vpop.permute.xlu0 %17  }
  0x85   :  { %20 = vst.msk [vmem:[#allocation0] sm:$0x1] %vm19_vm2, %v18_v7  }
  0x86   :  { %26 = vst.msk [vmem:[#allocation0] sm:$0x1] %vm25_vm3, %v24_v6  }
  0x8d   :  { %v29_v8 = vld [vmem:[#allocation0] sm:$0x1] }
  0x8e   :  { %32 = vst [vmem:[%s56_s1] sm:$0x1] %v29_v8 }

// kernel: tile.189
= control target key start
LH: loop header
LB: loop body
LE: loop exit
PB: predicated region body
PF: predicated region fallthrough
CT: control target
= control target key end

     0   :  { %vm7_vm0 = vcmask 523264   ;;  %vm13_vm1 = vcmask 1048064   ;;  %s39_s0 = inlined_call_operand.vmem [shape: f32[2,64], index: 0, kind: input, shape index: {}]   ;;  %s40_s1 = inlined_call_operand.vmem [shape: f32[1,128], index: 1, kind: output, shape index: {}]  }
   0x1   :  { %v4_v0 = vld [vmem:[%s39_s0] sm:$0x3]  ;;  %s22_s0 = smov 64  }
   0x2   :  { %5 = vst [vmem:[#allocation1] sm:$0x3] %v4_v0 }
   0x9   :  { %v10_v1 = vld [vmem:[#allocation1 + $0x1] sm:$0x1]   ;;  %v6_v2 = vld [vmem:[#allocation1] sm:$0x1]  }
   0xa   :  { %11 = vrot.lane.b32.xlu0 %v10_v1, %s22_s0  ;;  %8 = vst.msk [vmem:[#allocation0] sm:$0x1] %vm7_vm0, %v6_v2  }
  0x7c   :  { %v12_v3 = vpop.permute.xlu0 %11  }
  0x7d   :  { %14 = vst.msk [vmem:[#allocation0] sm:$0x1] %vm13_vm1, %v12_v3  }
  0x84   :  { %v17_v4 = vld [vmem:[#allocation0] sm:$0x1] }
  0x85   :  { %20 = vst [vmem:[%s40_s1] sm:$0x1] %v17_v4 }

// kernel: _lambda_.1
= control target key start
LH: loop header
LB: loop body
LE: loop exit
PB: predicated region body
PF: predicated region fallthrough
CT: control target
= control target key end

     0   :  { %s5229_s6 = smov 1   ;;  %s5230_s10 = smov 2   ;;  %vm172_vm0 = vcmask 1043456   ;;  %vm147_vm1 = vcmask 31744   ;;  %s7649_s0 = inlined_call_operand.smem [shape: u32[32], index: -1, kind: input, shape index: {}] }
   0x1   :  { %s1_s5 = sld [smem:[%s7649_s0]]   ;;  %s5231_s14 = smov 3  }
   0x2   :  { %s4668_s9 = sld [smem:[%s7649_s0 + %s5229_s6]]   ;;  %s5232_s18 = smov 4  }
   0x3   :  { %s4669_s13 = sld [smem:[%s7649_s0 + %s5230_s10]]   ;;  %s5233_s22 = smov 5  }
   0x4   :  { %s4670_s17 = sld [smem:[%s7649_s0 + %s5231_s14]]   ;;  %s5234_s26 = smov 112  }
   0x5   :  { %s5295_s21 = sld [smem:[%s7649_s0 + %s5232_s18]]   ;;  %s5235_s27 = smov 16  }
   0x6   :  { %s5443_s25 = sld [smem:[%s7649_s0 + %s5233_s22]]   ;;  %s5236_s28 = smov 8  }
   0x7   :  { %v130_v0 = vld [vmem:[%s1_s5] sm:$0xff]  ;;  %s5550_s1 = sld [smem:[%s7649_s0 + %s5236_s28]]   ;;  %s5237_s2 = smov 7  }
   0x8   :  { %v131_v1 = vld [vmem:[%s4668_s9] sm:$0xff]  ;;  %s5555_s5 = sld [smem:[%s7649_s0 + %s5237_s2]]   ;;  %s5239_s6 = smov 6  }
   0x9   :  { %v132_v2 = vmul.f32 %v131_v1, %v130_v0  ;;  %v133_v3 = vld [vmem:[%s4669_s13] sm:$0xff]  ;;  %s5602_s9 = sld [smem:[%s7649_s0 + %s5239_s6]]   ;;  %s5240_s10 = smov 9  }
   0xa   :  { %v135_v5 = vld [vmem:[%s4670_s17] sm:$0xff]  ;;  %v136_v9 = vld [vmem:[%s4670_s17 + $0x8] sm:$0xff]  ;;  %v137_v11 = vld [vmem:[%s4670_s17 + $0x10] sm:$0xff]  ;;  %s5796_s13 = sld [smem:[%s7649_s0 + %s5240_s10]]   ;;  %s5241_s14 = smov 10  }
   0xb   :  { %v134_v4 = vadd.f32 %v133_v3, %v132_v2  ;;  %v139_v8 = vld [vmem:[%s4670_s17 + $0x20] sm:$0xff]  ;;  %v5282_v10 = vld [vmem:[%s4670_s17 + $0x28] sm:$0xff]  ;;  %v5288_v12 = vld [vmem:[%s4670_s17 + $0x30] sm:$0xff]  ;;  %s5242_s18 = smov 11   ;;  %s5243_s22 = smov 13  }
   0xc   :  { %v138_v13 = vld [vmem:[%s4670_s17 + $0x18] sm:$0xff]  ;;  %v289_v15 = vld [vmem:[%s5295_s21 + $0xf0] sm:$0xff]  ;;  %v287_v18 = vld [vmem:[%s5295_s21 + $0xe0] sm:$0xff]  ;;  %s5244_s28 = smov 14   ;;  %s5245_s2 = smov 12  }
   0xd   :  { %144 = vst [vmem:[#allocation1] ss:$2 sm:$0xff] %v134_v4  ;;  %v5299_v14 = vld [vmem:[%s4670_s17 + $0x38] sm:$0xff]  ;;  %v321_v16 = vld [vmem:[%s5295_s21 + $0x1f0] sm:$0xff]  ;;  %v319_v19 = vld [vmem:[%s5295_s21 + $0x1e0] sm:$0xff]  ;;  %s5874_s17 = sld [smem:[%s7649_s0 + %s5241_s14]]   ;;  %s5246_s6 = smov 15  }
   0xe   :  { %v290_v17 = vld [vmem:[%s5295_s21 + $0xf8] sm:$0xff]  ;;  %424 = vmatpush.msra.mxu3 %v321_v16  ;;  %v288_v20 = vld [vmem:[%s5295_s21 + $0xe8] sm:$0xff]  ;;  %v285_v22 = vld [vmem:[%s5295_s21 + $0xd0] sm:$0xff]  ;;  %s6458_s12 = sld [smem:[%s7649_s0 + %s5235_s27]]   ;;  %s5259_s3 = smov 30  }
   0xf   :  { %v322_v21 = vld [vmem:[%s5295_s21 + $0x1f8] sm:$0xff]  ;;  %v317_v23 = vld [vmem:[%s5295_s21 + $0x1d0] sm:$0xff]  ;;  %v320_v25 = vld [vmem:[%s5295_s21 + $0x1e8] sm:$0xff]  ;;  %s5260_s7 = smov 28   ;;  %s5261_s11 = smov 31  }
  0x10   :  { %425 = vmatpush.msra.mxu3 %v319_v19  ;;  %v286_v24 = vld [vmem:[%s5295_s21 + $0xd8] sm:$0xff]  ;;  %v283_v26 = vld [vmem:[%s5295_s21 + $0xc0] sm:$0xff]  ;;  %v284_v28 = vld [vmem:[%s5295_s21 + $0xc8] sm:$0xff]  ;;  %s4695_s10 = sld [smem:[%s7649_s0 + %s5260_s7]]  }
  0x11   :  { %v315_v27 = vld [vmem:[%s5295_s21 + $0x1c0] sm:$0xff]  ;;  %v318_v29 = vld [vmem:[%s5295_s21 + $0x1d8] sm:$0xff]  ;;  %v281_v30 = vld [vmem:[%s5295_s21 + $0xb0] sm:$0xff]  ;;  %s4698_s14 = sld [smem:[%s7649_s0 + %s5261_s11]]  }
  0x12   :  { %426 = vmatpush.msra.mxu3 %v317_v23  ;;  %v313_v31 = vld [vmem:[%s5295_s21 + $0x1b0] sm:$0xff]  ;;  %v282_v32 = vld [vmem:[%s5295_s21 + $0xb8] sm:$0xff]  ;;  %v316_v33 = vld [vmem:[%s5295_s21 + $0x1c8] sm:$0xff] }
  0x13   :  { %v279_v34 = vld [vmem:[%s5295_s21 + $0xa0] sm:$0xff]  ;;  %v280_v36 = vld [vmem:[%s5295_s21 + $0xa8] sm:$0xff]  ;;  %v314_v37 = vld [vmem:[%s5295_s21 + $0x1b8] sm:$0xff] }
  0x14   :  { %v145_v6 = vld.sshfl [vmem:[#allocation1] sm:$0xff pattern:$0x75316420]  ;;  %v146_v7 = vld.sshfl [vmem:[#allocation1 + $0x8] sm:$0xff pattern:$0x75316420]  ;;  %427 = vmatpush.msra.mxu3 %v315_v27 }
  0x15   :  { %4699 = vmatpush.msk.msra.mxu0 %vm172_vm0, %v145_v6  ;;  %4708 = vmatpush.msk.msra.mxu1 %vm172_vm0, %v146_v7  ;;  %v311_v35 = vld [vmem:[%s5295_s21 + $0x1a0] sm:$0xff]  ;;  %v277_v38 = vld [vmem:[%s5295_s21 + $0x90] sm:$0xff]  ;;  %v278_v40 = vld [vmem:[%s5295_s21 + $0x98] sm:$0xff] }
  0x16   :  { %4700 = vmatmul.msk.f32.vlgmr.msra.gmra.mxu0 %vm147_vm1, %v135_v5  ;;  %4709 = vmatmul.msk.f32.vlgmr.msra.gmra.mxu1 %vm147_vm1, %v135_v5  ;;  %v309_v39 = vld [vmem:[%s5295_s21 + $0x190] sm:$0xff]  ;;  %v312_v41 = vld [vmem:[%s5295_s21 + $0x1a8] sm:$0xff]  ;;  %v275_v42 = vld [vmem:[%s5295_s21 + $0x80] sm:$0xff] }
  0x17   :  { %4898 = vmatpush.msk.msra.mxu2 %vm172_vm0, %v145_v6  ;;  %511 = vmatpush.msrb.mxu0 %v290_v17  ;;  %v307_v43 = vld [vmem:[%s5295_s21 + $0x180] sm:$0xff]  ;;  %v276_v44 = vld [vmem:[%s5295_s21 + $0x88] sm:$0xff]  ;;  %v310_v45 = vld [vmem:[%s5295_s21 + $0x198] sm:$0xff] }
  0x18   :  { %4704 = vmatmul.msk.f32.vlgmr.msra.gmra.mxu2 %vm147_vm1, %v139_v8  ;;  %540 = vmatpush.msrb.mxu1 %v322_v21  ;;  %v273_v46 = vld [vmem:[%s5295_s21 + $0x70] sm:$0xff]  ;;  %v274_v48 = vld [vmem:[%s5295_s21 + $0x78] sm:$0xff]  ;;  %v308_v49 = vld [vmem:[%s5295_s21 + $0x188] sm:$0xff] }
  0x19   :  { %395 = vmatpush.msrb.mxu2 %v289_v15  ;;  %512 = vmatpush.msrb.mxu0 %v288_v20  ;;  %v305_v47 = vld [vmem:[%s5295_s21 + $0x170] sm:$0xff]  ;;  %v271_v50 = vld [vmem:[%s5295_s21 + $0x60] sm:$0xff]  ;;  %v272_v52 = vld [vmem:[%s5295_s21 + $0x68] sm:$0xff] }
  0x1a   :  { %541 = vmatpush.msrb.mxu1 %v320_v25  ;;  %428 = vmatpush.msra.mxu3 %v313_v31  ;;  %v303_v51 = vld [vmem:[%s5295_s21 + $0x160] sm:$0xff]  ;;  %v306_v53 = vld [vmem:[%s5295_s21 + $0x178] sm:$0xff]  ;;  %v269_v54 = vld [vmem:[%s5295_s21 + $0x50] sm:$0xff] }
  0x1b   :  { %396 = vmatpush.msrb.mxu2 %v287_v18  ;;  %513 = vmatpush.msrb.mxu0 %v286_v24  ;;  %v301_v55 = vld [vmem:[%s5295_s21 + $0x150] sm:$0xff]  ;;  %v270_v56 = vld [vmem:[%s5295_s21 + $0x58] sm:$0xff]  ;;  %v304_v57 = vld [vmem:[%s5295_s21 + $0x168] sm:$0xff] }
  0x1c   :  { %542 = vmatpush.msrb.mxu1 %v318_v29  ;;  %429 = vmatpush.msra.mxu3 %v311_v35  ;;  %v267_v58 = vld [vmem:[%s5295_s21 + $0x40] sm:$0xff]  ;;  %v268_v60 = vld [vmem:[%s5295_s21 + $0x48] sm:$0xff]  ;;  %v302_v61 = vld [vmem:[%s5295_s21 + $0x158] sm:$0xff] }
  0x1d   :  { %397 = vmatpush.msrb.mxu2 %v285_v22  ;;  %514 = vmatpush.msrb.mxu0 %v284_v28  ;;  %v299_v59 = vld [vmem:[%s5295_s21 + $0x140] sm:$0xff]  ;;  %v265_v62 = vld [vmem:[%s5295_s21 + $0x30] sm:$0xff]  ;;  %v266_v0 = vld [vmem:[%s5295_s21 + $0x38] sm:$0xff] }
  0x1e   :  { %4701 = vmatmul.msk.f32.gmra.mxu0 %vm147_vm1, %v136_v9  ;;  %4710 = vmatmul.msk.f32.gmra.mxu1 %vm147_vm1, %v136_v9  ;;  %v297_v63 = vld [vmem:[%s5295_s21 + $0x130] sm:$0xff]  ;;  %v300_v1 = vld [vmem:[%s5295_s21 + $0x148] sm:$0xff]  ;;  %v263_v2 = vld [vmem:[%s5295_s21 + $0x20] sm:$0xff] }
  0x1f   :  { %398 = vmatpush.msrb.mxu2 %v283_v26  ;;  %515 = vmatpush.msrb.mxu0 %v282_v32  ;;  %v295_v3 = vld [vmem:[%s5295_s21 + $0x120] sm:$0xff]  ;;  %v264_v4 = vld [vmem:[%s5295_s21 + $0x28] sm:$0xff]  ;;  %v298_v5 = vld [vmem:[%s5295_s21 + $0x138] sm:$0xff] }
  0x20   :  { %4705 = vmatmul.msk.f32.gmra.mxu2 %vm147_vm1, %v5282_v10  ;;  %543 = vmatpush.msrb.mxu1 %v316_v33  ;;  %v261_v6 = vld [vmem:[%s5295_s21 + $0x10] sm:$0xff]  ;;  %v296_v9 = vld [vmem:[%s5295_s21 + $0x128] sm:$0xff]  ;;  %v383_v18 = vld [vmem:[%s5295_s21 + $0x3e0] sm:$0xff] }
  0x21   :  { %399 = vmatpush.msrb.mxu2 %v281_v30  ;;  %516 = vmatpush.msrb.mxu0 %v280_v36  ;;  %v293_v7 = vld [vmem:[%s5295_s21 + $0x110] sm:$0xff]  ;;  %v292_v17 = vld [vmem:[%s5295_s21 + $0x108] sm:$0xff]  ;;  %v347_v21 = vld [vmem:[%s5295_s21 + $0x2c0] sm:$0xff] }
  0x22   :  { %544 = vmatpush.msrb.mxu1 %v314_v37  ;;  %430 = vmatpush.msra.mxu3 %v309_v39  ;;  %v353_v15 = vld [vmem:[%s5295_s21 + $0x2f0] sm:$0xff]  ;;  %v379_v22 = vld [vmem:[%s5295_s21 + $0x3c0] sm:$0xff] }
  0x23   :  { %400 = vmatpush.msrb.mxu2 %v279_v34  ;;  %517 = vmatpush.msrb.mxu0 %v278_v40  ;;  %v385_v16 = vld [vmem:[%s5295_s21 + $0x3f0] sm:$0xff]  ;;  %v343_v25 = vld [vmem:[%s5295_s21 + $0x2a0] sm:$0xff] }
  0x24   :  { %545 = vmatpush.msrb.mxu1 %v312_v41  ;;  %431 = vmatpush.msra.mxu3 %v307_v43  ;;  %v349_v19 = vld [vmem:[%s5295_s21 + $0x2d0] sm:$0xff]  ;;  %v375_v26 = vld [vmem:[%s5295_s21 + $0x3a0] sm:$0xff] }
  0x25   :  { %401 = vmatpush.msrb.mxu2 %v277_v38  ;;  %518 = vmatpush.msrb.mxu0 %v276_v44  ;;  %v381_v20 = vld [vmem:[%s5295_s21 + $0x3d0] sm:$0xff]  ;;  %v339_v29 = vld [vmem:[%s5295_s21 + $0x280] sm:$0xff] }
  0x26   :  { %4702 = vmatmul.msk.f32.gmra.mxu0 %vm147_vm1, %v137_v11  ;;  %4711 = vmatmul.msk.f32.gmra.mxu1 %vm147_vm1, %v137_v11  ;;  %v291_v11 = vld [vmem:[%s5295_s21 + $0x100] sm:$0xff]  ;;  %v345_v23 = vld [vmem:[%s5295_s21 + $0x2b0] sm:$0xff] }
  0x27   :  { %402 = vmatpush.msrb.mxu2 %v275_v42  ;;  %546 = vmatpush.msrb.mxu1 %v310_v45  ;;  %v377_v24 = vld [vmem:[%s5295_s21 + $0x3b0] sm:$0xff]  ;;  %v371_v30 = vld [vmem:[%s5295_s21 + $0x380] sm:$0xff] }
  0x28   :  { %4706 = vmatmul.msk.f32.gmra.mxu2 %vm147_vm1, %v5288_v12  ;;  %432 = vmatpush.msra.mxu3 %v305_v47  ;;  %v341_v27 = vld [vmem:[%s5295_s21 + $0x290] sm:$0xff]  ;;  %v335_v33 = vld [vmem:[%s5295_s21 + $0x260] sm:$0xff] }
  0x29   :  { %403 = vmatpush.msrb.mxu2 %v273_v46  ;;  %519 = vmatpush.msrb.mxu0 %v274_v48  ;;  %v373_v28 = vld [vmem:[%s5295_s21 + $0x390] sm:$0xff]  ;;  %v367_v34 = vld [vmem:[%s5295_s21 + $0x360] sm:$0xff] }
  0x2a   :  { %547 = vmatpush.msrb.mxu1 %v308_v49  ;;  %433 = vmatpush.msra.mxu3 %v303_v51  ;;  %v337_v31 = vld [vmem:[%s5295_s21 + $0x270] sm:$0xff]  ;;  %v331_v37 = vld [vmem:[%s5295_s21 + $0x240] sm:$0xff]  ;;  %v354_v49 = vld [vmem:[%s5295_s21 + $0x2f8] sm:$0xff] }
  0x2b   :  { %404 = vmatpush.msrb.mxu2 %v271_v50  ;;  %520 = vmatpush.msrb.mxu0 %v272_v52  ;;  %v369_v32 = vld [vmem:[%s5295_s21 + $0x370] sm:$0xff]  ;;  %v363_v38 = vld [vmem:[%s5295_s21 + $0x340] sm:$0xff]  ;;  %v386_v50 = vld [vmem:[%s5295_s21 + $0x3f8] sm:$0xff] }
  0x2c   :  { %548 = vmatpush.msrb.mxu1 %v306_v53  ;;  %434 = vmatpush.msra.mxu3 %v301_v55  ;;  %v333_v35 = vld [vmem:[%s5295_s21 + $0x250] sm:$0xff]  ;;  %v327_v41 = vld [vmem:[%s5295_s21 + $0x220] sm:$0xff]  ;;  %v352_v51 = vld [vmem:[%s5295_s21 + $0x2e8] sm:$0xff] }
  0x2d   :  { %405 = vmatpush.msrb.mxu2 %v269_v54  ;;  %521 = vmatpush.msrb.mxu0 %v270_v56  ;;  %v365_v36 = vld [vmem:[%s5295_s21 + $0x350] sm:$0xff]  ;;  %v359_v42 = vld [vmem:[%s5295_s21 + $0x320] sm:$0xff]  ;;  %v384_v52 = vld [vmem:[%s5295_s21 + $0x3e8] sm:$0xff] }
  0x2e   :  { %4703 = vmatmul.msk.f32.gmra.mxu0 %vm147_vm1, %v138_v13  ;;  %4712 = vmatmul.msk.f32.gmra.mxu1 %vm147_vm1, %v138_v13  ;;  %v294_v13 = vld [vmem:[%s5295_s21 + $0x118] sm:$0xff]  ;;  %v329_v39 = vld [vmem:[%s5295_s21 + $0x230] sm:$0xff]  ;;  %v323_v47 = vld [vmem:[%s5295_s21 + $0x200] sm:$0xff] }
  0x2f   :  { %549 = vmatpush.msrb.mxu1 %v304_v57  ;;  %406 = vmatpush.msrb.mxu2 %v267_v58  ;;  %v361_v40 = vld [vmem:[%s5295_s21 + $0x330] sm:$0xff]  ;;  %v355_v48 = vld [vmem:[%s5295_s21 + $0x300] sm:$0xff]  ;;  %v350_v53 = vld [vmem:[%s5295_s21 + $0x2d8] sm:$0xff] }
  0x30   :  { %4707 = vmatmul.msk.f32.gmra.mxu2 %vm147_vm1, %v5299_v14  ;;  %435 = vmatpush.msra.mxu3 %v299_v59  ;;  %v325_v43 = vld [vmem:[%s5295_s21 + $0x210] sm:$0xff]  ;;  %v382_v54 = vld [vmem:[%s5295_s21 + $0x3d8] sm:$0xff]  ;;  %v348_v57 = vld [vmem:[%s5295_s21 + $0x2c8] sm:$0xff] }
  0x31   :  { %522 = vmatpush.msrb.mxu0 %v268_v60  ;;  %550 = vmatpush.msrb.mxu1 %v302_v61  ;;  %v357_v44 = vld [vmem:[%s5295_s21 + $0x310] sm:$0xff]  ;;  %v380_v58 = vld [vmem:[%s5295_s21 + $0x3c8] sm:$0xff]  ;;  %v346_v59 = vld [vmem:[%s5295_s21 + $0x2b8] sm:$0xff] }
  0x32   :  { %407 = vmatpush.msrb.mxu2 %v265_v62  ;;  %436 = vmatpush.msra.mxu3 %v297_v63  ;;  %v378_v60 = vld [vmem:[%s5295_s21 + $0x3b8] sm:$0xff]  ;;  %v344_v61 = vld [vmem:[%s5295_s21 + $0x2a8] sm:$0xff] }
  0x33   :  { %523 = vmatpush.msrb.mxu0 %v266_v0  ;;  %551 = vmatpush.msrb.mxu1 %v300_v1  ;;  %v376_v62 = vld [vmem:[%s5295_s21 + $0x3a8] sm:$0xff]  ;;  %v342_v1 = vld [vmem:[%s5295_s21 + $0x298] sm:$0xff] }
  0x34   :  { %408 = vmatpush.msrb.mxu2 %v263_v2  ;;  %437 = vmatpush.msra.mxu3 %v295_v3  ;;  %v374_v2 = vld [vmem:[%s5295_s21 + $0x398] sm:$0xff]  ;;  %v340_v3 = vld [vmem:[%s5295_s21 + $0x288] sm:$0xff] }
  0x35   :  { %524 = vmatpush.msrb.mxu0 %v264_v4  ;;  %552 = vmatpush.msrb.mxu1 %v298_v5  ;;  %v372_v4 = vld [vmem:[%s5295_s21 + $0x388] sm:$0xff]  ;;  %v338_v5 = vld [vmem:[%s5295_s21 + $0x278] sm:$0xff] }
  0x36   :  { %4713 = vmatmul.msk.f32.gmra.mxu1 %vm147_vm1, %v139_v8  ;;  %v262_v8 = vld [vmem:[%s5295_s21 + $0x18] sm:$0xff]  ;;  %409 = vmatpush.msrb.mxu2 %v261_v6 }
  0x37   :  { %438 = vmatpush.msra.mxu3 %v293_v7  ;;  %525 = vmatpush.msrb.mxu0 %v262_v8  ;;  %v370_v6 = vld [vmem:[%s5295_s21 + $0x378] sm:$0xff] }
  0x38   :  { %553 = vmatpush.msrb.mxu1 %v296_v9 }
  0x39   :  { %439 = vmatpush.msra.mxu3 %v291_v11  ;;  %v368_v11 = vld [vmem:[%s5295_s21 + $0x368] sm:$0xff] }
  0x3a   :  { %554 = vmatpush.msrb.mxu1 %v294_v13  ;;  %v366_v13 = vld [vmem:[%s5295_s21 + $0x358] sm:$0xff] }
  0x3b   :  { %482 = vmatpush.msrb.mxu3 %v385_v16  ;;  %v364_v16 = vld [vmem:[%s5295_s21 + $0x348] sm:$0xff] }
  0x3c   :  { %555 = vmatpush.msrb.mxu1 %v292_v17  ;;  %v330_v17 = vld [vmem:[%s5295_s21 + $0x238] sm:$0xff] }
  0x3d   :  { %483 = vmatpush.msrb.mxu3 %v383_v18 }
  0x3e   :  { %4714 = vmatmul.msk.f32.gmra.mxu1 %vm147_vm1, %v5282_v10  ;;  %v259_v10 = vld [vmem:[%s5295_s21] sm:$0xff] }
  0x3f   :  { %410 = vmatpush.msrb.mxu2 %v259_v10  ;;  %484 = vmatpush.msrb.mxu3 %v381_v20  ;;  %v336_v10 = vld [vmem:[%s5295_s21 + $0x268] sm:$0xff] }
  0x40   :  { %v360_v20 = vld [vmem:[%s5295_s21 + $0x328] sm:$0xff] }
  0x41   :  { %453 = vmatpush.msra.mxu2 %v353_v15  ;;  %485 = vmatpush.msrb.mxu3 %v379_v22  ;;  %v332_v15 = vld [vmem:[%s5295_s21 + $0x248] sm:$0xff]  ;;  %v326_v22 = vld [vmem:[%s5295_s21 + $0x218] sm:$0xff] }
  0x43   :  { %486 = vmatpush.msrb.mxu3 %v377_v24  ;;  %v324_v24 = vld [vmem:[%s5295_s21 + $0x208] sm:$0xff] }
  0x45   :  { %487 = vmatpush.msrb.mxu3 %v375_v26 }
  0x46   :  { %4715 = vmatmul.msk.f32.gmra.mxu1 %vm147_vm1, %v5288_v12  ;;  %v260_v12 = vld [vmem:[%s5295_s21 + $0x8] sm:$0xff] }
  0x47   :  { %526 = vmatpush.msrb.mxu0 %v260_v12  ;;  %488 = vmatpush.msrb.mxu3 %v373_v28  ;;  %v334_v12 = vld [vmem:[%s5295_s21 + $0x258] sm:$0xff] }
  0x49   :  { %489 = vmatpush.msrb.mxu3 %v371_v30 }
  0x4b   :  { %490 = vmatpush.msrb.mxu3 %v369_v32 }
  0x4d   :  { %491 = vmatpush.msrb.mxu3 %v367_v34 }
  0x4e   :  { %4716 = vmatmul.msk.f32.gmra.mxu1 %vm147_vm1, %v5299_v14  ;;  %v351_v14 = vld [vmem:[%s5295_s21 + $0x2e0] sm:$0xff] }
  0x4f   :  { %454 = vmatpush.msra.mxu2 %v351_v14  ;;  %492 = vmatpush.msrb.mxu3 %v365_v36  ;;  %v362_v14 = vld [vmem:[%s5295_s21 + $0x338] sm:$0xff] }
  0x51   :  { %455 = vmatpush.msra.mxu2 %v349_v19  ;;  %493 = vmatpush.msrb.mxu3 %v363_v38  ;;  %v328_v19 = vld [vmem:[%s5295_s21 + $0x228] sm:$0xff] }
  0x53   :  { %456 = vmatpush.msra.mxu2 %v347_v21  ;;  %494 = vmatpush.msrb.mxu3 %v361_v40 }
  0x55   :  { %457 = vmatpush.msra.mxu2 %v345_v23  ;;  %495 = vmatpush.msrb.mxu3 %v359_v42  ;;  %v358_v23 = vld [vmem:[%s5295_s21 + $0x318] sm:$0xff]  ;;  %v389_v42 = vld [vmem:[%s5443_s25 + $0x10] sm:$0xff] }
  0x57   :  { %458 = vmatpush.msra.mxu2 %v343_v25  ;;  %496 = vmatpush.msrb.mxu3 %v357_v44  ;;  %v356_v25 = vld [vmem:[%s5295_s21 + $0x308] sm:$0xff]  ;;  %s6022_s21 = sld [smem:[%s7649_s0 + %s5242_s18]]  }
  0x59   :  { %459 = vmatpush.msra.mxu2 %v341_v27  ;;  %497 = vmatpush.msrb.mxu3 %v355_v48 }
  0x5b   :  { %460 = vmatpush.msra.mxu2 %v339_v29 }
  0x5d   :  { %461 = vmatpush.msra.mxu2 %v337_v31 }
  0x5f   :  { %462 = vmatpush.msra.mxu2 %v335_v33 }
  0x61   :  { %463 = vmatpush.msra.mxu2 %v333_v35 }
  0x63   :  { %464 = vmatpush.msra.mxu2 %v331_v37  ;;  %v387_v37 = vld [vmem:[%s5443_s25] sm:$0xff] }
  0x65   :  { %465 = vmatpush.msra.mxu2 %v329_v39 }
  0x67   :  { %466 = vmatpush.msra.mxu2 %v327_v41 }
  0x69   :  { %467 = vmatpush.msra.mxu2 %v325_v43 }
  0x6b   :  { %468 = vmatpush.msra.mxu2 %v323_v47 }
  0x93   :  { %v194_v45 = vpop.f32.mrf.mxu0  ;;  %v235_v46 = vpop.f32.mrf.mxu1 }
  0x94   :  { %411 = vmatmul.f32.vlgmr.msrb.gmra.mxu2 %v194_v45  ;;  %440 = vmatmul.f32.vlgmr.msra.gmra.mxu3 %v235_v46 }
  0x95   :  { %527 = vmatmul.f32.vlgmr.msrb.gmra.mxu0 %v194_v45  ;;  %556 = vmatmul.f32.vlgmr.msrb.gmra.mxu1 %v235_v46 }
  0x96   :  { %569 = vmatpush.msrb.mxu2 %v354_v49  ;;  %598 = vmatpush.msra.mxu3 %v386_v50  ;;  %v391_v50 = vld [vmem:[%s5443_s25 + $0x20] sm:$0xff] }
  0x98   :  { %570 = vmatpush.msrb.mxu2 %v352_v51  ;;  %599 = vmatpush.msra.mxu3 %v384_v52 }
  0x9a   :  { %571 = vmatpush.msrb.mxu2 %v350_v53  ;;  %600 = vmatpush.msra.mxu3 %v382_v54 }
  0x9b   :  { %v197_v55 = vpop.f32.mrf.mxu0  ;;  %v238_v56 = vpop.f32.mrf.mxu1 }
  0x9c   :  { %414 = vmatmul.f32.gmra.mxu2 %v197_v55  ;;  %443 = vmatmul.f32.gmra.mxu3 %v238_v56  ;;  %v206_v7 = vpop.f32.mrf.mxu2 }
  0x9d   :  { %530 = vmatmul.f32.gmra.mxu0 %v197_v55  ;;  %559 = vmatmul.f32.gmra.mxu1 %v238_v56 }
  0x9e   :  { %572 = vmatpush.msrb.mxu2 %v348_v57  ;;  %601 = vmatpush.msra.mxu3 %v380_v58 }
  0xa0   :  { %573 = vmatpush.msrb.mxu2 %v346_v59  ;;  %602 = vmatpush.msra.mxu3 %v378_v60  ;;  %v393_v60 = vld [vmem:[%s5443_s25 + $0x30] sm:$0xff] }
  0xa2   :  { %574 = vmatpush.msrb.mxu2 %v344_v61  ;;  %603 = vmatpush.msra.mxu3 %v376_v62 }
  0xa3   :  { %v200_v63 = vpop.f32.mrf.mxu0  ;;  %v241_v0 = vpop.f32.mrf.mxu1 }
  0xa4   :  { %417 = vmatmul.f32.gmra.mxu2 %v200_v63  ;;  %446 = vmatmul.f32.gmra.mxu3 %v241_v0  ;;  %v209_v21 = vpop.f32.mrf.mxu2 }
  0xa5   :  { %533 = vmatmul.f32.gmra.mxu0 %v200_v63  ;;  %562 = vmatmul.f32.gmra.mxu1 %v241_v0 }
  0xa6   :  { %575 = vmatpush.msrb.mxu2 %v342_v1  ;;  %604 = vmatpush.msra.mxu3 %v374_v2 }
  0xa8   :  { %576 = vmatpush.msrb.mxu2 %v340_v3  ;;  %605 = vmatpush.msra.mxu3 %v372_v4 }
  0xaa   :  { %577 = vmatpush.msrb.mxu2 %v338_v5  ;;  %606 = vmatpush.msra.mxu3 %v370_v6 }
  0xab   :  { %v203_v8 = vpop.f32.mrf.mxu0  ;;  %v244_v9 = vpop.f32.mrf.mxu1 }
  0xac   :  { %420 = vmatmul.f32.gmra.mxu2 %v203_v8  ;;  %449 = vmatmul.f32.gmra.mxu3 %v244_v9  ;;  %v212_v27 = vpop.f32.mrf.mxu2 }
  0xad   :  { %536 = vmatmul.f32.gmra.mxu0 %v203_v8  ;;  %565 = vmatmul.f32.gmra.mxu1 %v244_v9  ;;  %v388_v8 = vld [vmem:[%s5443_s25 + $0x8] sm:$0xff] }
  0xae   :  { %578 = vmatpush.msrb.mxu2 %v336_v10  ;;  %607 = vmatpush.msra.mxu3 %v368_v11 }
  0xb0   :  { %579 = vmatpush.msrb.mxu2 %v334_v12  ;;  %608 = vmatpush.msra.mxu3 %v366_v13 }
  0xb2   :  { %580 = vmatpush.msrb.mxu2 %v332_v15  ;;  %609 = vmatpush.msra.mxu3 %v364_v16 }
  0xb3   :  { %v247_v18 = vpop.f32.mrf.mxu1 }
  0xb4   :  { %469 = vmatmul.f32.vlgmr.msra.gmra.mxu2 %v206_v7  ;;  %498 = vmatmul.f32.vlgmr.msrb.gmra.mxu3 %v247_v18  ;;  %v215_v29 = vpop.f32.mrf.mxu2 }
  0xb5   :  { %581 = vmatpush.msrb.mxu2 %v330_v17  ;;  %610 = vmatpush.msra.mxu3 %v362_v14 }
  0xb7   :  { %582 = vmatpush.msrb.mxu2 %v328_v19  ;;  %611 = vmatpush.msra.mxu3 %v360_v20 }
  0xb9   :  { %583 = vmatpush.msrb.mxu2 %v326_v22  ;;  %612 = vmatpush.msra.mxu3 %v358_v23 }
  0xbb   :  { %v250_v26 = vpop.f32.mrf.mxu1  ;;  %584 = vmatpush.msrb.mxu2 %v324_v24  ;;  %613 = vmatpush.msra.mxu3 %v356_v25 }
  0xbc   :  { %472 = vmatmul.f32.gmra.mxu2 %v209_v21  ;;  %501 = vmatmul.f32.gmra.mxu3 %v250_v26 }
  0xc3   :  { %v253_v28 = vpop.f32.mrf.mxu1 }
  0xc4   :  { %475 = vmatmul.f32.gmra.mxu2 %v212_v27  ;;  %504 = vmatmul.f32.gmra.mxu3 %v253_v28 }
  0xcb   :  { %v256_v30 = vpop.f32.mrf.mxu1 }
  0xcc   :  { %478 = vmatmul.f32.gmra.mxu2 %v215_v29  ;;  %507 = vmatmul.f32.gmra.mxu3 %v256_v30 }
  0xd4   :  { %585 = vmatmul.f32.vlgmr.msrb.gmra.mxu2 %v206_v7  ;;  %614 = vmatmul.f32.vlgmr.msra.gmra.mxu3 %v247_v18 }
  0xdc   :  { %588 = vmatmul.f32.gmra.mxu2 %v209_v21  ;;  %617 = vmatmul.f32.gmra.mxu3 %v250_v26 }
  0xe4   :  { %591 = vmatmul.f32.gmra.mxu2 %v212_v27  ;;  %620 = vmatmul.f32.gmra.mxu3 %v253_v28 }
  0xec   :  { %594 = vmatmul.f32.gmra.mxu2 %v215_v29  ;;  %623 = vmatmul.f32.gmra.mxu3 %v256_v30 }
 0x112   :  { %v528_v63 = vpop.f32.mrf.mxu0  ;;  %v557_v4 = vpop.f32.mrf.mxu1 }
 0x113   :  { %v529_v16 = vadd.f32 %v528_v63, %v388_v8  ;;  %v394_v8 = vld [vmem:[%s5443_s25 + $0x38] sm:$0xff] }
 0x115   :  { %v558_v25 = vadd.f32 %v557_v4, %v529_v16 }
 0x117   :  { %v412_v31 = vpop.f32.mrf.mxu2  ;;  %v441_v32 = vpop.f32.mrf.mxu3 }
 0x118   :  { %v413_v40 = vadd.f32 %v412_v31, %v387_v37  ;;  %v390_v31 = vld [vmem:[%s5443_s25 + $0x18] sm:$0xff] }
 0x11a   :  { %v442_v41 = vadd.f32 %v441_v32, %v413_v40  ;;  %v531_v14 = vpop.f32.mrf.mxu0  ;;  %v560_v28 = vpop.f32.mrf.mxu1 }
 0x11f   :  { %v415_v33 = vpop.f32.mrf.mxu2  ;;  %v444_v34 = vpop.f32.mrf.mxu3 }
 0x120   :  { %v416_v46 = vadd.f32 %v415_v33, %v389_v42 }
 0x122   :  { %v445_v49 = vadd.f32 %v444_v34, %v416_v46 }
 0x127   :  { %v418_v35 = vpop.f32.mrf.mxu2  ;;  %v447_v36 = vpop.f32.mrf.mxu3 }
 0x128   :  { %v419_v54 = vadd.f32 %v418_v35, %v391_v50  ;;  %v392_v50 = vld [vmem:[%s5443_s25 + $0x28] sm:$0xff]  ;;  %s4680_s25 = sld [smem:[%s7649_s0 + %s5243_s22]]  }
 0x12a   :  { %v448_v59 = vadd.f32 %v447_v36, %v419_v54 }
 0x12f   :  { %v421_v38 = vpop.f32.mrf.mxu2  ;;  %v450_v39 = vpop.f32.mrf.mxu3 }
 0x130   :  { %v422_v1 = vadd.f32 %v421_v38, %v393_v60 }
 0x132   :  { %v451_v9 = vadd.f32 %v450_v39, %v422_v1  ;;  %v532_v39 = vadd.f32 %v531_v14, %v390_v31 }
 0x137   :  { %v470_v43 = vpop.f32.mrf.mxu2  ;;  %v499_v44 = vpop.f32.mrf.mxu3 }
 0x138   :  { %v471_v45 = vadd.f32 %v470_v43, %v442_v41  ;;  %v534_v43 = vpop.f32.mrf.mxu0 }
 0x13a   :  { %v5447_v47 = vadd.f32 %v499_v44, %v471_v45 }
 0x13c   :  { %v4717_v48 = vmul.f32 -1.442695, %v5447_v47 }
 0x13e   :  { %4937 = vpow2.f32 %v4717_v48 }
 0x13f   :  { %v473_v51 = vpop.f32.mrf.mxu2  ;;  %v502_v52 = vpop.f32.mrf.mxu3 }
 0x140   :  { %v474_v53 = vadd.f32 %v473_v51, %v445_v49  ;;  %v561_v49 = vadd.f32 %v560_v28, %v532_v39 }
 0x142   :  { %v5451_v55 = vadd.f32 %v502_v52, %v474_v53 }
 0x144   :  { %v4938_v56 = vpop.eup %4937  ;;  %v4719_v57 = vmul.f32 -1.442695, %v5451_v55 }
 0x145   :  { %v651_v58 = vadd.f32 1.0, %v4938_v56 }
 0x146   :  { %4939 = vpow2.f32 %v4719_v57 }
 0x147   :  { %4941 = vrcp.f32 %v651_v58  ;;  %v476_v61 = vpop.f32.mrf.mxu2  ;;  %v505_v62 = vpop.f32.mrf.mxu3  ;;  %v670_v17 = vand.u32 2147483648, %v651_v58  ;;  %v668_v19 = vand.u32 2147483647, %v651_v58  ;;  %vm664_vm3 = vweird.f32 %v651_v58 }
 0x148   :  { %v477_v0 = vadd.f32 %v476_v61, %v448_v59  ;;  %v535_v61 = vadd.f32 %v534_v43, %v392_v50 }
 0x149   :  { %v671_v26 = vor.u32 1.1754944e-38, %v670_v17  ;;  %vm669_vm5 = vcmp.eq.f32.partialorder %v668_v19, 8.507059e+37 }
 0x14a   :  { %v5455_v2 = vadd.f32 %v505_v62, %v477_v0  ;;  %v563_v62 = vpop.f32.mrf.mxu1 }
 0x14c   :  { %v4940_v3 = vpop.eup %4939  ;;  %v4721_v5 = vmul.f32 -1.442695, %v5455_v2 }
 0x14d   :  { %v4942_v6 = vpop.eup %4941  ;;  %v653_v7 = vadd.f32 1.0, %v4940_v3 }
 0x14e   :  { %v660_v10 = vmul.f32 %v4942_v6, %v651_v58  ;;  %4943 = vpow2.f32 %v4721_v5  ;;  %vm665_vm2 = vweird.f32 %v4942_v6 }
 0x14f   :  { %4945 = vrcp.f32 %v653_v7  ;;  %v479_v11 = vpop.f32.mrf.mxu2  ;;  %v508_v12 = vpop.f32.mrf.mxu3  ;;  %vm666_vm4 = vmor %vm664_vm3, %vm665_vm2  ;;  %v700_v38 = vand.u32 2147483648, %v653_v7  ;;  %v698_v41 = vand.u32 2147483647, %v653_v7  ;;  %vm694_vm7 = vweird.f32 %v653_v7 }
 0x150   :  { %v661_v13 = vsub.f32 1.0, %v660_v10  ;;  %v480_v15 = vadd.f32 %v479_v11, %v451_v9  ;;  %v537_v9 = vpop.f32.mrf.mxu0 }
 0x151   :  { %vm699_vm9 = vcmp.eq.f32.partialorder %v698_v41, 8.507059e+37 }
 0x152   :  { %v662_v18 = vmul.f32 %v4942_v6, %v661_v13  ;;  %v5459_v20 = vadd.f32 %v508_v12, %v480_v15 }
 0x154   :  { %v4944_v21 = vpop.eup %4943  ;;  %v663_v22 = vadd.f32 %v4942_v6, %v662_v18  ;;  %v4723_v23 = vmul.f32 -1.442695, %v5459_v20  ;;  %v538_v18 = vadd.f32 %v537_v9, %v394_v8 }
 0x155   :  { %v4946_v24 = vpop.eup %4945  ;;  %v5462_v27 = vadd.f32 1.0, %v4944_v21 }
 0x156   :  { %v667_v29 = vsel %vm666_vm4, %v4942_v6, %v663_v22  ;;  %v690_v30 = vmul.f32 %v4946_v24, %v653_v7  ;;  %4947 = vpow2.f32 %v4723_v23  ;;  %vm695_vm6 = vweird.f32 %v4946_v24 }
 0x157   :  { %v672_v32 = vsel %vm669_vm5, %v671_v26, %v667_v29  ;;  %4949 = vrcp.f32 %v5462_v27  ;;  %v586_v33 = vpop.f32.mrf.mxu2  ;;  %v615_v34 = vpop.f32.mrf.mxu3  ;;  %vm696_vm8 = vmor %vm694_vm7, %vm695_vm6  ;;  %v730_v63 = vand.u32 2147483648, %v5462_v27  ;;  %v728_v1 = vand.u32 2147483647, %v5462_v27 }
 0x158   :  { %v5467_v35 = vmul.f32 %v672_v32, %v5447_v47  ;;  %v691_v36 = vsub.f32 1.0, %v690_v30  ;;  %v587_v37 = vadd.f32 %v586_v33, %v558_v25  ;;  %v701_v47 = vor.u32 1.1754944e-38, %v700_v38  ;;  %v566_v25 = vpop.f32.mrf.mxu1 }
 0x159   :  { %vm724_vm11 = vweird.f32 %v5462_v27  ;;  %v564_v6 = vadd.f32 %v563_v62, %v535_v61  ;;  %v731_v7 = vor.u32 1.1754944e-38, %v730_v63  ;;  %vm729_vm13 = vcmp.eq.f32.partialorder %v728_v1, 8.507059e+37 }
 0x15a   :  { %v692_v40 = vmul.f32 %v4946_v24, %v691_v36  ;;  %828 = vrot.lane.b32.xlu0 %v5467_v35, %s5234_s26  ;;  %v5471_v45 = vadd.f32 %v615_v34, %v587_v37  ;;  %v567_v31 = vadd.f32 %v566_v25, %v538_v18 }
 0x15c   :  { %v4948_v42 = vpop.eup %4947  ;;  %v693_v44 = vadd.f32 %v4946_v24, %v692_v40  ;;  %v4718_v59 = vmul.f32 -1.442695, %v5471_v45 }
 0x15d   :  { %v4950_v46 = vpop.eup %4949  ;;  %v657_v48 = vadd.f32 1.0, %v4948_v42 }
 0x15e   :  { %v697_v51 = vsel %vm696_vm8, %v4946_v24, %v693_v44  ;;  %v720_v52 = vmul.f32 %v4950_v46, %v5462_v27  ;;  %vm725_vm10 = vweird.f32 %v4950_v46 }
 0x15f   :  { %v702_v53 = vsel %vm699_vm9, %v701_v47, %v697_v51  ;;  %4951 = vrcp.f32 %v657_v48  ;;  %v589_v54 = vpop.f32.mrf.mxu2  ;;  %v618_v56 = vpop.f32.mrf.mxu3  ;;  %vm726_vm12 = vmor %vm724_vm11, %vm725_vm10  ;;  %v760_v19 = vand.u32 2147483648, %v657_v48  ;;  %v758_v23 = vand.u32 2147483647, %v657_v48 }
 0x160   :  { %v5476_v57 = vmul.f32 %v702_v53, %v5451_v55  ;;  %v721_v58 = vsub.f32 1.0, %v720_v52  ;;  %v590_v60 = vadd.f32 %v589_v54, %v561_v49  ;;  %4953 = vpow2.f32 %v4718_v59 }
 0x161   :  { %vm754_vm15 = vweird.f32 %v657_v48  ;;  %v761_v28 = vor.u32 1.1754944e-38, %v760_v19  ;;  %vm759_vm1 = vcmp.eq.f32.partialorder %v758_v23, 8.507059e+37 }
 0x162   :  { %v722_v0 = vmul.f32 %v4950_v46, %v721_v58  ;;  %v5481_v3 = vadd.f32 %v618_v56, %v590_v60  ;;  %830 = vrot.lane.b32.xlu2 %v5476_v57, %s5234_s26 }
 0x164   :  { %v723_v55 = vadd.f32 %v4950_v46, %v722_v0  ;;  %v4720_v4 = vmul.f32 -1.442695, %v5481_v3 }
 0x165   :  { %v4952_v5 = vpop.eup %4951 }
 0x166   :  { %v727_v10 = vsel %vm726_vm12, %v4950_v46, %v723_v55  ;;  %v750_v11 = vmul.f32 %v4952_v5, %v657_v48  ;;  %4955 = vpow2.f32 %v4720_v4  ;;  %v4954_v21 = vpop.eup %4953  ;;  %vm755_vm14 = vweird.f32 %v4952_v5 }
 0x167   :  { %v732_v12 = vsel %vm729_vm13, %v731_v7, %v727_v10  ;;  %v592_v13 = vpop.f32.mrf.mxu2  ;;  %v621_v15 = vpop.f32.mrf.mxu3  ;;  %vm756_vm0 = vmor %vm754_vm15, %vm755_vm14  ;;  %v5496_v29 = vadd.f32 1.0, %v4954_v21 }
 0x168   :  { %v5489_v16 = vmul.f32 %v732_v12, %v5455_v2  ;;  %v751_v17 = vsub.f32 1.0, %v750_v11  ;;  %v593_v14 = vadd.f32 %v592_v13, %v564_v6 }
 0x169   :  { %v685_v10 = vand.u32 2147483648, %v5496_v29  ;;  %vm679_vm11 = vweird.f32 %v5496_v29  ;;  %v683_v12 = vand.u32 2147483647, %v5496_v29 }
 0x16a   :  { %v752_v22 = vmul.f32 %v4952_v5, %v751_v17  ;;  %v5491_v24 = vadd.f32 %v621_v15, %v593_v14  ;;  %832 = vrot.lane.b32.xlu1 %v5489_v16, %s5234_s26 }
 0x16b   :  { %v686_v21 = vor.u32 1.1754944e-38, %v685_v10  ;;  %vm684_vm14 = vcmp.eq.f32.partialorder %v683_v12, 8.507059e+37 }
 0x16c   :  { %v4956_v26 = vpop.eup %4955  ;;  %v753_v27 = vadd.f32 %v4952_v5, %v752_v22  ;;  %v4722_v2 = vmul.f32 -1.442695, %v5491_v24 }
 0x16d   :  { %v654_v30 = vadd.f32 1.0, %v4956_v26 }
 0x16e   :  { %v757_v32 = vsel %vm756_vm0, %v4952_v5, %v753_v27  ;;  %4957 = vpow2.f32 %v4722_v2 }
 0x16f   :  { %v762_v33 = vsel %vm759_vm1, %v761_v28, %v757_v32  ;;  %4959 = vrcp.f32 %v654_v30  ;;  %v595_v34 = vpop.f32.mrf.mxu2  ;;  %v624_v38 = vpop.f32.mrf.mxu3  ;;  %v715_v47 = vand.u32 2147483648, %v654_v30  ;;  %v713_v50 = vand.u32 2147483647, %v654_v30 }
 0x170   :  { %v5499_v36 = vmul.f32 %v762_v33, %v5459_v20  ;;  %v596_v37 = vadd.f32 %v595_v34, %v567_v31  ;;  %4961 = vrcp.f32 %v5496_v29  ;;  %vm709_vm3 = vweird.f32 %v654_v30 }
 0x171   :  { %v716_v54 = vor.u32 1.1754944e-38, %v715_v47  ;;  %vm714_vm5 = vcmp.eq.f32.partialorder %v713_v50, 8.507059e+37  ;;  %v803_v31 = vlaneseq }
 0x172   :  { %v5502_v39 = vadd.f32 %v624_v38, %v596_v37  ;;  %834 = vrot.lane.b32.xlu0 %v5499_v36, %s5234_s26  ;;  %v4725_v37 = vld [vmem:[%s5550_s1 + $0x2] ss:$4 sm:$0x3]  ;;  %v875_v38 = vld [vmem:[%s5555_s5 + $0x18] sm:$0xff] }
 0x173   :  { %v5558_v34 = vand.u32 127, %v803_v31 }
 0x174   :  { %v4958_v40 = vpop.eup %4957  ;;  %v4724_v41 = vmul.f32 -1.442695, %v5502_v39 }
 0x175   :  { %v4960_v42 = vpop.eup %4959  ;;  %v656_v43 = vadd.f32 1.0, %v4958_v40 }
 0x176   :  { %v705_v44 = vmul.f32 %v4960_v42, %v654_v30  ;;  %4963 = vpow2.f32 %v4724_v41  ;;  %v4962_v46 = vpop.eup %4961  ;;  %vm710_vm2 = vweird.f32 %v4960_v42  ;;  %v856_v41 = vperm.slane %v4725_v37, 0 }
 0x177   :  { %4965 = vrcp.f32 %v656_v43  ;;  %v675_v48 = vmul.f32 %v4962_v46, %v5496_v29  ;;  %vm711_vm4 = vmor %vm709_vm3, %vm710_vm2  ;;  %v745_v0 = vand.u32 2147483648, %v656_v43  ;;  %v743_v4 = vand.u32 2147483647, %v656_v43 }
 0x178   :  { %v706_v20 = vsub.f32 1.0, %v705_v44  ;;  %vm739_vm7 = vweird.f32 %v656_v43  ;;  %vm680_vm8 = vweird.f32 %v4962_v46  ;;  %vm7652_vm2 = vcmp.lt.s32.totalorder %v5558_v34, 112 }
 0x179   :  { %v676_v58 = vsub.f32 1.0, %v675_v48  ;;  %v746_v7 = vor.u32 1.1754944e-38, %v745_v0  ;;  %vm744_vm10 = vcmp.eq.f32.partialorder %v743_v4, 8.507059e+37  ;;  %vm681_vm12 = vmor %vm679_vm11, %vm680_vm8  ;;  %v814_v4 = vld [vmem:[%s5550_s1] ss:$4 sm:$0x3]  ;;  %s6135_s1 = sld [smem:[%s7649_s0 + %s5244_s28]]  }
 0x17a   :  { %v707_v49 = vmul.f32 %v4960_v42, %v706_v20  ;;  %vm7651_vm3 = vcmp.lt.s32.totalorder %v5558_v34, 16 }
 0x17b   :  { %v677_v1 = vmul.f32 %v4962_v46, %v676_v58 }
 0x17c   :  { %v4964_v51 = vpop.eup %4963  ;;  %v708_v52 = vadd.f32 %v4960_v42, %v707_v49 }
 0x17d   :  { %v4966_v53 = vpop.eup %4965  ;;  %v658_v56 = vadd.f32 1.0, %v4964_v51  ;;  %v678_v8 = vadd.f32 %v4962_v46, %v677_v1 }
 0x17e   :  { %v712_v59 = vsel %vm711_vm4, %v4960_v42, %v708_v52  ;;  %v735_v60 = vmul.f32 %v4966_v53, %v656_v43  ;;  %vm740_vm6 = vweird.f32 %v4966_v53  ;;  %v857_v42 = vperm.slane %v4725_v37, 1 }
 0x17f   :  { %v717_v61 = vsel %vm714_vm5, %v716_v54, %v712_v59  ;;  %4967 = vrcp.f32 %v658_v56  ;;  %vm741_vm9 = vmor %vm739_vm7, %vm740_vm6  ;;  %v775_v17 = vand.u32 2147483648, %v658_v56  ;;  %v682_v14 = vsel %vm681_vm12, %v4962_v46, %v678_v8  ;;  %v872_v59 = vld [vmem:[%s5555_s5] sm:$0xff] }
 0x180   :  { %v5509_v62 = vmul.f32 %v717_v61, %v5481_v3  ;;  %v736_v63 = vsub.f32 1.0, %v735_v60  ;;  %v773_v19 = vand.u32 2147483647, %v658_v56  ;;  %vm769_vm15 = vweird.f32 %v658_v56 }
 0x181   :  { %v687_v23 = vsel %vm684_vm14, %v686_v21, %v682_v14  ;;  %v817_v8 = vperm.slane %v814_v4, 1  ;;  %vm7650_vm4 = vcmask 785408  }
 0x182   :  { %v737_v55 = vmul.f32 %v4966_v53, %v736_v63  ;;  %838 = vrot.lane.b32.xlu2 %v5509_v62, %s5234_s26  ;;  %vm774_vm1 = vcmp.eq.f32.partialorder %v773_v19, 8.507059e+37  ;;  %v5524_v27 = vmul.f32 %v687_v23, %v5471_v45 }
 0x184   :  { %v738_v5 = vadd.f32 %v4966_v53, %v737_v55 }
 0x185   :  { %v4968_v6 = vpop.eup %4967 }
 0x186   :  { %v742_v9 = vsel %vm741_vm9, %v4966_v53, %v738_v5  ;;  %v765_v3 = vmul.f32 %v4968_v6, %v658_v56  ;;  %vm770_vm13 = vweird.f32 %v4968_v6  ;;  %v873_v5 = vld [vmem:[%s5555_s5 + $0x8] sm:$0xff] }
 0x187   :  { %v747_v11 = vsel %vm744_vm10, %v746_v7, %v742_v9  ;;  %vm771_vm0 = vmor %vm769_vm15, %vm770_vm13  ;;  %v816_v7 = vperm.slane %v814_v4, 0 }
 0x188   :  { %v5517_v13 = vmul.f32 %v747_v11, %v5491_v24  ;;  %v766_v15 = vsub.f32 1.0, %v765_v3  ;;  %v776_v24 = vor.u32 1.1754944e-38, %v775_v17 }
 0x18a   :  { %v767_v18 = vmul.f32 %v4968_v6, %v766_v15  ;;  %840 = vrot.lane.b32.xlu1 %v5517_v13, %s5234_s26  ;;  %793 = vrot.lane.b32.xlu2 %v5499_v36, %s5235_s27 }
 0x18c   :  { %v768_v22 = vadd.f32 %v4968_v6, %v767_v18 }
 0x18e   :  { %v772_v25 = vsel %vm771_vm0, %v4968_v6, %v768_v22 }
 0x18f   :  { %v777_v26 = vsel %vm774_vm1, %v776_v24, %v772_v25 }
 0x190   :  { %v5527_v2 = vmul.f32 %v777_v26, %v5502_v39  ;;  %v5238_v39 = vmov 0   ;;  %v868_v26 = vld [vmem:[%s5602_s9] sm:$0xff] }
 0x191   :  { %4932 = vset.pattern.permute.xlu1 %v5238_v39  ;;  %4934 = vset.pattern.permute.xlu0 %v5238_v39 }
 0x192   :  { %836 = vrot.lane.b32.xlu1 %v5524_v27, %s5234_s26  ;;  %799 = vrot.lane.b32.xlu2 %v5517_v13, %s5235_s27 }
 0x193   :  { %842 = vrot.lane.b32.xlu0 %v5527_v2, %s5234_s26  ;;  %4933 = vset.pattern.permute.xlu2 %v5238_v39 }
 0x19a   :  { %791 = vrot.lane.b32.xlu1 %v5489_v16, %s5235_s27  ;;  %787 = vrot.lane.b32.xlu2 %v5467_v35, %s5235_s27 }
 0x19b   :  { %789 = vrot.lane.b32.xlu0 %v5476_v57, %s5235_s27 }
 0x1a2   :  { %797 = vrot.lane.b32.xlu1 %v5509_v62, %s5235_s27 }
 0x1a3   :  { %801 = vrot.lane.b32.xlu0 %v5527_v2, %s5235_s27 }
 0x1aa   :  { %893 = vperm.xlu1 %4932, %v875_v38  }
 0x1ab   :  { %795 = vrot.lane.b32.xlu0 %v5524_v27, %s5235_s27 }
 0x1b2   :  { %878 = vperm.xlu1 %4932, %v872_v59  }
 0x1b3   :  { %883 = vperm.xlu0 %4934, %v873_v5  }
 0x1bc   :  { %v831_v29 = vpop.permute.xlu2 %830 }
 0x1cc   :  { %v829_v28 = vpop.permute.xlu0 %828 }
 0x1dc   :  { %v833_v45 = vpop.permute.xlu1 %832  ;;  %v839_v33 = vpop.permute.xlu2 %838 }
 0x1dd   :  { %v846_v50 = vsel %vm7652_vm2, %v831_v29, %v839_v33  ;;  %v850_v51 = vsel %vm7652_vm2, %v839_v33, %v831_v29 }
 0x1de   :  { %v862_v60 = vmul.f32 %v856_v41, %v846_v50  ;;  %v863_v61 = vmul.f32 %v857_v42, %v850_v51 }
 0x1e4   :  { %v835_v32 = vpop.permute.xlu0 %834  ;;  %v794_v52 = vpop.permute.xlu2 %793 }
 0x1ec   :  { %v800_v6 = vpop.permute.xlu2 %799 }
 0x1f4   :  { %v788_v19 = vpop.permute.xlu2 %787 }
 0x1fc   :  { %v841_v30 = vpop.permute.xlu1 %840 }
 0x1fd   :  { %v847_v44 = vsel %vm7652_vm2, %v833_v45, %v841_v30  ;;  %v851_v46 = vsel %vm7652_vm2, %v841_v30, %v833_v45  ;;  %v871_v45 = vld [vmem:[%s5602_s9 + $0x18] sm:$0xff] }
 0x1fe   :  { %v864_v53 = vmul.f32 %v856_v41, %v847_v44  ;;  %v865_v54 = vmul.f32 %v857_v42, %v851_v46 }
 0x204   :  { %v837_v40 = vpop.permute.xlu1 %836 }
 0x205   :  { %v843_v43 = vpop.permute.xlu0 %842  ;;  %v845_v56 = vsel %vm7652_vm2, %v829_v28, %v837_v40  ;;  %v849_v58 = vsel %vm7652_vm2, %v837_v40, %v829_v28 }
 0x206   :  { %v848_v20 = vsel %vm7652_vm2, %v835_v32, %v843_v43  ;;  %v852_v47 = vsel %vm7652_vm2, %v843_v43, %v835_v32  ;;  %v860_v0 = vmul.f32 %v856_v41, %v845_v56  ;;  %v861_v1 = vmul.f32 %v857_v42, %v849_v58 }
 0x207   :  { %v866_v48 = vmul.f32 %v856_v41, %v848_v20  ;;  %v867_v49 = vmul.f32 %v857_v42, %v852_v47 }
 0x209   :  { %913 = vmatpush.msra.mxu0 %v866_v48  ;;  %942 = vmatpush.msra.mxu1 %v867_v49 }
 0x20b   :  { %914 = vmatpush.msra.mxu0 %v864_v53  ;;  %943 = vmatpush.msra.mxu1 %v865_v54 }
 0x20c   :  { %v792_v63 = vpop.permute.xlu1 %791 }
 0x20d   :  { %915 = vmatpush.msra.mxu0 %v862_v60  ;;  %944 = vmatpush.msra.mxu1 %v863_v61  ;;  %v790_v55 = vpop.permute.xlu0 %789  ;;  %v808_v3 = vsel %vm7651_vm3, %v792_v63, %v800_v6  ;;  %v812_v10 = vsel %vm7651_vm3, %v800_v6, %v792_v63 }
 0x20e   :  { %v824_v15 = vmul.f32 %v816_v7, %v812_v10  ;;  %v825_v17 = vmul.f32 %v817_v8, %v808_v3 }
 0x20f   :  { %916 = vmatpush.msra.mxu0 %v860_v0  ;;  %945 = vmatpush.msra.mxu1 %v861_v1 }
 0x211   :  { %917 = vmatpush.msra.mxu0 %v5499_v36  ;;  %946 = vmatpush.msra.mxu1 %v5527_v2  ;;  %v870_v2 = vld [vmem:[%s5602_s9 + $0x10] sm:$0xff] }
 0x213   :  { %918 = vmatpush.msra.mxu0 %v5489_v16  ;;  %947 = vmatpush.msra.mxu1 %v5517_v13 }
 0x214   :  { %v798_v9 = vpop.permute.xlu1 %797 }
 0x215   :  { %919 = vmatpush.msra.mxu0 %v5476_v57  ;;  %948 = vmatpush.msra.mxu1 %v5509_v62  ;;  %v802_v36 = vpop.permute.xlu0 %801  ;;  %v807_v57 = vsel %vm7651_vm3, %v790_v55, %v798_v9  ;;  %v811_v62 = vsel %vm7651_vm3, %v798_v9, %v790_v55 }
 0x216   :  { %v809_v16 = vsel %vm7651_vm3, %v794_v52, %v802_v36  ;;  %v813_v11 = vsel %vm7651_vm3, %v802_v36, %v794_v52  ;;  %v822_v14 = vmul.f32 %v816_v7, %v811_v62  ;;  %v823_v18 = vmul.f32 %v817_v8, %v807_v57 }
 0x217   :  { %v826_v12 = vmul.f32 %v816_v7, %v813_v11  ;;  %v827_v13 = vmul.f32 %v817_v8, %v809_v16  ;;  %920 = vmatpush.msra.mxu0 %v5467_v35  ;;  %949 = vmatpush.msra.mxu1 %v5524_v27  ;;  %v874_v35 = vld [vmem:[%s5555_s5 + $0x10] sm:$0xff]  ;;  %v869_v27 = vld [vmem:[%s5602_s9 + $0x8] sm:$0xff]  ;;  %s6173_s5 = sld [smem:[%s7649_s0 + %s5245_s2]]  }
 0x218   :  { %888 = vperm.xlu2 %4933, %v874_v35   ;;  %s6367_s9 = sld [smem:[%s7649_s0 + %s5246_s6]]  }
 0x219   :  { %921 = vmatpush.msra.mxu0 %v826_v12  ;;  %950 = vmatpush.msra.mxu1 %v827_v13  ;;  %s7595_s6 = sld [smem:[%s7649_s0 + %s5259_s3]]  }
 0x21b   :  { %922 = vmatpush.msra.mxu0 %v824_v15  ;;  %951 = vmatpush.msra.mxu1 %v825_v17 }
 0x21c   :  { %v894_v28 = vpop.permute.xlu1 %893 }
 0x21d   :  { %923 = vmatpush.msra.mxu0 %v822_v14  ;;  %952 = vmatpush.msra.mxu1 %v823_v18  ;;  %v796_v21 = vpop.permute.xlu0 %795 }
 0x21e   :  { %v806_v22 = vsel %vm7651_vm3, %v788_v19, %v796_v21  ;;  %v810_v23 = vsel %vm7651_vm3, %v796_v21, %v788_v19 }
 0x21f   :  { %v820_v24 = vmul.f32 %v816_v7, %v810_v23  ;;  %v821_v25 = vmul.f32 %v817_v8, %v806_v22 }
 0x221   :  { %924 = vmatpush.msra.mxu0 %v820_v24  ;;  %953 = vmatpush.msra.mxu1 %v821_v25 }
 0x222   :  { %4726 = vmatmul.msk.f32.vlgmr.msra.gmra.mxu0 %vm7650_vm4, %v868_v26  ;;  %4730 = vmatmul.msk.f32.vlgmr.msra.gmra.mxu1 %vm7650_vm4, %v868_v26 }
 0x224   :  { %v879_v32 = vpop.permute.xlu1 %878 }
 0x225   :  { %v884_v33 = vpop.permute.xlu0 %883 }
 0x22a   :  { %4727 = vmatmul.msk.f32.gmra.mxu0 %vm7650_vm4, %v869_v27  ;;  %4731 = vmatmul.msk.f32.gmra.mxu1 %vm7650_vm4, %v869_v27 }
 0x232   :  { %4728 = vmatmul.msk.f32.gmra.mxu0 %vm7650_vm4, %v870_v2  ;;  %4732 = vmatmul.msk.f32.gmra.mxu1 %vm7650_vm4, %v870_v2 }
 0x23a   :  { %4729 = vmatmul.msk.f32.gmra.mxu0 %vm7650_vm4, %v871_v45  ;;  %4733 = vmatmul.msk.f32.gmra.mxu1 %vm7650_vm4, %v871_v45 }
 0x272   :  { %v889_v20 = vpop.permute.xlu2 %888 }
 0x29f   :  { %v926_v29 = vpop.f32.mrf.mxu0  ;;  %v955_v30 = vpop.f32.mrf.mxu1 }
 0x2a0   :  { %v5625_v37 = vadd.f32 %v926_v29, %v879_v32  ;;  %v5629_v41 = vadd.f32 %v955_v30, %v879_v32 }
 0x2a2   :  { %v4734_v42 = vmul.f32 -1.442695, %v5625_v37  ;;  %v4735_v46 = vmul.f32 -1.442695, %v5629_v41 }
 0x2a4   :  { %4969 = vpow2.f32 %v4734_v42 }
 0x2a7   :  { %v929_v38 = vpop.f32.mrf.mxu0  ;;  %v958_v39 = vpop.f32.mrf.mxu1 }
 0x2a8   :  { %v5627_v40 = vadd.f32 %v929_v38, %v884_v33  ;;  %v5632_v43 = vadd.f32 %v958_v39, %v884_v33 }
 0x2aa   :  { %v4736_v44 = vmul.f32 -1.442695, %v5627_v40  ;;  %v4737_v47 = vmul.f32 -1.442695, %v5632_v43  ;;  %v4970_v54 = vpop.eup %4969 }
 0x2ab   :  { %v5643_v59 = vadd.f32 1.0, %v4970_v54 }
 0x2ac   :  { %4971 = vpow2.f32 %v4736_v44 }
 0x2ad   :  { %4973 = vpow2.f32 %v4735_v46  ;;  %v1010_v21 = vand.u32 2147483648, %v5643_v59  ;;  %v1008_v24 = vand.u32 2147483647, %v5643_v59  ;;  %vm1004_vm7 = vweird.f32 %v5643_v59 }
 0x2ae   :  { %4975 = vpow2.f32 %v4737_v47 }
 0x2af   :  { %v932_v48 = vpop.f32.mrf.mxu0  ;;  %v961_v49 = vpop.f32.mrf.mxu1  ;;  %v5701_v32 = vor.u32 1.1754944e-38, %v1010_v21  ;;  %vm5743_vm1 = vcmp.eq.f32.partialorder %v1008_v24, 8.507059e+37 }
 0x2b0   :  { %v5637_v50 = vadd.f32 %v932_v48, %v889_v20  ;;  %v5639_v51 = vadd.f32 %v961_v49, %v889_v20 }
 0x2b2   :  { %v4738_v52 = vmul.f32 -1.442695, %v5637_v50  ;;  %v4739_v53 = vmul.f32 -1.442695, %v5639_v51  ;;  %v4972_v56 = vpop.eup %4971 }
 0x2b3   :  { %v4974_v58 = vpop.eup %4973  ;;  %v5645_v61 = vadd.f32 1.0, %v4972_v56 }
 0x2b4   :  { %4977 = vpow2.f32 %v4738_v52  ;;  %v4976_v63 = vpop.eup %4975  ;;  %v5647_v1 = vadd.f32 1.0, %v4974_v58 }
 0x2b5   :  { %4979 = vpow2.f32 %v4739_v53  ;;  %v5656_v8 = vadd.f32 1.0, %v4976_v63  ;;  %v1040_v25 = vand.u32 2147483648, %v5645_v61  ;;  %vm1034_vm5 = vweird.f32 %v5645_v61 }
 0x2b6   :  { %4981 = vrcp.f32 %v5643_v59  ;;  %v1023_v45 = vand.u32 2147483647, %v5647_v1  ;;  %v1025_v33 = vand.u32 2147483648, %v5647_v1  ;;  %v1038_v44 = vand.u32 2147483647, %v5645_v61 }
 0x2b7   :  { %v935_v60 = vpop.f32.mrf.mxu0  ;;  %v964_v4 = vpop.f32.mrf.mxu1  ;;  %4983 = vrcp.f32 %v5645_v61  ;;  %v5711_v46 = vor.u32 1.1754944e-38, %v1040_v25  ;;  %v1053_v53 = vand.u32 2147483647, %v5656_v8  ;;  %v1055_v54 = vand.u32 2147483648, %v5656_v8 }
 0x2b8   :  { %v5649_v55 = vadd.f32 %v935_v60, %v894_v28  ;;  %v5659_v9 = vadd.f32 %v964_v4, %v894_v28  ;;  %vm1049_vm10 = vweird.f32 %v5656_v8  ;;  %vm5732_vm14 = vcmp.eq.f32.partialorder %v1038_v44, 8.507059e+37 }
 0x2ba   :  { %v4978_v0 = vpop.eup %4977  ;;  %v4740_v6 = vmul.f32 -1.442695, %v5649_v55  ;;  %v4741_v10 = vmul.f32 -1.442695, %v5659_v9 }
 0x2bb   :  { %v5652_v5 = vadd.f32 1.0, %v4978_v0  ;;  %v4980_v7 = vpop.eup %4979 }
 0x2bc   :  { %v5662_v36 = vadd.f32 1.0, %v4980_v7  ;;  %v5664_v3 = vpop.eup %4981 }
 0x2bd   :  { %4985 = vrcp.f32 %v5652_v5  ;;  %v5668_v16 = vpop.eup %4983  ;;  %v1000_v13 = vmul.f32 %v5664_v3, %v5643_v59  ;;  %vm1005_vm6 = vweird.f32 %v5664_v3  ;;  %v1068_v39 = vand.u32 2147483647, %v5652_v5 }
 0x2be   :  { %4987 = vrcp.f32 %v5647_v1  ;;  %v1030_v57 = vmul.f32 %v5668_v16, %v5645_v61  ;;  %v1070_v42 = vand.u32 2147483648, %v5652_v5  ;;  %vm1035_vm8 = vweird.f32 %v5668_v16  ;;  %v1267_v61 = vld [vmem:[%s5874_s17 + $0xc8] sm:$0xff] }
 0x2bf   :  { %4989 = vpow2.f32 %v4740_v6  ;;  %v1001_v19 = vsub.f32 1.0, %v1000_v13  ;;  %vm1064_vm9 = vweird.f32 %v5652_v5  ;;  %vm5727_vm12 = vcmp.eq.f32.partialorder %v1068_v39, 8.507059e+37  ;;  %vm5752_vm3 = vmor %vm1034_vm5, %vm1035_vm8 }
 0x2c0   :  { %4991 = vrcp.f32 %v5656_v8  ;;  %v1031_v23 = vsub.f32 1.0, %v1030_v57  ;;  %v1071_v0 = vor.u32 1.1754944e-38, %v1070_v42  ;;  %vm1079_vm0 = vweird.f32 %v5662_v36 }
 0x2c1   :  { %4993 = vrcp.f32 %v5662_v36  ;;  %v1002_v30 = vmul.f32 %v5664_v3, %v1001_v19  ;;  %v1083_v21 = vand.u32 2147483647, %v5662_v36  ;;  %v1085_v25 = vand.u32 2147483648, %v5662_v36  ;;  %v1300_v19 = vld [vmem:[%s5874_s17 + $0x1d0] sm:$0xff] }
 0x2c2   :  { %4995 = vpow2.f32 %v4741_v10  ;;  %v1032_v38 = vmul.f32 %v5668_v16, %v1031_v23 }
 0x2c3   :  { %v5671_v11 = vpop.eup %4985  ;;  %v5719_v56 = vadd.f32 %v5664_v3, %v1002_v30 }
 0x2c4   :  { %v5673_v12 = vpop.eup %4987  ;;  %v1060_v15 = vmul.f32 %v5671_v11, %v5652_v5  ;;  %v1033_v60 = vadd.f32 %v5668_v16, %v1032_v38  ;;  %vm1065_vm15 = vweird.f32 %v5671_v11 }
 0x2c5   :  { %v4990_v62 = vpop.eup %4989  ;;  %v1015_v35 = vmul.f32 %v5673_v12, %v5647_v1  ;;  %vm1020_vm13 = vweird.f32 %v5673_v12  ;;  %vm5765_vm4 = vmor %vm1064_vm9, %vm1065_vm15 }
 0x2c6   :  { %v5681_v17 = vpop.eup %4991  ;;  %v5685_v14 = vadd.f32 1.0, %v4990_v62  ;;  %v1061_v26 = vsub.f32 1.0, %v1060_v15  ;;  %v1037_v24 = vsel %vm5752_vm3, %v5668_v16, %v1033_v60  ;;  %vm5786_vm15 = vmor %vm1004_vm7, %vm1005_vm6 }
 0x2c7   :  { %v5687_v18 = vpop.eup %4993  ;;  %v1016_v2 = vsub.f32 1.0, %v1015_v35  ;;  %v1045_v28 = vmul.f32 %v5681_v17, %v5656_v8  ;;  %vm1050_vm11 = vweird.f32 %v5681_v17  ;;  %v1007_v59 = vsel %vm5786_vm15, %v5664_v3, %v5719_v56  ;;  %v1127_v8 = vld [vmem:[%s5796_s13] sm:$0xff]  ;;  %v1268_v35 = vld [vmem:[%s5874_s17 + $0xd0] sm:$0xff]  ;;  %v1293_v3 = vld [vmem:[%s5874_s17 + $0x198] sm:$0xff] }
 0x2c8   :  { %v4996_v22 = vpop.eup %4995  ;;  %4997 = vrcp.f32 %v5685_v14  ;;  %v1075_v27 = vmul.f32 %v5687_v18, %v5662_v36  ;;  %v1062_v20 = vmul.f32 %v5671_v11, %v1061_v26  ;;  %v1098_v62 = vand.u32 2147483647, %v5685_v14  ;;  %vm5817_vm6 = vmor %vm1049_vm10, %vm1050_vm11 }
 0x2c9   :  { %v5698_v29 = vadd.f32 1.0, %v4996_v22  ;;  %v1017_v49 = vmul.f32 %v5673_v12, %v1016_v2  ;;  %v1046_v52 = vsub.f32 1.0, %v1045_v28  ;;  %v1100_v15 = vand.u32 2147483648, %v5685_v14  ;;  %v1262_v28 = vld [vmem:[%s5874_s17 + $0xa0] sm:$0xff] }
 0x2ca   :  { %v1076_v47 = vsub.f32 1.0, %v1075_v27  ;;  %v1063_v6 = vadd.f32 %v5671_v11, %v1062_v20  ;;  %vm1080_vm5 = vweird.f32 %v5687_v18  ;;  %vm1094_vm8 = vweird.f32 %v5685_v14 }
 0x2cb   :  { %4999 = vrcp.f32 %v5698_v29  ;;  %v1047_v57 = vmul.f32 %v5681_v17, %v1046_v52  ;;  %vm1099_vm9 = vcmp.eq.f32.partialorder %v1098_v62, 8.507059e+37  ;;  %v1101_v30 = vor.u32 1.1754944e-38, %v1100_v15  ;;  %v1271_v62 = vld [vmem:[%s5874_s17 + $0xe8] sm:$0xff]  ;;  %v1305_v15 = vld [vmem:[%s5874_s17 + $0x1f8] sm:$0xff] }
 0x2cc   :  { %v1077_v7 = vmul.f32 %v5687_v18, %v1076_v47  ;;  %v1067_v26 = vsel %vm5765_vm4, %v5671_v11, %v1063_v6  ;;  %v1115_v38 = vand.u32 2147483648, %v5698_v29  ;;  %v1113_v42 = vand.u32 2147483647, %v5698_v29  ;;  %vm5809_vm4 = vmor %vm1079_vm0, %vm1080_vm5  ;;  %v1297_v11 = vld [vmem:[%s5874_s17 + $0x1b8] sm:$0xff]  ;;  %v1259_v47 = vld [vmem:[%s5874_s17 + $0x88] sm:$0xff] }
 0x2cd   :  { %v1048_v5 = vadd.f32 %v5681_v17, %v1047_v57  ;;  %v1018_v44 = vadd.f32 %v5673_v12, %v1017_v49  ;;  %v1072_v20 = vsel %vm5727_vm12, %v1071_v0, %v1067_v26  ;;  %vm1109_vm7 = vweird.f32 %v5698_v29  ;;  %v1302_v57 = vld [vmem:[%s5874_s17 + $0x1e0] sm:$0xff]  ;;  %v1264_v26 = vld [vmem:[%s5874_s17 + $0xb0] sm:$0xff] }
 0x2ce   :  { %v4998_v48 = vpop.eup %4997  ;;  %v1078_v16 = vadd.f32 %v5687_v18, %v1077_v7  ;;  %v1042_v56 = vsel %vm5732_vm14, %v5711_v46, %v1037_v24  ;;  %vm1084_vm12 = vcmp.eq.f32.partialorder %v1083_v21, 8.507059e+37  ;;  %v1116_v60 = vor.u32 1.1754944e-38, %v1115_v38  ;;  %v1303_v21 = vld [vmem:[%s5874_s17 + $0x1e8] sm:$0xff]  ;;  %v1298_v24 = vld [vmem:[%s5874_s17 + $0x1c0] sm:$0xff] }
 0x2cf   :  { %v1090_v58 = vmul.f32 %v4998_v48, %v5685_v14  ;;  %vm1095_vm2 = vweird.f32 %v4998_v48  ;;  %v1052_v63 = vsel %vm5817_vm6, %v5681_v17, %v1048_v5  ;;  %vm1114_vm11 = vcmp.eq.f32.partialorder %v1113_v42, 8.507059e+37  ;;  %v1132_v5 = vld [vmem:[%s5796_s13 + $0x28] sm:$0xff]  ;;  %v1261_v42 = vld [vmem:[%s5874_s17 + $0x98] sm:$0xff] }
 0x2d0   :  { %vm5777_vm3 = vmor %vm1094_vm8, %vm1095_vm2  ;;  %v1082_v49 = vsel %vm5809_vm4, %v5687_v18, %v1078_v16  ;;  %v1123_v18 = vmul.f32 %v1072_v20, %v5637_v50  ;;  %vm7673_vm14 = vweird.f32 %v5647_v1  ;;  %v1056_v17 = vor.u32 1.1754944e-38, %v1055_v54  ;;  %v1129_v1 = vld [vmem:[%s5796_s13 + $0x10] sm:$0xff]  ;;  %v1263_v38 = vld [vmem:[%s5874_s17 + $0xa8] sm:$0xff] }
 0x2d1   :  { %v1091_v10 = vsub.f32 1.0, %v1090_v58  ;;  %v5000_v13 = vpop.eup %4999  ;;  %v1086_v58 = vor.u32 1.1754944e-38, %v1085_v25  ;;  %vm5841_vm0 = vmor %vm7673_vm14, %vm1020_vm13  ;;  %v1026_v7 = vor.u32 1.1754944e-38, %v1025_v33  ;;  %vm1024_vm13 = vcmp.eq.f32.partialorder %v1023_v45, 8.507059e+37  ;;  %v1304_v45 = vld [vmem:[%s5874_s17 + $0x1f0] sm:$0xff]  ;;  %v1273_v33 = vld [vmem:[%s5874_s17 + $0xf8] sm:$0xff] }
 0x2d2   :  { %v1105_v23 = vmul.f32 %v5000_v13, %v5698_v29  ;;  %vm1110_vm2 = vweird.f32 %v5000_v13  ;;  %v1022_v4 = vsel %vm5841_vm0, %v5673_v12, %v1018_v44  ;;  %vm7653_vm5 = vcmask 261120   ;;  %1407 = vmatpush.msrb.mxu1 %v1304_v45  ;;  %v1301_v25 = vld [vmem:[%s5874_s17 + $0x1d8] sm:$0xff]  ;;  %v1296_v16 = vld [vmem:[%s5874_s17 + $0x1b0] sm:$0xff]  ;;  %v1295_v44 = vld [vmem:[%s5874_s17 + $0x1a8] sm:$0xff] }
 0x2d3   :  { %v1092_v22 = vmul.f32 %v4998_v48, %v1091_v10  ;;  %vm1111_vm10 = vmor %vm1109_vm7, %vm1110_vm2  ;;  %v1087_v50 = vsel %vm1084_vm12, %v1086_v58, %v1082_v49  ;;  %v1290_v20 = vld [vmem:[%s5874_s17 + $0x180] sm:$0xff]  ;;  %v1288_v49 = vld [vmem:[%s5874_s17 + $0x170] sm:$0xff] }
 0x2d4   :  { %v1106_v2 = vsub.f32 1.0, %v1105_v23  ;;  %v1124_v12 = vmul.f32 %v1087_v50, %v5639_v51  ;;  %v1128_v51 = vld [vmem:[%s5796_s13 + $0x8] sm:$0xff]  ;;  %1408 = vmatpush.msrb.mxu1 %v1302_v57  ;;  %v1266_v23 = vld [vmem:[%s5874_s17 + $0xc0] sm:$0xff]  ;;  %v1253_v29 = vld [vmem:[%s5874_s17 + $0x58] sm:$0xff] }
 0x2d5   :  { %v1093_v27 = vadd.f32 %v4998_v48, %v1092_v22  ;;  %v1269_v22 = vld [vmem:[%s5874_s17 + $0xd8] sm:$0xff]  ;;  %v1291_v58 = vld [vmem:[%s5874_s17 + $0x188] sm:$0xff]  ;;  %v1250_v50 = vld [vmem:[%s5874_s17 + $0x40] sm:$0xff] }
 0x2d6   :  { %v1107_v39 = vmul.f32 %v5000_v13, %v1106_v2  ;;  %1409 = vmatpush.msrb.mxu1 %v1300_v19  ;;  %v1299_v2 = vld [vmem:[%s5874_s17 + $0x1c8] sm:$0xff]  ;;  %v1242_v45 = vld [vmem:[%s5874_s17] sm:$0xff]  ;;  %v1336_v57 = vld [vmem:[%s5874_s17 + $0x2f0] sm:$0xff] }
 0x2d7   :  { %v1097_v14 = vsel %vm5777_vm3, %v4998_v48, %v1093_v27  ;;  %v1265_v27 = vld [vmem:[%s5874_s17 + $0xb8] sm:$0xff]  ;;  %v1366_v19 = vld [vmem:[%s5874_s17 + $0x3e0] sm:$0xff] }
 0x2d8   :  { %v1102_v48 = vsel %vm1099_vm9, %v1101_v30, %v1097_v14  ;;  %v1108_v36 = vadd.f32 %v5000_v13, %v1107_v39  ;;  %1410 = vmatpush.msrb.mxu1 %v1298_v24  ;;  %v1294_v30 = vld [vmem:[%s5874_s17 + $0x1a0] sm:$0xff]  ;;  %v1260_v14 = vld [vmem:[%s5874_s17 + $0x90] sm:$0xff] }
 0x2d9   :  { %v1125_v52 = vmul.f32 %v1102_v48, %v5649_v55  ;;  %v1012_v55 = vsel %vm5743_vm1, %v5701_v32, %v1007_v59  ;;  %vm1054_vm1 = vcmp.eq.f32.partialorder %v1053_v53, 8.507059e+37  ;;  %v1121_v32 = vmul.f32 %v1042_v56, %v5627_v40  ;;  %v1131_v53 = vld [vmem:[%s5796_s13 + $0x20] sm:$0xff]  ;;  %v1292_v39 = vld [vmem:[%s5874_s17 + $0x190] sm:$0xff]  ;;  %v1257_v56 = vld [vmem:[%s5874_s17 + $0x78] sm:$0xff] }
 0x2da   :  { %v1112_v0 = vsel %vm1111_vm10, %v5000_v13, %v1108_v36  ;;  %v1057_v10 = vsel %vm1054_vm1, %v1056_v17, %v1052_v63  ;;  %v1119_v54 = vmul.f32 %v1012_v55, %v5625_v37  ;;  %v1027_v40 = vsel %vm1024_vm13, %v1026_v7, %v1022_v4  ;;  %v1270_v13 = vld [vmem:[%s5874_s17 + $0xe0] sm:$0xff]  ;;  %1411 = vmatpush.msrb.mxu1 %v1296_v16  ;;  %v1256_v48 = vld [vmem:[%s5874_s17 + $0x70] sm:$0xff]  ;;  %v1287_v17 = vld [vmem:[%s5874_s17 + $0x168] sm:$0xff] }
 0x2db   :  { %1172 = vmatpush.msra.mxu2 %v1125_v52  ;;  %v1117_v46 = vsel %vm1114_vm11, %v1116_v60, %v1112_v0  ;;  %v1120_v37 = vmul.f32 %v1027_v40, %v5629_v41  ;;  %v1130_v41 = vld [vmem:[%s5796_s13 + $0x18] sm:$0xff]  ;;  %v1258_v59 = vld [vmem:[%s5874_s17 + $0x80] sm:$0xff]  ;;  %v1133_v52 = vld [vmem:[%s5796_s13 + $0x30] sm:$0xff] }
 0x2dc   :  { %v1126_v6 = vmul.f32 %v1117_v46, %v5659_v9  ;;  %v1122_v9 = vmul.f32 %v1057_v10, %v5632_v43  ;;  %v1272_v43 = vld [vmem:[%s5874_s17 + $0xf0] sm:$0xff]  ;;  %1412 = vmatpush.msrb.mxu1 %v1294_v30  ;;  %v1254_v36 = vld [vmem:[%s5874_s17 + $0x60] sm:$0xff]  ;;  %v1289_v0 = vld [vmem:[%s5874_s17 + $0x178] sm:$0xff] }
 0x2dd   :  { %1173 = vmatpush.msra.mxu2 %v1123_v18  ;;  %1378 = vmatpush.msrb.mxu0 %v1272_v43  ;;  %v1286_v60 = vld [vmem:[%s5874_s17 + $0x160] sm:$0xff]  ;;  %v1252_v63 = vld [vmem:[%s5874_s17 + $0x50] sm:$0xff]  ;;  %v1255_v18 = vld [vmem:[%s5874_s17 + $0x68] sm:$0xff] }
 0x2de   :  { %1213 = vmatpush.msrb.mxu3 %v1126_v6  ;;  %1413 = vmatpush.msrb.mxu1 %v1292_v39  ;;  %v1284_v55 = vld [vmem:[%s5874_s17 + $0x150] sm:$0xff]  ;;  %v1282_v46 = vld [vmem:[%s5874_s17 + $0x140] sm:$0xff]  ;;  %v1251_v4 = vld [vmem:[%s5874_s17 + $0x48] sm:$0xff] }
 0x2df   :  { %1174 = vmatpush.msra.mxu2 %v1121_v32  ;;  %1379 = vmatpush.msrb.mxu0 %v1270_v13  ;;  %v1285_v32 = vld [vmem:[%s5874_s17 + $0x158] sm:$0xff]  ;;  %v1248_v7 = vld [vmem:[%s5874_s17 + $0x30] sm:$0xff]  ;;  %v1278_v40 = vld [vmem:[%s5874_s17 + $0x120] sm:$0xff] }
 0x2e0   :  { %1214 = vmatpush.msrb.mxu3 %v1124_v12  ;;  %1414 = vmatpush.msrb.mxu1 %v1290_v20  ;;  %v1134_v6 = vld [vmem:[%s5796_s13 + $0x38] sm:$0xff]  ;;  %v1280_v10 = vld [vmem:[%s5874_s17 + $0x130] sm:$0xff]  ;;  %v1283_v12 = vld [vmem:[%s5874_s17 + $0x148] sm:$0xff]  ;;  %s5247_s13 = smov 17  }
 0x2e1   :  { %1175 = vmatpush.msra.mxu2 %v1119_v54  ;;  %1380 = vmatpush.msrb.mxu0 %v1268_v35  ;;  %v1249_v54 = vld [vmem:[%s5874_s17 + $0x38] sm:$0xff]  ;;  %v1279_v43 = vld [vmem:[%s5874_s17 + $0x128] sm:$0xff]  ;;  %v1334_v35 = vld [vmem:[%s5874_s17 + $0x2e0] sm:$0xff]  ;;  %s6654_s16 = sld [smem:[%s7649_s0 + %s5247_s13]]   ;;  %s5254_s13 = smov 24  }
 0x2e2   :  { %4742 = vmatmul.msk.f32.vlgmr.msra.gmra.mxu2 %vm7653_vm5, %v1127_v8  ;;  %1215 = vmatpush.msrb.mxu3 %v1122_v9  ;;  %v1247_v9 = vld [vmem:[%s5874_s17 + $0x28] sm:$0xff]  ;;  %v1277_v13 = vld [vmem:[%s5874_s17 + $0x118] sm:$0xff]  ;;  %v1362_v24 = vld [vmem:[%s5874_s17 + $0x3c0] sm:$0xff] }
 0x2e3   :  { %1494 = vmatpush.msrb.mxu2 %v1273_v33  ;;  %1381 = vmatpush.msrb.mxu0 %v1266_v23  ;;  %v1274_v33 = vld [vmem:[%s5874_s17 + $0x100] sm:$0xff]  ;;  %v1320_v30 = vld [vmem:[%s5874_s17 + $0x270] sm:$0xff] }
 0x2e4   :  { %1216 = vmatpush.msrb.mxu3 %v1120_v37  ;;  %1415 = vmatpush.msrb.mxu1 %v1288_v49  ;;  %v1244_v37 = vld [vmem:[%s5874_s17 + $0x10] sm:$0xff]  ;;  %v1330_v23 = vld [vmem:[%s5874_s17 + $0x2c0] sm:$0xff] }
 0x2e5   :  { %4750 = vmatmul.msk.f32.vlgmr.msrb.gmra.mxu3 %vm7653_vm5, %v1127_v8  ;;  %1495 = vmatpush.msrb.mxu2 %v1271_v62  ;;  %v1246_v8 = vld [vmem:[%s5874_s17 + $0x20] sm:$0xff]  ;;  %v1368_v62 = vld [vmem:[%s5874_s17 + $0x3f0] sm:$0xff] }
 0x2e6   :  { %1523 = vmatpush.msra.mxu3 %v1305_v15  ;;  %1382 = vmatpush.msrb.mxu0 %v1264_v26  ;;  %v1275_v15 = vld [vmem:[%s5874_s17 + $0x108] sm:$0xff]  ;;  %v1326_v26 = vld [vmem:[%s5874_s17 + $0x2a0] sm:$0xff]  ;;  %v1316_v39 = vld [vmem:[%s5874_s17 + $0x250] sm:$0xff] }
 0x2e7   :  { %1496 = vmatpush.msrb.mxu2 %v1269_v22  ;;  %1416 = vmatpush.msrb.mxu1 %v1286_v60  ;;  %v1364_v22 = vld [vmem:[%s5874_s17 + $0x3d0] sm:$0xff]  ;;  %v1358_v16 = vld [vmem:[%s5874_s17 + $0x3a0] sm:$0xff] }
 0x2e8   :  { %1524 = vmatpush.msra.mxu3 %v1303_v21  ;;  %1383 = vmatpush.msrb.mxu0 %v1262_v28  ;;  %v1332_v21 = vld [vmem:[%s5874_s17 + $0x2d0] sm:$0xff]  ;;  %v1354_v28 = vld [vmem:[%s5874_s17 + $0x380] sm:$0xff] }
 0x2e9   :  { %1497 = vmatpush.msrb.mxu2 %v1267_v61  ;;  %1417 = vmatpush.msrb.mxu1 %v1284_v55  ;;  %v1328_v61 = vld [vmem:[%s5874_s17 + $0x2b0] sm:$0xff]  ;;  %v1338_v60 = vld [vmem:[%s5874_s17 + $0x300] sm:$0xff]  ;;  %v1367_v55 = vld [vmem:[%s5874_s17 + $0x3e8] sm:$0xff] }
 0x2ea   :  { %4743 = vmatmul.msk.f32.gmra.mxu2 %vm7653_vm5, %v1128_v51  ;;  %1525 = vmatpush.msra.mxu3 %v1301_v25  ;;  %v1360_v25 = vld [vmem:[%s5874_s17 + $0x3b0] sm:$0xff] }
 0x2eb   :  { %1498 = vmatpush.msrb.mxu2 %v1265_v27  ;;  %1384 = vmatpush.msrb.mxu0 %v1260_v14  ;;  %v1324_v27 = vld [vmem:[%s5874_s17 + $0x290] sm:$0xff]  ;;  %v1350_v14 = vld [vmem:[%s5874_s17 + $0x360] sm:$0xff] }
 0x2ec   :  { %1526 = vmatpush.msra.mxu3 %v1299_v2  ;;  %1418 = vmatpush.msrb.mxu1 %v1282_v46  ;;  %v1356_v2 = vld [vmem:[%s5874_s17 + $0x390] sm:$0xff] }
 0x2ed   :  { %4751 = vmatmul.msk.f32.gmra.mxu3 %vm7653_vm5, %v1128_v51  ;;  %1499 = vmatpush.msrb.mxu2 %v1263_v38  ;;  %v1281_v51 = vld [vmem:[%s5874_s17 + $0x138] sm:$0xff]  ;;  %v1352_v38 = vld [vmem:[%s5874_s17 + $0x370] sm:$0xff] }
 0x2ee   :  { %1527 = vmatpush.msra.mxu3 %v1297_v11  ;;  %1385 = vmatpush.msrb.mxu0 %v1258_v59  ;;  %v1318_v11 = vld [vmem:[%s5874_s17 + $0x260] sm:$0xff]  ;;  %v1312_v20 = vld [vmem:[%s5874_s17 + $0x230] sm:$0xff] }
 0x2ef   :  { %1500 = vmatpush.msrb.mxu2 %v1261_v42  ;;  %1419 = vmatpush.msrb.mxu1 %v1280_v10  ;;  %v1348_v42 = vld [vmem:[%s5874_s17 + $0x350] sm:$0xff]  ;;  %v1314_v59 = vld [vmem:[%s5874_s17 + $0x240] sm:$0xff]  ;;  %v1327_v10 = vld [vmem:[%s5874_s17 + $0x2a8] sm:$0xff] }
 0x2f0   :  { %1528 = vmatpush.msra.mxu3 %v1295_v44  ;;  %1386 = vmatpush.msrb.mxu0 %v1256_v48  ;;  %v1346_v44 = vld [vmem:[%s5874_s17 + $0x340] sm:$0xff] }
 0x2f1   :  { %1501 = vmatpush.msrb.mxu2 %v1259_v47  ;;  %1420 = vmatpush.msrb.mxu1 %v1278_v40  ;;  %v1344_v47 = vld [vmem:[%s5874_s17 + $0x330] sm:$0xff]  ;;  %v1310_v48 = vld [vmem:[%s5874_s17 + $0x220] sm:$0xff]  ;;  %v1357_v40 = vld [vmem:[%s5874_s17 + $0x398] sm:$0xff] }
 0x2f2   :  { %4744 = vmatmul.msk.f32.gmra.mxu2 %vm7653_vm5, %v1129_v1  ;;  %1529 = vmatpush.msra.mxu3 %v1293_v3  ;;  %v1342_v3 = vld [vmem:[%s5874_s17 + $0x320] sm:$0xff] }
 0x2f3   :  { %1387 = vmatpush.msrb.mxu0 %v1254_v36  ;;  %1502 = vmatpush.msrb.mxu2 %v1257_v56  ;;  %v1340_v36 = vld [vmem:[%s5874_s17 + $0x310] sm:$0xff] }
 0x2f4   :  { %1530 = vmatpush.msra.mxu3 %v1291_v58  ;;  %v1306_v58 = vld [vmem:[%s5874_s17 + $0x200] sm:$0xff] }
 0x2f5   :  { %4752 = vmatmul.msk.f32.gmra.mxu3 %vm7653_vm5, %v1129_v1  ;;  %1388 = vmatpush.msrb.mxu0 %v1252_v63  ;;  %v1276_v1 = vld [vmem:[%s5874_s17 + $0x110] sm:$0xff]  ;;  %v1337_v63 = vld [vmem:[%s5874_s17 + $0x2f8] sm:$0xff] }
 0x2f6   :  { %1503 = vmatpush.msrb.mxu2 %v1255_v18  ;;  %1531 = vmatpush.msra.mxu3 %v1289_v0  ;;  %v1369_v18 = vld [vmem:[%s5874_s17 + $0x3f8] sm:$0xff]  ;;  %v1335_v0 = vld [vmem:[%s5874_s17 + $0x2e8] sm:$0xff] }
 0x2f7   :  { %1389 = vmatpush.msrb.mxu0 %v1250_v50  ;;  %1421 = vmatpush.msrb.mxu1 %v1276_v1  ;;  %v1365_v50 = vld [vmem:[%s5874_s17 + $0x3d8] sm:$0xff] }
 0x2f8   :  { %1504 = vmatpush.msrb.mxu2 %v1253_v29  ;;  %1532 = vmatpush.msra.mxu3 %v1287_v17  ;;  %v1333_v17 = vld [vmem:[%s5874_s17 + $0x2d8] sm:$0xff] }
 0x2f9   :  { %1390 = vmatpush.msrb.mxu0 %v1248_v7  ;;  %1422 = vmatpush.msrb.mxu1 %v1274_v33  ;;  %v1361_v7 = vld [vmem:[%s5874_s17 + $0x3b8] sm:$0xff] }
 0x2fa   :  { %4745 = vmatmul.msk.f32.gmra.mxu2 %vm7653_vm5, %v1130_v41  ;;  %1533 = vmatpush.msra.mxu3 %v1285_v32  ;;  %v1363_v32 = vld [vmem:[%s5874_s17 + $0x3c8] sm:$0xff]  ;;  %v1321_v1 = vld [vmem:[%s5874_s17 + $0x278] sm:$0xff] }
 0x2fb   :  { %1505 = vmatpush.msrb.mxu2 %v1251_v4  ;;  %1391 = vmatpush.msrb.mxu0 %v1246_v8  ;;  %v1331_v4 = vld [vmem:[%s5874_s17 + $0x2c8] sm:$0xff]  ;;  %v1325_v8 = vld [vmem:[%s5874_s17 + $0x298] sm:$0xff] }
 0x2fc   :  { %1534 = vmatpush.msra.mxu3 %v1283_v12  ;;  %1465 = vmatpush.msra.mxu1 %v1368_v62  ;;  %v1315_v62 = vld [vmem:[%s5874_s17 + $0x248] sm:$0xff] }
 0x2fd   :  { %4753 = vmatmul.msk.f32.gmra.mxu3 %vm7653_vm5, %v1130_v41  ;;  %1506 = vmatpush.msrb.mxu2 %v1249_v54  ;;  %v1245_v41 = vld [vmem:[%s5874_s17 + $0x18] sm:$0xff]  ;;  %v1359_v54 = vld [vmem:[%s5874_s17 + $0x3a8] sm:$0xff] }
 0x2fe   :  { %1392 = vmatpush.msrb.mxu0 %v1244_v37  ;;  %1535 = vmatpush.msra.mxu3 %v1281_v51  ;;  %v1323_v37 = vld [vmem:[%s5874_s17 + $0x288] sm:$0xff] }
 0x2ff   :  { %1507 = vmatpush.msrb.mxu2 %v1247_v9  ;;  %1466 = vmatpush.msra.mxu1 %v1366_v19  ;;  %v1355_v51 = vld [vmem:[%s5874_s17 + $0x388] sm:$0xff]  ;;  %v1345_v19 = vld [vmem:[%s5874_s17 + $0x338] sm:$0xff] }
 0x300   :  { %1536 = vmatpush.msra.mxu3 %v1279_v43  ;;  %1393 = vmatpush.msrb.mxu0 %v1242_v45  ;;  %v1319_v43 = vld [vmem:[%s5874_s17 + $0x268] sm:$0xff] }
 0x301   :  { %1508 = vmatpush.msrb.mxu2 %v1245_v41  ;;  %1467 = vmatpush.msra.mxu1 %v1364_v22  ;;  %v1353_v41 = vld [vmem:[%s5874_s17 + $0x378] sm:$0xff]  ;;  %v1351_v45 = vld [vmem:[%s5874_s17 + $0x368] sm:$0xff] }
 0x302   :  { %4746 = vmatmul.msk.f32.gmra.mxu2 %vm7653_vm5, %v1131_v53  ;;  %1537 = vmatpush.msra.mxu3 %v1277_v13  ;;  %v1349_v13 = vld [vmem:[%s5874_s17 + $0x358] sm:$0xff]  ;;  %v1343_v22 = vld [vmem:[%s5874_s17 + $0x328] sm:$0xff] }
 0x303   :  { %1436 = vmatpush.msra.mxu0 %v1336_v57  ;;  %1468 = vmatpush.msra.mxu1 %v1362_v24  ;;  %v1309_v24 = vld [vmem:[%s5874_s17 + $0x218] sm:$0xff] }
 0x304   :  { %1538 = vmatpush.msra.mxu3 %v1275_v15  ;;  %v1347_v15 = vld [vmem:[%s5874_s17 + $0x348] sm:$0xff] }
 0x305   :  { %4754 = vmatmul.msk.f32.gmra.mxu3 %vm7653_vm5, %v1131_v53  ;;  %v1243_v53 = vld [vmem:[%s5874_s17 + $0x8] sm:$0xff]  ;;  %1437 = vmatpush.msra.mxu0 %v1334_v35  ;;  %v1313_v35 = vld [vmem:[%s5874_s17 + $0x238] sm:$0xff] }
 0x306   :  { %1509 = vmatpush.msrb.mxu2 %v1243_v53  ;;  %1469 = vmatpush.msra.mxu1 %v1360_v25  ;;  %v1317_v53 = vld [vmem:[%s5874_s17 + $0x258] sm:$0xff]  ;;  %v1307_v25 = vld [vmem:[%s5874_s17 + $0x208] sm:$0xff] }
 0x307   :  { %1438 = vmatpush.msra.mxu0 %v1332_v21  ;;  %v1311_v21 = vld [vmem:[%s5874_s17 + $0x228] sm:$0xff] }
 0x308   :  { %1470 = vmatpush.msra.mxu1 %v1358_v16 }
 0x309   :  { %1439 = vmatpush.msra.mxu0 %v1330_v23 }
 0x30a   :  { %4747 = vmatmul.msk.f32.gmra.mxu2 %vm7653_vm5, %v1132_v5  ;;  %1471 = vmatpush.msra.mxu1 %v1356_v2 }
 0x30b   :  { %1440 = vmatpush.msra.mxu0 %v1328_v61  ;;  %v1341_v61 = vld [vmem:[%s5874_s17 + $0x318] sm:$0xff] }
 0x30c   :  { %1472 = vmatpush.msra.mxu1 %v1354_v28 }
 0x30d   :  { %4755 = vmatmul.msk.f32.gmra.mxu3 %vm7653_vm5, %v1132_v5  ;;  %1441 = vmatpush.msra.mxu0 %v1326_v26  ;;  %v1322_v5 = vld [vmem:[%s5874_s17 + $0x280] sm:$0xff]  ;;  %v1339_v26 = vld [vmem:[%s5874_s17 + $0x308] sm:$0xff] }
 0x30e   :  { %1473 = vmatpush.msra.mxu1 %v1352_v38 }
 0x30f   :  { %1442 = vmatpush.msra.mxu0 %v1324_v27 }
 0x310   :  { %1474 = vmatpush.msra.mxu1 %v1350_v14 }
 0x311   :  { %1443 = vmatpush.msra.mxu0 %v1322_v5 }
 0x312   :  { %4748 = vmatmul.msk.f32.gmra.mxu2 %vm7653_vm5, %v1133_v52  ;;  %1475 = vmatpush.msra.mxu1 %v1348_v42 }
 0x313   :  { %1444 = vmatpush.msra.mxu0 %v1320_v30 }
 0x314   :  { %1476 = vmatpush.msra.mxu1 %v1346_v44 }
 0x315   :  { %4756 = vmatmul.msk.f32.gmra.mxu3 %vm7653_vm5, %v1133_v52  ;;  %1445 = vmatpush.msra.mxu0 %v1318_v11  ;;  %v1308_v52 = vld [vmem:[%s5874_s17 + $0x210] sm:$0xff] }
 0x316   :  { %1477 = vmatpush.msra.mxu1 %v1344_v47 }
 0x317   :  { %1446 = vmatpush.msra.mxu0 %v1316_v39 }
 0x318   :  { %1478 = vmatpush.msra.mxu1 %v1342_v3 }
 0x319   :  { %1447 = vmatpush.msra.mxu0 %v1314_v59 }
 0x31a   :  { %4749 = vmatmul.msk.f32.gmra.mxu2 %vm7653_vm5, %v1134_v6  ;;  %1479 = vmatpush.msra.mxu1 %v1340_v36 }
 0x31b   :  { %1448 = vmatpush.msra.mxu0 %v1312_v20  ;;  %v1370_v20 = vld [vmem:[%s6022_s21] sm:$0xff] }
 0x31c   :  { %1480 = vmatpush.msra.mxu1 %v1338_v60 }
 0x31d   :  { %4757 = vmatmul.msk.f32.gmra.mxu3 %vm7653_vm5, %v1134_v6  ;;  %1449 = vmatpush.msra.mxu0 %v1310_v48  ;;  %v1329_v6 = vld [vmem:[%s5874_s17 + $0x2b8] sm:$0xff]  ;;  %s5248_s17 = smov 19  }
 0x31e   :  { %s4686_s20 = sld [smem:[%s7649_s0 + %s5248_s17]]   ;;  %s5255_s17 = smov 27  }
 0x31f   :  { %1450 = vmatpush.msra.mxu0 %v1308_v52  ;;  %v1372_v52 = vld [vmem:[%s6022_s21 + $0x10] sm:$0xff] }
 0x321   :  { %1451 = vmatpush.msra.mxu0 %v1306_v58 }
 0x365   :  { %v1177_v49 = vpop.f32.mrf.mxu2 }
 0x366   :  { %1394 = vmatmul.f32.vlgmr.msrb.gmra.mxu0 %v1177_v49  ;;  %1510 = vmatmul.f32.vlgmr.msrb.gmra.mxu2 %v1177_v49 }
 0x367   :  { %1552 = vmatpush.msrb.mxu0 %v1337_v63 }
 0x368   :  { %v1218_v56 = vpop.f32.mrf.mxu3 }
 0x369   :  { %1423 = vmatmul.f32.vlgmr.msrb.gmra.mxu1 %v1218_v56  ;;  %1539 = vmatmul.f32.vlgmr.msra.gmra.mxu3 %v1218_v56 }
 0x36a   :  { %1581 = vmatpush.msrb.mxu1 %v1369_v18  ;;  %1553 = vmatpush.msrb.mxu0 %v1335_v0 }
 0x36c   :  { %1582 = vmatpush.msrb.mxu1 %v1367_v55  ;;  %1554 = vmatpush.msrb.mxu0 %v1333_v17  ;;  %v1374_v55 = vld [vmem:[%s6022_s21 + $0x20] sm:$0xff] }
 0x36d   :  { %v1180_v29 = vpop.f32.mrf.mxu2 }
 0x36e   :  { %1397 = vmatmul.f32.gmra.mxu0 %v1180_v29  ;;  %1513 = vmatmul.f32.gmra.mxu2 %v1180_v29 }
 0x36f   :  { %1583 = vmatpush.msrb.mxu1 %v1365_v50  ;;  %1555 = vmatpush.msrb.mxu0 %v1331_v4 }
 0x370   :  { %v1221_v46 = vpop.f32.mrf.mxu3 }
 0x371   :  { %1426 = vmatmul.f32.gmra.mxu1 %v1221_v46  ;;  %1542 = vmatmul.f32.gmra.mxu3 %v1221_v46 }
 0x372   :  { %1584 = vmatpush.msrb.mxu1 %v1363_v32  ;;  %1556 = vmatpush.msrb.mxu0 %v1329_v6 }
 0x374   :  { %1585 = vmatpush.msrb.mxu1 %v1361_v7  ;;  %1557 = vmatpush.msrb.mxu0 %v1327_v10  ;;  %v1376_v10 = vld [vmem:[%s6022_s21 + $0x30] sm:$0xff] }
 0x375   :  { %v1183_v12 = vpop.f32.mrf.mxu2 }
 0x376   :  { %1400 = vmatmul.f32.gmra.mxu0 %v1183_v12  ;;  %1516 = vmatmul.f32.gmra.mxu2 %v1183_v12 }
 0x377   :  { %1586 = vmatpush.msrb.mxu1 %v1359_v54  ;;  %1558 = vmatpush.msrb.mxu0 %v1325_v8 }
 0x378   :  { %v1224_v9 = vpop.f32.mrf.mxu3 }
 0x379   :  { %1587 = vmatpush.msrb.mxu1 %v1357_v40  ;;  %1545 = vmatmul.f32.gmra.mxu3 %v1224_v9 }
 0x37a   :  { %1429 = vmatmul.f32.gmra.mxu1 %v1224_v9  ;;  %1559 = vmatpush.msrb.mxu0 %v1323_v37 }
 0x37b   :  { %1588 = vmatpush.msrb.mxu1 %v1355_v51 }
 0x37c   :  { %1560 = vmatpush.msrb.mxu0 %v1321_v1 }
 0x37d   :  { %v1186_v33 = vpop.f32.mrf.mxu2  ;;  %1589 = vmatpush.msrb.mxu1 %v1353_v41 }
 0x37e   :  { %1403 = vmatmul.f32.gmra.mxu0 %v1186_v33  ;;  %1519 = vmatmul.f32.gmra.mxu2 %v1186_v33 }
 0x37f   :  { %1561 = vmatpush.msrb.mxu0 %v1319_v43  ;;  %1590 = vmatpush.msrb.mxu1 %v1351_v45 }
 0x380   :  { %v1227_v57 = vpop.f32.mrf.mxu3 }
 0x381   :  { %1562 = vmatpush.msrb.mxu0 %v1317_v53  ;;  %1591 = vmatpush.msrb.mxu1 %v1349_v13 }
 0x382   :  { %1432 = vmatmul.f32.gmra.mxu1 %v1227_v57  ;;  %1548 = vmatmul.f32.gmra.mxu3 %v1227_v57 }
 0x383   :  { %1563 = vmatpush.msrb.mxu0 %v1315_v62  ;;  %1592 = vmatpush.msrb.mxu1 %v1347_v15 }
 0x385   :  { %v1189_v23 = vpop.f32.mrf.mxu2  ;;  %1564 = vmatpush.msrb.mxu0 %v1313_v35  ;;  %1593 = vmatpush.msrb.mxu1 %v1345_v19 }
 0x386   :  { %1452 = vmatmul.f32.vlgmr.msra.gmra.mxu0 %v1189_v23 }
 0x387   :  { %1565 = vmatpush.msrb.mxu0 %v1311_v21  ;;  %1594 = vmatpush.msrb.mxu1 %v1343_v22 }
 0x388   :  { %v1230_v16 = vpop.f32.mrf.mxu3 }
 0x389   :  { %1566 = vmatpush.msrb.mxu0 %v1309_v24  ;;  %1595 = vmatpush.msrb.mxu1 %v1341_v61 }
 0x38a   :  { %1481 = vmatmul.f32.vlgmr.msra.gmra.mxu1 %v1230_v16 }
 0x38b   :  { %1567 = vmatpush.msrb.mxu0 %v1307_v25  ;;  %1596 = vmatpush.msrb.mxu1 %v1339_v26 }
 0x38d   :  { %v1192_v27 = vpop.f32.mrf.mxu2 }
 0x38e   :  { %1455 = vmatmul.f32.gmra.mxu0 %v1192_v27 }
 0x390   :  { %v1233_v2 = vpop.f32.mrf.mxu3 }
 0x392   :  { %1484 = vmatmul.f32.gmra.mxu1 %v1233_v2 }
 0x395   :  { %v1195_v5 = vpop.f32.mrf.mxu2 }
 0x396   :  { %1458 = vmatmul.f32.gmra.mxu0 %v1195_v5 }
 0x398   :  { %v1236_v28 = vpop.f32.mrf.mxu3 }
 0x39a   :  { %1487 = vmatmul.f32.gmra.mxu1 %v1236_v28 }
 0x39d   :  { %v1198_v30 = vpop.f32.mrf.mxu2 }
 0x39e   :  { %1461 = vmatmul.f32.gmra.mxu0 %v1198_v30 }
 0x3a0   :  { %v1239_v38 = vpop.f32.mrf.mxu3 }
 0x3a2   :  { %1490 = vmatmul.f32.gmra.mxu1 %v1239_v38 }
 0x3a6   :  { %1568 = vmatmul.f32.vlgmr.msrb.gmra.mxu0 %v1189_v23 }
 0x3aa   :  { %1597 = vmatmul.f32.vlgmr.msrb.gmra.mxu1 %v1230_v16 }
 0x3ae   :  { %1571 = vmatmul.f32.gmra.mxu0 %v1192_v27 }
 0x3b2   :  { %1600 = vmatmul.f32.gmra.mxu1 %v1233_v2 }
 0x3b6   :  { %1574 = vmatmul.f32.gmra.mxu0 %v1195_v5 }
 0x3ba   :  { %1603 = vmatmul.f32.gmra.mxu1 %v1236_v28  ;;  %v1371_v28 = vld [vmem:[%s6022_s21 + $0x8] sm:$0xff] }
 0x3be   :  { %1577 = vmatmul.f32.gmra.mxu0 %v1198_v30 }
 0x3c2   :  { %1606 = vmatmul.f32.gmra.mxu1 %v1239_v38 }
 0x3e3   :  { %v1395_v11 = vpop.f32.mrf.mxu0 }
 0x3e4   :  { %v1396_v48 = vadd.f32 %v1395_v11, %v1370_v20  ;;  %v1373_v11 = vld [vmem:[%s6022_s21 + $0x18] sm:$0xff] }
 0x3e6   :  { %v1424_v14 = vpop.f32.mrf.mxu1 }
 0x3e7   :  { %v1425_v49 = vadd.f32 %v1424_v14, %v1396_v48 }
 0x3e9   :  { %v1511_v40 = vpop.f32.mrf.mxu2 }
 0x3eb   :  { %v1398_v39 = vpop.f32.mrf.mxu0 }
 0x3ec   :  { %v1399_v58 = vadd.f32 %v1398_v39, %v1372_v52  ;;  %v1540_v33 = vpop.f32.mrf.mxu3 }
 0x3ee   :  { %v1427_v42 = vpop.f32.mrf.mxu1 }
 0x3ef   :  { %v1428_v18 = vadd.f32 %v1427_v42, %v1399_v58 }
 0x3f1   :  { %v1514_v21 = vpop.f32.mrf.mxu2 }
 0x3f2   :  { %v1515_v48 = vadd.f32 %v1514_v21, %v1373_v11 }
 0x3f3   :  { %v1401_v59 = vpop.f32.mrf.mxu0 }
 0x3f4   :  { %v1402_v50 = vadd.f32 %v1401_v59, %v1374_v55  ;;  %v1543_v14 = vpop.f32.mrf.mxu3 }
 0x3f5   :  { %v1544_v55 = vadd.f32 %v1543_v14, %v1515_v48 }
 0x3f7   :  { %v1430_v44 = vpop.f32.mrf.mxu1 }
 0x3f8   :  { %v1431_v6 = vadd.f32 %v1430_v44, %v1402_v50  ;;  %v1512_v44 = vadd.f32 %v1511_v40, %v1371_v28 }
 0x3fb   :  { %v1404_v47 = vpop.f32.mrf.mxu0 }
 0x3fc   :  { %v1405_v9 = vadd.f32 %v1404_v47, %v1376_v10 }
 0x3ff   :  { %v1433_v3 = vpop.f32.mrf.mxu1 }
 0x400   :  { %v1434_v41 = vadd.f32 %v1433_v3, %v1405_v9 }
 0x403   :  { %v1453_v36 = vpop.f32.mrf.mxu0 }
 0x404   :  { %v1454_v56 = vadd.f32 %v1453_v36, %v1425_v49  ;;  %v1517_v36 = vpop.f32.mrf.mxu2 }
 0x407   :  { %v1482_v60 = vpop.f32.mrf.mxu1 }
 0x408   :  { %v1483_v63 = vadd.f32 %v1482_v60, %v1454_v56  ;;  %v1541_v60 = vadd.f32 %v1540_v33, %v1512_v44 }
 0x40a   :  { %v4758_v0 = vmul.f32 -1.442695, %v1483_v63 }
 0x40b   :  { %v1456_v29 = vpop.f32.mrf.mxu0 }
 0x40c   :  { %5001 = vpow2.f32 %v4758_v0  ;;  %v1457_v17 = vadd.f32 %v1456_v29, %v1428_v18  ;;  %v1375_v29 = vld [vmem:[%s6022_s21 + $0x28] sm:$0xff] }
 0x40f   :  { %v1485_v46 = vpop.f32.mrf.mxu1 }
 0x410   :  { %v6027_v4 = vadd.f32 %v1485_v46, %v1457_v17 }
 0x412   :  { %v5002_v32 = vpop.eup %5001  ;;  %v4760_v7 = vmul.f32 -1.442695, %v6027_v4 }
 0x413   :  { %v1634_v54 = vadd.f32 1.0, %v5002_v32  ;;  %v1459_v12 = vpop.f32.mrf.mxu0 }
 0x414   :  { %5003 = vpow2.f32 %v4760_v7  ;;  %v1460_v8 = vadd.f32 %v1459_v12, %v1431_v6  ;;  %v1546_v12 = vpop.f32.mrf.mxu3 }
 0x415   :  { %5005 = vrcp.f32 %v1634_v54  ;;  %v1653_v35 = vand.u32 2147483648, %v1634_v54  ;;  %v1651_v23 = vand.u32 2147483647, %v1634_v54  ;;  %vm1647_vm3 = vweird.f32 %v1634_v54 }
 0x417   :  { %v1488_v37 = vpop.f32.mrf.mxu1  ;;  %v1654_v27 = vor.u32 1.1754944e-38, %v1653_v35  ;;  %vm1652_vm15 = vcmp.eq.f32.partialorder %v1651_v23, 8.507059e+37 }
 0x418   :  { %v6031_v51 = vadd.f32 %v1488_v37, %v1460_v8 }
 0x41a   :  { %v5004_v1 = vpop.eup %5003  ;;  %v4762_v43 = vmul.f32 -1.442695, %v6031_v51 }
 0x41b   :  { %v5006_v45 = vpop.eup %5005  ;;  %v1636_v53 = vadd.f32 1.0, %v5004_v1  ;;  %v1462_v13 = vpop.f32.mrf.mxu0 }
 0x41c   :  { %v1643_v57 = vmul.f32 %v5006_v45, %v1634_v54  ;;  %5007 = vpow2.f32 %v4762_v43  ;;  %v1463_v62 = vadd.f32 %v1462_v13, %v1434_v41  ;;  %vm1648_vm8 = vweird.f32 %v5006_v45  ;;  %v1549_v28 = vpop.f32.mrf.mxu3 }
 0x41d   :  { %5009 = vrcp.f32 %v1636_v53  ;;  %vm1649_vm9 = vmor %vm1647_vm3, %vm1648_vm8  ;;  %v1683_v20 = vand.u32 2147483648, %v1636_v53  ;;  %v1681_v49 = vand.u32 2147483647, %v1636_v53  ;;  %vm1677_vm4 = vweird.f32 %v1636_v53 }
 0x41e   :  { %v1644_v15 = vsub.f32 1.0, %v1643_v57  ;;  %v1518_v54 = vadd.f32 %v1517_v36, %v1375_v29  ;;  %v1377_v57 = vld [vmem:[%s6022_s21 + $0x38] sm:$0xff]  ;;  %s5249_s21 = smov 20  }
 0x41f   :  { %v1491_v19 = vpop.f32.mrf.mxu1  ;;  %vm1682_vm7 = vcmp.eq.f32.partialorder %v1681_v49, 8.507059e+37  ;;  %s4687_s24 = sld [smem:[%s7649_s0 + %s5249_s21]]   ;;  %s5256_s21 = smov 26  }
 0x420   :  { %v1645_v22 = vmul.f32 %v5006_v45, %v1644_v15  ;;  %v6034_v24 = vadd.f32 %v1491_v19, %v1463_v62  ;;  %v1547_v33 = vadd.f32 %v1546_v12, %v1518_v54  ;;  %v1520_v62 = vpop.f32.mrf.mxu2 }
 0x422   :  { %v5008_v61 = vpop.eup %5007  ;;  %v1646_v25 = vadd.f32 %v5006_v45, %v1645_v22  ;;  %v4764_v26 = vmul.f32 -1.442695, %v6034_v24 }
 0x423   :  { %v5010_v16 = vpop.eup %5009  ;;  %v6037_v2 = vadd.f32 1.0, %v5008_v61  ;;  %v1569_v5 = vpop.f32.mrf.mxu0 }
 0x424   :  { %v1650_v30 = vsel %vm1649_vm9, %v5006_v45, %v1646_v25  ;;  %v1673_v38 = vmul.f32 %v5010_v16, %v1636_v53  ;;  %5011 = vpow2.f32 %v4764_v26  ;;  %vm1678_vm2 = vweird.f32 %v5010_v16 }
 0x425   :  { %v1655_v39 = vsel %vm1652_vm15, %v1654_v27, %v1650_v30  ;;  %5013 = vrcp.f32 %v6037_v2  ;;  %vm1679_vm6 = vmor %vm1677_vm4, %vm1678_vm2  ;;  %v1570_v7 = vadd.f32 %v1569_v5, %v1541_v60  ;;  %v1713_v8 = vand.u32 2147483648, %v6037_v2 }
 0x426   :  { %v6042_v42 = vmul.f32 %v1655_v39, %v1483_v63  ;;  %v1674_v59 = vsub.f32 1.0, %v1673_v38  ;;  %v1684_v63 = vor.u32 1.1754944e-38, %v1683_v20  ;;  %v1711_v37 = vand.u32 2147483647, %v6037_v2 }
 0x427   :  { %v1598_v47 = vpop.f32.mrf.mxu1  ;;  %vm1707_vm10 = vweird.f32 %v6037_v2  ;;  %v1714_v53 = vor.u32 1.1754944e-38, %v1713_v8  ;;  %v1521_v25 = vadd.f32 %v1520_v62, %v1377_v57 }
 0x428   :  { %v1675_v3 = vmul.f32 %v5010_v16, %v1674_v59  ;;  %1808 = vrot.lane.b32.xlu0 %v6042_v42, %s5234_s26  ;;  %v6061_v41 = vadd.f32 %v1598_v47, %v1570_v7  ;;  %vm1712_vm14 = vcmp.eq.f32.partialorder %v1711_v37, 8.507059e+37 }
 0x429   :  { %v1550_v59 = vadd.f32 %v1549_v28, %v1521_v25 }
 0x42a   :  { %v5012_v52 = vpop.eup %5011  ;;  %v1676_v56 = vadd.f32 %v5010_v16, %v1675_v3  ;;  %v4759_v23 = vmul.f32 -1.442695, %v6061_v41 }
 0x42b   :  { %v5014_v58 = vpop.eup %5013  ;;  %v6046_v18 = vadd.f32 1.0, %v5012_v52  ;;  %v1572_v0 = vpop.f32.mrf.mxu0 }
 0x42c   :  { %v1680_v17 = vsel %vm1679_vm6, %v5010_v16, %v1676_v56  ;;  %v1703_v50 = vmul.f32 %v5014_v58, %v6037_v2  ;;  %v1573_v10 = vadd.f32 %v1572_v0, %v1544_v55  ;;  %vm1708_vm12 = vweird.f32 %v5014_v58 }
 0x42d   :  { %v1685_v46 = vsel %vm1682_vm7, %v1684_v63, %v1680_v17  ;;  %5015 = vrcp.f32 %v6046_v18  ;;  %vm1709_vm11 = vmor %vm1707_vm10, %vm1708_vm12  ;;  %v1743_v26 = vand.u32 2147483648, %v6046_v18  ;;  %v1741_v2 = vand.u32 2147483647, %v6046_v18 }
 0x42e   :  { %v6052_v32 = vmul.f32 %v1685_v46, %v6027_v4  ;;  %v1704_v6 = vsub.f32 1.0, %v1703_v50  ;;  %vm1737_vm1 = vweird.f32 %v6046_v18 }
 0x42f   :  { %v1601_v40 = vpop.f32.mrf.mxu1  ;;  %v1744_v11 = vor.u32 1.1754944e-38, %v1743_v26  ;;  %vm1742_vm8 = vcmp.eq.f32.partialorder %v1741_v2, 8.507059e+37 }
 0x430   :  { %v1705_v9 = vmul.f32 %v5014_v58, %v1704_v6  ;;  %v6056_v1 = vadd.f32 %v1601_v40, %v1573_v10  ;;  %1810 = vrot.lane.b32.xlu1 %v6052_v32, %s5234_s26 }
 0x432   :  { %v1706_v4 = vadd.f32 %v5014_v58, %v1705_v9  ;;  %v4761_v43 = vmul.f32 -1.442695, %v6056_v1 }
 0x433   :  { %v5016_v45 = vpop.eup %5015  ;;  %v1575_v13 = vpop.f32.mrf.mxu0 }
 0x434   :  { %v1710_v15 = vsel %vm1709_vm11, %v5014_v58, %v1706_v4  ;;  %v1733_v35 = vmul.f32 %v5016_v45, %v6046_v18  ;;  %5017 = vpow2.f32 %v4761_v43  ;;  %v1576_v61 = vadd.f32 %v1575_v13, %v1547_v33 }
 0x435   :  { %v1715_v19 = vsel %vm1712_vm14, %v1714_v53, %v1710_v15  ;;  %vm1738_vm0 = vweird.f32 %v5016_v45  ;;  %5019 = vpow2.f32 %v4759_v23 }
 0x436   :  { %v6067_v21 = vmul.f32 %v1715_v19, %v6031_v51  ;;  %v1734_v22 = vsub.f32 1.0, %v1733_v35  ;;  %vm1739_vm13 = vmor %vm1737_vm1, %vm1738_vm0 }
 0x437   :  { %v1604_v16 = vpop.f32.mrf.mxu1 }
 0x438   :  { %v1735_v27 = vmul.f32 %v5016_v45, %v1734_v22  ;;  %v6072_v5 = vadd.f32 %v1604_v16, %v1576_v61  ;;  %1812 = vrot.lane.b32.xlu2 %v6067_v21, %s5234_s26 }
 0x43a   :  { %v5018_v51 = vpop.eup %5017  ;;  %v1736_v30 = vadd.f32 %v5016_v45, %v1735_v27  ;;  %v4763_v38 = vmul.f32 -1.442695, %v6072_v5 }
 0x43b   :  { %v1637_v14 = vadd.f32 1.0, %v5018_v51  ;;  %v1578_v39 = vpop.f32.mrf.mxu0  ;;  %v5020_v49 = vpop.eup %5019 }
 0x43c   :  { %v1740_v44 = vsel %vm1739_vm13, %v5016_v45, %v1736_v30  ;;  %5021 = vpow2.f32 %v4763_v38  ;;  %v1579_v48 = vadd.f32 %v1578_v39, %v1550_v59  ;;  %v6086_v60 = vadd.f32 1.0, %v5020_v49  ;;  %v1853_v59 = vld [vmem:[%s4680_s25 + $0x10] sm:$0xff] }
 0x43d   :  { %v1745_v20 = vsel %vm1742_vm8, %v1744_v11, %v1740_v44  ;;  %5023 = vrcp.f32 %v1637_v14  ;;  %v1698_v0 = vand.u32 2147483648, %v1637_v14  ;;  %v1696_v29 = vand.u32 2147483647, %v1637_v14  ;;  %v1854_v44 = vld [vmem:[%s4680_s25 + $0x18] sm:$0xff] }
 0x43e   :  { %v6079_v47 = vmul.f32 %v1745_v20, %v6034_v24  ;;  %vm1692_vm9 = vweird.f32 %v1637_v14  ;;  %vm1662_vm13 = vweird.f32 %v6086_v60  ;;  %v1666_v51 = vand.u32 2147483647, %v6086_v60  ;;  %v1851_v20 = vld [vmem:[%s4680_s25] sm:$0xff] }
 0x43f   :  { %v1607_v3 = vpop.f32.mrf.mxu1  ;;  %v1699_v6 = vor.u32 1.1754944e-38, %v1698_v0  ;;  %vm1697_vm2 = vcmp.eq.f32.partialorder %v1696_v29, 8.507059e+37 }
 0x440   :  { %v6081_v52 = vadd.f32 %v1607_v3, %v1579_v48  ;;  %1814 = vrot.lane.b32.xlu2 %v6079_v47, %s5234_s26 }
 0x442   :  { %v5022_v36 = vpop.eup %5021  ;;  %v4765_v56 = vmul.f32 -1.442695, %v6081_v52 }
 0x443   :  { %v5024_v58 = vpop.eup %5023  ;;  %v1639_v63 = vadd.f32 1.0, %v5022_v36 }
 0x444   :  { %v1688_v18 = vmul.f32 %v5024_v58, %v1637_v14  ;;  %5025 = vpow2.f32 %v4765_v56  ;;  %vm1693_vm3 = vweird.f32 %v5024_v58 }
 0x445   :  { %5027 = vrcp.f32 %v1639_v63  ;;  %vm1694_vm15 = vmor %vm1692_vm9, %vm1693_vm3  ;;  %v1728_v37 = vand.u32 2147483648, %v1639_v63  ;;  %v1726_v45 = vand.u32 2147483647, %v1639_v63  ;;  %vm1722_vm6 = vweird.f32 %v1639_v63 }
 0x446   :  { %v1689_v24 = vsub.f32 1.0, %v1688_v18  ;;  %5029 = vrcp.f32 %v6086_v60  ;;  %vm1667_vm3 = vcmp.eq.f32.partialorder %v1666_v51, 8.507059e+37  ;;  %vm7676_vm9 = vcmp.lt.s32.totalorder %v5558_v34, 112 }
 0x447   :  { %v1729_v13 = vor.u32 1.1754944e-38, %v1728_v37  ;;  %vm1727_vm12 = vcmp.eq.f32.partialorder %v1726_v45, 8.507059e+37 }
 0x448   :  { %v1690_v55 = vmul.f32 %v5024_v58, %v1689_v24 }
 0x44a   :  { %v5026_v17 = vpop.eup %5025  ;;  %v1691_v50 = vadd.f32 %v5024_v58, %v1690_v55 }
 0x44b   :  { %v5028_v46 = vpop.eup %5027  ;;  %v1641_v7 = vadd.f32 1.0, %v5026_v17 }
 0x44c   :  { %v1695_v10 = vsel %vm1694_vm15, %v5024_v58, %v1691_v50  ;;  %v1718_v54 = vmul.f32 %v5028_v46, %v1639_v63  ;;  %v5030_v12 = vpop.eup %5029  ;;  %vm1723_vm4 = vweird.f32 %v5028_v46  ;;  %v4766_v58 = vld [vmem:[%s6135_s1 + $0x2] ss:$4 sm:$0x3]  ;;  %vm7677_vm15 = vmmov %vm7676_vm9 }
 0x44d   :  { %v1700_v8 = vsel %vm1697_vm2, %v1699_v6, %v1695_v10  ;;  %5031 = vrcp.f32 %v1641_v7  ;;  %v1658_v4 = vmul.f32 %v5030_v12, %v6086_v60  ;;  %vm1724_vm7 = vmor %vm1722_vm6, %vm1723_vm4  ;;  %v1758_v22 = vand.u32 2147483648, %v1641_v7 }
 0x44e   :  { %v6090_v40 = vmul.f32 %v1700_v8, %v6056_v1  ;;  %v1719_v9 = vsub.f32 1.0, %v1718_v54  ;;  %v1756_v25 = vand.u32 2147483647, %v1641_v7  ;;  %vm1752_vm11 = vweird.f32 %v1641_v7  ;;  %vm7678_vm2 = vmmov %vm7676_vm9 }
 0x44f   :  { %v1659_v57 = vsub.f32 1.0, %v1658_v4  ;;  %v1759_v16 = vor.u32 1.1754944e-38, %v1758_v22  ;;  %vm1663_vm0 = vweird.f32 %v5030_v12  ;;  %v1836_v63 = vperm.slane %v4766_v58, 1  ;;  %vm7679_vm4 = vmmov %vm7678_vm2 }
 0x450   :  { %v1720_v43 = vmul.f32 %v5028_v46, %v1719_v9  ;;  %1818 = vrot.lane.b32.xlu2 %v6090_v40, %s5234_s26  ;;  %vm1757_vm1 = vcmp.eq.f32.partialorder %v1756_v25, 8.507059e+37  ;;  %vm1664_vm8 = vmor %vm1662_vm13, %vm1663_vm0 }
 0x451   :  { %v1660_v23 = vmul.f32 %v5030_v12, %v1659_v57  ;;  %vm7680_vm6 = vmmov %vm7678_vm2 }
 0x452   :  { %v1721_v33 = vadd.f32 %v5028_v46, %v1720_v43 }
 0x453   :  { %v5032_v53 = vpop.eup %5031  ;;  %v1661_v27 = vadd.f32 %v5030_v12, %v1660_v23 }
 0x454   :  { %v1725_v62 = vsel %vm1724_vm7, %v5028_v46, %v1721_v33  ;;  %v1748_v1 = vmul.f32 %v5032_v53, %v1641_v7  ;;  %vm1753_vm10 = vweird.f32 %v5032_v53  ;;  %vm7681_vm7 = vmmov %vm7678_vm2 }
 0x455   :  { %v1730_v15 = vsel %vm1727_vm12, %v1729_v13, %v1725_v62  ;;  %vm1754_vm14 = vmor %vm1752_vm11, %vm1753_vm10  ;;  %v1665_v38 = vsel %vm1664_vm8, %v5030_v12, %v1661_v27  ;;  %v1794_v13 = vld [vmem:[%s6135_s1] ss:$4 sm:$0x3]  ;;  %vm7684_vm11 = vcmp.lt.s32.totalorder %v5558_v34, 16  ;;  %s5251_s1 = smov 21  }
 0x456   :  { %v6096_v35 = vmul.f32 %v1730_v15, %v6072_v5  ;;  %v1749_v19 = vsub.f32 1.0, %v1748_v1  ;;  %v1668_v5 = vand.u32 2147483648, %v6086_v60  ;;  %v1835_v60 = vperm.slane %v4766_v58, 0  ;;  %vm7682_vm12 = vmmov %vm7678_vm2  ;;  %s7095_s4 = sld [smem:[%s7649_s0 + %s5251_s1]]  }
 0x457   :  { %vm7683_vm10 = vmmov %vm7678_vm2  ;;  %v1796_v62 = vperm.slane %v1794_v13, 0  ;;  %v1797_v15 = vperm.slane %v1794_v13, 1 }
 0x458   :  { %v1750_v61 = vmul.f32 %v5032_v53, %v1749_v19  ;;  %1820 = vrot.lane.b32.xlu0 %v6096_v35, %s5234_s26  ;;  %1776 = vrot.lane.b32.xlu2 %v6079_v47, %s5235_s27  ;;  %v1669_v11 = vor.u32 1.1754944e-38, %v1668_v5  ;;  %vm7686_vm0 = vmmov %vm7684_vm11 }
 0x459   :  { %vm7688_vm13 = vmmov %vm7686_vm0 }
 0x45a   :  { %v1751_v26 = vadd.f32 %v5032_v53, %v1750_v61  ;;  %v1670_v14 = vsel %vm1667_vm3, %v1669_v11, %v1665_v38  ;;  %vm7689_vm8 = vmmov %vm7686_vm0  ;;  %v1847_v38 = vld [vmem:[%s6173_s5] sm:$0xff]  ;;  %v1848_v11 = vld [vmem:[%s6173_s5 + $0x8] sm:$0xff] }
 0x45b   :  { %v6115_v39 = vmul.f32 %v1670_v14, %v6061_v41  ;;  %v1852_v41 = vld [vmem:[%s4680_s25 + $0x8] sm:$0xff]  ;;  %vm7690_vm3 = vmmov %vm7686_vm0  ;;  %v1849_v14 = vld [vmem:[%s6173_s5 + $0x10] sm:$0xff]  ;;  %s5250_s25 = smov 18  }
 0x45c   :  { %v1755_v2 = vsel %vm1754_vm14, %v5032_v53, %v1751_v26  ;;  %vm7685_vm14 = vmmov %vm7684_vm11  ;;  %s7043_s30 = sld [smem:[%s7649_s0 + %s5250_s25]]  }
 0x45d   :  { %v1760_v28 = vsel %vm1757_vm1, %v1759_v16, %v1755_v2  ;;  %vm7687_vm1 = vmmov %vm7686_vm0 }
 0x45e   :  { %v6106_v30 = vmul.f32 %v1760_v28, %v6081_v52 }
 0x460   :  { %1822 = vrot.lane.b32.xlu1 %v6106_v30, %s5234_s26  ;;  %1772 = vrot.lane.b32.xlu0 %v6052_v32, %s5235_s27 }
 0x461   :  { %1782 = vrot.lane.b32.xlu2 %v6096_v35, %s5235_s27 }
 0x468   :  { %1784 = vrot.lane.b32.xlu0 %v6106_v30, %s5235_s27  ;;  %1816 = vrot.lane.b32.xlu1 %v6115_v39, %s5234_s26 }
 0x469   :  { %1770 = vrot.lane.b32.xlu2 %v6042_v42, %s5235_s27 }
 0x470   :  { %1778 = vrot.lane.b32.xlu0 %v6115_v39, %s5235_s27  ;;  %1774 = vrot.lane.b32.xlu1 %v6067_v21, %s5235_s27 }
 0x471   :  { %1867 = vperm.xlu2 %4933, %v1853_v59  }
 0x478   :  { %1862 = vperm.xlu0 %4934, %v1852_v41   ;;  %1780 = vrot.lane.b32.xlu1 %v6090_v40, %s5235_s27 }
 0x480   :  { %1872 = vperm.xlu1 %4932, %v1854_v44  }
 0x488   :  { %1857 = vperm.xlu1 %4932, %v1851_v20  }
 0x492   :  { %v1813_v48 = vpop.permute.xlu2 %1812 }
 0x49a   :  { %v1809_v3 = vpop.permute.xlu0 %1808  ;;  %v1815_v49 = vpop.permute.xlu2 %1814 }
 0x4a2   :  { %v1811_v52 = vpop.permute.xlu1 %1810 }
 0x4aa   :  { %v1819_v56 = vpop.permute.xlu2 %1818 }
 0x4ab   :  { %v1825_v6 = vsel %vm7680_vm6, %v1811_v52, %v1819_v56  ;;  %v1829_v7 = vsel %vm7681_vm7, %v1819_v56, %v1811_v52 }
 0x4ac   :  { %v1841_v8 = vmul.f32 %v1835_v60, %v1825_v6  ;;  %v1842_v9 = vmul.f32 %v1836_v63, %v1829_v7 }
 0x4b2   :  { %v1777_v10 = vpop.permute.xlu2 %1776 }
 0x4bb   :  { %v1783_v57 = vpop.permute.xlu2 %1782 }
 0x4ca   :  { %v1821_v36 = vpop.permute.xlu0 %1820 }
 0x4cb   :  { %v1826_v24 = vsel %vm7676_vm9, %v1813_v48, %v1821_v36  ;;  %v1830_v0 = vsel %vm7677_vm15, %v1821_v36, %v1813_v48  ;;  %vm7691_vm9 = vmmov %vm7686_vm0  ;;  %vm7692_vm15 = vcmask 785408  }
 0x4cc   :  { %v1843_v54 = vmul.f32 %v1835_v60, %v1826_v24  ;;  %v1844_v12 = vmul.f32 %v1836_v63, %v1830_v0 }
 0x4d2   :  { %v1823_v18 = vpop.permute.xlu1 %1822  ;;  %v1773_v46 = vpop.permute.xlu0 %1772 }
 0x4d3   :  { %v1827_v55 = vsel %vm7678_vm2, %v1815_v49, %v1823_v18  ;;  %v1831_v29 = vsel %vm7679_vm4, %v1823_v18, %v1815_v49  ;;  %vm7693_vm2 = vmmov %vm7692_vm15 }
 0x4d4   :  { %v1845_v17 = vmul.f32 %v1835_v60, %v1827_v55  ;;  %v1846_v50 = vmul.f32 %v1836_v63, %v1831_v29  ;;  %vm7694_vm4 = vmmov %vm7693_vm2 }
 0x4d5   :  { %vm7695_vm6 = vmmov %vm7693_vm2 }
 0x4d6   :  { %1891 = vmatpush.msra.mxu2 %v1845_v17  ;;  %1920 = vmatpush.msrb.mxu3 %v1846_v50  ;;  %vm7696_vm7 = vmmov %vm7693_vm2 }
 0x4d8   :  { %1892 = vmatpush.msra.mxu2 %v1843_v54  ;;  %1921 = vmatpush.msrb.mxu3 %v1844_v12 }
 0x4da   :  { %v1817_v37 = vpop.permute.xlu1 %1816  ;;  %1893 = vmatpush.msra.mxu2 %v1841_v8  ;;  %1922 = vmatpush.msrb.mxu3 %v1842_v9  ;;  %v1785_v53 = vpop.permute.xlu0 %1784 }
 0x4db   :  { %v1824_v4 = vsel %vm7682_vm12, %v1809_v3, %v1817_v37  ;;  %v1828_v43 = vsel %vm7683_vm10, %v1817_v37, %v1809_v3  ;;  %v1793_v19 = vsel %vm7684_vm11, %v1785_v53, %v1777_v10  ;;  %v1789_v22 = vsel %vm7685_vm14, %v1777_v10, %v1785_v53  ;;  %vm7697_vm12 = vmmov %vm7693_vm2 }
 0x4dc   :  { %v1839_v45 = vmul.f32 %v1835_v60, %v1824_v4  ;;  %v1840_v33 = vmul.f32 %v1836_v63, %v1828_v43  ;;  %v1806_v23 = vmul.f32 %v1796_v62, %v1793_v19  ;;  %vm7698_vm10 = vmmov %vm7693_vm2 }
 0x4dd   :  { %vm7699_vm11 = vmmov %vm7693_vm2 }
 0x4de   :  { %1894 = vmatpush.msra.mxu2 %v1839_v45  ;;  %1923 = vmatpush.msrb.mxu3 %v1840_v33 }
 0x4e0   :  { %1895 = vmatpush.msra.mxu2 %v6079_v47  ;;  %1924 = vmatpush.msrb.mxu3 %v6106_v30 }
 0x4e2   :  { %v1775_v1 = vpop.permute.xlu1 %1774  ;;  %1896 = vmatpush.msra.mxu2 %v6067_v21  ;;  %1925 = vmatpush.msrb.mxu3 %v6096_v35  ;;  %v1807_v35 = vmul.f32 %v1797_v15, %v1789_v22 }
 0x4e3   :  { %v1792_v47 = vsel %vm7686_vm0, %v1783_v57, %v1775_v1  ;;  %v1788_v21 = vsel %vm7687_vm1, %v1775_v1, %v1783_v57 }
 0x4e4   :  { %1897 = vmatpush.msra.mxu2 %v6052_v32  ;;  %1926 = vmatpush.msrb.mxu3 %v6090_v40  ;;  %v1779_v32 = vpop.permute.xlu0 %1778  ;;  %v1804_v61 = vmul.f32 %v1796_v62, %v1792_v47  ;;  %v1805_v25 = vmul.f32 %v1797_v15, %v1788_v21  ;;  %v1771_v40 = vpop.permute.xlu2 %1770 }
 0x4e5   :  { %v1790_v16 = vsel %vm7689_vm8, %v1779_v32, %v1771_v40 }
 0x4e6   :  { %1898 = vmatpush.msra.mxu2 %v6042_v42  ;;  %1927 = vmatpush.msrb.mxu3 %v6115_v39  ;;  %v1786_v42 = vsel %vm7688_vm13, %v1771_v40, %v1779_v32  ;;  %v1800_v51 = vmul.f32 %v1796_v62, %v1790_v16  ;;  %v1850_v39 = vld [vmem:[%s6173_s5 + $0x18] sm:$0xff]  ;;  %s5252_s5 = smov 22  }
 0x4e7   :  { %v1801_v30 = vmul.f32 %v1797_v15, %v1786_v42  ;;  %s7346_s8 = sld [smem:[%s7649_s0 + %s5252_s5]]  }
 0x4e8   :  { %1899 = vmatpush.msra.mxu2 %v1806_v23  ;;  %1928 = vmatpush.msrb.mxu3 %v1807_v35 }
 0x4ea   :  { %v1781_v26 = vpop.permute.xlu1 %1780  ;;  %1900 = vmatpush.msra.mxu2 %v1804_v61  ;;  %1929 = vmatpush.msrb.mxu3 %v1805_v25 }
 0x4eb   :  { %v1787_v27 = vsel %vm7690_vm3, %v1773_v46, %v1781_v26  ;;  %v1791_v2 = vsel %vm7691_vm9, %v1781_v26, %v1773_v46 }
 0x4ec   :  { %v1802_v5 = vmul.f32 %v1796_v62, %v1791_v2  ;;  %v1803_v28 = vmul.f32 %v1797_v15, %v1787_v27  ;;  %v1863_v48 = vpop.permute.xlu0 %1862  ;;  %v1868_v24 = vpop.permute.xlu2 %1867 }
 0x4ee   :  { %1901 = vmatpush.msra.mxu2 %v1802_v5  ;;  %1930 = vmatpush.msrb.mxu3 %v1803_v28 }
 0x4f0   :  { %1902 = vmatpush.msra.mxu2 %v1800_v51  ;;  %1931 = vmatpush.msrb.mxu3 %v1801_v30 }
 0x4f1   :  { %4767 = vmatmul.msk.f32.vlgmr.msra.gmra.mxu2 %vm7692_vm15, %v1847_v38  ;;  %4771 = vmatmul.msk.f32.vlgmr.msrb.gmra.mxu3 %vm7693_vm2, %v1847_v38 }
 0x4f2   :  { %v1873_v59 = vpop.permute.xlu1 %1872 }
 0x4f9   :  { %4768 = vmatmul.msk.f32.gmra.mxu2 %vm7694_vm4, %v1848_v11  ;;  %4772 = vmatmul.msk.f32.gmra.mxu3 %vm7695_vm6, %v1848_v11 }
 0x4fa   :  { %v1858_v20 = vpop.permute.xlu1 %1857 }
 0x501   :  { %4769 = vmatmul.msk.f32.gmra.mxu2 %vm7696_vm7, %v1849_v14  ;;  %4773 = vmatmul.msk.f32.gmra.mxu3 %vm7697_vm12, %v1849_v14 }
 0x509   :  { %4770 = vmatmul.msk.f32.gmra.mxu2 %vm7698_vm10, %v1850_v39  ;;  %4774 = vmatmul.msk.f32.gmra.mxu3 %vm7699_vm11, %v1850_v39 }
 0x574   :  { %v1904_v41 = vpop.f32.mrf.mxu2  ;;  %v1933_v44 = vpop.f32.mrf.mxu3 }
 0x575   :  { %v6196_v3 = vadd.f32 %v1904_v41, %v1858_v20  ;;  %v6200_v56 = vadd.f32 %v1933_v44, %v1858_v20 }
 0x577   :  { %v4775_v58 = vmul.f32 -1.442695, %v6196_v3  ;;  %v4776_v18 = vmul.f32 -1.442695, %v6200_v56 }
 0x579   :  { %5033 = vpow2.f32 %v4775_v58 }
 0x57c   :  { %v1907_v49 = vpop.f32.mrf.mxu2  ;;  %v1936_v52 = vpop.f32.mrf.mxu3 }
 0x57d   :  { %v6198_v36 = vadd.f32 %v1907_v49, %v1863_v48  ;;  %v6204_v63 = vadd.f32 %v1936_v52, %v1863_v48 }
 0x57f   :  { %v4777_v60 = vmul.f32 -1.442695, %v6198_v36  ;;  %v4778_v0 = vmul.f32 -1.442695, %v6204_v63  ;;  %v5034_v7 = vpop.eup %5033 }
 0x580   :  { %v6214_v12 = vadd.f32 1.0, %v5034_v7 }
 0x581   :  { %5035 = vpow2.f32 %v4777_v60 }
 0x582   :  { %5037 = vpow2.f32 %v4776_v18  ;;  %v1988_v2 = vand.u32 2147483648, %v6214_v12  ;;  %v1986_v51 = vand.u32 2147483647, %v6214_v12  ;;  %vm1982_vm1 = vweird.f32 %v6214_v12 }
 0x583   :  { %5039 = vpow2.f32 %v4778_v0 }
 0x584   :  { %v1910_v55 = vpop.f32.mrf.mxu2  ;;  %v1939_v29 = vpop.f32.mrf.mxu3  ;;  %v6272_v20 = vor.u32 1.1754944e-38, %v1988_v2  ;;  %vm6314_vm12 = vcmp.eq.f32.partialorder %v1986_v51, 8.507059e+37 }
 0x585   :  { %v6208_v17 = vadd.f32 %v1910_v55, %v1868_v24  ;;  %v6210_v50 = vadd.f32 %v1939_v29, %v1868_v24 }
 0x587   :  { %v4779_v46 = vmul.f32 -1.442695, %v6208_v17  ;;  %v4780_v6 = vmul.f32 -1.442695, %v6210_v50  ;;  %v5036_v10 = vpop.eup %5035 }
 0x588   :  { %v5038_v54 = vpop.eup %5037  ;;  %v6216_v9 = vadd.f32 1.0, %v5036_v10 }
 0x589   :  { %5041 = vpow2.f32 %v4779_v46  ;;  %v5040_v37 = vpop.eup %5039  ;;  %v6218_v43 = vadd.f32 1.0, %v5038_v54 }
 0x58a   :  { %5043 = vpow2.f32 %v4780_v6  ;;  %v6227_v62 = vadd.f32 1.0, %v5040_v37  ;;  %v2018_v30 = vand.u32 2147483648, %v6216_v9  ;;  %vm2012_vm14 = vweird.f32 %v6216_v9 }
 0x58b   :  { %5045 = vrcp.f32 %v6214_v12  ;;  %v2001_v39 = vand.u32 2147483647, %v6218_v43  ;;  %v2003_v48 = vand.u32 2147483648, %v6218_v43  ;;  %v2016_v60 = vand.u32 2147483647, %v6216_v9 }
 0x58c   :  { %v1913_v8 = vpop.f32.mrf.mxu2  ;;  %v1942_v33 = vpop.f32.mrf.mxu3  ;;  %5047 = vrcp.f32 %v6216_v9  ;;  %v6282_v18 = vor.u32 1.1754944e-38, %v2018_v30  ;;  %v2031_v6 = vand.u32 2147483647, %v6227_v62  ;;  %v2033_v7 = vand.u32 2147483648, %v6227_v62 }
 0x58d   :  { %v6220_v45 = vadd.f32 %v1913_v8, %v1873_v59  ;;  %v6230_v1 = vadd.f32 %v1942_v33, %v1873_v59  ;;  %vm2027_vm3 = vweird.f32 %v6227_v62  ;;  %vm6303_vm4 = vcmp.eq.f32.partialorder %v2016_v60, 8.507059e+37 }
 0x58f   :  { %v5042_v4 = vpop.eup %5041  ;;  %v4781_v13 = vmul.f32 -1.442695, %v6220_v45  ;;  %v4782_v22 = vmul.f32 -1.442695, %v6230_v1 }
 0x590   :  { %v6223_v53 = vadd.f32 1.0, %v5042_v4  ;;  %v5044_v57 = vpop.eup %5043 }
 0x591   :  { %v6233_v15 = vadd.f32 1.0, %v5044_v57  ;;  %v6235_v19 = vpop.eup %5045 }
 0x592   :  { %5049 = vrcp.f32 %v6223_v53  ;;  %v6239_v47 = vpop.eup %5047  ;;  %v1978_v35 = vmul.f32 %v6235_v19, %v6214_v12  ;;  %vm1983_vm0 = vweird.f32 %v6235_v19  ;;  %v2046_v52 = vand.u32 2147483647, %v6223_v53 }
 0x593   :  { %5051 = vrcp.f32 %v6218_v43  ;;  %v2008_v32 = vmul.f32 %v6239_v47, %v6216_v9  ;;  %v2048_v58 = vand.u32 2147483648, %v6223_v53  ;;  %vm2013_vm13 = vweird.f32 %v6239_v47  ;;  %v2328_v9 = vld [vmem:[%s6458_s12 + $0xe8] sm:$0xff] }
 0x594   :  { %5053 = vpow2.f32 %v4781_v13  ;;  %v1979_v27 = vsub.f32 1.0, %v1978_v35  ;;  %vm2042_vm8 = vweird.f32 %v6223_v53  ;;  %vm6298_vm15 = vcmp.eq.f32.partialorder %v2046_v52, 8.507059e+37  ;;  %vm6323_vm11 = vmor %vm2012_vm14, %vm2013_vm13 }
 0x595   :  { %5055 = vrcp.f32 %v6227_v62  ;;  %v2009_v28 = vsub.f32 1.0, %v2008_v32  ;;  %v2049_v4 = vor.u32 1.1754944e-38, %v2048_v58  ;;  %vm2057_vm7 = vweird.f32 %v6233_v15 }
 0x596   :  { %5057 = vrcp.f32 %v6233_v15  ;;  %v1980_v44 = vmul.f32 %v6235_v19, %v1979_v27  ;;  %v2061_v2 = vand.u32 2147483647, %v6233_v15  ;;  %v2063_v30 = vand.u32 2147483648, %v6233_v15  ;;  %v2359_v27 = vld [vmem:[%s6458_s12 + $0x1e0] sm:$0xff] }
 0x597   :  { %5059 = vpow2.f32 %v4782_v22  ;;  %v2010_v49 = vmul.f32 %v6239_v47, %v2009_v28 }
 0x598   :  { %v6242_v23 = vpop.eup %5049  ;;  %v6290_v10 = vadd.f32 %v6235_v19, %v1980_v44 }
 0x599   :  { %v6244_v21 = vpop.eup %5051  ;;  %v2038_v25 = vmul.f32 %v6242_v23, %v6223_v53  ;;  %v2011_v8 = vadd.f32 %v6239_v47, %v2010_v49  ;;  %vm2043_vm6 = vweird.f32 %v6242_v23 }
 0x59a   :  { %v5054_v61 = vpop.eup %5053  ;;  %v1993_v26 = vmul.f32 %v6244_v21, %v6218_v43  ;;  %vm1998_vm2 = vweird.f32 %v6244_v21  ;;  %vm6336_vm10 = vmor %vm2042_vm8, %vm2043_vm6 }
 0x59b   :  { %v6252_v40 = vpop.eup %5055  ;;  %v6256_v42 = vadd.f32 1.0, %v5054_v61  ;;  %v2039_v38 = vsub.f32 1.0, %v2038_v25  ;;  %v2015_v51 = vsel %vm6323_vm11, %v6239_v47, %v2011_v8  ;;  %vm6357_vm11 = vmor %vm1982_vm1, %vm1983_vm0 }
 0x59c   :  { %v6258_v16 = vpop.eup %5057  ;;  %v1994_v14 = vsub.f32 1.0, %v1993_v26  ;;  %v2023_v59 = vmul.f32 %v6252_v40, %v6227_v62  ;;  %vm2028_vm9 = vweird.f32 %v6252_v40  ;;  %v1985_v12 = vsel %vm6357_vm11, %v6235_v19, %v6290_v10  ;;  %v2327_v26 = vld [vmem:[%s6458_s12 + $0xe0] sm:$0xff] }
 0x59d   :  { %v5060_v5 = vpop.eup %5059  ;;  %5061 = vrcp.f32 %v6256_v42  ;;  %v2053_v11 = vmul.f32 %v6258_v16, %v6233_v15  ;;  %v2040_v24 = vmul.f32 %v6242_v23, %v2039_v38  ;;  %v2076_v61 = vand.u32 2147483647, %v6256_v42  ;;  %vm6388_vm1 = vmor %vm2027_vm3, %vm2028_vm9  ;;  %v2315_v19 = vld [vmem:[%s6458_s12 + $0x80] sm:$0xff] }
 0x59e   :  { %v6269_v41 = vadd.f32 1.0, %v5060_v5  ;;  %v1995_v29 = vmul.f32 %v6244_v21, %v1994_v14  ;;  %v2024_v46 = vsub.f32 1.0, %v2023_v59  ;;  %v2078_v25 = vand.u32 2147483648, %v6256_v42  ;;  %v2353_v59 = vld [vmem:[%s6458_s12 + $0x1b0] sm:$0xff] }
 0x59f   :  { %v2054_v0 = vsub.f32 1.0, %v2053_v11  ;;  %v2041_v13 = vadd.f32 %v6242_v23, %v2040_v24  ;;  %vm2058_vm14 = vweird.f32 %v6258_v16  ;;  %vm2072_vm13 = vweird.f32 %v6256_v42 }
 0x5a0   :  { %5063 = vrcp.f32 %v6269_v41  ;;  %v2025_v32 = vmul.f32 %v6252_v40, %v2024_v46  ;;  %vm2077_vm6 = vcmp.eq.f32.partialorder %v2076_v61, 8.507059e+37  ;;  %v2079_v44 = vor.u32 1.1754944e-38, %v2078_v25  ;;  %vm6380_vm0 = vmor %vm2057_vm7, %vm2058_vm14  ;;  %v2113_v61 = vld [vmem:[%s6367_s9 + $0x40] sm:$0xff]  ;;  %v2114_v25 = vld [vmem:[%s6367_s9 + $0x48] sm:$0xff] }
 0x5a1   :  { %v2055_v57 = vmul.f32 %v6258_v16, %v2054_v0  ;;  %v2045_v38 = vsel %vm6336_vm10, %v6242_v23, %v2041_v13  ;;  %v2093_v49 = vand.u32 2147483648, %v6269_v41  ;;  %v2091_v58 = vand.u32 2147483647, %v6269_v41  ;;  %v2319_v23 = vld [vmem:[%s6458_s12 + $0xa0] sm:$0xff]  ;;  %v2320_v0 = vld [vmem:[%s6458_s12 + $0xa8] sm:$0xff] }
 0x5a2   :  { %v2026_v53 = vadd.f32 %v6252_v40, %v2025_v32  ;;  %v1996_v60 = vadd.f32 %v6244_v21, %v1995_v29  ;;  %v2050_v24 = vsel %vm6298_vm15, %v2049_v4, %v2045_v38  ;;  %vm2087_vm15 = vweird.f32 %v6269_v41  ;;  %v2361_v32 = vld [vmem:[%s6458_s12 + $0x1f0] sm:$0xff]  ;;  %v2323_v38 = vld [vmem:[%s6458_s12 + $0xc0] sm:$0xff] }
 0x5a3   :  { %v5062_v55 = vpop.eup %5061  ;;  %v2056_v47 = vadd.f32 %v6258_v16, %v2055_v57  ;;  %v2020_v10 = vsel %vm6303_vm4, %v6282_v18, %v2015_v51  ;;  %vm2062_vm7 = vcmp.eq.f32.partialorder %v2061_v2, 8.507059e+37  ;;  %v2094_v8 = vor.u32 1.1754944e-38, %v2093_v49  ;;  %2484 = vmatpush.msra.mxu3 %v2361_v32  ;;  %v2330_v2 = vld [vmem:[%s6458_s12 + $0xf8] sm:$0xff]  ;;  %v2357_v51 = vld [vmem:[%s6458_s12 + $0x1d0] sm:$0xff]  ;;  %v2356_v49 = vld [vmem:[%s6458_s12 + $0x1c8] sm:$0xff] }
 0x5a4   :  { %v2068_v54 = vmul.f32 %v5062_v55, %v6256_v42  ;;  %vm2073_vm5 = vweird.f32 %v5062_v55  ;;  %v2030_v37 = vsel %vm6388_vm1, %v6252_v40, %v2026_v53  ;;  %vm2092_vm9 = vcmp.eq.f32.partialorder %v2091_v58, 8.507059e+37  ;;  %v2321_v53 = vld [vmem:[%s6458_s12 + $0xb0] sm:$0xff]  ;;  %v2336_v32 = vld [vmem:[%s6458_s12 + $0x128] sm:$0xff] }
 0x5a5   :  { %vm6348_vm8 = vmor %vm2072_vm13, %vm2073_vm5  ;;  %v2060_v29 = vsel %vm6380_vm0, %v6258_v16, %v2056_v47  ;;  %v2101_v16 = vmul.f32 %v2050_v24, %v6208_v17  ;;  %vm7718_vm4 = vweird.f32 %v6218_v43  ;;  %v2034_v40 = vor.u32 1.1754944e-38, %v2033_v7  ;;  %v2107_v43 = vld [vmem:[%s6367_s9 + $0x10] sm:$0xff]  ;;  %2485 = vmatpush.msra.mxu3 %v2359_v27  ;;  %v2355_v47 = vld [vmem:[%s6458_s12 + $0x1c0] sm:$0xff] }
 0x5a6   :  { %v2069_v22 = vsub.f32 1.0, %v2068_v54  ;;  %v5064_v35 = vpop.eup %5063  ;;  %v2064_v54 = vor.u32 1.1754944e-38, %v2063_v30  ;;  %vm6412_vm10 = vmor %vm7718_vm4, %vm1998_vm2  ;;  %v2004_v57 = vor.u32 1.1754944e-38, %v2003_v48  ;;  %vm2002_vm2 = vcmp.eq.f32.partialorder %v2001_v39, 8.507059e+37  ;;  %v2110_v39 = vld [vmem:[%s6367_s9 + $0x28] sm:$0xff]  ;;  %v2111_v48 = vld [vmem:[%s6367_s9 + $0x30] sm:$0xff] }
 0x5a7   :  { %v2083_v28 = vmul.f32 %v5064_v35, %v6269_v41  ;;  %vm2088_vm5 = vweird.f32 %v5064_v35  ;;  %v2000_v33 = vsel %vm6412_vm10, %v6244_v21, %v1996_v60  ;;  %vm7721_vm14 = vcmask 261120   ;;  %v2360_v30 = vld [vmem:[%s6458_s12 + $0x1e8] sm:$0xff]  ;;  %2486 = vmatpush.msra.mxu3 %v2357_v51  ;;  %v2115_v58 = vld [vmem:[%s6367_s9 + $0x50] sm:$0xff]  ;;  %v2120_v51 = vld [vmem:[%s6367_s9 + $0x78] sm:$0xff] }
 0x5a8   :  { %v2070_v5 = vmul.f32 %v5062_v55, %v2069_v22  ;;  %vm2089_vm3 = vmor %vm2087_vm15, %vm2088_vm5  ;;  %v2065_v17 = vsel %vm2062_vm7, %v2064_v54, %v2060_v29  ;;  %v2005_v62 = vsel %vm2002_vm2, %v2004_v57, %v2000_v33  ;;  %v2317_v60 = vld [vmem:[%s6458_s12 + $0x90] sm:$0xff]  ;;  %v2347_v29 = vld [vmem:[%s6458_s12 + $0x180] sm:$0xff] }
 0x5a9   :  { %v2084_v14 = vsub.f32 1.0, %v2083_v28  ;;  %v2102_v21 = vmul.f32 %v2065_v17, %v6210_v50  ;;  %vm7722_vm13 = vmmov %vm7721_vm14  ;;  %v2106_v50 = vld [vmem:[%s6367_s9 + $0x8] sm:$0xff]  ;;  %v2325_v28 = vld [vmem:[%s6458_s12 + $0xd0] sm:$0xff]  ;;  %2487 = vmatpush.msra.mxu3 %v2355_v47 }
 0x5aa   :  { %v2071_v11 = vadd.f32 %v5062_v55, %v2070_v5  ;;  %v2362_v5 = vld [vmem:[%s6458_s12 + $0x1f8] sm:$0xff]  ;;  %v2349_v24 = vld [vmem:[%s6458_s12 + $0x190] sm:$0xff]  ;;  %v2307_v33 = vld [vmem:[%s6458_s12 + $0x40] sm:$0xff] }
 0x5ab   :  { %v2085_v52 = vmul.f32 %v5064_v35, %v2084_v14  ;;  %v2326_v14 = vld [vmem:[%s6458_s12 + $0xd8] sm:$0xff]  ;;  %2488 = vmatpush.msra.mxu3 %v2353_v59  ;;  %v2345_v54 = vld [vmem:[%s6458_s12 + $0x170] sm:$0xff]  ;;  %v2339_v57 = vld [vmem:[%s6458_s12 + $0x140] sm:$0xff] }
 0x5ac   :  { %v2075_v42 = vsel %vm6348_vm8, %v5062_v55, %v2071_v11  ;;  %vm7723_vm8 = vmmov %vm7722_vm13  ;;  %v2358_v11 = vld [vmem:[%s6458_s12 + $0x1d8] sm:$0xff]  ;;  %v2309_v41 = vld [vmem:[%s6458_s12 + $0x50] sm:$0xff] }
 0x5ad   :  { %v2080_v55 = vsel %vm2077_vm6, %v2079_v44, %v2075_v42  ;;  %v2086_v15 = vadd.f32 %v5064_v35, %v2085_v52  ;;  %vm7724_vm6 = vmmov %vm7723_vm8  ;;  %v2324_v44 = vld [vmem:[%s6458_s12 + $0xc8] sm:$0xff]  ;;  %v2351_v42 = vld [vmem:[%s6458_s12 + $0x1a0] sm:$0xff] }
 0x5ae   :  { %v2103_v46 = vmul.f32 %v2080_v55, %v6220_v45  ;;  %v1990_v45 = vsel %vm6314_vm12, %v6272_v20, %v1985_v12  ;;  %v2099_v20 = vmul.f32 %v2020_v10, %v6198_v36  ;;  %vm2032_vm12 = vcmp.eq.f32.partialorder %v2031_v6, 8.507059e+37  ;;  %v2105_v36 = vld [vmem:[%s6367_s9] sm:$0xff]  ;;  %vm7725_vm11 = vmmov %vm7724_vm6  ;;  %v2112_v6 = vld [vmem:[%s6367_s9 + $0x38] sm:$0xff]  ;;  %2489 = vmatpush.msra.mxu3 %v2351_v42 }
 0x5af   :  { %v2090_v4 = vsel %vm2089_vm3, %v5064_v35, %v2086_v15  ;;  %v2035_v22 = vsel %vm2032_vm12, %v2034_v40, %v2030_v37  ;;  %v2097_v7 = vmul.f32 %v1990_v45, %v6196_v3  ;;  %v2098_v3 = vmul.f32 %v2005_v62, %v6200_v56  ;;  %vm7726_vm5 = vmmov %vm7724_vm6  ;;  %v2109_v56 = vld [vmem:[%s6367_s9 + $0x20] sm:$0xff]  ;;  %v2329_v35 = vld [vmem:[%s6458_s12 + $0xf0] sm:$0xff] }
 0x5b0   :  { %2181 = vmatpush.msra.mxu0 %v2103_v46  ;;  %v2095_v18 = vsel %vm2092_vm9, %v2094_v8, %v2090_v4  ;;  %vm7727_vm0 = vmmov %vm7726_vm5  ;;  %2443 = vmatpush.msrb.mxu2 %v2329_v35  ;;  %v2322_v52 = vld [vmem:[%s6458_s12 + $0xb8] sm:$0xff]  ;;  %v2352_v55 = vld [vmem:[%s6458_s12 + $0x1a8] sm:$0xff] }
 0x5b1   :  { %v2104_v13 = vmul.f32 %v2095_v18, %v6230_v1  ;;  %v2100_v1 = vmul.f32 %v2035_v22, %v6204_v63  ;;  %v2108_v63 = vld [vmem:[%s6367_s9 + $0x18] sm:$0xff]  ;;  %vm7728_vm1 = vmmov %vm7727_vm0  ;;  %2490 = vmatpush.msra.mxu3 %v2349_v24  ;;  %v2313_v15 = vld [vmem:[%s6458_s12 + $0x70] sm:$0xff] }
 0x5b2   :  { %2182 = vmatpush.msra.mxu0 %v2101_v16  ;;  %vm7729_vm15 = vmmov %vm7727_vm0  ;;  %2444 = vmatpush.msrb.mxu2 %v2327_v26  ;;  %v2354_v12 = vld [vmem:[%s6458_s12 + $0x1b8] sm:$0xff]  ;;  %v2316_v8 = vld [vmem:[%s6458_s12 + $0x88] sm:$0xff] }
 0x5b3   :  { %2246 = vmatpush.msra.mxu1 %v2104_v13  ;;  %vm7730_vm7 = vmmov %vm7727_vm0  ;;  %v2318_v46 = vld [vmem:[%s6458_s12 + $0x98] sm:$0xff]  ;;  %2491 = vmatpush.msra.mxu3 %v2347_v29  ;;  %v2348_v37 = vld [vmem:[%s6458_s12 + $0x188] sm:$0xff] }
 0x5b4   :  { %2183 = vmatpush.msra.mxu0 %v2099_v20  ;;  %vm7731_vm3 = vmmov %vm7727_vm0  ;;  %2445 = vmatpush.msrb.mxu2 %v2325_v28  ;;  %v2350_v10 = vld [vmem:[%s6458_s12 + $0x198] sm:$0xff]  ;;  %v2311_v16 = vld [vmem:[%s6458_s12 + $0x60] sm:$0xff] }
 0x5b5   :  { %2247 = vmatpush.msra.mxu1 %v2102_v21  ;;  %vm7732_vm9 = vmmov %vm7727_vm0  ;;  %v2343_v4 = vld [vmem:[%s6458_s12 + $0x160] sm:$0xff]  ;;  %v2116_v45 = vld [vmem:[%s6367_s9 + $0x58] sm:$0xff]  ;;  %2492 = vmatpush.msra.mxu3 %v2345_v54 }
 0x5b6   :  { %2184 = vmatpush.msra.mxu0 %v2097_v7  ;;  %vm7733_vm4 = vmmov %vm7727_vm0  ;;  %2446 = vmatpush.msrb.mxu2 %v2323_v38  ;;  %v2314_v40 = vld [vmem:[%s6458_s12 + $0x78] sm:$0xff]  ;;  %v2341_v18 = vld [vmem:[%s6458_s12 + $0x150] sm:$0xff] }
 0x5b7   :  { %4783 = vmatmul.msk.f32.vlgmr.msra.gmra.mxu0 %vm7721_vm14, %v2105_v36  ;;  %2248 = vmatpush.msra.mxu1 %v2100_v1  ;;  %vm7734_vm10 = vmmov %vm7727_vm0  ;;  %v2346_v17 = vld [vmem:[%s6458_s12 + $0x178] sm:$0xff]  ;;  %v2312_v20 = vld [vmem:[%s6458_s12 + $0x68] sm:$0xff] }
 0x5b8   :  { %vm7735_vm12 = vmmov %vm7727_vm0  ;;  %2607 = vmatpush.msrb.mxu0 %v2330_v2  ;;  %2447 = vmatpush.msrb.mxu2 %v2321_v53  ;;  %v2344_v13 = vld [vmem:[%s6458_s12 + $0x168] sm:$0xff]  ;;  %v2310_v22 = vld [vmem:[%s6458_s12 + $0x58] sm:$0xff] }
 0x5b9   :  { %2249 = vmatpush.msra.mxu1 %v2098_v3  ;;  %vm7736_vm2 = vmmov %vm7727_vm0  ;;  %2493 = vmatpush.msra.mxu3 %v2343_v4  ;;  %v2342_v7 = vld [vmem:[%s6458_s12 + $0x158] sm:$0xff]  ;;  %v2305_v21 = vld [vmem:[%s6458_s12 + $0x30] sm:$0xff] }
 0x5ba   :  { %4799 = vmatmul.msk.f32.vlgmr.msra.gmra.mxu1 %vm7722_vm13, %v2105_v36  ;;  %vm7737_vm14 = vmmov %vm7727_vm0  ;;  %2608 = vmatpush.msrb.mxu0 %v2328_v9  ;;  %v2337_v36 = vld [vmem:[%s6458_s12 + $0x130] sm:$0xff]  ;;  %v2308_v62 = vld [vmem:[%s6458_s12 + $0x48] sm:$0xff] }
 0x5bb   :  { %vm7738_vm13 = vmmov %vm7727_vm0  ;;  %2648 = vmatpush.msrb.mxu1 %v2362_v5  ;;  %2448 = vmatpush.msrb.mxu2 %v2319_v23  ;;  %v2340_v1 = vld [vmem:[%s6458_s12 + $0x148] sm:$0xff]  ;;  %v2117_v3 = vld [vmem:[%s6367_s9 + $0x60] sm:$0xff] }
 0x5bc   :  { %2609 = vmatpush.msrb.mxu0 %v2326_v14  ;;  %2494 = vmatpush.msra.mxu3 %v2341_v18  ;;  %v2299_v35 = vld [vmem:[%s6458_s12] sm:$0xff]  ;;  %v2334_v26 = vld [vmem:[%s6458_s12 + $0x118] sm:$0xff]  ;;  %v2118_v27 = vld [vmem:[%s6367_s9 + $0x68] sm:$0xff] }
 0x5bd   :  { %2649 = vmatpush.msrb.mxu1 %v2360_v30  ;;  %2449 = vmatpush.msrb.mxu2 %v2317_v60  ;;  %v2300_v2 = vld [vmem:[%s6458_s12 + $0x8] sm:$0xff]  ;;  %v2119_v28 = vld [vmem:[%s6367_s9 + $0x70] sm:$0xff]  ;;  %v2423_v14 = vld [vmem:[%s6458_s12 + $0x3e0] sm:$0xff]  ;;  %s5253_s9 = smov 23  }
 0x5be   :  { %2610 = vmatpush.msrb.mxu0 %v2324_v44  ;;  %2495 = vmatpush.msra.mxu3 %v2339_v57  ;;  %v2332_v5 = vld [vmem:[%s6458_s12 + $0x108] sm:$0xff]  ;;  %v2393_v38 = vld [vmem:[%s6458_s12 + $0x2f0] sm:$0xff]  ;;  %v2387_v23 = vld [vmem:[%s6458_s12 + $0x2c0] sm:$0xff] }
 0x5bf   :  { %4784 = vmatmul.msk.f32.gmra.mxu0 %vm7723_vm8, %v2106_v50  ;;  %vm7739_vm8 = vmmov %vm7727_vm0  ;;  %2650 = vmatpush.msrb.mxu1 %v2358_v11  ;;  %v2425_v47 = vld [vmem:[%s6458_s12 + $0x3f0] sm:$0xff]  ;;  %v2391_v11 = vld [vmem:[%s6458_s12 + $0x2e0] sm:$0xff] }
 0x5c0   :  { %2611 = vmatpush.msrb.mxu0 %v2322_v52  ;;  %2450 = vmatpush.msrb.mxu2 %v2315_v19  ;;  %v2389_v53 = vld [vmem:[%s6458_s12 + $0x2d0] sm:$0xff]  ;;  %v2419_v42 = vld [vmem:[%s6458_s12 + $0x3c0] sm:$0xff] }
 0x5c1   :  { %2651 = vmatpush.msrb.mxu1 %v2356_v49  ;;  %2496 = vmatpush.msra.mxu3 %v2337_v36  ;;  %v2421_v44 = vld [vmem:[%s6458_s12 + $0x3d0] sm:$0xff]  ;;  %v2415_v60 = vld [vmem:[%s6458_s12 + $0x3a0] sm:$0xff] }
 0x5c2   :  { %4800 = vmatmul.msk.f32.gmra.mxu1 %vm7724_vm6, %v2106_v50  ;;  %vm7740_vm6 = vmmov %vm7727_vm0  ;;  %2612 = vmatpush.msrb.mxu0 %v2320_v0  ;;  %v2303_v50 = vld [vmem:[%s6458_s12 + $0x20] sm:$0xff]  ;;  %v2385_v52 = vld [vmem:[%s6458_s12 + $0x2b0] sm:$0xff] }
 0x5c3   :  { %2652 = vmatpush.msrb.mxu1 %v2354_v12  ;;  %2451 = vmatpush.msrb.mxu2 %v2313_v15  ;;  %v2383_v12 = vld [vmem:[%s6458_s12 + $0x2a0] sm:$0xff]  ;;  %v2381_v0 = vld [vmem:[%s6458_s12 + $0x290] sm:$0xff] }
 0x5c4   :  { %2613 = vmatpush.msrb.mxu0 %v2318_v46  ;;  %v2379_v29 = vld [vmem:[%s6458_s12 + $0x280] sm:$0xff]  ;;  %v2377_v15 = vld [vmem:[%s6458_s12 + $0x270] sm:$0xff] }
 0x5c5   :  { %2653 = vmatpush.msrb.mxu1 %v2352_v55  ;;  %2452 = vmatpush.msrb.mxu2 %v2311_v16  ;;  %v2413_v55 = vld [vmem:[%s6458_s12 + $0x390] sm:$0xff]  ;;  %v2411_v46 = vld [vmem:[%s6458_s12 + $0x380] sm:$0xff] }
 0x5c6   :  { %2614 = vmatpush.msrb.mxu0 %v2316_v8  ;;  %v2375_v54 = vld [vmem:[%s6458_s12 + $0x260] sm:$0xff]  ;;  %v2373_v16 = vld [vmem:[%s6458_s12 + $0x250] sm:$0xff] }
 0x5c7   :  { %4785 = vmatmul.msk.f32.gmra.mxu0 %vm7725_vm11, %v2107_v43  ;;  %vm7741_vm11 = vmmov %vm7727_vm0  ;;  %2654 = vmatpush.msrb.mxu1 %v2350_v10  ;;  %v2409_v10 = vld [vmem:[%s6458_s12 + $0x370] sm:$0xff]  ;;  %v2407_v8 = vld [vmem:[%s6458_s12 + $0x360] sm:$0xff] }
 0x5c8   :  { %2453 = vmatpush.msrb.mxu2 %v2309_v41  ;;  %2615 = vmatpush.msrb.mxu0 %v2314_v40  ;;  %v2405_v4 = vld [vmem:[%s6458_s12 + $0x350] sm:$0xff]  ;;  %v2371_v41 = vld [vmem:[%s6458_s12 + $0x240] sm:$0xff] }
 0x5c9   :  { %2655 = vmatpush.msrb.mxu1 %v2348_v37  ;;  %v2403_v40 = vld [vmem:[%s6458_s12 + $0x340] sm:$0xff]  ;;  %v2401_v18 = vld [vmem:[%s6458_s12 + $0x330] sm:$0xff] }
 0x5ca   :  { %4801 = vmatmul.msk.f32.gmra.mxu1 %vm7726_vm5, %v2107_v43  ;;  %vm7742_vm5 = vmmov %vm7727_vm0  ;;  %2454 = vmatpush.msrb.mxu2 %v2307_v33  ;;  %v2335_v43 = vld [vmem:[%s6458_s12 + $0x120] sm:$0xff]  ;;  %v2365_v57 = vld [vmem:[%s6458_s12 + $0x210] sm:$0xff] }
 0x5cb   :  { %2656 = vmatpush.msrb.mxu1 %v2346_v17  ;;  %2616 = vmatpush.msrb.mxu0 %v2312_v20  ;;  %v2369_v17 = vld [vmem:[%s6458_s12 + $0x230] sm:$0xff]  ;;  %v2367_v33 = vld [vmem:[%s6458_s12 + $0x220] sm:$0xff] }
 0x5cc   :  { %2455 = vmatpush.msrb.mxu2 %v2305_v21  ;;  %2497 = vmatpush.msra.mxu3 %v2335_v43  ;;  %v2399_v20 = vld [vmem:[%s6458_s12 + $0x320] sm:$0xff] }
 0x5cd   :  { %2657 = vmatpush.msrb.mxu1 %v2344_v13  ;;  %2617 = vmatpush.msrb.mxu0 %v2310_v22  ;;  %v2397_v22 = vld [vmem:[%s6458_s12 + $0x310] sm:$0xff]  ;;  %v2363_v21 = vld [vmem:[%s6458_s12 + $0x200] sm:$0xff] }
 0x5ce   :  { %2456 = vmatpush.msrb.mxu2 %v2303_v50  ;;  %v2395_v36 = vld [vmem:[%s6458_s12 + $0x300] sm:$0xff] }
 0x5cf   :  { %4786 = vmatmul.msk.f32.gmra.mxu0 %vm7727_vm0, %v2108_v63  ;;  %2658 = vmatpush.msrb.mxu1 %v2342_v7 }
 0x5d0   :  { %2618 = vmatpush.msrb.mxu0 %v2308_v62 }
 0x5d1   :  { %2659 = vmatpush.msrb.mxu1 %v2340_v1 }
 0x5d2   :  { %4802 = vmatmul.msk.f32.gmra.mxu1 %vm7728_vm1, %v2108_v63  ;;  %vm7743_vm1 = vmmov %vm7727_vm0  ;;  %v2306_v63 = vld [vmem:[%s6458_s12 + $0x38] sm:$0xff] }
 0x5d3   :  { %2619 = vmatpush.msrb.mxu0 %v2306_v63 }
 0x5d7   :  { %4787 = vmatmul.msk.f32.gmra.mxu0 %vm7729_vm15, %v2109_v56  ;;  %vm7744_vm15 = vmmov %vm7727_vm0 }
 0x5da   :  { %4803 = vmatmul.msk.f32.gmra.mxu1 %vm7730_vm7, %v2109_v56  ;;  %v2338_v56 = vld [vmem:[%s6458_s12 + $0x138] sm:$0xff]  ;;  %vm7745_vm7 = vmmov %vm7727_vm0 }
 0x5db   :  { %2660 = vmatpush.msrb.mxu1 %v2338_v56 }
 0x5dd   :  { %2661 = vmatpush.msrb.mxu1 %v2336_v32  ;;  %v2424_v32 = vld [vmem:[%s6458_s12 + $0x3e8] sm:$0xff] }
 0x5df   :  { %4788 = vmatmul.msk.f32.gmra.mxu0 %vm7731_vm3, %v2110_v39  ;;  %2662 = vmatpush.msrb.mxu1 %v2334_v26  ;;  %vm7746_vm3 = vmmov %vm7727_vm0 }
 0x5e1   :  { %2663 = vmatpush.msrb.mxu1 %v2332_v5  ;;  %v2420_v5 = vld [vmem:[%s6458_s12 + $0x3c8] sm:$0xff] }
 0x5e2   :  { %4804 = vmatmul.msk.f32.gmra.mxu1 %vm7732_vm9, %v2110_v39  ;;  %v2301_v39 = vld [vmem:[%s6458_s12 + $0x10] sm:$0xff]  ;;  %vm7747_vm9 = vmmov %vm7727_vm0 }
 0x5e3   :  { %2457 = vmatpush.msrb.mxu2 %v2301_v39 }
 0x5e5   :  { %2458 = vmatpush.msrb.mxu2 %v2299_v35  ;;  %v2392_v35 = vld [vmem:[%s6458_s12 + $0x2e8] sm:$0xff] }
 0x5e7   :  { %4789 = vmatmul.msk.f32.gmra.mxu0 %vm7733_vm4, %v2111_v48  ;;  %vm7748_vm4 = vmmov %vm7727_vm0  ;;  %2525 = vmatpush.msra.mxu2 %v2393_v38 }
 0x5e9   :  { %2526 = vmatpush.msra.mxu2 %v2391_v11  ;;  %v2414_v11 = vld [vmem:[%s6458_s12 + $0x398] sm:$0xff] }
 0x5ea   :  { %4805 = vmatmul.msk.f32.gmra.mxu1 %vm7734_vm10, %v2111_v48  ;;  %v2333_v48 = vld [vmem:[%s6458_s12 + $0x110] sm:$0xff]  ;;  %vm7749_vm10 = vmmov %vm7727_vm0 }
 0x5eb   :  { %2498 = vmatpush.msra.mxu3 %v2333_v48  ;;  %2527 = vmatpush.msra.mxu2 %v2389_v53  ;;  %v2394_v48 = vld [vmem:[%s6458_s12 + $0x2f8] sm:$0xff]  ;;  %v2380_v53 = vld [vmem:[%s6458_s12 + $0x288] sm:$0xff] }
 0x5ed   :  { %2528 = vmatpush.msra.mxu2 %v2387_v23  ;;  %v2376_v23 = vld [vmem:[%s6458_s12 + $0x268] sm:$0xff] }
 0x5ef   :  { %4790 = vmatmul.msk.f32.gmra.mxu0 %vm7735_vm12, %v2112_v6  ;;  %vm7750_vm12 = vmmov %vm7727_vm0  ;;  %2529 = vmatpush.msra.mxu2 %v2385_v52 }
 0x5f1   :  { %2530 = vmatpush.msra.mxu2 %v2383_v12  ;;  %v2406_v12 = vld [vmem:[%s6458_s12 + $0x358] sm:$0xff] }
 0x5f2   :  { %4806 = vmatmul.msk.f32.gmra.mxu1 %vm7736_vm2, %v2112_v6  ;;  %v2304_v6 = vld [vmem:[%s6458_s12 + $0x28] sm:$0xff]  ;;  %vm7751_vm2 = vmmov %vm7727_vm0 }
 0x5f3   :  { %2620 = vmatpush.msrb.mxu0 %v2304_v6  ;;  %2531 = vmatpush.msra.mxu2 %v2381_v0  ;;  %v2426_v6 = vld [vmem:[%s6458_s12 + $0x3f8] sm:$0xff]  ;;  %v2404_v0 = vld [vmem:[%s6458_s12 + $0x348] sm:$0xff] }
 0x5f5   :  { %2532 = vmatpush.msra.mxu2 %v2379_v29  ;;  %v2368_v29 = vld [vmem:[%s6458_s12 + $0x228] sm:$0xff] }
 0x5f7   :  { %4791 = vmatmul.msk.f32.gmra.mxu0 %vm7737_vm14, %v2113_v61  ;;  %2533 = vmatpush.msra.mxu2 %v2377_v15 }
 0x5f9   :  { %2534 = vmatpush.msra.mxu2 %v2375_v54  ;;  %v2398_v54 = vld [vmem:[%s6458_s12 + $0x318] sm:$0xff] }
 0x5fa   :  { %4807 = vmatmul.msk.f32.gmra.mxu1 %vm7738_vm13, %v2113_v61  ;;  %v2331_v61 = vld [vmem:[%s6458_s12 + $0x100] sm:$0xff] }
 0x5fb   :  { %2499 = vmatpush.msra.mxu3 %v2331_v61  ;;  %2535 = vmatpush.msra.mxu2 %v2373_v16  ;;  %v2390_v61 = vld [vmem:[%s6458_s12 + $0x2d8] sm:$0xff]  ;;  %v2396_v16 = vld [vmem:[%s6458_s12 + $0x308] sm:$0xff] }
 0x5fd   :  { %2566 = vmatpush.msrb.mxu3 %v2425_v47  ;;  %2536 = vmatpush.msra.mxu2 %v2371_v41  ;;  %v2382_v47 = vld [vmem:[%s6458_s12 + $0x298] sm:$0xff] }
 0x5ff   :  { %4792 = vmatmul.msk.f32.gmra.mxu0 %vm7739_vm8, %v2114_v25  ;;  %2567 = vmatpush.msrb.mxu3 %v2423_v14 }
 0x600   :  { %2537 = vmatpush.msra.mxu2 %v2369_v17 }
 0x601   :  { %2568 = vmatpush.msrb.mxu3 %v2421_v44  ;;  %v2378_v44 = vld [vmem:[%s6458_s12 + $0x278] sm:$0xff] }
 0x602   :  { %4808 = vmatmul.msk.f32.gmra.mxu1 %vm7740_vm6, %v2114_v25  ;;  %v2302_v25 = vld [vmem:[%s6458_s12 + $0x18] sm:$0xff]  ;;  %2538 = vmatpush.msra.mxu2 %v2367_v33 }
 0x603   :  { %2621 = vmatpush.msrb.mxu0 %v2302_v25  ;;  %2569 = vmatpush.msrb.mxu3 %v2419_v42  ;;  %v2422_v25 = vld [vmem:[%s6458_s12 + $0x3d8] sm:$0xff]  ;;  %v2408_v42 = vld [vmem:[%s6458_s12 + $0x368] sm:$0xff] }
 0x604   :  { %2539 = vmatpush.msra.mxu2 %v2365_v57 }
 0x605   :  { %2622 = vmatpush.msrb.mxu0 %v2300_v2  ;;  %v2388_v2 = vld [vmem:[%s6458_s12 + $0x2c8] sm:$0xff] }
 0x606   :  { %2540 = vmatpush.msra.mxu2 %v2363_v21 }
 0x607   :  { %4793 = vmatmul.msk.f32.gmra.mxu0 %vm7741_vm11, %v2115_v58 }
 0x60a   :  { %4809 = vmatmul.msk.f32.gmra.mxu1 %vm7742_vm5, %v2115_v58  ;;  %v2417_v58 = vld [vmem:[%s6458_s12 + $0x3b0] sm:$0xff] }
 0x60b   :  { %2570 = vmatpush.msrb.mxu3 %v2417_v58  ;;  %v2374_v58 = vld [vmem:[%s6458_s12 + $0x258] sm:$0xff] }
 0x60d   :  { %2571 = vmatpush.msrb.mxu3 %v2415_v60 }
 0x60f   :  { %4794 = vmatmul.msk.f32.gmra.mxu0 %vm7727_vm0, %v2116_v45  ;;  %2572 = vmatpush.msrb.mxu3 %v2413_v55  ;;  %v2370_v55 = vld [vmem:[%s6458_s12 + $0x238] sm:$0xff] }
 0x611   :  { %2573 = vmatpush.msrb.mxu3 %v2411_v46  ;;  %v2400_v46 = vld [vmem:[%s6458_s12 + $0x328] sm:$0xff] }
 0x612   :  { %4810 = vmatmul.msk.f32.gmra.mxu1 %vm7743_vm1, %v2116_v45 }
 0x613   :  { %2574 = vmatpush.msrb.mxu3 %v2409_v10  ;;  %v2366_v10 = vld [vmem:[%s6458_s12 + $0x218] sm:$0xff] }
 0x615   :  { %2575 = vmatpush.msrb.mxu3 %v2407_v8 }
 0x617   :  { %4795 = vmatmul.msk.f32.gmra.mxu0 %vm7744_vm15, %v2117_v3  ;;  %2576 = vmatpush.msrb.mxu3 %v2405_v4 }
 0x619   :  { %2577 = vmatpush.msrb.mxu3 %v2403_v40 }
 0x61a   :  { %4811 = vmatmul.msk.f32.gmra.mxu1 %vm7745_vm7, %v2117_v3 }
 0x61b   :  { %2578 = vmatpush.msrb.mxu3 %v2401_v18 }
 0x61d   :  { %2579 = vmatpush.msrb.mxu3 %v2399_v20 }
 0x61f   :  { %4796 = vmatmul.msk.f32.gmra.mxu0 %vm7746_vm3, %v2118_v27  ;;  %2580 = vmatpush.msrb.mxu3 %v2397_v22 }
 0x621   :  { %2581 = vmatpush.msrb.mxu3 %v2395_v36 }
 0x622   :  { %4812 = vmatmul.msk.f32.gmra.mxu1 %vm7747_vm9, %v2118_v27 }
 0x627   :  { %4797 = vmatmul.msk.f32.gmra.mxu0 %vm7748_vm4, %v2119_v28 }
 0x62a   :  { %4813 = vmatmul.msk.f32.gmra.mxu1 %vm7749_vm10, %v2119_v28  ;;  %v2386_v28 = vld [vmem:[%s6458_s12 + $0x2b8] sm:$0xff] }
 0x62f   :  { %4798 = vmatmul.msk.f32.gmra.mxu0 %vm7750_vm12, %v2120_v51 }
 0x632   :  { %4814 = vmatmul.msk.f32.gmra.mxu1 %vm7751_vm2, %v2120_v51  ;;  %v2418_v51 = vld [vmem:[%s6458_s12 + $0x3b8] sm:$0xff] }
 0x634   :  { %v2186_v9 = vpop.f32.mrf.mxu0 }
 0x635   :  { %2459 = vmatmul.f32.vlgmr.msrb.gmra.mxu2 %v2186_v9 }
 0x636   :  { %2689 = vmatpush.msrb.mxu2 %v2394_v48  ;;  %v2429_v48 = vld [vmem:[%s6654_s16 + $0x10] sm:$0xff] }
 0x637   :  { %2623 = vmatmul.f32.vlgmr.msrb.gmra.mxu0 %v2186_v9  ;;  %v2251_v30 = vpop.f32.mrf.mxu1  ;;  %v2384_v9 = vld [vmem:[%s6458_s12 + $0x2a8] sm:$0xff] }
 0x638   :  { %2500 = vmatmul.f32.vlgmr.msra.gmra.mxu3 %v2251_v30  ;;  %2690 = vmatpush.msrb.mxu2 %v2392_v35 }
 0x639   :  { %2730 = vmatpush.msra.mxu3 %v2426_v6 }
 0x63a   :  { %2664 = vmatmul.f32.vlgmr.msrb.gmra.mxu1 %v2251_v30  ;;  %2691 = vmatpush.msrb.mxu2 %v2390_v61  ;;  %v2416_v30 = vld [vmem:[%s6458_s12 + $0x3a8] sm:$0xff] }
 0x63b   :  { %2731 = vmatpush.msra.mxu3 %v2424_v32 }
 0x63c   :  { %v2189_v59 = vpop.f32.mrf.mxu0  ;;  %2692 = vmatpush.msrb.mxu2 %v2388_v2 }
 0x63d   :  { %2462 = vmatmul.f32.gmra.mxu2 %v2189_v59  ;;  %2732 = vmatpush.msra.mxu3 %v2422_v25  ;;  %v2431_v25 = vld [vmem:[%s6654_s16 + $0x20] sm:$0xff] }
 0x63e   :  { %2693 = vmatpush.msrb.mxu2 %v2386_v28 }
 0x63f   :  { %2626 = vmatmul.f32.gmra.mxu0 %v2189_v59  ;;  %v2254_v49 = vpop.f32.mrf.mxu1  ;;  %2733 = vmatpush.msra.mxu3 %v2420_v5  ;;  %v2412_v59 = vld [vmem:[%s6458_s12 + $0x388] sm:$0xff] }
 0x640   :  { %2503 = vmatmul.f32.gmra.mxu3 %v2254_v49  ;;  %2694 = vmatpush.msrb.mxu2 %v2384_v9 }
 0x641   :  { %2734 = vmatpush.msra.mxu3 %v2418_v51 }
 0x642   :  { %2667 = vmatmul.f32.gmra.mxu1 %v2254_v49  ;;  %2695 = vmatpush.msrb.mxu2 %v2382_v47  ;;  %v2410_v49 = vld [vmem:[%s6458_s12 + $0x378] sm:$0xff] }
 0x643   :  { %2735 = vmatpush.msra.mxu3 %v2416_v30  ;;  %v2433_v30 = vld [vmem:[%s6654_s16 + $0x30] sm:$0xff] }
 0x644   :  { %v2192_v24 = vpop.f32.mrf.mxu0  ;;  %2696 = vmatpush.msrb.mxu2 %v2380_v53 }
 0x645   :  { %2465 = vmatmul.f32.gmra.mxu2 %v2192_v24  ;;  %2736 = vmatpush.msra.mxu3 %v2414_v11 }
 0x646   :  { %2697 = vmatpush.msrb.mxu2 %v2378_v44 }
 0x647   :  { %2629 = vmatmul.f32.gmra.mxu0 %v2192_v24  ;;  %v2257_v19 = vpop.f32.mrf.mxu1  ;;  %2737 = vmatpush.msra.mxu3 %v2412_v59  ;;  %v2372_v24 = vld [vmem:[%s6458_s12 + $0x248] sm:$0xff] }
 0x648   :  { %2506 = vmatmul.f32.gmra.mxu3 %v2257_v19  ;;  %2698 = vmatpush.msrb.mxu2 %v2376_v23 }
 0x649   :  { %2738 = vmatpush.msra.mxu3 %v2410_v49 }
 0x64a   :  { %2670 = vmatmul.f32.gmra.mxu1 %v2257_v19  ;;  %2699 = vmatpush.msrb.mxu2 %v2374_v58  ;;  %v2402_v19 = vld [vmem:[%s6458_s12 + $0x338] sm:$0xff]  ;;  %v2435_v58 = vld [vmem:[%s6654_s16 + $0x40] sm:$0xff] }
 0x64b   :  { %2739 = vmatpush.msra.mxu3 %v2408_v42 }
 0x64c   :  { %v2195_v37 = vpop.f32.mrf.mxu0  ;;  %2700 = vmatpush.msrb.mxu2 %v2372_v24 }
 0x64d   :  { %2468 = vmatmul.f32.gmra.mxu2 %v2195_v37  ;;  %2740 = vmatpush.msra.mxu3 %v2406_v12 }
 0x64e   :  { %2701 = vmatpush.msrb.mxu2 %v2370_v55 }
 0x64f   :  { %2632 = vmatmul.f32.gmra.mxu0 %v2195_v37  ;;  %v2260_v45 = vpop.f32.mrf.mxu1  ;;  %2741 = vmatpush.msra.mxu3 %v2404_v0  ;;  %v2364_v37 = vld [vmem:[%s6458_s12 + $0x208] sm:$0xff]  ;;  %s7374_s12 = sld [smem:[%s7649_s0 + %s5253_s9]]  }
 0x650   :  { %2509 = vmatmul.f32.gmra.mxu3 %v2260_v45  ;;  %2702 = vmatpush.msrb.mxu2 %v2368_v29 }
 0x651   :  { %2742 = vmatpush.msra.mxu3 %v2402_v19 }
 0x652   :  { %2673 = vmatmul.f32.gmra.mxu1 %v2260_v45  ;;  %2703 = vmatpush.msrb.mxu2 %v2366_v10  ;;  %v2437_v10 = vld [vmem:[%s6654_s16 + $0x50] sm:$0xff] }
 0x653   :  { %2743 = vmatpush.msra.mxu3 %v2400_v46 }
 0x654   :  { %v2198_v13 = vpop.f32.mrf.mxu0  ;;  %2704 = vmatpush.msrb.mxu2 %v2364_v37 }
 0x655   :  { %2471 = vmatmul.f32.gmra.mxu2 %v2198_v13  ;;  %2744 = vmatpush.msra.mxu3 %v2398_v54 }
 0x657   :  { %2635 = vmatmul.f32.gmra.mxu0 %v2198_v13  ;;  %v2263_v7 = vpop.f32.mrf.mxu1  ;;  %2745 = vmatpush.msra.mxu3 %v2396_v16 }
 0x658   :  { %2512 = vmatmul.f32.gmra.mxu3 %v2263_v7 }
 0x65a   :  { %2676 = vmatmul.f32.gmra.mxu1 %v2263_v7 }
 0x65c   :  { %v2201_v62 = vpop.f32.mrf.mxu0 }
 0x65d   :  { %2474 = vmatmul.f32.gmra.mxu2 %v2201_v62 }
 0x65f   :  { %2638 = vmatmul.f32.gmra.mxu0 %v2201_v62  ;;  %v2266_v1 = vpop.f32.mrf.mxu1 }
 0x660   :  { %2515 = vmatmul.f32.gmra.mxu3 %v2266_v1 }
 0x662   :  { %2679 = vmatmul.f32.gmra.mxu1 %v2266_v1 }
 0x664   :  { %v2204_v3 = vpop.f32.mrf.mxu0 }
 0x665   :  { %2477 = vmatmul.f32.gmra.mxu2 %v2204_v3 }
 0x667   :  { %2641 = vmatmul.f32.gmra.mxu0 %v2204_v3  ;;  %v2269_v50 = vpop.f32.mrf.mxu1 }
 0x668   :  { %2518 = vmatmul.f32.gmra.mxu3 %v2269_v50 }
 0x66a   :  { %2682 = vmatmul.f32.gmra.mxu1 %v2269_v50 }
 0x66c   :  { %v2207_v43 = vpop.f32.mrf.mxu0 }
 0x66d   :  { %2480 = vmatmul.f32.gmra.mxu2 %v2207_v43 }
 0x66f   :  { %2644 = vmatmul.f32.gmra.mxu0 %v2207_v43  ;;  %v2272_v63 = vpop.f32.mrf.mxu1 }
 0x670   :  { %2521 = vmatmul.f32.gmra.mxu3 %v2272_v63 }
 0x672   :  { %2685 = vmatmul.f32.gmra.mxu1 %v2272_v63 }
 0x674   :  { %v6583_v56 = vpop.f32.mrf.mxu0 }
 0x675   :  { %2541 = vmatmul.f32.vlgmr.msra.gmra.mxu2 %v6583_v56 }
 0x677   :  { %v6586_v39 = vpop.f32.mrf.mxu1 }
 0x678   :  { %2582 = vmatmul.f32.vlgmr.msrb.gmra.mxu3 %v6586_v39 }
 0x67c   :  { %v6595_v26 = vpop.f32.mrf.mxu0 }
 0x67d   :  { %2544 = vmatmul.f32.gmra.mxu2 %v6595_v26 }
 0x67f   :  { %v6598_v27 = vpop.f32.mrf.mxu1 }
 0x680   :  { %2585 = vmatmul.f32.gmra.mxu3 %v6598_v27 }
 0x684   :  { %v6607_v38 = vpop.f32.mrf.mxu0 }
 0x685   :  { %2547 = vmatmul.f32.gmra.mxu2 %v6607_v38 }
 0x687   :  { %v6612_v14 = vpop.f32.mrf.mxu1 }
 0x688   :  { %2588 = vmatmul.f32.gmra.mxu3 %v6612_v14 }
 0x68c   :  { %v2219_v52 = vpop.f32.mrf.mxu0 }
 0x68d   :  { %2550 = vmatmul.f32.gmra.mxu2 %v2219_v52 }
 0x68f   :  { %v2284_v60 = vpop.f32.mrf.mxu1 }
 0x690   :  { %2591 = vmatmul.f32.gmra.mxu3 %v2284_v60 }
 0x694   :  { %v2222_v15 = vpop.f32.mrf.mxu0 }
 0x695   :  { %2553 = vmatmul.f32.gmra.mxu2 %v2222_v15 }
 0x697   :  { %v2287_v8 = vpop.f32.mrf.mxu1 }
 0x698   :  { %2594 = vmatmul.f32.gmra.mxu3 %v2287_v8 }
 0x69c   :  { %v2225_v4 = vpop.f32.mrf.mxu0 }
 0x69d   :  { %2556 = vmatmul.f32.gmra.mxu2 %v2225_v4 }
 0x69f   :  { %v2290_v45 = vpop.f32.mrf.mxu1 }
 0x6a0   :  { %2597 = vmatmul.f32.gmra.mxu3 %v2290_v45 }
 0x6a4   :  { %v2228_v41 = vpop.f32.mrf.mxu0 }
 0x6a5   :  { %2559 = vmatmul.f32.gmra.mxu2 %v2228_v41 }
 0x6a7   :  { %v2293_v40 = vpop.f32.mrf.mxu1 }
 0x6a8   :  { %2600 = vmatmul.f32.gmra.mxu3 %v2293_v40 }
 0x6ac   :  { %v2231_v17 = vpop.f32.mrf.mxu0 }
 0x6ad   :  { %2562 = vmatmul.f32.gmra.mxu2 %v2231_v17 }
 0x6af   :  { %v2296_v18 = vpop.f32.mrf.mxu1 }
 0x6b0   :  { %2603 = vmatmul.f32.gmra.mxu3 %v2296_v18 }
 0x6b5   :  { %2705 = vmatmul.f32.vlgmr.msrb.gmra.mxu2 %v6583_v56 }
 0x6b8   :  { %v6634_v33 = vpop.f32.mrf.mxu2  ;;  %2746 = vmatmul.f32.vlgmr.msra.gmra.mxu3 %v6586_v39 }
 0x6bb   :  { %v6637_v20 = vpop.f32.mrf.mxu3 }
 0x6bd   :  { %2708 = vmatmul.f32.gmra.mxu2 %v6595_v26 }
 0x6c0   :  { %v2463_v13 = vpop.f32.mrf.mxu2  ;;  %2749 = vmatmul.f32.gmra.mxu3 %v6598_v27 }
 0x6c1   :  { %v2464_v35 = vadd.f32 %v2463_v13, %v2429_v48 }
 0x6c3   :  { %v2504_v57 = vpop.f32.mrf.mxu3 }
 0x6c4   :  { %v2505_v61 = vadd.f32 %v2504_v57, %v2464_v35 }
 0x6c5   :  { %2711 = vmatmul.f32.gmra.mxu2 %v6607_v38 }
 0x6c8   :  { %v2466_v22 = vpop.f32.mrf.mxu2  ;;  %2752 = vmatmul.f32.gmra.mxu3 %v6612_v14 }
 0x6c9   :  { %v2467_v2 = vadd.f32 %v2466_v22, %v2431_v25  ;;  %v6682_v25 = vpop.f32.mrf.mxu0 }
 0x6cb   :  { %v2507_v7 = vpop.f32.mrf.mxu3 }
 0x6cc   :  { %v2508_v51 = vadd.f32 %v2507_v7, %v2467_v2 }
 0x6cd   :  { %2714 = vmatmul.f32.gmra.mxu2 %v2219_v52 }
 0x6d0   :  { %v2469_v21 = vpop.f32.mrf.mxu2  ;;  %2755 = vmatmul.f32.gmra.mxu3 %v2284_v60 }
 0x6d1   :  { %v2470_v11 = vadd.f32 %v2469_v21, %v2433_v30 }
 0x6d3   :  { %v2510_v36 = vpop.f32.mrf.mxu3 }
 0x6d4   :  { %v2511_v44 = vadd.f32 %v2510_v36, %v2470_v11 }
 0x6d5   :  { %2717 = vmatmul.f32.gmra.mxu2 %v2222_v15 }
 0x6d8   :  { %v2472_v62 = vpop.f32.mrf.mxu2  ;;  %2758 = vmatmul.f32.gmra.mxu3 %v2287_v8 }
 0x6d9   :  { %v2473_v60 = vadd.f32 %v2472_v62, %v2435_v58 }
 0x6db   :  { %v2513_v1 = vpop.f32.mrf.mxu3 }
 0x6dc   :  { %v2514_v15 = vadd.f32 %v2513_v1, %v2473_v60  ;;  %v2427_v1 = vld [vmem:[%s6654_s16] sm:$0xff] }
 0x6dd   :  { %2720 = vmatmul.f32.gmra.mxu2 %v2225_v4  ;;  %v2461_v2 = vadd.f32 %v6634_v33, %v2427_v1 }
 0x6df   :  { %v2502_v33 = vadd.f32 %v6637_v20, %v2461_v2 }
 0x6e0   :  { %v2475_v3 = vpop.f32.mrf.mxu2  ;;  %2761 = vmatmul.f32.gmra.mxu3 %v2290_v45 }
 0x6e1   :  { %v2476_v16 = vadd.f32 %v2475_v3, %v2437_v10  ;;  %v2439_v3 = vld [vmem:[%s6654_s16 + $0x60] sm:$0xff] }
 0x6e3   :  { %v6643_v50 = vpop.f32.mrf.mxu3 }
 0x6e4   :  { %v2517_v7 = vadd.f32 %v6643_v50, %v2476_v16 }
 0x6e5   :  { %2723 = vmatmul.f32.gmra.mxu2 %v2228_v41 }
 0x6e8   :  { %v6645_v43 = vpop.f32.mrf.mxu2  ;;  %2764 = vmatmul.f32.gmra.mxu3 %v2293_v40 }
 0x6eb   :  { %v6647_v63 = vpop.f32.mrf.mxu3 }
 0x6ed   :  { %2726 = vmatmul.f32.gmra.mxu2 %v2231_v17 }
 0x6f0   :  { %v6649_v56 = vpop.f32.mrf.mxu2  ;;  %2767 = vmatmul.f32.gmra.mxu3 %v2296_v18 }
 0x6f3   :  { %v6656_v39 = vpop.f32.mrf.mxu3 }
 0x6f8   :  { %v6659_v6 = vpop.f32.mrf.mxu2 }
 0x6f9   :  { %v2543_v60 = vadd.f32 %v6659_v6, %v2502_v33 }
 0x6fb   :  { %v6661_v32 = vpop.f32.mrf.mxu3 }
 0x6fc   :  { %v6716_v6 = vadd.f32 %v6661_v32, %v2543_v60 }
 0x6fe   :  { %v4815_v32 = vmul.f32 -1.442695, %v6716_v6 }
 0x700   :  { %v2545_v26 = vpop.f32.mrf.mxu2 }
 0x701   :  { %v2546_v27 = vadd.f32 %v2545_v26, %v2505_v61 }
 0x703   :  { %v2586_v5 = vpop.f32.mrf.mxu3 }
 0x704   :  { %v2587_v28 = vadd.f32 %v2586_v5, %v2546_v27  ;;  %v2479_v5 = vadd.f32 %v6645_v43, %v2439_v3 }
 0x706   :  { %v4817_v9 = vmul.f32 -1.442695, %v2587_v28  ;;  %v2520_v43 = vadd.f32 %v6647_v63, %v2479_v5 }
 0x708   :  { %v2548_v38 = vpop.f32.mrf.mxu2  ;;  %5065 = vpow2.f32 %v4817_v9 }
 0x709   :  { %v2549_v47 = vadd.f32 %v2548_v38, %v2508_v51 }
 0x70b   :  { %v2589_v14 = vpop.f32.mrf.mxu3 }
 0x70c   :  { %v6665_v53 = vadd.f32 %v2589_v14, %v2549_v47 }
 0x70e   :  { %v5066_v59 = vpop.eup %5065  ;;  %v4819_v49 = vmul.f32 -1.442695, %v6665_v53 }
 0x70f   :  { %v2821_v23 = vadd.f32 1.0, %v5066_v59 }
 0x710   :  { %v2551_v42 = vpop.f32.mrf.mxu2  ;;  %5067 = vpow2.f32 %v4819_v49 }
 0x711   :  { %v2552_v52 = vadd.f32 %v2551_v42, %v2511_v44  ;;  %5069 = vrcp.f32 %v2821_v23  ;;  %v2876_v4 = vand.u32 2147483648, %v2821_v23  ;;  %v2874_v40 = vand.u32 2147483647, %v2821_v23  ;;  %v6697_v42 = vpop.f32.mrf.mxu1 }
 0x712   :  { %vm2870_vm13 = vweird.f32 %v2821_v23 }
 0x713   :  { %v2592_v12 = vpop.f32.mrf.mxu3  ;;  %v2877_v21 = vor.u32 1.1754944e-38, %v2876_v4  ;;  %vm2875_vm6 = vcmp.eq.f32.partialorder %v2874_v40, 8.507059e+37 }
 0x714   :  { %v6669_v24 = vadd.f32 %v2592_v12, %v2552_v52  ;;  %v2441_v52 = vld [vmem:[%s6654_s16 + $0x70] sm:$0xff] }
 0x716   :  { %v5068_v0 = vpop.eup %5067  ;;  %v4821_v55 = vmul.f32 -1.442695, %v6669_v24 }
 0x717   :  { %v5070_v19 = vpop.eup %5069  ;;  %v2823_v29 = vadd.f32 1.0, %v5068_v0 }
 0x718   :  { %v2554_v46 = vpop.f32.mrf.mxu2  ;;  %v2866_v54 = vmul.f32 %v5070_v19, %v2821_v23  ;;  %5071 = vpow2.f32 %v4821_v55  ;;  %vm2871_vm14 = vweird.f32 %v5070_v19 }
 0x719   :  { %5073 = vrcp.f32 %v2823_v29  ;;  %v2555_v37 = vadd.f32 %v2554_v46, %v2514_v15  ;;  %vm2872_vm8 = vmor %vm2870_vm13, %vm2871_vm14  ;;  %v2906_v51 = vand.u32 2147483648, %v2823_v29  ;;  %v2904_v38 = vand.u32 2147483647, %v2823_v29  ;;  %v2627_v15 = vpop.f32.mrf.mxu0 }
 0x71a   :  { %v2867_v8 = vsub.f32 1.0, %v2866_v54  ;;  %vm2900_vm5 = vweird.f32 %v2823_v29 }
 0x71b   :  { %v2595_v45 = vpop.f32.mrf.mxu3  ;;  %v2907_v44 = vor.u32 1.1754944e-38, %v2906_v51  ;;  %vm2905_vm1 = vcmp.eq.f32.partialorder %v2904_v38, 8.507059e+37  ;;  %v2430_v38 = vld [vmem:[%s6654_s16 + $0x18] sm:$0xff] }
 0x71c   :  { %v2868_v41 = vmul.f32 %v5070_v19, %v2867_v8  ;;  %v6673_v17 = vadd.f32 %v2595_v45, %v2555_v37 }
 0x71e   :  { %v5072_v18 = vpop.eup %5071  ;;  %v2869_v13 = vadd.f32 %v5070_v19, %v2868_v41  ;;  %v4823_v57 = vmul.f32 -1.442695, %v6673_v17 }
 0x71f   :  { %v5074_v22 = vpop.eup %5073  ;;  %v6677_v36 = vadd.f32 1.0, %v5072_v18 }
 0x720   :  { %v2557_v62 = vpop.f32.mrf.mxu2  ;;  %v2873_v48 = vsel %vm2872_vm8, %v5070_v19, %v2869_v13  ;;  %v2896_v35 = vmul.f32 %v5074_v22, %v2823_v29  ;;  %5075 = vpow2.f32 %v4823_v57  ;;  %vm2901_vm11 = vweird.f32 %v5074_v22 }
 0x721   :  { %v2878_v61 = vsel %vm2875_vm6, %v2877_v21, %v2873_v48  ;;  %5077 = vrcp.f32 %v6677_v36  ;;  %v2558_v50 = vadd.f32 %v2557_v62, %v2517_v7  ;;  %vm2902_vm0 = vmor %vm2900_vm5, %vm2901_vm11  ;;  %v2482_v19 = vadd.f32 %v6649_v56, %v2441_v52 }
 0x722   :  { %v6684_v26 = vmul.f32 %v2878_v61, %v2587_v28  ;;  %v2897_v27 = vsub.f32 1.0, %v2896_v35  ;;  %v2936_v29 = vand.u32 2147483648, %v6677_v36  ;;  %v2934_v54 = vand.u32 2147483647, %v6677_v36  ;;  %v2630_v35 = vpop.f32.mrf.mxu0 }
 0x723   :  { %v2598_v9 = vpop.f32.mrf.mxu3  ;;  %vm2930_vm7 = vweird.f32 %v6677_v36  ;;  %v2523_v4 = vadd.f32 %v6656_v39, %v2482_v19 }
 0x724   :  { %v2898_v30 = vmul.f32 %v5074_v22, %v2897_v27  ;;  %v6688_v47 = vadd.f32 %v2598_v9, %v2558_v50  ;;  %3093 = vrot.lane.b32.xlu2 %v6684_v26, %s5235_s27  ;;  %v2937_v45 = vor.u32 1.1754944e-38, %v2936_v29  ;;  %vm2935_vm9 = vcmp.eq.f32.partialorder %v2934_v54, 8.507059e+37  ;;  %v2432_v29 = vld [vmem:[%s6654_s16 + $0x28] sm:$0xff] }
 0x726   :  { %v5076_v11 = vpop.eup %5075  ;;  %v2899_v28 = vadd.f32 %v5074_v22, %v2898_v30  ;;  %v4825_v14 = vmul.f32 -1.442695, %v6688_v47 }
 0x727   :  { %v5078_v59 = vpop.eup %5077  ;;  %v6695_v49 = vadd.f32 1.0, %v5076_v11 }
 0x728   :  { %v2560_v23 = vpop.f32.mrf.mxu2  ;;  %v2903_v58 = vsel %vm2902_vm0, %v5074_v22, %v2899_v28  ;;  %v2926_v12 = vmul.f32 %v5078_v59, %v6677_v36  ;;  %5079 = vpow2.f32 %v4825_v14  ;;  %vm2931_vm15 = vweird.f32 %v5078_v59  ;;  %v2668_v22 = vpop.f32.mrf.mxu1 }
 0x729   :  { %v2908_v0 = vsel %vm2905_vm1, %v2907_v44, %v2903_v58  ;;  %5081 = vrcp.f32 %v6695_v49  ;;  %v2561_v55 = vadd.f32 %v2560_v23, %v2520_v43  ;;  %vm2932_vm3 = vmor %vm2930_vm7, %vm2931_vm15  ;;  %v2966_v36 = vand.u32 2147483648, %v6695_v49 }
 0x72a   :  { %v6704_v20 = vmul.f32 %v2908_v0, %v6665_v53  ;;  %v2927_v63 = vsub.f32 1.0, %v2926_v12  ;;  %v2964_v3 = vand.u32 2147483647, %v6695_v49  ;;  %vm2960_vm10 = vweird.f32 %v6695_v49 }
 0x72b   :  { %v2601_v46 = vpop.f32.mrf.mxu3  ;;  %v2967_v2 = vor.u32 1.1754944e-38, %v2966_v36  ;;  %v2628_v44 = vadd.f32 %v2627_v15, %v2430_v38 }
 0x72c   :  { %v2928_v10 = vmul.f32 %v5078_v59, %v2927_v63  ;;  %v6709_v8 = vadd.f32 %v2601_v46, %v2561_v55  ;;  %3165 = vrot.lane.b32.xlu0 %v6704_v20, %s5234_s26  ;;  %3095 = vrot.lane.b32.xlu1 %v6704_v20, %s5235_s27  ;;  %vm2965_vm2 = vcmp.eq.f32.partialorder %v2964_v3, 8.507059e+37  ;;  %v2633_v46 = vpop.f32.mrf.mxu0 }
 0x72d   :  { %v2669_v19 = vadd.f32 %v2668_v22, %v2628_v44 }
 0x72e   :  { %v5080_v56 = vpop.eup %5079  ;;  %v2929_v53 = vadd.f32 %v5078_v59, %v2928_v10  ;;  %v4827_v37 = vmul.f32 -1.442695, %v6709_v8 }
 0x72f   :  { %v5082_v16 = vpop.eup %5081  ;;  %v6721_v41 = vadd.f32 1.0, %v5080_v56 }
 0x730   :  { %v2563_v40 = vpop.f32.mrf.mxu2  ;;  %v2933_v18 = vsel %vm2932_vm3, %v5078_v59, %v2929_v53  ;;  %v2956_v13 = vmul.f32 %v5082_v16, %v6695_v49  ;;  %5083 = vpow2.f32 %v4827_v37  ;;  %vm2961_vm4 = vweird.f32 %v5082_v16  ;;  %v2671_v49 = vpop.f32.mrf.mxu1 }
 0x731   :  { %v2938_v57 = vsel %vm2935_vm9, %v2937_v45, %v2933_v18  ;;  %5085 = vrcp.f32 %v6721_v41  ;;  %v2564_v21 = vadd.f32 %v2563_v40, %v2523_v4  ;;  %vm2962_vm12 = vmor %vm2960_vm10, %vm2961_vm4  ;;  %v2996_v33 = vand.u32 2147483648, %v6721_v41 }
 0x732   :  { %v6727_v7 = vmul.f32 %v2938_v57, %v6669_v24  ;;  %v2957_v39 = vsub.f32 1.0, %v2956_v13  ;;  %5087 = vpow2.f32 %v4815_v32  ;;  %v2994_v52 = vand.u32 2147483647, %v6721_v41 }
 0x733   :  { %v2604_v62 = vpop.f32.mrf.mxu3  ;;  %vm2990_vm13 = vweird.f32 %v6721_v41  ;;  %v2997_v0 = vor.u32 1.1754944e-38, %v2996_v33 }
 0x734   :  { %v2958_v1 = vmul.f32 %v5082_v16, %v2957_v39  ;;  %v6731_v48 = vadd.f32 %v2604_v62, %v2564_v21  ;;  %3167 = vrot.lane.b32.xlu2 %v6727_v7, %s5234_s26  ;;  %3097 = vrot.lane.b32.xlu0 %v6727_v7, %s5235_s27  ;;  %vm2995_vm6 = vcmp.eq.f32.partialorder %v2994_v52, 8.507059e+37  ;;  %v2434_v62 = vld [vmem:[%s6654_s16 + $0x38] sm:$0xff] }
 0x736   :  { %v5084_v24 = vpop.eup %5083  ;;  %v2959_v61 = vadd.f32 %v5082_v16, %v2958_v1  ;;  %v4829_v27 = vmul.f32 -1.442695, %v6731_v48 }
 0x737   :  { %v5086_v50 = vpop.eup %5085  ;;  %v6739_v5 = vadd.f32 1.0, %v5084_v24 }
 0x738   :  { %v6741_v51 = vpop.f32.mrf.mxu2  ;;  %v2963_v9 = vsel %vm2962_vm12, %v5082_v16, %v2959_v61  ;;  %v2986_v30 = vmul.f32 %v5086_v50, %v6721_v41  ;;  %5089 = vpow2.f32 %v4829_v27  ;;  %v5088_v59 = vpop.eup %5087  ;;  %vm2991_vm14 = vweird.f32 %v5086_v50 }
 0x739   :  { %v2968_v11 = vsel %vm2965_vm2, %v2967_v2, %v2963_v9  ;;  %5091 = vrcp.f32 %v6739_v5  ;;  %v6757_v58 = vadd.f32 1.0, %v5088_v59  ;;  %vm2992_vm8 = vmor %vm2990_vm13, %vm2991_vm14  ;;  %v2631_v16 = vadd.f32 %v2630_v35, %v2432_v29  ;;  %v2636_v35 = vpop.f32.mrf.mxu0 }
 0x73a   :  { %v6747_v28 = vmul.f32 %v2968_v11, %v6673_v17  ;;  %v2987_v14 = vsub.f32 1.0, %v2986_v30  ;;  %v3026_v4 = vand.u32 2147483648, %v6739_v5  ;;  %v3024_v40 = vand.u32 2147483647, %v6739_v5 }
 0x73b   :  { %v6750_v43 = vpop.f32.mrf.mxu3  ;;  %vm3020_vm5 = vweird.f32 %v6739_v5  ;;  %v2672_v22 = vadd.f32 %v2671_v49, %v2631_v16  ;;  %v2634_v2 = vadd.f32 %v2633_v46, %v2434_v62  ;;  %vm2840_vm10 = vweird.f32 %v6757_v58 }
 0x73c   :  { %v2988_v23 = vmul.f32 %v5086_v50, %v2987_v14  ;;  %3169 = vrot.lane.b32.xlu1 %v6747_v28, %s5234_s26  ;;  %3099 = vrot.lane.b32.xlu2 %v6747_v28, %s5235_s27  ;;  %v3027_v39 = vor.u32 1.1754944e-38, %v3026_v4  ;;  %vm3025_vm1 = vcmp.eq.f32.partialorder %v3024_v40, 8.507059e+37  ;;  %v2428_v4 = vld [vmem:[%s6654_s16 + $0x8] sm:$0xff] }
 0x73e   :  { %v5090_v17 = vpop.eup %5089  ;;  %v2989_v12 = vadd.f32 %v5086_v50, %v2988_v23 }
 0x73f   :  { %v5092_v60 = vpop.eup %5091  ;;  %v6760_v63 = vadd.f32 1.0, %v5090_v17 }
 0x740   :  { %v2709_v55 = vpop.f32.mrf.mxu2  ;;  %v2993_v15 = vsel %vm2992_vm8, %v5086_v50, %v2989_v12  ;;  %v3016_v10 = vmul.f32 %v5092_v60, %v6739_v5  ;;  %vm3021_vm11 = vweird.f32 %v5092_v60 }
 0x741   :  { %v2998_v54 = vsel %vm2995_vm6, %v2997_v0, %v2993_v15  ;;  %5093 = vrcp.f32 %v6760_v63  ;;  %v2710_v37 = vadd.f32 %v2709_v55, %v2669_v19  ;;  %vm3022_vm0 = vmor %vm3020_vm5, %vm3021_vm11  ;;  %v3056_v9 = vand.u32 2147483648, %v6760_v63  ;;  %v2436_v0 = vld [vmem:[%s6654_s16 + $0x48] sm:$0xff] }
 0x742   :  { %5095 = vrcp.f32 %v6757_v58  ;;  %v6767_v56 = vmul.f32 %v2998_v54, %v6688_v47  ;;  %v3017_v53 = vsub.f32 1.0, %v3016_v10  ;;  %v2674_v47 = vpop.f32.mrf.mxu1  ;;  %v3054_v11 = vand.u32 2147483647, %v6760_v63  ;;  %v2639_v10 = vpop.f32.mrf.mxu0 }
 0x743   :  { %v2750_v45 = vpop.f32.mrf.mxu3  ;;  %vm3050_vm7 = vweird.f32 %v6760_v63  ;;  %v3057_v49 = vor.u32 1.1754944e-38, %v3056_v9  ;;  %v2675_v17 = vadd.f32 %v2674_v47, %v2634_v2  ;;  %v2637_v15 = vadd.f32 %v2636_v35, %v2436_v0 }
 0x744   :  { %v3018_v41 = vmul.f32 %v5092_v60, %v3017_v53  ;;  %v6771_v18 = vadd.f32 %v2750_v45, %v2710_v37  ;;  %3171 = vrot.lane.b32.xlu0 %v6767_v56, %s5234_s26  ;;  %3101 = vrot.lane.b32.xlu1 %v6767_v56, %s5235_s27  ;;  %vm3055_vm9 = vcmp.eq.f32.partialorder %v3054_v11, 8.507059e+37  ;;  %v2846_v45 = vand.u32 2147483648, %v6757_v58 }
 0x746   :  { %v3019_v13 = vadd.f32 %v5092_v60, %v3018_v41  ;;  %v4818_v32 = vmul.f32 -1.442695, %v6771_v18 }
 0x747   :  { %v5094_v57 = vpop.eup %5093 }
 0x748   :  { %v2712_v21 = vpop.f32.mrf.mxu2  ;;  %v6779_v36 = vpop.eup %5095  ;;  %v3023_v1 = vsel %vm3022_vm0, %v5092_v60, %v3019_v13  ;;  %v3046_v3 = vmul.f32 %v5094_v57, %v6760_v63  ;;  %5097 = vpow2.f32 %v4818_v32  ;;  %vm3051_vm15 = vweird.f32 %v5094_v57  ;;  %v2438_v13 = vld [vmem:[%s6654_s16 + $0x58] sm:$0xff] }
 0x749   :  { %v3028_v24 = vsel %vm3025_vm1, %v3027_v39, %v3023_v1  ;;  %v2713_v50 = vadd.f32 %v2712_v21, %v2672_v22  ;;  %v2836_v5 = vmul.f32 %v6779_v36, %v6757_v58  ;;  %vm3052_vm3 = vmor %vm3050_vm7, %vm3051_vm15  ;;  %vm2841_vm4 = vweird.f32 %v6779_v36 }
 0x74a   :  { %v3087_v61 = vmul.f32 %v3028_v24, %v6709_v8  ;;  %v3047_v27 = vsub.f32 1.0, %v3046_v3  ;;  %v2677_v12 = vpop.f32.mrf.mxu1  ;;  %v2625_v22 = vadd.f32 %v6682_v25, %v2428_v4  ;;  %vm6820_vm12 = vmor %vm2840_vm10, %vm2841_vm4  ;;  %v2640_v3 = vadd.f32 %v2639_v10, %v2438_v13  ;;  %v2642_v2 = vpop.f32.mrf.mxu0  ;;  %v2442_v4 = vld [vmem:[%s6654_s16 + $0x78] sm:$0xff] }
 0x74b   :  { %v2753_v30 = vpop.f32.mrf.mxu3  ;;  %v2837_v44 = vsub.f32 1.0, %v2836_v5  ;;  %v2678_v47 = vadd.f32 %v2677_v12, %v2637_v15  ;;  %v2847_v24 = vor.u32 1.1754944e-38, %v2846_v45 }
 0x74c   :  { %v3048_v38 = vmul.f32 %v5094_v57, %v3047_v27  ;;  %v6788_v14 = vadd.f32 %v2753_v30, %v2713_v50  ;;  %3173 = vrot.lane.b32.xlu2 %v3087_v61, %s5234_s26  ;;  %3103 = vrot.lane.b32.xlu0 %v3087_v61, %s5235_s27 }
 0x74d   :  { %v2838_v29 = vmul.f32 %v6779_v36, %v2837_v44 }
 0x74e   :  { %v5098_v8 = vpop.eup %5097  ;;  %v3049_v59 = vadd.f32 %v5094_v57, %v3048_v38  ;;  %v4820_v33 = vmul.f32 -1.442695, %v6788_v14 }
 0x74f   :  { %v6794_v23 = vadd.f32 1.0, %v5098_v8 }
 0x750   :  { %v2715_v52 = vpop.f32.mrf.mxu2  ;;  %v3053_v60 = vsel %vm3052_vm3, %v5094_v57, %v3049_v59  ;;  %5099 = vpow2.f32 %v4820_v33  ;;  %v2844_v57 = vand.u32 2147483647, %v6757_v58 }
 0x751   :  { %v3058_v55 = vsel %vm3055_vm9, %v3057_v49, %v3053_v60  ;;  %5101 = vrcp.f32 %v6794_v23  ;;  %v2716_v19 = vadd.f32 %v2715_v52, %v2675_v17  ;;  %v2891_v35 = vand.u32 2147483648, %v6794_v23 }
 0x752   :  { %v3089_v63 = vmul.f32 %v3058_v55, %v6731_v48  ;;  %v2839_v48 = vadd.f32 %v6779_v36, %v2838_v29  ;;  %v2680_v39 = vpop.f32.mrf.mxu1  ;;  %vm2845_vm14 = vcmp.eq.f32.partialorder %v2844_v57, 8.507059e+37  ;;  %vm2885_vm13 = vweird.f32 %v6794_v23 }
 0x753   :  { %v2756_v46 = vpop.f32.mrf.mxu3  ;;  %v2681_v38 = vadd.f32 %v2680_v39, %v2640_v3  ;;  %v2892_v11 = vor.u32 1.1754944e-38, %v2891_v35 }
 0x754   :  { %v6800_v54 = vadd.f32 %v2756_v46, %v2716_v19  ;;  %3175 = vrot.lane.b32.xlu1 %v3089_v63, %s5234_s26  ;;  %3105 = vrot.lane.b32.xlu2 %v3089_v63, %s5235_s27  ;;  %v2843_v58 = vsel %vm6820_vm12, %v6779_v36, %v2839_v48  ;;  %v2645_v48 = vpop.f32.mrf.mxu0 }
 0x755   :  { %3273 = vmatpush.msra.mxu0 %v3089_v63  ;;  %v2848_v5 = vsel %vm2845_vm14, %v2847_v24, %v2843_v58  ;;  %v2646_v57 = vadd.f32 %v2645_v48, %v2442_v4 }
 0x756   :  { %v5100_v53 = vpop.eup %5099  ;;  %v4822_v37 = vmul.f32 -1.442695, %v6800_v54  ;;  %v6842_v49 = vmul.f32 %v2848_v5, %v6716_v6 }
 0x757   :  { %v5102_v16 = vpop.eup %5101  ;;  %v6809_v41 = vadd.f32 1.0, %v5100_v53  ;;  %3274 = vmatpush.msra.mxu0 %v3087_v61  ;;  %v2889_v61 = vand.u32 2147483647, %v6794_v23 }
 0x758   :  { %v2718_v40 = vpop.f32.mrf.mxu2  ;;  %v2881_v32 = vmul.f32 %v5102_v16, %v6794_v23  ;;  %5103 = vpow2.f32 %v4822_v37  ;;  %vm2886_vm2 = vweird.f32 %v5102_v16 }
 0x759   :  { %5105 = vrcp.f32 %v6809_v41  ;;  %3275 = vmatpush.msra.mxu0 %v6767_v56  ;;  %v2719_v1 = vadd.f32 %v2718_v40, %v2678_v47  ;;  %vm2887_vm8 = vmor %vm2885_vm13, %vm2886_vm2  ;;  %vm2890_vm6 = vcmp.eq.f32.partialorder %v2889_v61, 8.507059e+37  ;;  %v2921_v60 = vand.u32 2147483648, %v6809_v41 }
 0x75a   :  { %v2882_v62 = vsub.f32 1.0, %v2881_v32  ;;  %v2683_v6 = vpop.f32.mrf.mxu1  ;;  %v2919_v63 = vand.u32 2147483647, %v6809_v41  ;;  %vm2915_vm5 = vweird.f32 %v6809_v41 }
 0x75b   :  { %v2759_v56 = vpop.f32.mrf.mxu3  ;;  %3276 = vmatpush.msra.mxu0 %v6747_v28  ;;  %v2666_v28 = vadd.f32 %v6697_v42, %v2625_v22  ;;  %v2922_v53 = vor.u32 1.1754944e-38, %v2921_v60 }
 0x75c   :  { %v2883_v25 = vmul.f32 %v5102_v16, %v2882_v62  ;;  %v6830_v27 = vadd.f32 %v2759_v56, %v2719_v1  ;;  %vm2920_vm1 = vcmp.eq.f32.partialorder %v2919_v63, 8.507059e+37 }
 0x75d   :  { %3277 = vmatpush.msra.mxu0 %v6727_v7  ;;  %v2440_v7 = vld [vmem:[%s6654_s16 + $0x68] sm:$0xff]  ;;  %v2707_v42 = vadd.f32 %v6741_v51, %v2666_v28  ;;  %s7427_s16 = sld [smem:[%s7649_s0 + %s5254_s13]]  }
 0x75e   :  { %v5104_v50 = vpop.eup %5103  ;;  %v2884_v36 = vadd.f32 %v5102_v16, %v2883_v25  ;;  %v4824_v9 = vmul.f32 -1.442695, %v6830_v27  ;;  %v2643_v12 = vadd.f32 %v2642_v2, %v2440_v7 }
 0x75f   :  { %v5106_v30 = vpop.eup %5105  ;;  %v6836_v8 = vadd.f32 1.0, %v5104_v50  ;;  %3278 = vmatpush.msra.mxu0 %v6704_v20 }
 0x760   :  { %v2721_v59 = vpop.f32.mrf.mxu2  ;;  %v2888_v33 = vsel %vm2887_vm8, %v5102_v16, %v2884_v36  ;;  %v2911_v44 = vmul.f32 %v5106_v30, %v6809_v41  ;;  %5107 = vpow2.f32 %v4824_v9  ;;  %vm2916_vm11 = vweird.f32 %v5106_v30 }
 0x761   :  { %v2893_v23 = vsel %vm2890_vm6, %v2892_v11, %v2888_v33  ;;  %5109 = vrcp.f32 %v6836_v8  ;;  %3279 = vmatpush.msra.mxu0 %v6684_v26  ;;  %v2722_v17 = vadd.f32 %v2721_v59, %v2681_v38  ;;  %v2684_v10 = vadd.f32 %v2683_v6, %v2643_v12  ;;  %vm2917_vm0 = vmor %vm2915_vm5, %vm2916_vm11 }
 0x762   :  { %v6848_v52 = vmul.f32 %v2893_v23, %v6771_v18  ;;  %v2912_v20 = vsub.f32 1.0, %v2911_v44  ;;  %v6858_v18 = vadd.f32 %v6750_v43, %v2707_v42  ;;  %v2951_v22 = vand.u32 2147483648, %v6836_v8  ;;  %v2686_v3 = vpop.f32.mrf.mxu1 }
 0x763   :  { %v2762_v0 = vpop.f32.mrf.mxu3  ;;  %3280 = vmatpush.msra.mxu0 %v6842_v49  ;;  %v2949_v62 = vand.u32 2147483647, %v6836_v8  ;;  %vm2945_vm7 = vweird.f32 %v6836_v8  ;;  %v2687_v56 = vadd.f32 %v2686_v3, %v2646_v57 }
 0x764   :  { %v2913_v55 = vmul.f32 %v5106_v30, %v2912_v20  ;;  %v6853_v19 = vadd.f32 %v2762_v0, %v2722_v17  ;;  %3109 = vrot.lane.b32.xlu0 %v6848_v52, %s5235_s27  ;;  %v4816_v41 = vmul.f32 -1.442695, %v6858_v18  ;;  %v2952_v25 = vor.u32 1.1754944e-38, %v2951_v22 }
 0x765   :  { %vm2950_vm9 = vcmp.eq.f32.partialorder %v2949_v62, 8.507059e+37 }
 0x766   :  { %v5108_v51 = vpop.eup %5107  ;;  %v2914_v29 = vadd.f32 %v5106_v30, %v2913_v55  ;;  %v4826_v46 = vmul.f32 -1.442695, %v6853_v19 }
 0x767   :  { %v5110_v15 = vpop.eup %5109  ;;  %v6862_v37 = vadd.f32 1.0, %v5108_v51 }
 0x768   :  { %v2724_v16 = vpop.f32.mrf.mxu2  ;;  %v2918_v45 = vsel %vm2917_vm0, %v5106_v30, %v2914_v29  ;;  %v2941_v40 = vmul.f32 %v5110_v15, %v6836_v8  ;;  %5111 = vpow2.f32 %v4826_v46  ;;  %vm2946_vm15 = vweird.f32 %v5110_v15 }
 0x769   :  { %v2923_v43 = vsel %vm2920_vm1, %v2922_v53, %v2918_v45  ;;  %5113 = vrcp.f32 %v6862_v37  ;;  %v2725_v32 = vadd.f32 %v2724_v16, %v2684_v10  ;;  %vm2947_vm3 = vmor %vm2945_vm7, %vm2946_vm15  ;;  %v2981_v38 = vand.u32 2147483648, %v6862_v37 }
 0x76a   :  { %v6869_v47 = vmul.f32 %v2923_v43, %v6788_v14  ;;  %v2942_v13 = vsub.f32 1.0, %v2941_v40  ;;  %5115 = vpow2.f32 %v4816_v41  ;;  %v2979_v7 = vand.u32 2147483647, %v6862_v37 }
 0x76b   :  { %v2765_v39 = vpop.f32.mrf.mxu3  ;;  %vm2975_vm10 = vweird.f32 %v6862_v37  ;;  %v2982_v17 = vor.u32 1.1754944e-38, %v2981_v38 }
 0x76c   :  { %v2943_v21 = vmul.f32 %v5110_v15, %v2942_v13  ;;  %v6873_v1 = vadd.f32 %v2765_v39, %v2725_v32  ;;  %3181 = vrot.lane.b32.xlu1 %v6869_v47, %s5234_s26  ;;  %3111 = vrot.lane.b32.xlu2 %v6869_v47, %s5235_s27  ;;  %vm2980_vm2 = vcmp.eq.f32.partialorder %v2979_v7, 8.507059e+37 }
 0x76e   :  { %v5112_v14 = vpop.eup %5111  ;;  %v2944_v58 = vadd.f32 %v5110_v15, %v2943_v21  ;;  %v4828_v24 = vmul.f32 -1.442695, %v6873_v1 }
 0x76f   :  { %v5114_v35 = vpop.eup %5113  ;;  %v2830_v61 = vadd.f32 1.0, %v5112_v14 }
 0x770   :  { %v2727_v50 = vpop.f32.mrf.mxu2  ;;  %v2948_v2 = vsel %vm2947_vm3, %v5110_v15, %v2944_v58  ;;  %v2971_v5 = vmul.f32 %v5114_v35, %v6862_v37  ;;  %5117 = vpow2.f32 %v4828_v24  ;;  %v5116_v8 = vpop.eup %5115  ;;  %vm2976_vm4 = vweird.f32 %v5114_v35 }
 0x771   :  { %v2953_v36 = vsel %vm2950_vm9, %v2952_v25, %v2948_v2  ;;  %5119 = vrcp.f32 %v2830_v61  ;;  %v2728_v28 = vadd.f32 %v2727_v50, %v2687_v56  ;;  %v6895_v20 = vadd.f32 1.0, %v5116_v8  ;;  %vm2977_vm12 = vmor %vm2975_vm10, %vm2976_vm4 }
 0x772   :  { %v6883_v9 = vmul.f32 %v2953_v36, %v6800_v54  ;;  %v2972_v30 = vsub.f32 1.0, %v2971_v5  ;;  %v3011_v51 = vand.u32 2147483648, %v2830_v61  ;;  %v3009_v46 = vand.u32 2147483647, %v2830_v61 }
 0x773   :  { %v2768_v11 = vpop.f32.mrf.mxu3  ;;  %vm3005_vm13 = vweird.f32 %v2830_v61  ;;  %vm2855_vm10 = vweird.f32 %v6895_v20  ;;  %v2859_v38 = vand.u32 2147483647, %v6895_v20 }
 0x774   :  { %v2973_v59 = vmul.f32 %v5114_v35, %v2972_v30  ;;  %v6887_v33 = vadd.f32 %v2768_v11, %v2728_v28  ;;  %3183 = vrot.lane.b32.xlu0 %v6883_v9, %s5234_s26  ;;  %3113 = vrot.lane.b32.xlu1 %v6883_v9, %s5235_s27  ;;  %vm3010_vm6 = vcmp.eq.f32.partialorder %v3009_v46, 8.507059e+37 }
 0x776   :  { %v5118_v54 = vpop.eup %5117  ;;  %v2974_v44 = vadd.f32 %v5114_v35, %v2973_v59  ;;  %v4830_v23 = vmul.f32 -1.442695, %v6887_v33 }
 0x777   :  { %v5120_v42 = vpop.eup %5119  ;;  %v2832_v12 = vadd.f32 1.0, %v5118_v54  ;;  %v3475_v54 = vld [vmem:[%s4686_s20 + $0x30] sm:$0xff] }
 0x778   :  { %v2978_v60 = vsel %vm2977_vm12, %v5114_v35, %v2974_v44  ;;  %v3001_v0 = vmul.f32 %v5120_v42, %v2830_v61  ;;  %5121 = vpow2.f32 %v4830_v23  ;;  %vm3006_vm14 = vweird.f32 %v5120_v42  ;;  %v3470_v23 = vld [vmem:[%s4686_s20 + $0x8] sm:$0xff] }
 0x779   :  { %v2983_v6 = vsel %vm2980_vm2, %v2982_v17, %v2978_v60  ;;  %5123 = vrcp.f32 %v2832_v12  ;;  %vm3007_vm8 = vmor %vm3005_vm13, %vm3006_vm14  ;;  %v3041_v41 = vand.u32 2147483648, %v2832_v12  ;;  %v3039_v32 = vand.u32 2147483647, %v2832_v12 }
 0x77a   :  { %v6898_v55 = vmul.f32 %v2983_v6, %v6830_v27  ;;  %v3002_v63 = vsub.f32 1.0, %v3001_v0  ;;  %5125 = vrcp.f32 %v6895_v20  ;;  %v3012_v27 = vor.u32 1.1754944e-38, %v3011_v51 }
 0x77b   :  { %vm3035_vm5 = vweird.f32 %v2832_v12  ;;  %v3042_v21 = vor.u32 1.1754944e-38, %v3041_v41  ;;  %vm3040_vm1 = vcmp.eq.f32.partialorder %v3039_v32, 8.507059e+37  ;;  %vm2860_vm2 = vcmp.eq.f32.partialorder %v2859_v38, 8.507059e+37 }
 0x77c   :  { %v3003_v29 = vmul.f32 %v5120_v42, %v3002_v63  ;;  %3115 = vrot.lane.b32.xlu0 %v6898_v55, %s5235_s27  ;;  %3185 = vrot.lane.b32.xlu2 %v6898_v55, %s5234_s26  ;;  %vm7754_vm14 = vcmp.lt.s32.totalorder %v5558_v34, 112 }
 0x77d   :  { %vm7755_vm13 = vmmov %vm7754_vm14 }
 0x77e   :  { %v5122_v15 = vpop.eup %5121  ;;  %v3004_v10 = vadd.f32 %v5120_v42, %v3003_v29 }
 0x77f   :  { %v5124_v53 = vpop.eup %5123  ;;  %v2834_v37 = vadd.f32 1.0, %v5122_v15 }
 0x780   :  { %v3008_v16 = vsel %vm3007_vm8, %v5120_v42, %v3004_v10  ;;  %v3031_v4 = vmul.f32 %v5124_v53, %v2832_v12  ;;  %v5126_v45 = vpop.eup %5125  ;;  %vm3036_vm11 = vweird.f32 %v5124_v53  ;;  %v3469_v42 = vld [vmem:[%s4686_s20] sm:$0xff]  ;;  %vm7756_vm8 = vmmov %vm7755_vm13 }
 0x781   :  { %v3013_v48 = vsel %vm3010_vm6, %v3012_v27, %v3008_v16  ;;  %5127 = vrcp.f32 %v2834_v37  ;;  %v2851_v57 = vmul.f32 %v5126_v45, %v6895_v20  ;;  %vm3037_vm0 = vmor %vm3035_vm5, %vm3036_vm11  ;;  %v3071_v35 = vand.u32 2147483648, %v2834_v37 }
 0x782   :  { %v3086_v40 = vmul.f32 %v3013_v48, %v6853_v19  ;;  %v3032_v43 = vsub.f32 1.0, %v3031_v4  ;;  %v3069_v25 = vand.u32 2147483647, %v2834_v37  ;;  %vm3065_vm7 = vweird.f32 %v2834_v37  ;;  %vm7757_vm6 = vmmov %vm7756_vm8 }
 0x783   :  { %v2852_v19 = vsub.f32 1.0, %v2851_v57  ;;  %v3072_v2 = vor.u32 1.1754944e-38, %v3071_v35  ;;  %vm2856_vm4 = vweird.f32 %v5126_v45  ;;  %vm7758_vm11 = vmmov %vm7757_vm6 }
 0x784   :  { %v3033_v13 = vmul.f32 %v5124_v53, %v3032_v43  ;;  %3187 = vrot.lane.b32.xlu1 %v3086_v40, %s5234_s26  ;;  %3117 = vrot.lane.b32.xlu2 %v3086_v40, %s5235_s27  ;;  %vm3070_vm9 = vcmp.eq.f32.partialorder %v3069_v25, 8.507059e+37  ;;  %vm2857_vm12 = vmor %vm2855_vm10, %vm2856_vm4  ;;  %v3139_v25 = vld [vmem:[%s4687_s24] ss:$4 sm:$0x3]  ;;  %vm7766_vm4 = vcmp.lt.s32.totalorder %v5558_v34, 16  ;;  %v3234_v34 = vld [vmem:[%s7043_s30 + $0x10] sm:$0xff] }
 0x785   :  { %v2853_v61 = vmul.f32 %v5126_v45, %v2852_v19  ;;  %vm7759_vm5 = vmmov %vm7757_vm6 }
 0x786   :  { %v3034_v22 = vadd.f32 %v5124_v53, %v3033_v13  ;;  %vm7767_vm10 = vmmov %vm7766_vm4 }
 0x787   :  { %v5128_v39 = vpop.eup %5127  ;;  %v2854_v36 = vadd.f32 %v5126_v45, %v2853_v61 }
 0x788   :  { %v3038_v62 = vsel %vm3037_vm0, %v5124_v53, %v3034_v22  ;;  %v3061_v14 = vmul.f32 %v5128_v39, %v2834_v37  ;;  %vm3066_vm15 = vweird.f32 %v5128_v39  ;;  %v4831_v37 = vld [vmem:[%s4687_s24 + $0x2] ss:$4 sm:$0x3]  ;;  %vm7760_vm0 = vmmov %vm7759_vm5  ;;  %s4693_s24 = sld [smem:[%s7649_s0 + %s5256_s21]]  }
 0x789   :  { %v3043_v3 = vsel %vm3040_vm1, %v3042_v21, %v3038_v62  ;;  %vm3067_vm3 = vmor %vm3065_vm7, %vm3066_vm15  ;;  %v2858_v11 = vsel %vm2857_vm12, %v5126_v45, %v2854_v36  ;;  %v6955_v48 = vperm.slane %v4831_v37, 0  ;;  %v6957_v45 = vperm.slane %v4831_v37, 1 }
 0x78a   :  { %v3088_v58 = vmul.f32 %v3043_v3, %v6873_v1  ;;  %v3062_v24 = vsub.f32 1.0, %v3061_v14  ;;  %v2861_v1 = vand.u32 2147483648, %v6895_v20  ;;  %vm7761_vm1 = vmmov %vm7760_vm0 }
 0x78b   :  { %vm7762_vm15 = vmmov %vm7760_vm0 }
 0x78c   :  { %v3063_v56 = vmul.f32 %v5128_v39, %v3062_v24  ;;  %3189 = vrot.lane.b32.xlu0 %v3088_v58, %s5234_s26  ;;  %3119 = vrot.lane.b32.xlu1 %v3088_v58, %s5235_s27  ;;  %v2862_v8 = vor.u32 1.1754944e-38, %v2861_v1  ;;  %vm7763_vm7 = vmmov %vm7760_vm0 }
 0x78d   :  { %vm7768_vm12 = vmmov %vm7766_vm4 }
 0x78e   :  { %v3064_v50 = vadd.f32 %v5128_v39, %v3063_v56  ;;  %v2863_v59 = vsel %vm2860_vm2, %v2862_v8, %v2858_v11  ;;  %v6993_v11 = vperm.slane %v3139_v25, 1  ;;  %vm7769_vm2 = vmmov %vm7766_vm4 }
 0x78f   :  { %v3076_v7 = vmul.f32 %v2863_v59, %v6858_v18  ;;  %v6936_v18 = vpop.permute.xlu2 %3093 }
 0x790   :  { %v3068_v5 = vsel %vm3067_vm3, %v5128_v39, %v3064_v50  ;;  %vm7764_vm3 = vmmov %vm7760_vm0 }
 0x791   :  { %v3073_v30 = vsel %vm3070_vm9, %v3072_v2, %v3068_v5  ;;  %vm7765_vm9 = vmmov %vm7760_vm0 }
 0x792   :  { %v3090_v28 = vmul.f32 %v3073_v30, %v6887_v33  ;;  %v3473_v33 = vld [vmem:[%s4686_s20 + $0x20] sm:$0xff] }
 0x794   :  { %3355 = vmatpush.msra.mxu2 %v3090_v28  ;;  %3121 = vrot.lane.b32.xlu0 %v3090_v28, %s5235_s27 }
 0x795   :  { %3163 = vrot.lane.b32.xlu1 %v6684_v26, %s5234_s26  ;;  %3191 = vrot.lane.b32.xlu2 %v3090_v28, %s5234_s26  ;;  %v3476_v26 = vld [vmem:[%s4686_s20 + $0x38] sm:$0xff]  ;;  %v6989_v28 = vperm.slane %v3139_v25, 0 }
 0x796   :  { %3356 = vmatpush.msra.mxu2 %v3088_v58 }
 0x797   :  { %v3168_v44 = vpop.permute.xlu2 %3167 }
 0x798   :  { %3357 = vmatpush.msra.mxu2 %v3086_v40 }
 0x79a   :  { %3358 = vmatpush.msra.mxu2 %v6898_v55 }
 0x79c   :  { %3359 = vmatpush.msra.mxu2 %v6883_v9  ;;  %3091 = vrot.lane.b32.xlu0 %v6842_v49, %s5235_s27  ;;  %v3474_v9 = vld [vmem:[%s4686_s20 + $0x28] sm:$0xff] }
 0x79d   :  { %3107 = vrot.lane.b32.xlu1 %v3076_v7, %s5235_s27  ;;  %3179 = vrot.lane.b32.xlu2 %v6848_v52, %s5234_s26 }
 0x79e   :  { %3360 = vmatpush.msra.mxu2 %v6869_v47  ;;  %v3471_v47 = vld [vmem:[%s4686_s20 + $0x10] sm:$0xff]  ;;  %v6940_v17 = vpop.permute.xlu1 %3095 }
 0x79f   :  { %v6938_v20 = vpop.permute.xlu2 %3099 }
 0x7a0   :  { %3361 = vmatpush.msra.mxu2 %v6848_v52  ;;  %v3472_v52 = vld [vmem:[%s4686_s20 + $0x18] sm:$0xff]  ;;  %s7435_s20 = sld [smem:[%s7649_s0 + %s5255_s17]]  }
 0x7a2   :  { %3362 = vmatpush.msra.mxu2 %v3076_v7 }
 0x7a4   :  { %3177 = vrot.lane.b32.xlu0 %v3076_v7, %s5234_s26 }
 0x7a5   :  { %3514 = vperm.xlu1 %4932, %v3476_v26   ;;  %3161 = vrot.lane.b32.xlu2 %v6842_v49, %s5234_s26  ;;  %v3166_v49 = vpop.permute.xlu0 %3165 }
 0x7a7   :  { %v3174_v12 = vpop.permute.xlu2 %3173 }
 0x7ac   :  { %3504 = vperm.xlu0 %4934, %v3474_v9  }
 0x7ad   :  { %3499 = vperm.xlu1 %4932, %v3473_v33   ;;  %3509 = vperm.xlu2 %4933, %v3475_v54   ;;  %v6942_v60 = vpop.permute.xlu0 %3097 }
 0x7ae   :  { %v3170_v0 = vpop.permute.xlu1 %3169 }
 0x7af   :  { %v3106_v6 = vpop.permute.xlu2 %3105 }
 0x7b4   :  { %3489 = vperm.xlu0 %4934, %v3471_v47  }
 0x7b5   :  { %3484 = vperm.xlu1 %4932, %v3470_v23   ;;  %3494 = vperm.xlu2 %4933, %v3472_v52  }
 0x7b6   :  { %v3172_v55 = vpop.permute.xlu0 %3171  ;;  %v6944_v63 = vpop.permute.xlu1 %3101 }
 0x7bd   :  { %3479 = vperm.xlu2 %4933, %v3469_v42  }
 0x7be   :  { %v3104_v29 = vpop.permute.xlu0 %3103 }
 0x7c6   :  { %v6946_v51 = vpop.permute.xlu2 %3111  ;;  %v3176_v46 = vpop.permute.xlu1 %3175 }
 0x7d6   :  { %v3186_v15 = vpop.permute.xlu2 %3185  ;;  %v6948_v10 = vpop.permute.xlu0 %3109 }
 0x7d7   :  { %v3197_v35 = vsel %vm7760_vm0, %v3170_v0, %v3186_v15  ;;  %v3205_v56 = vsel %vm7761_vm1, %v3186_v15, %v3170_v0 }
 0x7d8   :  { %v3224_v30 = vmul.f32 %v6955_v48, %v3197_v35  ;;  %v3225_v1 = vmul.f32 %v6957_v45, %v3205_v56 }
 0x7de   :  { %v3182_v53 = vpop.permute.xlu1 %3181  ;;  %v3118_v27 = vpop.permute.xlu2 %3117 }
 0x7df   :  { %v3195_v2 = vsel %vm7762_vm15, %v3166_v49, %v3182_v53  ;;  %v3203_v38 = vsel %vm7765_vm9, %v3182_v53, %v3166_v49 }
 0x7e0   :  { %v3220_v8 = vmul.f32 %v6955_v48, %v3195_v2  ;;  %v3221_v0 = vmul.f32 %v6957_v45, %v3203_v38  ;;  %v3233_v2 = vld [vmem:[%s7043_s30 + $0x8] sm:$0xff]  ;;  %v3468_v38 = vld [vmem:[%s7095_s4 + $0xf8] sm:$0xff] }
 0x7e6   :  { %v3184_v16 = vpop.permute.xlu0 %3183  ;;  %v6953_v4 = vpop.permute.xlu1 %3113 }
 0x7e7   :  { %v3196_v5 = vsel %vm7763_vm7, %v3168_v44, %v3184_v16  ;;  %v3204_v36 = vsel %vm7764_vm3, %v3184_v16, %v3168_v44 }
 0x7e8   :  { %v3222_v59 = vmul.f32 %v6955_v48, %v3196_v5  ;;  %v3223_v7 = vmul.f32 %v6957_v45, %v3204_v36  ;;  %v3237_v5 = vld [vmem:[%s7043_s30 + $0x28] sm:$0xff]  ;;  %v3238_v36 = vld [vmem:[%s7043_s30 + $0x30] sm:$0xff] }
 0x7ee   :  { %v3116_v57 = vpop.permute.xlu0 %3115 }
 0x7ef   :  { %v3192_v40 = vpop.permute.xlu2 %3191 }
 0x7f0   :  { %v3200_v43 = vsel %vm7754_vm14, %v3176_v46, %v3192_v40  ;;  %v3208_v41 = vsel %vm7755_vm13, %v3192_v40, %v3176_v46  ;;  %vm7770_vm14 = vmmov %vm7760_vm0 }
 0x7f1   :  { %v3230_v13 = vmul.f32 %v6955_v48, %v3200_v43  ;;  %v3231_v32 = vmul.f32 %v6957_v45, %v3208_v41  ;;  %vm7771_vm13 = vmmov %vm7760_vm0 }
 0x7f2   :  { %vm7776_vm0 = vmmov %vm7769_vm2 }
 0x7f3   :  { %3322 = vmatpush.msra.mxu1 %v3230_v13  ;;  %3404 = vmatpush.msrb.mxu3 %v3231_v32  ;;  %v3134_v40 = vsel %vm7776_vm0, %v6953_v4, %v6942_v60  ;;  %vm7777_vm1 = vmmov %vm7776_vm0 }
 0x7f4   :  { %v3126_v43 = vsel %vm7777_vm1, %v6942_v60, %v6953_v4  ;;  %vm7778_vm15 = vmmov %vm7776_vm0  ;;  %v3151_v4 = vmul.f32 %v6989_v28, %v3134_v40  ;;  %v3458_v40 = vld [vmem:[%s7095_s4 + $0xa8] sm:$0xff] }
 0x7f5   :  { %vm7779_vm7 = vmmov %vm7776_vm0 }
 0x7f6   :  { %v3188_v22 = vpop.permute.xlu1 %3187  ;;  %v3125_v60 = vsel %vm7779_vm7, %v6940_v17, %v6946_v51  ;;  %vm7780_vm3 = vmmov %vm7776_vm0 }
 0x7f7   :  { %v3198_v62 = vsel %vm7756_vm8, %v3172_v55, %v3188_v22  ;;  %v3206_v14 = vsel %vm7757_vm6, %v3188_v22, %v3172_v55  ;;  %v3180_v9 = vpop.permute.xlu2 %3179  ;;  %vm7772_vm8 = vmmov %vm7769_vm2  ;;  %v3132_v22 = vsel %vm7780_vm3, %v6948_v10, %v6936_v18 }
 0x7f8   :  { %v3226_v61 = vmul.f32 %v6955_v48, %v3198_v62  ;;  %v3227_v50 = vmul.f32 %v6957_v45, %v3206_v14  ;;  %v3136_v55 = vsel %vm7772_vm8, %v3118_v27, %v6944_v63  ;;  %vm7773_vm6 = vmmov %vm7769_vm2  ;;  %v3147_v14 = vmul.f32 %v6989_v28, %v3132_v22  ;;  %v3454_v22 = vld [vmem:[%s7095_s4 + $0x88] sm:$0xff] }
 0x7f9   :  { %v3155_v16 = vmul.f32 %v6989_v28, %v3136_v55  ;;  %vm7781_vm9 = vmmov %vm7776_vm0  ;;  %v3444_v55 = vld [vmem:[%s7095_s4 + $0x38] sm:$0xff] }
 0x7fe   :  { %v3190_v39 = vpop.permute.xlu0 %3189  ;;  %v3120_v21 = vpop.permute.xlu1 %3119 }
 0x7ff   :  { %v3199_v19 = vsel %vm7758_vm11, %v3174_v12, %v3190_v39  ;;  %v3207_v3 = vsel %vm7759_vm5, %v3190_v39, %v3174_v12  ;;  %v3129_v33 = vsel %vm7766_vm4, %v3104_v29, %v3120_v21  ;;  %v3137_v54 = vsel %vm7767_vm10, %v3120_v21, %v3104_v29  ;;  %vm7774_vm11 = vmmov %vm7769_vm2 }
 0x800   :  { %v3228_v58 = vmul.f32 %v6955_v48, %v3199_v19  ;;  %v3229_v24 = vmul.f32 %v6957_v45, %v3207_v3  ;;  %v3157_v29 = vmul.f32 %v6989_v28, %v3137_v54  ;;  %v3135_v15 = vsel %vm7774_vm11, %v3116_v57, %v6938_v20  ;;  %vm7775_vm5 = vmmov %vm7769_vm2  ;;  %v3448_v54 = vld [vmem:[%s7095_s4 + $0x58] sm:$0xff] }
 0x801   :  { %v3158_v53 = vmul.f32 %v6993_v11, %v3129_v33  ;;  %v3153_v41 = vmul.f32 %v6989_v28, %v3135_v15  ;;  %v3152_v39 = vmul.f32 %v6993_v11, %v3126_v43  ;;  %vm7782_vm4 = vmmov %vm7776_vm0  ;;  %v3465_v33 = vld [vmem:[%s7095_s4 + $0xe0] sm:$0xff]  ;;  %v3460_v15 = vld [vmem:[%s7095_s4 + $0xb8] sm:$0xff] }
 0x802   :  { %3323 = vmatpush.msra.mxu1 %v3228_v58  ;;  %3405 = vmatpush.msrb.mxu3 %v3229_v24  ;;  %vm7783_vm10 = vmmov %vm7776_vm0  ;;  %v3162_v58 = vpop.permute.xlu2 %3161  ;;  %v3232_v24 = vld [vmem:[%s7043_s30] sm:$0xff]  ;;  %v3439_v43 = vld [vmem:[%s7095_s4 + $0x10] sm:$0xff] }
 0x804   :  { %3324 = vmatpush.msra.mxu1 %v3226_v61  ;;  %3406 = vmatpush.msrb.mxu3 %v3227_v50 }
 0x806   :  { %v3122_v26 = vpop.permute.xlu0 %3121  ;;  %3325 = vmatpush.msra.mxu1 %v3224_v30  ;;  %3407 = vmatpush.msrb.mxu3 %v3225_v1  ;;  %v3239_v30 = vld [vmem:[%s7043_s30 + $0x38] sm:$0xff] }
 0x807   :  { %v3130_v44 = vsel %vm7768_vm12, %v3106_v6, %v3122_v26  ;;  %v3138_v47 = vsel %vm7769_vm2, %v3122_v26, %v3106_v6  ;;  %v3164_v23 = vpop.permute.xlu1 %3163  ;;  %v3128_v6 = vsel %vm7773_vm6, %v6944_v63, %v3118_v27  ;;  %v3127_v63 = vsel %vm7775_vm5, %v6938_v20, %v3116_v57  ;;  %vm7784_vm12 = vmmov %vm7771_vm13  ;;  %v3452_v1 = vld [vmem:[%s7095_s4 + $0x78] sm:$0xff]  ;;  %v3241_v26 = vld [vmem:[%s7043_s30 + $0x48] sm:$0xff] }
 0x808   :  { %v3159_v52 = vmul.f32 %v6989_v28, %v3138_v47  ;;  %v3160_v42 = vmul.f32 %v6993_v11, %v3130_v44  ;;  %v3194_v49 = vsel %vm7770_vm14, %v3164_v23, %v3180_v9  ;;  %v3202_v12 = vsel %vm7771_vm13, %v3180_v9, %v3164_v23  ;;  %3326 = vmatpush.msra.mxu1 %v3222_v59  ;;  %vm7785_vm2 = vmmov %vm7784_vm12  ;;  %v3450_v59 = vld [vmem:[%s7095_s4 + $0x68] sm:$0xff]  ;;  %v3449_v9 = vld [vmem:[%s7095_s4 + $0x60] sm:$0xff] }
 0x809   :  { %3408 = vmatpush.msrb.mxu3 %v3223_v7  ;;  %v3218_v46 = vmul.f32 %v6955_v48, %v3194_v49  ;;  %v3219_v37 = vmul.f32 %v6957_v45, %v3202_v12  ;;  %v3156_v27 = vmul.f32 %v6993_v11, %v3128_v6  ;;  %v3133_v20 = vsel %vm7778_vm15, %v6946_v51, %v6940_v17  ;;  %v3466_v7 = vld [vmem:[%s7095_s4 + $0xe8] sm:$0xff]  ;;  %v3464_v44 = vld [vmem:[%s7095_s4 + $0xd8] sm:$0xff]  ;;  %v3447_v47 = vld [vmem:[%s7095_s4 + $0x50] sm:$0xff] }
 0x80a   :  { %3281 = vmatpush.msra.mxu0 %v3159_v52  ;;  %3327 = vmatpush.msra.mxu1 %v3220_v8  ;;  %v3154_v32 = vmul.f32 %v6993_v11, %v3127_v63  ;;  %v3149_v21 = vmul.f32 %v6989_v28, %v3133_v20  ;;  %v3124_v17 = vsel %vm7781_vm9, %v6936_v18, %v6948_v10  ;;  %vm7654_vm14 = vcmask 523264   ;;  %v3467_v8 = vld [vmem:[%s7095_s4 + $0xf0] sm:$0xff]  ;;  %v3243_v49 = vld [vmem:[%s7043_s30 + $0x58] sm:$0xff]  ;;  %v3445_v12 = vld [vmem:[%s7095_s4 + $0x40] sm:$0xff] }
 0x80b   :  { %3363 = vmatpush.msra.mxu2 %v3160_v42  ;;  %3409 = vmatpush.msrb.mxu3 %v3221_v0  ;;  %v3150_v51 = vmul.f32 %v6993_v11, %v3125_v60  ;;  %v3148_v3 = vmul.f32 %v6993_v11, %v3124_v17  ;;  %v3242_v23 = vld [vmem:[%s7043_s30 + $0x50] sm:$0xff]  ;;  %v3446_v42 = vld [vmem:[%s7095_s4 + $0x48] sm:$0xff]  ;;  %v3461_v6 = vld [vmem:[%s7095_s4 + $0xc0] sm:$0xff] }
 0x80c   :  { %3282 = vmatpush.msra.mxu0 %v3157_v29  ;;  %3328 = vmatpush.msra.mxu1 %v3218_v46  ;;  %v3463_v52 = vld [vmem:[%s7095_s4 + $0xd0] sm:$0xff]  ;;  %v3462_v0 = vld [vmem:[%s7095_s4 + $0xc8] sm:$0xff]  ;;  %v3244_v46 = vld [vmem:[%s7043_s30 + $0x60] sm:$0xff] }
 0x80d   :  { %3364 = vmatpush.msra.mxu2 %v3158_v53  ;;  %3410 = vmatpush.msrb.mxu3 %v3219_v37  ;;  %v3443_v29 = vld [vmem:[%s7095_s4 + $0x30] sm:$0xff]  ;;  %v3442_v53 = vld [vmem:[%s7095_s4 + $0x28] sm:$0xff]  ;;  %v3437_v60 = vld [vmem:[%s7095_s4] sm:$0xff] }
 0x80e   :  { %v3092_v13 = vpop.permute.xlu0 %3091  ;;  %3283 = vmatpush.msra.mxu0 %v3155_v16  ;;  %v3245_v37 = vld [vmem:[%s7043_s30 + $0x68] sm:$0xff]  ;;  %v3441_v16 = vld [vmem:[%s7095_s4 + $0x20] sm:$0xff]  ;;  %v3459_v63 = vld [vmem:[%s7095_s4 + $0xb0] sm:$0xff] }
 0x80f   :  { %3365 = vmatpush.msra.mxu2 %v3156_v27  ;;  %v3108_v57 = vpop.permute.xlu1 %3107  ;;  %v3440_v27 = vld [vmem:[%s7095_s4 + $0x18] sm:$0xff]  ;;  %v3438_v20 = vld [vmem:[%s7095_s4 + $0x8] sm:$0xff] }
 0x810   :  { %3284 = vmatpush.msra.mxu0 %v3153_v41  ;;  %v3131_v62 = vsel %vm7782_vm4, %v3108_v57, %v3092_v13  ;;  %v3123_v19 = vsel %vm7783_vm10, %v3092_v13, %v3108_v57  ;;  %v3246_v41 = vld [vmem:[%s7043_s30 + $0x70] sm:$0xff]  ;;  %v3247_v13 = vld [vmem:[%s7043_s30 + $0x78] sm:$0xff] }
 0x811   :  { %3366 = vmatpush.msra.mxu2 %v3154_v32  ;;  %v3145_v18 = vmul.f32 %v6989_v28, %v3131_v62  ;;  %v3146_v35 = vmul.f32 %v6993_v11, %v3123_v19  ;;  %v3451_v28 = vld [vmem:[%s7095_s4 + $0x70] sm:$0xff]  ;;  %v3240_v11 = vld [vmem:[%s7043_s30 + $0x40] sm:$0xff] }
 0x812   :  { %3285 = vmatpush.msra.mxu0 %v3151_v4  ;;  %v3457_v32 = vld [vmem:[%s7095_s4 + $0xa0] sm:$0xff]  ;;  %v3456_v4 = vld [vmem:[%s7095_s4 + $0x98] sm:$0xff]  ;;  %v3455_v57 = vld [vmem:[%s7095_s4 + $0x90] sm:$0xff] }
 0x813   :  { %3367 = vmatpush.msra.mxu2 %v3152_v39  ;;  %v3453_v39 = vld [vmem:[%s7095_s4 + $0x80] sm:$0xff] }
 0x814   :  { %3286 = vmatpush.msra.mxu0 %v3149_v21 }
 0x815   :  { %3368 = vmatpush.msra.mxu2 %v3150_v51 }
 0x816   :  { %v3178_v10 = vpop.permute.xlu0 %3177  ;;  %3287 = vmatpush.msra.mxu0 %v3147_v14 }
 0x817   :  { %v3193_v56 = vsel %vm7784_vm12, %v3162_v58, %v3178_v10  ;;  %v3201_v25 = vsel %vm7785_vm2, %v3178_v10, %v3162_v58  ;;  %3369 = vmatpush.msra.mxu2 %v3148_v3 }
 0x818   :  { %v3216_v61 = vmul.f32 %v6955_v48, %v3193_v56  ;;  %v3217_v50 = vmul.f32 %v6957_v45, %v3201_v25  ;;  %3288 = vmatpush.msra.mxu0 %v3145_v18  ;;  %v3235_v48 = vld [vmem:[%s7043_s30 + $0x18] sm:$0xff]  ;;  %v3236_v45 = vld [vmem:[%s7043_s30 + $0x20] sm:$0xff] }
 0x819   :  { %3370 = vmatpush.msra.mxu2 %v3146_v35  ;;  %3289 = vmatmul.f32.vlgmr.msra.gmra.mxu0 %v3232_v24 }
 0x81a   :  { %3329 = vmatpush.msra.mxu1 %v3216_v61  ;;  %3411 = vmatpush.msrb.mxu3 %v3217_v50 }
 0x81b   :  { %4832 = vmatmul.msk.f32.vlgmr.msra.gmra.mxu1 %vm7654_vm14, %v3233_v2  ;;  %3371 = vmatmul.f32.vlgmr.msra.gmra.mxu2 %v3232_v24 }
 0x81c   :  { %4840 = vmatmul.msk.f32.vlgmr.msrb.gmra.mxu3 %vm7654_vm14, %v3233_v2  ;;  %3517 = vmatpush.msrb.mxu0 %v3452_v1 }
 0x81d   :  { %3558 = vmatpush.msrb.mxu1 %v3468_v38 }
 0x81e   :  { %3518 = vmatpush.msrb.mxu0 %v3451_v28 }
 0x81f   :  { %3559 = vmatpush.msrb.mxu1 %v3467_v8 }
 0x820   :  { %3519 = vmatpush.msrb.mxu0 %v3450_v59 }
 0x821   :  { %3292 = vmatmul.f32.gmra.mxu0 %v3234_v34  ;;  %3560 = vmatpush.msrb.mxu1 %v3466_v7 }
 0x822   :  { %3520 = vmatpush.msrb.mxu0 %v3449_v9 }
 0x823   :  { %4833 = vmatmul.msk.f32.gmra.mxu1 %vm7654_vm14, %v3235_v48  ;;  %3374 = vmatmul.f32.gmra.mxu2 %v3234_v34 }
 0x824   :  { %4841 = vmatmul.msk.f32.gmra.mxu3 %vm7654_vm14, %v3235_v48  ;;  %3561 = vmatpush.msrb.mxu1 %v3465_v33 }
 0x825   :  { %3521 = vmatpush.msrb.mxu0 %v3448_v54 }
 0x826   :  { %3562 = vmatpush.msrb.mxu1 %v3464_v44 }
 0x827   :  { %3522 = vmatpush.msrb.mxu0 %v3447_v47 }
 0x828   :  { %3563 = vmatpush.msrb.mxu1 %v3463_v52 }
 0x829   :  { %3295 = vmatmul.f32.gmra.mxu0 %v3236_v45 }
 0x82a   :  { %3523 = vmatpush.msrb.mxu0 %v3446_v42  ;;  %3564 = vmatpush.msrb.mxu1 %v3462_v0 }
 0x82b   :  { %4834 = vmatmul.msk.f32.gmra.mxu1 %vm7654_vm14, %v3237_v5  ;;  %3377 = vmatmul.f32.gmra.mxu2 %v3236_v45 }
 0x82c   :  { %4842 = vmatmul.msk.f32.gmra.mxu3 %vm7654_vm14, %v3237_v5  ;;  %3524 = vmatpush.msrb.mxu0 %v3445_v12 }
 0x82d   :  { %3565 = vmatpush.msrb.mxu1 %v3461_v6 }
 0x82e   :  { %3525 = vmatpush.msrb.mxu0 %v3444_v55 }
 0x82f   :  { %3566 = vmatpush.msrb.mxu1 %v3460_v15 }
 0x830   :  { %3526 = vmatpush.msrb.mxu0 %v3443_v29 }
 0x831   :  { %3298 = vmatmul.f32.gmra.mxu0 %v3238_v36  ;;  %3567 = vmatpush.msrb.mxu1 %v3459_v63 }
 0x832   :  { %3527 = vmatpush.msrb.mxu0 %v3442_v53 }
 0x833   :  { %4835 = vmatmul.msk.f32.gmra.mxu1 %vm7654_vm14, %v3239_v30  ;;  %3380 = vmatmul.f32.gmra.mxu2 %v3238_v36 }
 0x834   :  { %4843 = vmatmul.msk.f32.gmra.mxu3 %vm7654_vm14, %v3239_v30  ;;  %3528 = vmatpush.msrb.mxu0 %v3441_v16 }
 0x835   :  { %3568 = vmatpush.msrb.mxu1 %v3458_v40 }
 0x836   :  { %3529 = vmatpush.msrb.mxu0 %v3440_v27 }
 0x837   :  { %3569 = vmatpush.msrb.mxu1 %v3457_v32 }
 0x838   :  { %3530 = vmatpush.msrb.mxu0 %v3439_v43 }
 0x839   :  { %3301 = vmatmul.f32.gmra.mxu0 %v3240_v11  ;;  %3570 = vmatpush.msrb.mxu1 %v3456_v4 }
 0x83a   :  { %3531 = vmatpush.msrb.mxu0 %v3438_v20 }
 0x83b   :  { %4836 = vmatmul.msk.f32.gmra.mxu1 %vm7654_vm14, %v3241_v26  ;;  %3383 = vmatmul.f32.gmra.mxu2 %v3240_v11 }
 0x83c   :  { %4844 = vmatmul.msk.f32.gmra.mxu3 %vm7654_vm14, %v3241_v26  ;;  %3532 = vmatpush.msrb.mxu0 %v3437_v60  ;;  %v3515_v60 = vpop.permute.xlu1 %3514 }
 0x83d   :  { %3571 = vmatpush.msrb.mxu1 %v3455_v57 }
 0x83f   :  { %3572 = vmatpush.msrb.mxu1 %v3454_v22 }
 0x841   :  { %3304 = vmatmul.f32.gmra.mxu0 %v3242_v23  ;;  %3573 = vmatpush.msrb.mxu1 %v3453_v39  ;;  %v3505_v39 = vpop.permute.xlu0 %3504 }
 0x843   :  { %4837 = vmatmul.msk.f32.gmra.mxu1 %vm7654_vm14, %v3243_v49  ;;  %3386 = vmatmul.f32.gmra.mxu2 %v3242_v23 }
 0x844   :  { %4845 = vmatmul.msk.f32.gmra.mxu3 %vm7654_vm14, %v3243_v49  ;;  %v3500_v22 = vpop.permute.xlu1 %3499 }
 0x849   :  { %3307 = vmatmul.f32.gmra.mxu0 %v3244_v46 }
 0x84b   :  { %4838 = vmatmul.msk.f32.gmra.mxu1 %vm7654_vm14, %v3245_v37  ;;  %3389 = vmatmul.f32.gmra.mxu2 %v3244_v46 }
 0x84c   :  { %4846 = vmatmul.msk.f32.gmra.mxu3 %vm7654_vm14, %v3245_v37  ;;  %v3510_v37 = vpop.permute.xlu2 %3509 }
 0x851   :  { %3310 = vmatmul.f32.gmra.mxu0 %v3246_v41 }
 0x853   :  { %4839 = vmatmul.msk.f32.gmra.mxu1 %vm7654_vm14, %v3247_v13  ;;  %3392 = vmatmul.f32.gmra.mxu2 %v3246_v41 }
 0x854   :  { %4847 = vmatmul.msk.f32.gmra.mxu3 %vm7654_vm14, %v3247_v13  ;;  %v3495_v16 = vpop.permute.xlu2 %3494 }
 0x85c   :  { %v3480_v27 = vpop.permute.xlu2 %3479 }
 0x896   :  { %v3290_v21 = vpop.f32.mrf.mxu0 }
 0x898   :  { %v3331_v17 = vpop.f32.mrf.mxu1 }
 0x899   :  { %v3332_v51 = vadd.f32 %v3331_v17, %v3290_v21 }
 0x89b   :  { %3533 = vmatmul.f32.vlgmr.msrb.gmra.mxu0 %v3332_v51  ;;  %v3485_v51 = vpop.permute.xlu1 %3484 }
 0x89e   :  { %v3372_v62 = vpop.f32.mrf.mxu2  ;;  %v3293_v14 = vpop.f32.mrf.mxu0 }
 0x89f   :  { %v3413_v19 = vpop.f32.mrf.mxu3 }
 0x8a0   :  { %v3414_v3 = vadd.f32 %v3413_v19, %v3372_v62  ;;  %v3334_v58 = vpop.f32.mrf.mxu1 }
 0x8a1   :  { %v3335_v18 = vadd.f32 %v3334_v58, %v3293_v14  ;;  %v3490_v14 = vpop.permute.xlu0 %3489 }
 0x8a2   :  { %3574 = vmatmul.f32.vlgmr.msrb.gmra.mxu1 %v3414_v3 }
 0x8a3   :  { %3536 = vmatmul.f32.gmra.mxu0 %v3335_v18 }
 0x8a6   :  { %v3375_v10 = vpop.f32.mrf.mxu2  ;;  %v3296_v24 = vpop.f32.mrf.mxu0 }
 0x8a7   :  { %v3416_v35 = vpop.f32.mrf.mxu3 }
 0x8a8   :  { %v3417_v56 = vadd.f32 %v3416_v35, %v3375_v10  ;;  %v3337_v25 = vpop.f32.mrf.mxu1 }
 0x8a9   :  { %v3338_v61 = vadd.f32 %v3337_v25, %v3296_v24 }
 0x8aa   :  { %3577 = vmatmul.f32.gmra.mxu1 %v3417_v56 }
 0x8ab   :  { %3539 = vmatmul.f32.gmra.mxu0 %v3338_v61 }
 0x8ae   :  { %v3378_v50 = vpop.f32.mrf.mxu2  ;;  %v3299_v2 = vpop.f32.mrf.mxu0 }
 0x8af   :  { %v3419_v34 = vpop.f32.mrf.mxu3 }
 0x8b0   :  { %v3420_v48 = vadd.f32 %v3419_v34, %v3378_v50  ;;  %v3340_v45 = vpop.f32.mrf.mxu1 }
 0x8b1   :  { %v3341_v5 = vadd.f32 %v3340_v45, %v3299_v2 }
 0x8b2   :  { %3580 = vmatmul.f32.gmra.mxu1 %v3420_v48 }
 0x8b3   :  { %3542 = vmatmul.f32.gmra.mxu0 %v3341_v5 }
 0x8b6   :  { %v3381_v36 = vpop.f32.mrf.mxu2  ;;  %v3302_v30 = vpop.f32.mrf.mxu0 }
 0x8b7   :  { %v3422_v1 = vpop.f32.mrf.mxu3 }
 0x8b8   :  { %v3423_v28 = vadd.f32 %v3422_v1, %v3381_v36  ;;  %v3343_v38 = vpop.f32.mrf.mxu1 }
 0x8b9   :  { %v3344_v11 = vadd.f32 %v3343_v38, %v3302_v30 }
 0x8ba   :  { %3583 = vmatmul.f32.gmra.mxu1 %v3423_v28 }
 0x8bb   :  { %3545 = vmatmul.f32.gmra.mxu0 %v3344_v11 }
 0x8be   :  { %v3384_v8 = vpop.f32.mrf.mxu2  ;;  %v3305_v59 = vpop.f32.mrf.mxu0 }
 0x8bf   :  { %v3425_v7 = vpop.f32.mrf.mxu3 }
 0x8c0   :  { %v3426_v26 = vadd.f32 %v3425_v7, %v3384_v8  ;;  %v3346_v9 = vpop.f32.mrf.mxu1 }
 0x8c1   :  { %v3347_v33 = vadd.f32 %v3346_v9, %v3305_v59 }
 0x8c2   :  { %3586 = vmatmul.f32.gmra.mxu1 %v3426_v26 }
 0x8c3   :  { %3548 = vmatmul.f32.gmra.mxu0 %v3347_v33 }
 0x8c6   :  { %v3387_v54 = vpop.f32.mrf.mxu2  ;;  %v3308_v44 = vpop.f32.mrf.mxu0 }
 0x8c7   :  { %v3428_v47 = vpop.f32.mrf.mxu3 }
 0x8c8   :  { %v3429_v23 = vadd.f32 %v3428_v47, %v3387_v54  ;;  %v3349_v52 = vpop.f32.mrf.mxu1 }
 0x8c9   :  { %v3350_v42 = vadd.f32 %v3349_v52, %v3308_v44 }
 0x8ca   :  { %3589 = vmatmul.f32.gmra.mxu1 %v3429_v23 }
 0x8cb   :  { %3551 = vmatmul.f32.gmra.mxu0 %v3350_v42 }
 0x8ce   :  { %v3390_v49 = vpop.f32.mrf.mxu2  ;;  %v3311_v12 = vpop.f32.mrf.mxu0 }
 0x8cf   :  { %v3431_v0 = vpop.f32.mrf.mxu3 }
 0x8d0   :  { %v3432_v55 = vadd.f32 %v3431_v0, %v3390_v49  ;;  %v3352_v6 = vpop.f32.mrf.mxu1 }
 0x8d1   :  { %v3353_v29 = vadd.f32 %v3352_v6, %v3311_v12 }
 0x8d2   :  { %3592 = vmatmul.f32.gmra.mxu1 %v3432_v55 }
 0x8d3   :  { %3554 = vmatmul.f32.gmra.mxu0 %v3353_v29 }
 0x8d6   :  { %v3393_v46 = vpop.f32.mrf.mxu2 }
 0x8d7   :  { %v3434_v15 = vpop.f32.mrf.mxu3 }
 0x8d8   :  { %v3435_v53 = vadd.f32 %v3434_v15, %v3393_v46 }
 0x8da   :  { %3595 = vmatmul.f32.gmra.mxu1 %v3435_v53 }
 0x918   :  { %v3534_v63 = vpop.f32.mrf.mxu0 }
 0x919   :  { %v3535_v40 = vadd.f32 %v3534_v63, %v3480_v27 }
 0x91f   :  { %v3575_v43 = vpop.f32.mrf.mxu1 }
 0x920   :  { %v7149_v41 = vadd.f32 %v3575_v43, %v3535_v40  ;;  %v3537_v13 = vpop.f32.mrf.mxu0 }
 0x921   :  { %v3538_v19 = vadd.f32 %v3537_v13, %v3485_v51 }
 0x922   :  { %v4848_v25 = vmul.f32 -1.442695, %v7149_v41 }
 0x924   :  { %5129 = vpow2.f32 %v4848_v25 }
 0x927   :  { %v3578_v20 = vpop.f32.mrf.mxu1 }
 0x928   :  { %v3540_v32 = vpop.f32.mrf.mxu0  ;;  %v7151_v18 = vadd.f32 %v3578_v20, %v3538_v19 }
 0x929   :  { %v3541_v58 = vadd.f32 %v3540_v32, %v3490_v14 }
 0x92a   :  { %v4849_v50 = vmul.f32 -1.442695, %v7151_v18  ;;  %v5130_v38 = vpop.eup %5129 }
 0x92b   :  { %v7169_v9 = vadd.f32 1.0, %v5130_v38 }
 0x92c   :  { %5131 = vpow2.f32 %v4849_v50 }
 0x92f   :  { %v3581_v4 = vpop.f32.mrf.mxu1 }
 0x930   :  { %v3543_v57 = vpop.f32.mrf.mxu0  ;;  %v7153_v24 = vadd.f32 %v3581_v4, %v3541_v58 }
 0x931   :  { %v3544_v10 = vadd.f32 %v3543_v57, %v3495_v16 }
 0x932   :  { %v4850_v34 = vmul.f32 -1.442695, %v7153_v24  ;;  %v5132_v8 = vpop.eup %5131 }
 0x933   :  { %v7172_v44 = vadd.f32 1.0, %v5132_v8 }
 0x934   :  { %5133 = vpow2.f32 %v4850_v34 }
 0x935   :  { %vm3651_vm2 = vweird.f32 %v7172_v44 }
 0x937   :  { %v3584_v21 = vpop.f32.mrf.mxu1 }
 0x938   :  { %v3546_v17 = vpop.f32.mrf.mxu0  ;;  %v7155_v56 = vadd.f32 %v3584_v21, %v3544_v10 }
 0x939   :  { %v3547_v35 = vadd.f32 %v3546_v17, %v3500_v22 }
 0x93a   :  { %v4851_v45 = vmul.f32 -1.442695, %v7155_v56  ;;  %v5134_v7 = vpop.eup %5133 }
 0x93b   :  { %v7174_v52 = vadd.f32 1.0, %v5134_v7 }
 0x93c   :  { %5135 = vpow2.f32 %v4851_v45 }
 0x93d   :  { %vm3666_vm7 = vweird.f32 %v7174_v52 }
 0x93f   :  { %v3587_v62 = vpop.f32.mrf.mxu1 }
 0x940   :  { %v3549_v3 = vpop.f32.mrf.mxu0  ;;  %v7158_v61 = vadd.f32 %v3587_v62, %v3547_v35 }
 0x941   :  { %v3550_v2 = vadd.f32 %v3549_v3, %v3505_v39 }
 0x942   :  { %v4852_v36 = vmul.f32 -1.442695, %v7158_v61  ;;  %v5136_v26 = vpop.eup %5135 }
 0x943   :  { %v7176_v42 = vadd.f32 1.0, %v5136_v26 }
 0x944   :  { %5137 = vpow2.f32 %v4852_v36 }
 0x945   :  { %vm3681_vm11 = vweird.f32 %v7176_v42 }
 0x947   :  { %v3590_v48 = vpop.f32.mrf.mxu1 }
 0x948   :  { %v7163_v5 = vadd.f32 %v3590_v48, %v3550_v2  ;;  %v3552_v30 = vpop.f32.mrf.mxu0  ;;  %v3685_v2 = vand.u32 2147483647, %v7176_v42 }
 0x949   :  { %v3553_v28 = vadd.f32 %v3552_v30, %v3510_v37 }
 0x94a   :  { %v4853_v1 = vmul.f32 -1.442695, %v7163_v5  ;;  %v5138_v54 = vpop.eup %5137 }
 0x94b   :  { %v7179_v49 = vadd.f32 1.0, %v5138_v54 }
 0x94c   :  { %5139 = vpow2.f32 %v4853_v1 }
 0x94d   :  { %vm3696_vm8 = vweird.f32 %v7179_v49  ;;  %v3700_v1 = vand.u32 2147483647, %v7179_v49 }
 0x94f   :  { %v3593_v11 = vpop.f32.mrf.mxu1 }
 0x950   :  { %v7167_v59 = vadd.f32 %v3593_v11, %v3553_v28  ;;  %v3555_v47 = vpop.f32.mrf.mxu0 }
 0x951   :  { %v3556_v12 = vadd.f32 %v3555_v47, %v3515_v60 }
 0x952   :  { %v4854_v33 = vmul.f32 -1.442695, %v7167_v59  ;;  %v5140_v23 = vpop.eup %5139 }
 0x953   :  { %v7182_v0 = vadd.f32 1.0, %v5140_v23 }
 0x954   :  { %5141 = vpow2.f32 %v4854_v33 }
 0x955   :  { %5143 = vrcp.f32 %v7169_v9  ;;  %vm3711_vm4 = vweird.f32 %v7182_v0  ;;  %v3715_v47 = vand.u32 2147483647, %v7182_v0  ;;  %v3717_v23 = vand.u32 2147483648, %v7182_v0 }
 0x956   :  { %5145 = vrcp.f32 %v7172_v44 }
 0x957   :  { %v3596_v55 = vpop.f32.mrf.mxu1  ;;  %5147 = vrcp.f32 %v7174_v52 }
 0x958   :  { %v7185_v6 = vadd.f32 %v3596_v55, %v3556_v12  ;;  %5149 = vrcp.f32 %v7176_v42  ;;  %v3768_v12 = vld [vmem:[%s7346_s8 + $0x48] sm:$0xff] }
 0x959   :  { %5151 = vrcp.f32 %v7179_v49 }
 0x95a   :  { %v5142_v29 = vpop.eup %5141  ;;  %v4855_v46 = vmul.f32 -1.442695, %v7185_v6  ;;  %5153 = vrcp.f32 %v7182_v0 }
 0x95b   :  { %v7191_v15 = vadd.f32 1.0, %v5142_v29  ;;  %v7193_v53 = vpop.eup %5143  ;;  %v3900_v29 = vld [vmem:[%s7374_s12 + $0x60] sm:$0xff] }
 0x95c   :  { %5155 = vpow2.f32 %v4855_v46  ;;  %v7195_v37 = vpop.eup %5145  ;;  %v3632_v20 = vmul.f32 %v7193_v53, %v7169_v9  ;;  %vm3637_vm12 = vweird.f32 %v7193_v53 }
 0x95d   :  { %5157 = vrcp.f32 %v7191_v15  ;;  %v7198_v16 = vpop.eup %5147  ;;  %v3647_v32 = vmul.f32 %v7195_v37, %v7172_v44  ;;  %vm3726_vm1 = vweird.f32 %v7191_v15  ;;  %v3730_v11 = vand.u32 2147483647, %v7191_v15 }
 0x95e   :  { %v7200_v63 = vpop.eup %5149  ;;  %v3662_v4 = vmul.f32 %v7198_v16, %v7174_v52  ;;  %v3633_v51 = vsub.f32 1.0, %v3632_v20  ;;  %vm3667_vm6 = vweird.f32 %v7198_v16  ;;  %v3732_v8 = vand.u32 2147483648, %v7191_v15 }
 0x95f   :  { %v7202_v27 = vpop.eup %5151  ;;  %v3677_v39 = vmul.f32 %v7200_v63, %v7176_v42  ;;  %v3648_v62 = vsub.f32 1.0, %v3647_v32  ;;  %vm3682_vm13 = vweird.f32 %v7200_v63  ;;  %vm3652_vm15 = vweird.f32 %v7195_v37 }
 0x960   :  { %v7204_v40 = vpop.eup %5153  ;;  %v3692_v21 = vmul.f32 %v7202_v27, %v7179_v49  ;;  %v3663_v14 = vsub.f32 1.0, %v3662_v4  ;;  %v7227_v25 = vmul.f32 %v7193_v53, %v3633_v51  ;;  %vm3697_vm9 = vweird.f32 %v7202_v27 }
 0x961   :  { %v3707_v57 = vmul.f32 %v7204_v40, %v7182_v0  ;;  %v3678_v3 = vsub.f32 1.0, %v3677_v39  ;;  %v3649_v50 = vmul.f32 %v7195_v37, %v3648_v62  ;;  %vm3712_vm5 = vweird.f32 %v7204_v40 }
 0x962   :  { %v5156_v43 = vpop.eup %5155  ;;  %v3693_v58 = vsub.f32 1.0, %v3692_v21  ;;  %v3664_v34 = vmul.f32 %v7198_v16, %v3663_v14  ;;  %vm7267_vm14 = vmor %vm3711_vm4, %vm3712_vm5  ;;  %v3733_v20 = vor.u32 1.1754944e-38, %v3732_v8  ;;  %vm3731_vm5 = vcmp.eq.f32.partialorder %v3730_v11, 8.507059e+37  ;;  %v3760_v8 = vld [vmem:[%s7346_s8 + $0x8] sm:$0xff] }
 0x963   :  { %v7206_v13 = vpop.eup %5157  ;;  %v7212_v60 = vadd.f32 1.0, %v5156_v43  ;;  %v3708_v19 = vsub.f32 1.0, %v3707_v57  ;;  %v3679_v36 = vmul.f32 %v7200_v63, %v3678_v3  ;;  %v3702_v43 = vand.u32 2147483648, %v7179_v49 }
 0x964   :  { %v3722_v22 = vmul.f32 %v7206_v13, %v7191_v15  ;;  %v3694_v30 = vmul.f32 %v7202_v27, %v3693_v58  ;;  %vm3727_vm0 = vweird.f32 %v7206_v13  ;;  %v3670_v62 = vand.u32 2147483647, %v7174_v52 }
 0x965   :  { %5159 = vrcp.f32 %v7212_v60  ;;  %v3709_v48 = vmul.f32 %v7204_v40, %v3708_v19  ;;  %v3747_v7 = vand.u32 2147483648, %v7212_v60  ;;  %v3745_v54 = vand.u32 2147483647, %v7212_v60  ;;  %vm7258_vm10 = vmor %vm3726_vm1, %vm3727_vm0 }
 0x966   :  { %v3723_v17 = vsub.f32 1.0, %v3722_v22  ;;  %v3695_v55 = vadd.f32 %v7202_v27, %v3694_v30  ;;  %vm3741_vm0 = vweird.f32 %v7212_v60  ;;  %v3680_v15 = vadd.f32 %v7200_v63, %v3679_v36 }
 0x967   :  { %v3710_v26 = vadd.f32 %v7204_v40, %v3709_v48  ;;  %v3748_v32 = vor.u32 1.1754944e-38, %v3747_v7  ;;  %vm3746_vm4 = vcmp.eq.f32.partialorder %v3745_v54, 8.507059e+37  ;;  %v3718_v22 = vor.u32 1.1754944e-38, %v3717_v23  ;;  %v3762_v7 = vld [vmem:[%s7346_s8 + $0x18] sm:$0xff]  ;;  %v3767_v54 = vld [vmem:[%s7346_s8 + $0x40] sm:$0xff]  ;;  %v3902_v23 = vld [vmem:[%s7374_s12 + $0x70] sm:$0xff] }
 0x968   :  { %v3724_v10 = vmul.f32 %v7206_v13, %v3723_v17  ;;  %v3665_v17 = vadd.f32 %v7198_v16, %v3664_v34  ;;  %v3672_v49 = vand.u32 2147483648, %v7174_v52  ;;  %v3703_v19 = vor.u32 1.1754944e-38, %v3702_v43  ;;  %v3897_v43 = vld [vmem:[%s7374_s12 + $0x48] sm:$0xff] }
 0x969   :  { %v3714_v4 = vsel %vm7267_vm14, %v7204_v40, %v3710_v26  ;;  %vm3716_vm14 = vcmp.eq.f32.partialorder %v3715_v47, 8.507059e+37  ;;  %v3650_v58 = vadd.f32 %v7195_v37, %v3649_v50  ;;  %v3642_v52 = vand.u32 2147483648, %v7169_v9  ;;  %v3765_v26 = vld [vmem:[%s7346_s8 + $0x30] sm:$0xff]  ;;  %v3903_v47 = vld [vmem:[%s7374_s12 + $0x78] sm:$0xff]  ;;  %v3913_v34 = vld [vmem:[%s7374_s12 + $0xc8] sm:$0xff] }
 0x96a   :  { %v3725_v28 = vadd.f32 %v7206_v13, %v3724_v10  ;;  %v3719_v3 = vsel %vm3716_vm14, %v3718_v22, %v3714_v4  ;;  %v3655_v10 = vand.u32 2147483647, %v7172_v44  ;;  %v3673_v36 = vor.u32 1.1754944e-38, %v3672_v49  ;;  %3928 = vmatpush.msra.mxu3 %v3903_v47  ;;  %v3894_v4 = vld [vmem:[%s7374_s12 + $0x30] sm:$0xff]  ;;  %v3891_v22 = vld [vmem:[%s7374_s12 + $0x18] sm:$0xff] }
 0x96b   :  { %v5160_v35 = vpop.eup %5159  ;;  %v3774_v49 = vld [vmem:[%s7346_s8 + $0x78] sm:$0xff] }
 0x96c   :  { %v3737_v45 = vmul.f32 %v5160_v35, %v7212_v60  ;;  %vm3742_vm3 = vweird.f32 %v5160_v35  ;;  %v3729_v0 = vsel %vm7258_vm10, %v7206_v13, %v3725_v28  ;;  %v3687_v13 = vand.u32 2147483648, %v7176_v42  ;;  %vm7286_vm10 = vmor %vm3696_vm8, %vm3697_vm9  ;;  %3929 = vmatpush.msra.mxu3 %v3902_v23  ;;  %v3892_v60 = vld [vmem:[%s7374_s12 + $0x20] sm:$0xff] }
 0x96d   :  { %vm3743_vm1 = vmor %vm3741_vm0, %vm3742_vm3  ;;  %v3734_v39 = vsel %vm3731_vm5, %v3733_v20, %v3729_v0  ;;  %v3699_v40 = vsel %vm7286_vm10, %v7202_v27, %v3695_v55  ;;  %vm3701_vm3 = vcmp.eq.f32.partialorder %v3700_v1, 8.507059e+37  ;;  %v3640_v42 = vand.u32 2147483647, %v7169_v9  ;;  %v3901_v55 = vld [vmem:[%s7374_s12 + $0x68] sm:$0xff]  ;;  %v3899_v0 = vld [vmem:[%s7374_s12 + $0x58] sm:$0xff] }
 0x96e   :  { %v3738_v38 = vsub.f32 1.0, %v3737_v45  ;;  %vm7301_vm8 = vmor %vm3681_vm11, %vm3682_vm13  ;;  %v3757_v27 = vmul.f32 %v3734_v39, %v7167_v59  ;;  %v3688_v50 = vor.u32 1.1754944e-38, %v3687_v13  ;;  %v3704_v48 = vsel %vm3701_vm3, %v3703_v19, %v3699_v40  ;;  %3930 = vmatpush.msra.mxu3 %v3901_v55  ;;  %v3896_v20 = vld [vmem:[%s7374_s12 + $0x40] sm:$0xff]  ;;  %v3893_v13 = vld [vmem:[%s7374_s12 + $0x28] sm:$0xff] }
 0x96f   :  { %vm7316_vm13 = vmor %vm3666_vm7, %vm3667_vm6  ;;  %vm3686_vm11 = vcmp.eq.f32.partialorder %v3685_v2, 8.507059e+37  ;;  %v3756_v45 = vmul.f32 %v3719_v3, %v7163_v5  ;;  %vm3636_vm6 = vweird.f32 %v7169_v9  ;;  %vm3671_vm9 = vcmp.eq.f32.partialorder %v3670_v62, 8.507059e+37  ;;  %v3890_v39 = vld [vmem:[%s7374_s12 + $0x10] sm:$0xff]  ;;  %v3888_v40 = vld [vmem:[%s7374_s12] sm:$0xff] }
 0x970   :  { %v3739_v33 = vmul.f32 %v5160_v35, %v3738_v38  ;;  %v3669_v59 = vsel %vm7316_vm13, %v7198_v16, %v3665_v17  ;;  %vm7334_vm7 = vmor %vm3651_vm2, %vm3652_vm15  ;;  %v3755_v2 = vmul.f32 %v3704_v48, %v7158_v61  ;;  %vm3656_vm2 = vcmp.eq.f32.partialorder %v3655_v10, 8.507059e+37  ;;  %3931 = vmatpush.msra.mxu3 %v3900_v29  ;;  %v3889_v17 = vld [vmem:[%s7374_s12 + $0x8] sm:$0xff]  ;;  %v3773_v62 = vld [vmem:[%s7346_s8 + $0x70] sm:$0xff] }
 0x971   :  { %v3654_v5 = vsel %vm7334_vm7, %v7195_v37, %v3650_v58  ;;  %vm3638_vm15 = vmor %vm3636_vm6, %vm3637_vm12  ;;  %v3674_v9 = vsel %vm3671_vm9, %v3673_v36, %v3669_v59  ;;  %v3643_v61 = vor.u32 1.1754944e-38, %v3642_v52  ;;  %vm3641_vm0 = vcmp.eq.f32.partialorder %v3640_v42, 8.507059e+37  ;;  %v3919_v19 = vld [vmem:[%s7374_s12 + $0xf8] sm:$0xff]  ;;  %v3918_v3 = vld [vmem:[%s7374_s12 + $0xf0] sm:$0xff] }
 0x972   :  { %v3740_v46 = vadd.f32 %v5160_v35, %v3739_v33  ;;  %v3753_v28 = vmul.f32 %v3674_v9, %v7153_v24  ;;  %vm7798_vm12 = vcmask 523264   ;;  %v3761_v24 = vld [vmem:[%s7346_s8 + $0x10] sm:$0xff]  ;;  %v3766_v33 = vld [vmem:[%s7346_s8 + $0x38] sm:$0xff]  ;;  %3932 = vmatpush.msra.mxu3 %v3899_v0  ;;  %3969 = vmatpush.msra.mxu0 %v3919_v19  ;;  %v3917_v58 = vld [vmem:[%s7374_s12 + $0xe8] sm:$0xff] }
 0x973   :  { %v3915_v10 = vld [vmem:[%s7374_s12 + $0xd8] sm:$0xff]  ;;  %v3912_v48 = vld [vmem:[%s7374_s12 + $0xc0] sm:$0xff]  ;;  %v3910_v59 = vld [vmem:[%s7374_s12 + $0xb0] sm:$0xff] }
 0x974   :  { %v3744_v57 = vsel %vm3743_vm1, %v5160_v35, %v3740_v46  ;;  %v3657_v35 = vand.u32 2147483648, %v7172_v44  ;;  %vm7799_vm1 = vmmov %vm7798_vm12  ;;  %v3898_v46 = vld [vmem:[%s7374_s12 + $0x50] sm:$0xff]  ;;  %3970 = vmatpush.msra.mxu0 %v3918_v3  ;;  %v3907_v36 = vld [vmem:[%s7374_s12 + $0x98] sm:$0xff] }
 0x975   :  { %v3749_v21 = vsel %vm3746_vm4, %v3748_v32, %v3744_v57  ;;  %vm7800_vm5 = vmmov %vm7799_vm1  ;;  %3933 = vmatpush.msra.mxu3 %v3898_v46  ;;  %v3895_v32 = vld [vmem:[%s7374_s12 + $0x38] sm:$0xff]  ;;  %v3905_v42 = vld [vmem:[%s7374_s12 + $0x88] sm:$0xff] }
 0x976   :  { %v3758_v51 = vmul.f32 %v3749_v21, %v7185_v6  ;;  %v3684_v6 = vsel %vm7301_vm8, %v7200_v63, %v3680_v15  ;;  %v3635_v63 = vadd.f32 %v7193_v53, %v7227_v25  ;;  %v3658_v44 = vor.u32 1.1754944e-38, %v3657_v35  ;;  %vm7801_vm4 = vmmov %vm7799_vm1  ;;  %v3769_v15 = vld [vmem:[%s7346_s8 + $0x50] sm:$0xff]  ;;  %v3770_v57 = vld [vmem:[%s7346_s8 + $0x58] sm:$0xff]  ;;  %3971 = vmatpush.msra.mxu0 %v3917_v58 }
 0x977   :  { %v3689_v16 = vsel %vm3686_vm11, %v3688_v50, %v3684_v6  ;;  %vm7802_vm10 = vmmov %vm7799_vm1  ;;  %3934 = vmatpush.msra.mxu3 %v3897_v43  ;;  %v3771_v21 = vld [vmem:[%s7346_s8 + $0x60] sm:$0xff]  ;;  %v3914_v35 = vld [vmem:[%s7374_s12 + $0xd0] sm:$0xff] }
 0x978   :  { %3831 = vmatpush.msrb.mxu2 %v3758_v51  ;;  %v3639_v30 = vsel %vm3638_vm15, %v7193_v53, %v3635_v63  ;;  %v3754_v37 = vmul.f32 %v3689_v16, %v7155_v56  ;;  %v3659_v1 = vsel %vm3656_vm2, %v3658_v44, %v3654_v5  ;;  %v3759_v56 = vld [vmem:[%s7346_s8] sm:$0xff]  ;;  %vm7803_vm14 = vmmov %vm7799_vm1  ;;  %v3772_v51 = vld [vmem:[%s7346_s8 + $0x68] sm:$0xff] }
 0x979   :  { %v3644_v38 = vsel %vm3641_vm0, %v3643_v61, %v3639_v30  ;;  %v3752_v11 = vmul.f32 %v3659_v1, %v7151_v18  ;;  %v3763_v18 = vld [vmem:[%s7346_s8 + $0x20] sm:$0xff]  ;;  %vm7804_vm8 = vmmov %vm7799_vm1  ;;  %3935 = vmatpush.msra.mxu3 %v3896_v20  ;;  %v3911_v63 = vld [vmem:[%s7374_s12 + $0xb8] sm:$0xff] }
 0x97a   :  { %3832 = vmatpush.msrb.mxu2 %v3757_v27  ;;  %v3751_v53 = vmul.f32 %v3644_v38, %v7149_v41  ;;  %v3764_v41 = vld [vmem:[%s7346_s8 + $0x28] sm:$0xff]  ;;  %vm7805_vm3 = vmmov %vm7799_vm1  ;;  %v3916_v27 = vld [vmem:[%s7374_s12 + $0xe0] sm:$0xff] }
 0x97b   :  { %vm7806_vm13 = vmmov %vm7799_vm1  ;;  %3936 = vmatpush.msra.mxu3 %v3895_v32  ;;  %3972 = vmatpush.msra.mxu0 %v3916_v27  ;;  %v3908_v25 = vld [vmem:[%s7374_s12 + $0xa0] sm:$0xff]  ;;  %v3906_v16 = vld [vmem:[%s7374_s12 + $0x90] sm:$0xff] }
 0x97c   :  { %3833 = vmatpush.msrb.mxu2 %v3756_v45  ;;  %vm7807_vm11 = vmmov %vm7799_vm1  ;;  %v3909_v45 = vld [vmem:[%s7374_s12 + $0xa8] sm:$0xff]  ;;  %v3924_v43 = vld [vmem:[%s7427_s16 + $0x20] sm:$0xff] }
 0x97d   :  { %vm7808_vm6 = vmmov %vm7799_vm1  ;;  %3937 = vmatpush.msra.mxu3 %v3894_v4  ;;  %3973 = vmatpush.msra.mxu0 %v3915_v10 }
 0x97e   :  { %3834 = vmatpush.msrb.mxu2 %v3755_v2  ;;  %vm7809_vm7 = vmmov %vm7799_vm1  ;;  %v3904_v2 = vld [vmem:[%s7374_s12 + $0x80] sm:$0xff] }
 0x97f   :  { %3938 = vmatpush.msra.mxu3 %v3893_v13  ;;  %vm7810_vm9 = vmmov %vm7799_vm1  ;;  %3974 = vmatpush.msra.mxu0 %v3914_v35  ;;  %v3926_v35 = vld [vmem:[%s7427_s16 + $0x30] sm:$0xff] }
 0x980   :  { %3835 = vmatpush.msrb.mxu2 %v3754_v37  ;;  %vm7811_vm15 = vmmov %vm7799_vm1 }
 0x981   :  { %3939 = vmatpush.msra.mxu3 %v3892_v60  ;;  %vm7812_vm2 = vmmov %vm7799_vm1  ;;  %3975 = vmatpush.msra.mxu0 %v3913_v34 }
 0x982   :  { %3836 = vmatpush.msrb.mxu2 %v3753_v28  ;;  %vm7813_vm0 = vmmov %vm7799_vm1 }
 0x983   :  { %3940 = vmatpush.msra.mxu3 %v3891_v22  ;;  %3976 = vmatpush.msra.mxu0 %v3912_v48  ;;  %v3925_v22 = vld [vmem:[%s7427_s16 + $0x28] sm:$0xff] }
 0x984   :  { %3837 = vmatpush.msrb.mxu2 %v3752_v11 }
 0x985   :  { %3941 = vmatpush.msra.mxu3 %v3890_v39  ;;  %3977 = vmatpush.msra.mxu0 %v3911_v63 }
 0x986   :  { %3838 = vmatpush.msrb.mxu2 %v3751_v53 }
 0x987   :  { %4856 = vmatmul.msk.f32.vlgmr.msrb.gmra.mxu2 %vm7798_vm12, %v3759_v56  ;;  %3942 = vmatpush.msra.mxu3 %v3889_v17  ;;  %v3922_v17 = vld [vmem:[%s7427_s16 + $0x10] sm:$0xff] }
 0x988   :  { %3978 = vmatpush.msra.mxu0 %v3910_v59 }
 0x989   :  { %3943 = vmatpush.msra.mxu3 %v3888_v40 }
 0x98a   :  { %3979 = vmatpush.msra.mxu0 %v3909_v45 }
 0x98c   :  { %3980 = vmatpush.msra.mxu0 %v3908_v25 }
 0x98e   :  { %3981 = vmatpush.msra.mxu0 %v3907_v36 }
 0x98f   :  { %4857 = vmatmul.msk.f32.gmra.mxu2 %vm7799_vm1, %v3760_v8 }
 0x990   :  { %3982 = vmatpush.msra.mxu0 %v3906_v16 }
 0x992   :  { %3983 = vmatpush.msra.mxu0 %v3905_v42 }
 0x994   :  { %3984 = vmatpush.msra.mxu0 %v3904_v2 }
 0x997   :  { %4858 = vmatmul.msk.f32.gmra.mxu2 %vm7800_vm5, %v3761_v24 }
 0x99f   :  { %4859 = vmatmul.msk.f32.gmra.mxu2 %vm7801_vm4, %v3762_v7  ;;  %v3920_v7 = vld [vmem:[%s7427_s16] sm:$0xff] }
 0x9a7   :  { %4860 = vmatmul.msk.f32.gmra.mxu2 %vm7802_vm10, %v3763_v18 }
 0x9af   :  { %4861 = vmatmul.msk.f32.gmra.mxu2 %vm7803_vm14, %v3764_v41 }
 0x9b7   :  { %4862 = vmatmul.msk.f32.gmra.mxu2 %vm7804_vm8, %v3765_v26 }
 0x9bf   :  { %4863 = vmatmul.msk.f32.gmra.mxu2 %vm7805_vm3, %v3766_v33 }
 0x9c7   :  { %4864 = vmatmul.msk.f32.gmra.mxu2 %vm7806_vm13, %v3767_v54 }
 0x9cf   :  { %4865 = vmatmul.msk.f32.gmra.mxu2 %vm7807_vm11, %v3768_v12  ;;  %v3923_v12 = vld [vmem:[%s7427_s16 + $0x18] sm:$0xff] }
 0x9d7   :  { %4866 = vmatmul.msk.f32.gmra.mxu2 %vm7808_vm6, %v3769_v15 }
 0x9df   :  { %4867 = vmatmul.msk.f32.gmra.mxu2 %vm7809_vm7, %v3770_v57 }
 0x9e7   :  { %4868 = vmatmul.msk.f32.gmra.mxu2 %vm7810_vm9, %v3771_v21  ;;  %v3921_v21 = vld [vmem:[%s7427_s16 + $0x8] sm:$0xff] }
 0x9ef   :  { %4869 = vmatmul.msk.f32.gmra.mxu2 %vm7811_vm15, %v3772_v51 }
 0x9f7   :  { %4870 = vmatmul.msk.f32.gmra.mxu2 %vm7812_vm2, %v3773_v62 }
 0x9ff   :  { %4871 = vmatmul.msk.f32.gmra.mxu2 %vm7813_vm0, %v3774_v49 }
 0xa0a   :  { %v3840_v14 = vpop.f32.mrf.mxu2 }
 0xa0b   :  { %3944 = vmatmul.f32.vlgmr.msra.gmra.mxu3 %v3840_v14 }
 0xa12   :  { %v3843_v6 = vpop.f32.mrf.mxu2 }
 0xa13   :  { %3947 = vmatmul.f32.gmra.mxu3 %v3843_v6 }
 0xa1a   :  { %v3846_v50 = vpop.f32.mrf.mxu2 }
 0xa1b   :  { %3950 = vmatmul.f32.gmra.mxu3 %v3846_v50 }
 0xa22   :  { %v3849_v52 = vpop.f32.mrf.mxu2 }
 0xa23   :  { %3953 = vmatmul.f32.gmra.mxu3 %v3849_v52 }
 0xa2a   :  { %v3852_v5 = vpop.f32.mrf.mxu2 }
 0xa2b   :  { %3956 = vmatmul.f32.gmra.mxu3 %v3852_v5 }
 0xa32   :  { %v3855_v44 = vpop.f32.mrf.mxu2 }
 0xa33   :  { %3959 = vmatmul.f32.gmra.mxu3 %v3855_v44 }
 0xa3a   :  { %v3858_v9 = vpop.f32.mrf.mxu2 }
 0xa3b   :  { %3962 = vmatmul.f32.gmra.mxu3 %v3858_v9 }
 0xa42   :  { %v3861_v30 = vpop.f32.mrf.mxu2 }
 0xa43   :  { %3965 = vmatmul.f32.gmra.mxu3 %v3861_v30  ;;  %v3927_v30 = vld [vmem:[%s7427_s16 + $0x38] sm:$0xff] }
 0xa4a   :  { %v3864_v37 = vpop.f32.mrf.mxu2 }
 0xa4b   :  { %3985 = vmatmul.f32.vlgmr.msra.gmra.mxu0 %v3864_v37 }
 0xa52   :  { %v3867_v61 = vpop.f32.mrf.mxu2 }
 0xa53   :  { %3988 = vmatmul.f32.gmra.mxu0 %v3867_v61 }
 0xa5a   :  { %v3870_v1 = vpop.f32.mrf.mxu2 }
 0xa5b   :  { %3991 = vmatmul.f32.gmra.mxu0 %v3870_v1 }
 0xa62   :  { %v3873_v28 = vpop.f32.mrf.mxu2 }
 0xa63   :  { %3994 = vmatmul.f32.gmra.mxu0 %v3873_v28 }
 0xa6a   :  { %v3876_v38 = vpop.f32.mrf.mxu2 }
 0xa6b   :  { %3997 = vmatmul.f32.gmra.mxu0 %v3876_v38 }
 0xa72   :  { %v3879_v11 = vpop.f32.mrf.mxu2 }
 0xa73   :  { %4000 = vmatmul.f32.gmra.mxu0 %v3879_v11 }
 0xa7a   :  { %v3882_v53 = vpop.f32.mrf.mxu2 }
 0xa7b   :  { %4003 = vmatmul.f32.gmra.mxu0 %v3882_v53 }
 0xa82   :  { %v3885_v56 = vpop.f32.mrf.mxu2 }
 0xa83   :  { %4006 = vmatmul.f32.gmra.mxu0 %v3885_v56 }
 0xa8e   :  { %v3945_v8 = vpop.f32.mrf.mxu3 }
 0xa8f   :  { %v3946_v18 = vadd.f32 %v3945_v8, %v3920_v7 }
 0xa96   :  { %v3948_v24 = vpop.f32.mrf.mxu3 }
 0xa97   :  { %v3949_v51 = vadd.f32 %v3948_v24, %v3921_v21 }
 0xa9e   :  { %v3951_v33 = vpop.f32.mrf.mxu3 }
 0xa9f   :  { %v3952_v49 = vadd.f32 %v3951_v33, %v3922_v17 }
 0xaa6   :  { %v3954_v47 = vpop.f32.mrf.mxu3 }
 0xaa7   :  { %v3955_v29 = vadd.f32 %v3954_v47, %v3923_v12 }
 0xaae   :  { %v3957_v55 = vpop.f32.mrf.mxu3 }
 0xaaf   :  { %v3958_v20 = vadd.f32 %v3957_v55, %v3924_v43 }
 0xab6   :  { %v3960_v32 = vpop.f32.mrf.mxu3 }
 0xab7   :  { %v3961_v40 = vadd.f32 %v3960_v32, %v3925_v22 }
 0xabe   :  { %v3963_v19 = vpop.f32.mrf.mxu3 }
 0xabf   :  { %v3964_v63 = vadd.f32 %v3963_v19, %v3926_v35 }
 0xac6   :  { %v3966_v37 = vpop.f32.mrf.mxu3 }
 0xac7   :  { %v3967_v56 = vadd.f32 %v3966_v37, %v3927_v30 }
 0xac8   :  { %v3986_v41 = vpop.f32.mrf.mxu0 }
 0xac9   :  { %v7430_v26 = vadd.f32 %v3986_v41, %v3946_v18 }
 0xacb   :  { %v4872_v11 = vmul.f32 -1.442695, %v7430_v26 }
 0xad0   :  { %v3989_v54 = vpop.f32.mrf.mxu0 }
 0xad1   :  { %v7447_v3 = vadd.f32 %v3989_v54, %v3949_v51 }
 0xad3   :  { %v4873_v48 = vmul.f32 -1.442695, %v7447_v3 }
 0xad8   :  { %v3992_v23 = vpop.f32.mrf.mxu0 }
 0xad9   :  { %v7449_v6 = vadd.f32 %v3992_v23, %v3952_v49 }
 0xadb   :  { %v4874_v59 = vmul.f32 -1.442695, %v7449_v6 }
 0xae0   :  { %v3995_v0 = vpop.f32.mrf.mxu0 }
 0xae1   :  { %v3996_v46 = vadd.f32 %v3995_v0, %v3955_v29 }
 0xae3   :  { %v4875_v15 = vmul.f32 -1.442695, %v3996_v46 }
 0xae5   :  { %5161 = vpow2.f32 %v4875_v15 }
 0xae8   :  { %v3998_v4 = vpop.f32.mrf.mxu0 }
 0xae9   :  { %v7439_v57 = vadd.f32 %v3998_v4, %v3958_v20 }
 0xaeb   :  { %v5162_v13 = vpop.eup %5161  ;;  %v4876_v60 = vmul.f32 -1.442695, %v7439_v57 }
 0xaec   :  { %v4037_v39 = vadd.f32 1.0, %v5162_v13 }
 0xaed   :  { %5163 = vpow2.f32 %v4876_v60 }
 0xaee   :  { %5165 = vrcp.f32 %v4037_v39  ;;  %v4098_v52 = vand.u32 2147483648, %v4037_v39  ;;  %v4096_v16 = vand.u32 2147483647, %v4037_v39  ;;  %vm4092_vm1 = vweird.f32 %v4037_v39 }
 0xaf0   :  { %v4001_v62 = vpop.f32.mrf.mxu0  ;;  %v4099_v61 = vor.u32 1.1754944e-38, %v4098_v52  ;;  %vm4097_vm4 = vcmp.eq.f32.partialorder %v4096_v16, 8.507059e+37 }
 0xaf1   :  { %v7445_v14 = vadd.f32 %v4001_v62, %v3961_v40 }
 0xaf3   :  { %v5164_v58 = vpop.eup %5163  ;;  %v4877_v27 = vmul.f32 -1.442695, %v7445_v14 }
 0xaf4   :  { %v5166_v10 = vpop.eup %5165  ;;  %v4038_v34 = vadd.f32 1.0, %v5164_v58 }
 0xaf5   :  { %v4088_v50 = vmul.f32 %v5166_v10, %v4037_v39  ;;  %5167 = vpow2.f32 %v4877_v27  ;;  %vm4093_vm12 = vweird.f32 %v5166_v10 }
 0xaf6   :  { %5169 = vrcp.f32 %v4038_v34  ;;  %vm4094_vm5 = vmor %vm4092_vm1, %vm4093_vm12  ;;  %v4113_v18 = vand.u32 2147483648, %v4038_v34  ;;  %v4111_v47 = vand.u32 2147483647, %v4038_v34  ;;  %vm4107_vm14 = vweird.f32 %v4038_v34 }
 0xaf7   :  { %v4089_v45 = vsub.f32 1.0, %v4088_v50  ;;  %5171 = vpow2.f32 %v4873_v48 }
 0xaf8   :  { %v4004_v25 = vpop.f32.mrf.mxu0  ;;  %5173 = vpow2.f32 %v4874_v59  ;;  %v4114_v43 = vor.u32 1.1754944e-38, %v4113_v18  ;;  %vm4112_vm3 = vcmp.eq.f32.partialorder %v4111_v47, 8.507059e+37 }
 0xaf9   :  { %v4090_v36 = vmul.f32 %v5166_v10, %v4089_v45  ;;  %v7455_v42 = vadd.f32 %v4004_v25, %v3964_v63 }
 0xafb   :  { %v5168_v5 = vpop.eup %5167  ;;  %v4091_v2 = vadd.f32 %v5166_v10, %v4090_v36  ;;  %v4878_v44 = vmul.f32 -1.442695, %v7455_v42 }
 0xafc   :  { %v5170_v9 = vpop.eup %5169  ;;  %v4039_v1 = vadd.f32 1.0, %v5168_v5 }
 0xafd   :  { %v4095_v28 = vsel %vm4094_vm5, %v5166_v10, %v4091_v2  ;;  %v4103_v38 = vmul.f32 %v5170_v9, %v4038_v34  ;;  %5175 = vpow2.f32 %v4878_v44  ;;  %v5172_v7 = vpop.eup %5171  ;;  %vm4108_vm10 = vweird.f32 %v5170_v9 }
 0xafe   :  { %v4100_v53 = vsel %vm4097_vm4, %v4099_v61, %v4095_v28  ;;  %5177 = vrcp.f32 %v4039_v1  ;;  %v5174_v33 = vpop.eup %5173  ;;  %vm4109_vm8 = vmor %vm4107_vm14, %vm4108_vm10  ;;  %v4128_v21 = vand.u32 2147483648, %v4039_v1  ;;  %v4126_v40 = vand.u32 2147483647, %v4039_v1 }
 0xaff   :  { %v7460_v8 = vmul.f32 %v4100_v53, %v3996_v46  ;;  %v4104_v24 = vsub.f32 1.0, %v4103_v38  ;;  %5179 = vpow2.f32 %v4872_v11  ;;  %v7467_v46 = vadd.f32 1.0, %v5172_v7 }
 0xb00   :  { %v4007_v41 = vpop.f32.mrf.mxu0  ;;  %v7469_v15 = vadd.f32 1.0, %v5174_v33  ;;  %vm4122_vm11 = vweird.f32 %v4039_v1  ;;  %v4129_v19 = vor.u32 1.1754944e-38, %v4128_v21  ;;  %vm4127_vm7 = vcmp.eq.f32.partialorder %v4126_v40, 8.507059e+37 }
 0xb01   :  { %v4105_v54 = vmul.f32 %v5170_v9, %v4104_v24  ;;  %v7462_v23 = vadd.f32 %v4007_v41, %v3967_v56  ;;  %4202 = vrot.lane.b32.xlu1 %v7460_v8, %s5234_s26  ;;  %v4068_v47 = vand.u32 2147483648, %v7467_v46 }
 0xb03   :  { %v5176_v12 = vpop.eup %5175  ;;  %v4106_v55 = vadd.f32 %v5170_v9, %v4105_v54  ;;  %v4879_v29 = vmul.f32 -1.442695, %v7462_v23 }
 0xb04   :  { %v5178_v0 = vpop.eup %5177  ;;  %v4040_v20 = vadd.f32 1.0, %v5176_v12 }
 0xb05   :  { %v4110_v32 = vsel %vm4109_vm8, %v5170_v9, %v4106_v55  ;;  %v4118_v4 = vmul.f32 %v5178_v0, %v4039_v1  ;;  %5181 = vpow2.f32 %v4879_v29  ;;  %v5180_v39 = vpop.eup %5179  ;;  %vm4123_vm13 = vweird.f32 %v5178_v0 }
 0xb06   :  { %v4115_v13 = vsel %vm4112_vm3, %v4114_v43, %v4110_v32  ;;  %5183 = vrcp.f32 %v4040_v20  ;;  %v7478_v62 = vadd.f32 1.0, %v5180_v39  ;;  %vm4124_vm6 = vmor %vm4122_vm11, %vm4123_vm13  ;;  %v4143_v59 = vand.u32 2147483648, %v4040_v20 }
 0xb07   :  { %v7472_v60 = vmul.f32 %v4115_v13, %v7439_v57  ;;  %v4119_v22 = vsub.f32 1.0, %v4118_v4  ;;  %5185 = vrcp.f32 %v7467_v46  ;;  %v4141_v25 = vand.u32 2147483647, %v4040_v20 }
 0xb08   :  { %5187 = vrcp.f32 %v7469_v15  ;;  %vm4137_vm15 = vweird.f32 %v4040_v20  ;;  %v4144_v5 = vor.u32 1.1754944e-38, %v4143_v59  ;;  %vm4062_vm8 = vweird.f32 %v7467_v46  ;;  %v4936_v59 = vld [vmem:[%s7435_s20] ss:$0 sm:$0xff] }
 0xb09   :  { %v4120_v17 = vmul.f32 %v5178_v0, %v4119_v22  ;;  %4204 = vrot.lane.b32.xlu2 %v7472_v60, %s5234_s26  ;;  %vm4142_vm0 = vcmp.eq.f32.partialorder %v4141_v25, 8.507059e+37  ;;  %v4066_v29 = vand.u32 2147483647, %v7467_v46  ;;  %vm4077_vm13 = vweird.f32 %v7469_v15 }
 0xb0a   :  { %v4081_v4 = vand.u32 2147483647, %v7469_v15 }
 0xb0b   :  { %v5182_v51 = vpop.eup %5181  ;;  %v4121_v49 = vadd.f32 %v5178_v0, %v4120_v17  ;;  %v4053_v17 = vand.u32 2147483648, %v7478_v62 }
 0xb0c   :  { %v5184_v57 = vpop.eup %5183  ;;  %v4041_v58 = vadd.f32 1.0, %v5182_v51  ;;  %v4051_v51 = vand.u32 2147483647, %v7478_v62 }
 0xb0d   :  { %v4125_v27 = vsel %vm4124_vm6, %v5178_v0, %v4121_v49  ;;  %v4133_v10 = vmul.f32 %v5184_v57, %v4040_v20  ;;  %v7480_v35 = vpop.eup %5185  ;;  %vm4138_vm9 = vweird.f32 %v5184_v57  ;;  %v4083_v0 = vand.u32 2147483648, %v7469_v15 }
 0xb0e   :  { %v4130_v34 = vsel %vm4127_vm7, %v4129_v19, %v4125_v27  ;;  %5189 = vrcp.f32 %v4041_v58  ;;  %v7482_v50 = vpop.eup %5187  ;;  %v4058_v45 = vmul.f32 %v7480_v35, %v7467_v46  ;;  %vm4139_vm2 = vmor %vm4137_vm15, %vm4138_vm9  ;;  %v4158_v11 = vand.u32 2147483648, %v4041_v58  ;;  %v4240_v27 = vld [vmem:[%s4693_s24 + $0x10] sm:$0xff] }
 0xb0f   :  { %5191 = vrcp.f32 %v7478_v62  ;;  %v7486_v48 = vmul.f32 %v4130_v34, %v7445_v14  ;;  %v4134_v63 = vsub.f32 1.0, %v4133_v10  ;;  %v4073_v36 = vmul.f32 %v7482_v50, %v7469_v15  ;;  %v4244_v10 = vld [vmem:[%s4693_s24 + $0x30] sm:$0xff]  ;;  %v4243_v34 = vld [vmem:[%s4693_s24 + $0x28] sm:$0xff] }
 0xb10   :  { %v4059_v44 = vsub.f32 1.0, %v4058_v45  ;;  %v4156_v24 = vand.u32 2147483647, %v4041_v58  ;;  %vm4152_vm1 = vweird.f32 %v4041_v58  ;;  %v4159_v41 = vor.u32 1.1754944e-38, %v4158_v11 }
 0xb11   :  { %v4135_v52 = vmul.f32 %v5184_v57, %v4134_v63  ;;  %4178 = vrot.lane.b32.xlu2 %v7472_v60, %s5235_s27  ;;  %4206 = vrot.lane.b32.xlu0 %v7486_v48, %s5234_s26  ;;  %v4074_v37 = vsub.f32 1.0, %v4073_v36  ;;  %vm4063_vm4 = vweird.f32 %v7480_v35  ;;  %vm4078_vm14 = vweird.f32 %v7482_v50 }
 0xb12   :  { %v4060_v53 = vmul.f32 %v7480_v35, %v4059_v44  ;;  %vm4157_vm10 = vcmp.eq.f32.partialorder %v4156_v24, 8.507059e+37  ;;  %vm7516_vm3 = vmor %vm4062_vm8, %vm4063_vm4  ;;  %vm4067_vm6 = vcmp.eq.f32.partialorder %v4066_v29, 8.507059e+37  ;;  %v4084_v15 = vor.u32 1.1754944e-38, %v4083_v0 }
 0xb13   :  { %v4136_v16 = vadd.f32 %v5184_v57, %v4135_v52  ;;  %v4075_v7 = vmul.f32 %v7482_v50, %v4074_v37  ;;  %vm7525_vm11 = vmor %vm4077_vm13, %vm4078_vm14  ;;  %vm4082_vm9 = vcmp.eq.f32.partialorder %v4081_v4, 8.507059e+37  ;;  %vm4047_vm15 = vweird.f32 %v7478_v62 }
 0xb14   :  { %v5190_v14 = vpop.eup %5189  ;;  %v4061_v33 = vadd.f32 %v7480_v35, %v4060_v53 }
 0xb15   :  { %v7496_v2 = vpop.eup %5191  ;;  %v4140_v9 = vsel %vm4139_vm2, %v5184_v57, %v4136_v16  ;;  %v4148_v30 = vmul.f32 %v5190_v14, %v4041_v58  ;;  %vm4153_vm12 = vweird.f32 %v5190_v14  ;;  %v4076_v12 = vadd.f32 %v7482_v50, %v4075_v7 }
 0xb16   :  { %v4145_v61 = vsel %vm4142_vm0, %v4144_v5, %v4140_v9  ;;  %v4043_v38 = vmul.f32 %v7496_v2, %v7478_v62  ;;  %vm4154_vm5 = vmor %vm4152_vm1, %vm4153_vm12  ;;  %v4065_v13 = vsel %vm7516_vm3, %v7480_v35, %v4061_v33  ;;  %vm4048_vm7 = vweird.f32 %v7496_v2  ;;  %v4245_v35 = vld [vmem:[%s4693_s24 + $0x38] sm:$0xff]  ;;  %v4935_v5 = vld [vmem:[%s7435_s20 + $0x2] ss:$0 sm:$0xff] }
 0xb17   :  { %v4168_v1 = vmul.f32 %v4145_v61, %v7455_v42  ;;  %v4149_v28 = vsub.f32 1.0, %v4148_v30  ;;  %v4080_v22 = vsel %vm7525_vm11, %v7482_v50, %v4076_v12  ;;  %vm4049_vm2 = vmor %vm4047_vm15, %vm4048_vm7  ;;  %v4054_v58 = vor.u32 1.1754944e-38, %v4053_v17 }
 0xb18   :  { %v4044_v42 = vsub.f32 1.0, %v4043_v38  ;;  %v4085_v40 = vsel %vm4082_vm9, %v4084_v15, %v4080_v22  ;;  %vm4052_vm0 = vcmp.eq.f32.partialorder %v4051_v51, 8.507059e+37  ;;  %vm7818_vm12 = vcmask 523264  }
 0xb19   :  { %v4150_v56 = vmul.f32 %v5190_v14, %v4149_v28  ;;  %4180 = vrot.lane.b32.xlu0 %v7486_v48, %s5235_s27  ;;  %4208 = vrot.lane.b32.xlu1 %v4168_v1, %s5234_s26  ;;  %v4164_v19 = vmul.f32 %v4085_v40, %v7449_v6  ;;  %v4238_v6 = vld [vmem:[%s4693_s24] sm:$0xff]  ;;  %vm7819_vm1 = vmmov %vm7818_vm12 }
 0xb1a   :  { %v4045_v20 = vmul.f32 %v7496_v2, %v4044_v42  ;;  %vm7821_vm4 = vmmov %vm7819_vm1 }
 0xb1b   :  { %v4151_v18 = vadd.f32 %v5190_v14, %v4150_v56  ;;  %vm7823_vm14 = vmmov %vm7819_vm1 }
 0xb1c   :  { %v4046_v39 = vadd.f32 %v7496_v2, %v4045_v20  ;;  %vm7824_vm8 = vmmov %vm7819_vm1 }
 0xb1d   :  { %v4155_v54 = vsel %vm4154_vm5, %v5190_v14, %v4151_v18  ;;  %vm7820_vm5 = vmmov %vm7819_vm1 }
 0xb1e   :  { %v4160_v55 = vsel %vm4157_vm10, %v4159_v41, %v4155_v54  ;;  %v4050_v57 = vsel %vm4049_vm2, %v7496_v2, %v4046_v39  ;;  %vm7822_vm10 = vmmov %vm7819_vm1 }
 0xb1f   :  { %v4169_v43 = vmul.f32 %v4160_v55, %v7462_v23  ;;  %v4069_v23 = vor.u32 1.1754944e-38, %v4068_v47  ;;  %v4055_v62 = vsel %vm4052_vm0, %v4054_v58, %v4050_v57  ;;  %vm7825_vm3 = vmmov %vm7819_vm1  ;;  %v4566_v58 = vld [vmem:[%s7595_s6 + $0x70] sm:$0xff] }
 0xb21   :  { %4182 = vrot.lane.b32.xlu1 %v4168_v1, %s5235_s27  ;;  %4184 = vrot.lane.b32.xlu2 %v4169_v43, %s5235_s27  ;;  %v4070_v21 = vsel %vm4067_vm6, %v4069_v23, %v4065_v13 }
 0xb22   :  { %4210 = vrot.lane.b32.xlu0 %v4169_v43, %s5234_s26  ;;  %4310 = vmatpush.msra.mxu1 %v4169_v43  ;;  %v4163_v49 = vmul.f32 %v4070_v21, %v7447_v3  ;;  %v4162_v3 = vmul.f32 %v4055_v62, %v7430_v26  ;;  %v4241_v26 = vld [vmem:[%s4693_s24 + $0x18] sm:$0xff]  ;;  %v4565_v62 = vld [vmem:[%s7595_s6 + $0x68] sm:$0xff] }
 0xb24   :  { %4311 = vmatpush.msra.mxu1 %v4168_v1 }
 0xb26   :  { %4312 = vmatpush.msra.mxu1 %v7486_v48 }
 0xb28   :  { %4313 = vmatpush.msra.mxu1 %v7472_v60  ;;  %v4239_v60 = vld [vmem:[%s4693_s24 + $0x8] sm:$0xff] }
 0xb29   :  { %4176 = vrot.lane.b32.xlu1 %v7460_v8, %s5235_s27  ;;  %4198 = vrot.lane.b32.xlu2 %v4163_v49, %s5234_s26 }
 0xb2a   :  { %4200 = vrot.lane.b32.xlu0 %v4164_v19, %s5234_s26  ;;  %4314 = vmatpush.msra.mxu1 %v7460_v8  ;;  %v4242_v8 = vld [vmem:[%s4693_s24 + $0x20] sm:$0xff] }
 0xb2c   :  { %4315 = vmatpush.msra.mxu1 %v4164_v19 }
 0xb2e   :  { %4316 = vmatpush.msra.mxu1 %v4163_v49 }
 0xb30   :  { %4317 = vmatpush.msra.mxu1 %v4162_v3 }
 0xb31   :  { %4196 = vrot.lane.b32.xlu1 %v4162_v3, %s5234_s26  ;;  %4172 = vrot.lane.b32.xlu2 %v4163_v49, %s5235_s27  ;;  %s5257_s26 = smov 29  }
 0xb32   :  { %4174 = vrot.lane.b32.xlu0 %v4164_v19, %s5235_s27  ;;  %s4696_s29 = sld [smem:[%s7649_s0 + %s5257_s26]]   ;;  %v4567_v19 = vld [vmem:[%s7595_s6 + $0x78] sm:$0xff] }
 0xb33   :  { %4568 = vmatpush.msrb.mxu0 %v4567_v19 }
 0xb35   :  { %4569 = vmatpush.msrb.mxu0 %v4566_v58 }
 0xb37   :  { %4570 = vmatpush.msrb.mxu0 %v4565_v62 }
 0xb38   :  { %v4610_v50 = vld [vmem:[%s4696_s29] sm:$0x3f] }
 0xb39   :  { %4248 = vperm.xlu1 %4932, %v4238_v6   ;;  %4253 = vperm.xlu2 %4933, %v4239_v60   ;;  %v4563_v6 = vld [vmem:[%s7595_s6 + $0x58] sm:$0xff]  ;;  %v4562_v60 = vld [vmem:[%s7595_s6 + $0x50] sm:$0xff] }
 0xb3a   :  { %4170 = vrot.lane.b32.xlu0 %v4162_v3, %s5235_s27  ;;  %s5258_s27 = smov 25   ;;  %v4564_v3 = vld [vmem:[%s7595_s6 + $0x60] sm:$0xff] }
 0xb3b   :  { %s7566_s2 = sld [smem:[%s7649_s0 + %s5258_s27]]   ;;  %4571 = vmatpush.msrb.mxu0 %v4564_v3 }
 0xb3d   :  { %4572 = vmatpush.msrb.mxu0 %v4563_v6 }
 0xb3f   :  { %4573 = vmatpush.msrb.mxu0 %v4562_v60 }
 0xb41   :  { %4263 = vperm.xlu1 %4932, %v4241_v26   ;;  %4268 = vperm.xlu2 %4933, %v4242_v8   ;;  %v4223_v12 = vld [vmem:[%s7566_s2 + $0x8] sm:$0xff]  ;;  %v4225_v43 = vld [vmem:[%s7566_s2 + $0x18] sm:$0xff]  ;;  %v4222_v32 = vld [vmem:[%s7566_s2] sm:$0xff] }
 0xb42   :  { %4258 = vperm.xlu0 %4934, %v4240_v27   ;;  %v4227_v4 = vld [vmem:[%s7566_s2 + $0x28] sm:$0xff]  ;;  %v4224_v13 = vld [vmem:[%s7566_s2 + $0x10] sm:$0xff]  ;;  %v4229_v46 = vld [vmem:[%s7566_s2 + $0x38] sm:$0xff] }
 0xb43   :  { %v4226_v23 = vld [vmem:[%s7566_s2 + $0x20] sm:$0xff]  ;;  %v4231_v22 = vld [vmem:[%s7566_s2 + $0x48] sm:$0xff]  ;;  %v4228_v15 = vld [vmem:[%s7566_s2 + $0x30] sm:$0xff] }
 0xb44   :  { %v4233_v39 = vld [vmem:[%s7566_s2 + $0x58] sm:$0xff]  ;;  %v4230_v21 = vld [vmem:[%s7566_s2 + $0x40] sm:$0xff]  ;;  %v4235_v17 = vld [vmem:[%s7566_s2 + $0x68] sm:$0xff] }
 0xb45   :  { %v4232_v40 = vld [vmem:[%s7566_s2 + $0x50] sm:$0xff]  ;;  %v4237_v51 = vld [vmem:[%s7566_s2 + $0x78] sm:$0xff]  ;;  %v4234_v49 = vld [vmem:[%s7566_s2 + $0x60] sm:$0xff] }
 0xb46   :  { %v4236_v57 = vld [vmem:[%s7566_s2 + $0x70] sm:$0xff]  ;;  %v4561_v26 = vld [vmem:[%s7595_s6 + $0x48] sm:$0xff]  ;;  %v4560_v8 = vld [vmem:[%s7595_s6 + $0x40] sm:$0xff] }
 0xb47   :  { %4574 = vmatpush.msrb.mxu0 %v4561_v26  ;;  %v4559_v27 = vld [vmem:[%s7595_s6 + $0x38] sm:$0xff] }
 0xb49   :  { %4278 = vperm.xlu1 %4932, %v4244_v10   ;;  %4283 = vperm.xlu2 %4933, %v4245_v35   ;;  %v4558_v10 = vld [vmem:[%s7595_s6 + $0x30] sm:$0xff]  ;;  %v4557_v35 = vld [vmem:[%s7595_s6 + $0x28] sm:$0xff] }
 0xb4a   :  { %4273 = vperm.xlu0 %4934, %v4243_v34   ;;  %4575 = vmatpush.msrb.mxu0 %v4560_v8  ;;  %v4556_v34 = vld [vmem:[%s7595_s6 + $0x20] sm:$0xff] }
 0xb4c   :  { %4576 = vmatpush.msrb.mxu0 %v4559_v27 }
 0xb4e   :  { %4577 = vmatpush.msrb.mxu0 %v4558_v10 }
 0xb50   :  { %4578 = vmatpush.msrb.mxu0 %v4557_v35 }
 0xb52   :  { %4613 = vperm.xlu0 %4934, %v4610_v50   ;;  %4579 = vmatpush.msrb.mxu0 %v4556_v34  ;;  %v4555_v50 = vld [vmem:[%s7595_s6 + $0x18] sm:$0xff] }
 0xb54   :  { %4580 = vmatpush.msrb.mxu0 %v4555_v50 }
 0xb63   :  { %v4205_v48 = vpop.permute.xlu2 %4204 }
 0xb64   :  { %v4218_v11 = vmul.f32 %v4935_v5, %v4205_v48 }
 0xb6b   :  { %v4179_v63 = vpop.permute.xlu2 %4178 }
 0xb6c   :  { %v4192_v1 = vmul.f32 %v4936_v59, %v4179_v63  ;;  %v4554_v63 = vld [vmem:[%s7595_s6 + $0x10] sm:$0xff] }
 0xb6d   :  { %4581 = vmatpush.msrb.mxu0 %v4554_v63 }
 0xb73   :  { %v4203_v25 = vpop.permute.xlu1 %4202 }
 0xb74   :  { %v4217_v7 = vmul.f32 %v4935_v5, %v4203_v25 }
 0xb7b   :  { %v4185_v45 = vpop.permute.xlu2 %4184 }
 0xb7c   :  { %v4195_v52 = vmul.f32 %v4936_v59, %v4185_v45 }
 0xb7e   :  { %4318 = vmatpush.msra.mxu1 %v4195_v52  ;;  %v4553_v52 = vld [vmem:[%s7595_s6 + $0x8] sm:$0xff] }
 0xb7f   :  { %4582 = vmatpush.msrb.mxu0 %v4553_v52 }
 0xb83   :  { %v4207_v36 = vpop.permute.xlu0 %4206  ;;  %v4199_v38 = vpop.permute.xlu2 %4198 }
 0xb84   :  { %v4219_v28 = vmul.f32 %v4935_v5, %v4207_v36  ;;  %v4215_v42 = vmul.f32 %v4935_v5, %v4199_v38  ;;  %v4552_v36 = vld [vmem:[%s7595_s6] sm:$0xff] }
 0xb85   :  { %4583 = vmatpush.msrb.mxu0 %v4552_v36 }
 0xb8b   :  { %v4181_v16 = vpop.permute.xlu0 %4180  ;;  %v4209_v14 = vpop.permute.xlu1 %4208 }
 0xb8c   :  { %v4193_v37 = vmul.f32 %v4936_v59, %v4181_v16  ;;  %v4220_v61 = vmul.f32 %v4935_v5, %v4209_v14  ;;  %v4173_v33 = vpop.permute.xlu2 %4172 }
 0xb8d   :  { %v4189_v29 = vmul.f32 %v4936_v59, %v4173_v33 }
 0xb93   :  { %v4183_v2 = vpop.permute.xlu1 %4182 }
 0xb94   :  { %v4194_v44 = vmul.f32 %v4936_v59, %v4183_v2  ;;  %v4211_v9 = vpop.permute.xlu0 %4210  ;;  %v4254_v2 = vpop.permute.xlu2 %4253 }
 0xb95   :  { %v4221_v30 = vmul.f32 %v4935_v5, %v4211_v9 }
 0xb96   :  { %4319 = vmatpush.msra.mxu1 %v4194_v44 }
 0xb97   :  { %4359 = vmatpush.msrb.mxu3 %v4221_v30 }
 0xb98   :  { %4320 = vmatpush.msra.mxu1 %v4193_v37 }
 0xb99   :  { %4360 = vmatpush.msrb.mxu3 %v4220_v61 }
 0xb9a   :  { %4321 = vmatpush.msra.mxu1 %v4192_v1 }
 0xb9b   :  { %4361 = vmatpush.msrb.mxu3 %v4219_v28  ;;  %v4177_v53 = vpop.permute.xlu1 %4176 }
 0xb9c   :  { %v4191_v56 = vmul.f32 %v4936_v59, %v4177_v53  ;;  %v4201_v24 = vpop.permute.xlu0 %4200 }
 0xb9d   :  { %4362 = vmatpush.msrb.mxu3 %v4218_v11  ;;  %v4216_v18 = vmul.f32 %v4935_v5, %v4201_v24 }
 0xb9e   :  { %4322 = vmatpush.msra.mxu1 %v4191_v56 }
 0xb9f   :  { %4363 = vmatpush.msrb.mxu3 %v4217_v7 }
 0xba1   :  { %4364 = vmatpush.msrb.mxu3 %v4216_v18 }
 0xba3   :  { %4365 = vmatpush.msrb.mxu3 %v4215_v42  ;;  %v4197_v41 = vpop.permute.xlu1 %4196 }
 0xba4   :  { %v4214_v54 = vmul.f32 %v4935_v5, %v4197_v41  ;;  %v4175_v47 = vpop.permute.xlu0 %4174 }
 0xba5   :  { %v4190_v55 = vmul.f32 %v4936_v59, %v4175_v47 }
 0xba6   :  { %4366 = vmatpush.msrb.mxu3 %v4214_v54 }
 0xba7   :  { %4323 = vmatpush.msra.mxu1 %v4190_v55  ;;  %4880 = vmatmul.msk.f32.vlgmr.msrb.gmra.mxu3 %vm7818_vm12, %v4223_v12 }
 0xba9   :  { %4324 = vmatpush.msra.mxu1 %v4189_v29 }
 0xbac   :  { %v4171_v0 = vpop.permute.xlu0 %4170 }
 0xbad   :  { %v4188_v20 = vmul.f32 %v4936_v59, %v4171_v0  ;;  %v4249_v59 = vpop.permute.xlu1 %4248 }
 0xbaf   :  { %4325 = vmatpush.msra.mxu1 %v4188_v20  ;;  %4881 = vmatmul.msk.f32.gmra.mxu3 %vm7819_vm1, %v4225_v43 }
 0xbb0   :  { %4326 = vmatmul.f32.vlgmr.msra.gmra.mxu1 %v4222_v32 }
 0xbb4   :  { %v4259_v38 = vpop.permute.xlu0 %4258 }
 0xbb5   :  { %v4264_v54 = vpop.permute.xlu1 %4263 }
 0xbb7   :  { %4882 = vmatmul.msk.f32.gmra.mxu3 %vm7820_vm5, %v4227_v4 }
 0xbb8   :  { %4329 = vmatmul.f32.gmra.mxu1 %v4224_v13 }
 0xbbc   :  { %v4274_v63 = vpop.permute.xlu0 %4273 }
 0xbbf   :  { %4883 = vmatmul.msk.f32.gmra.mxu3 %vm7821_vm4, %v4229_v46 }
 0xbc0   :  { %4332 = vmatmul.f32.gmra.mxu1 %v4226_v23 }
 0xbc7   :  { %4884 = vmatmul.msk.f32.gmra.mxu3 %vm7822_vm10, %v4231_v22 }
 0xbc8   :  { %4335 = vmatmul.f32.gmra.mxu1 %v4228_v15 }
 0xbcf   :  { %4885 = vmatmul.msk.f32.gmra.mxu3 %vm7823_vm14, %v4233_v39 }
 0xbd0   :  { %4338 = vmatmul.f32.gmra.mxu1 %v4230_v21 }
 0xbd7   :  { %4886 = vmatmul.msk.f32.gmra.mxu3 %vm7824_vm8, %v4235_v17  ;;  %v4269_v17 = vpop.permute.xlu2 %4268 }
 0xbd8   :  { %4341 = vmatmul.f32.gmra.mxu1 %v4232_v40 }
 0xbdf   :  { %4887 = vmatmul.msk.f32.gmra.mxu3 %vm7825_vm3, %v4237_v51 }
 0xbe0   :  { %4344 = vmatmul.f32.gmra.mxu1 %v4234_v49 }
 0xbe8   :  { %4347 = vmatmul.f32.gmra.mxu1 %v4236_v57 }
 0xc2a   :  { %v4368_v48 = vpop.f32.mrf.mxu3 }
 0xc2d   :  { %v4327_v45 = vpop.f32.mrf.mxu1 }
 0xc2e   :  { %v4328_v25 = vadd.f32 %v4327_v45, %v4249_v59 }
 0xc30   :  { %v4369_v16 = vadd.f32 %v4368_v48, %v4328_v25 }
 0xc32   :  { %v4888_v14 = vmul.f32 -1.442695, %v4369_v16  ;;  %v4371_v5 = vpop.f32.mrf.mxu3 }
 0xc34   :  { %5193 = vpow2.f32 %v4888_v14 }
 0xc35   :  { %v4330_v44 = vpop.f32.mrf.mxu1 }
 0xc36   :  { %v4331_v9 = vadd.f32 %v4330_v44, %v4254_v2 }
 0xc38   :  { %v7613_v30 = vadd.f32 %v4371_v5, %v4331_v9 }
 0xc3a   :  { %v5194_v37 = vpop.eup %5193  ;;  %v4889_v61 = vmul.f32 -1.442695, %v7613_v30  ;;  %v4374_v1 = vpop.f32.mrf.mxu3 }
 0xc3b   :  { %v4416_v28 = vadd.f32 1.0, %v5194_v37 }
 0xc3c   :  { %5195 = vpow2.f32 %v4889_v61 }
 0xc3d   :  { %5197 = vrcp.f32 %v4416_v28  ;;  %v4333_v11 = vpop.f32.mrf.mxu1  ;;  %v4435_v29 = vand.u32 2147483648, %v4416_v28  ;;  %v4433_v43 = vand.u32 2147483647, %v4416_v28  ;;  %vm4429_vm11 = vweird.f32 %v4416_v28 }
 0xc3e   :  { %v4334_v53 = vadd.f32 %v4333_v11, %v4259_v38 }
 0xc3f   :  { %v4436_v22 = vor.u32 1.1754944e-38, %v4435_v29  ;;  %vm4434_vm7 = vcmp.eq.f32.partialorder %v4433_v43, 8.507059e+37 }
 0xc40   :  { %v7616_v56 = vadd.f32 %v4374_v1, %v4334_v53  ;;  %v4279_v53 = vpop.permute.xlu1 %4278 }
 0xc42   :  { %v5196_v24 = vpop.eup %5195  ;;  %v4890_v7 = vmul.f32 -1.442695, %v7616_v56  ;;  %v4377_v18 = vpop.f32.mrf.mxu3 }
 0xc43   :  { %v5198_v42 = vpop.eup %5197  ;;  %v4417_v41 = vadd.f32 1.0, %v5196_v24 }
 0xc44   :  { %v4425_v33 = vmul.f32 %v5198_v42, %v4416_v28  ;;  %5199 = vpow2.f32 %v4890_v7  ;;  %vm4430_vm13 = vweird.f32 %v5198_v42 }
 0xc45   :  { %5201 = vrcp.f32 %v4417_v41  ;;  %v4336_v47 = vpop.f32.mrf.mxu1  ;;  %vm4431_vm6 = vmor %vm4429_vm11, %vm4430_vm13  ;;  %v4450_v58 = vand.u32 2147483648, %v4417_v41  ;;  %v4448_v3 = vand.u32 2147483647, %v4417_v41  ;;  %vm4444_vm15 = vweird.f32 %v4417_v41 }
 0xc46   :  { %v4426_v12 = vsub.f32 1.0, %v4425_v33  ;;  %v4337_v55 = vadd.f32 %v4336_v47, %v4264_v54 }
 0xc47   :  { %v4451_v35 = vor.u32 1.1754944e-38, %v4450_v58  ;;  %vm4449_vm0 = vcmp.eq.f32.partialorder %v4448_v3, 8.507059e+37 }
 0xc48   :  { %v4427_v0 = vmul.f32 %v5198_v42, %v4426_v12  ;;  %v7619_v20 = vadd.f32 %v4377_v18, %v4337_v55 }
 0xc4a   :  { %v5200_v32 = vpop.eup %5199  ;;  %v4428_v4 = vadd.f32 %v5198_v42, %v4427_v0  ;;  %v4891_v13 = vmul.f32 -1.442695, %v7619_v20  ;;  %v4380_v46 = vpop.f32.mrf.mxu3 }
 0xc4b   :  { %v5202_v23 = vpop.eup %5201  ;;  %v4418_v15 = vadd.f32 1.0, %v5200_v32 }
 0xc4c   :  { %v4432_v39 = vsel %vm4431_vm6, %v5198_v42, %v4428_v4  ;;  %v4440_v21 = vmul.f32 %v5202_v23, %v4417_v41  ;;  %5203 = vpow2.f32 %v4891_v13  ;;  %vm4445_vm9 = vweird.f32 %v5202_v23  ;;  %v4284_v13 = vpop.permute.xlu2 %4283 }
 0xc4d   :  { %v4437_v40 = vsel %vm4434_vm7, %v4436_v22, %v4432_v39  ;;  %5205 = vrcp.f32 %v4418_v15  ;;  %v4339_v51 = vpop.f32.mrf.mxu1  ;;  %vm4446_vm2 = vmor %vm4444_vm15, %vm4445_vm9  ;;  %v4463_v5 = vand.u32 2147483647, %v4418_v15  ;;  %vm4459_vm1 = vweird.f32 %v4418_v15 }
 0xc4e   :  { %v4544_v49 = vmul.f32 %v4437_v40, %v4369_v16  ;;  %v4441_v57 = vsub.f32 1.0, %v4440_v21  ;;  %v4340_v19 = vadd.f32 %v4339_v51, %v4269_v17  ;;  %v4465_v16 = vand.u32 2147483648, %v4418_v15 }
 0xc4f   :  { %vm4464_vm4 = vcmp.eq.f32.partialorder %v4463_v5, 8.507059e+37 }
 0xc50   :  { %v4442_v62 = vmul.f32 %v5202_v23, %v4441_v57  ;;  %v7622_v6 = vadd.f32 %v4380_v46, %v4340_v19  ;;  %4584 = vmatmul.f32.vlgmr.msrb.gmra.mxu0 %v4544_v49  ;;  %v4466_v1 = vor.u32 1.1754944e-38, %v4465_v16 }
 0xc52   :  { %v5204_v60 = vpop.eup %5203  ;;  %v4443_v26 = vadd.f32 %v5202_v23, %v4442_v62  ;;  %v4892_v8 = vmul.f32 -1.442695, %v7622_v6  ;;  %v4383_v27 = vpop.f32.mrf.mxu3 }
 0xc53   :  { %v5206_v10 = vpop.eup %5205  ;;  %v4419_v34 = vadd.f32 1.0, %v5204_v60 }
 0xc54   :  { %v4447_v50 = vsel %vm4446_vm2, %v5202_v23, %v4443_v26  ;;  %v4455_v48 = vmul.f32 %v5206_v10, %v4418_v15  ;;  %5207 = vpow2.f32 %v4892_v8  ;;  %vm4460_vm12 = vweird.f32 %v5206_v10 }
 0xc55   :  { %v4452_v59 = vsel %vm4449_vm0, %v4451_v35, %v4447_v50  ;;  %5209 = vrcp.f32 %v4419_v34  ;;  %v4342_v45 = vpop.f32.mrf.mxu1  ;;  %vm4461_vm5 = vmor %vm4459_vm1, %vm4460_vm12  ;;  %v4480_v33 = vand.u32 2147483648, %v4419_v34  ;;  %v4478_v47 = vand.u32 2147483647, %v4419_v34 }
 0xc56   :  { %v4545_v52 = vmul.f32 %v4452_v59, %v7613_v30  ;;  %v4456_v25 = vsub.f32 1.0, %v4455_v48  ;;  %v4343_v36 = vadd.f32 %v4342_v45, %v4274_v63  ;;  %vm4474_vm14 = vweird.f32 %v4419_v34 }
 0xc57   :  { %v4481_v32 = vor.u32 1.1754944e-38, %v4480_v33  ;;  %vm4479_vm3 = vcmp.eq.f32.partialorder %v4478_v47, 8.507059e+37 }
 0xc58   :  { %v4457_v14 = vmul.f32 %v5206_v10, %v4456_v25  ;;  %v7626_v2 = vadd.f32 %v4383_v27, %v4343_v36  ;;  %4587 = vmatmul.f32.gmra.mxu0 %v4545_v52 }
 0xc5a   :  { %v5208_v44 = vpop.eup %5207  ;;  %v4458_v9 = vadd.f32 %v5206_v10, %v4457_v14  ;;  %v4893_v37 = vmul.f32 -1.442695, %v7626_v2  ;;  %v4386_v38 = vpop.f32.mrf.mxu3 }
 0xc5b   :  { %v5210_v61 = vpop.eup %5209  ;;  %v4420_v28 = vadd.f32 1.0, %v5208_v44 }
 0xc5c   :  { %v4462_v30 = vsel %vm4461_vm5, %v5206_v10, %v4458_v9  ;;  %v4470_v11 = vmul.f32 %v5210_v61, %v4419_v34  ;;  %5211 = vpow2.f32 %v4893_v37  ;;  %vm4475_vm10 = vweird.f32 %v5210_v61 }
 0xc5d   :  { %v4467_v24 = vsel %vm4464_vm4, %v4466_v1, %v4462_v30  ;;  %5213 = vrcp.f32 %v4420_v28  ;;  %v4345_v7 = vpop.f32.mrf.mxu1  ;;  %vm4476_vm8 = vmor %vm4474_vm14, %vm4475_vm10  ;;  %v4495_v40 = vand.u32 2147483648, %v4420_v28  ;;  %v4493_v49 = vand.u32 2147483647, %v4420_v28 }
 0xc5e   :  { %v4546_v18 = vmul.f32 %v4467_v24, %v7616_v56  ;;  %v4471_v42 = vsub.f32 1.0, %v4470_v11  ;;  %v4346_v41 = vadd.f32 %v4345_v7, %v4279_v53  ;;  %vm4489_vm11 = vweird.f32 %v4420_v28 }
 0xc5f   :  { %v4496_v60 = vor.u32 1.1754944e-38, %v4495_v40  ;;  %vm4494_vm7 = vcmp.eq.f32.partialorder %v4493_v49, 8.507059e+37  ;;  %v4640_v49 = vshrl.u32 %v803_v31, 7 }
 0xc60   :  { %v4472_v54 = vmul.f32 %v5210_v61, %v4471_v42  ;;  %v7630_v12 = vadd.f32 %v4386_v38, %v4346_v41  ;;  %4590 = vmatmul.f32.gmra.mxu0 %v4546_v18 }
 0xc62   :  { %v5212_v55 = vpop.eup %5211  ;;  %v4473_v29 = vadd.f32 %v5210_v61, %v4472_v54  ;;  %v4894_v0 = vmul.f32 -1.442695, %v7630_v12  ;;  %v4389_v15 = vpop.f32.mrf.mxu3 }
 0xc63   :  { %v5214_v43 = vpop.eup %5213  ;;  %v4421_v4 = vadd.f32 1.0, %v5212_v55 }
 0xc64   :  { %v4477_v56 = vsel %vm4476_vm8, %v5210_v61, %v4473_v29  ;;  %v4485_v46 = vmul.f32 %v5214_v43, %v4420_v28  ;;  %5215 = vpow2.f32 %v4894_v0  ;;  %vm4490_vm13 = vweird.f32 %v5214_v43 }
 0xc65   :  { %v4482_v23 = vsel %vm4479_vm3, %v4481_v32, %v4477_v56  ;;  %5217 = vrcp.f32 %v4421_v4  ;;  %v4348_v22 = vpop.f32.mrf.mxu1  ;;  %vm4491_vm6 = vmor %vm4489_vm11, %vm4490_vm13  ;;  %v4510_v34 = vand.u32 2147483648, %v4421_v4  ;;  %v4508_v48 = vand.u32 2147483647, %v4421_v4  ;;  %v4609_v56 = vld [vmem:[%s4695_s10] sm:$0x3f] }
 0xc66   :  { %v4547_v39 = vmul.f32 %v4482_v23, %v7619_v20  ;;  %v4486_v21 = vsub.f32 1.0, %v4485_v46  ;;  %v4349_v17 = vadd.f32 %v4348_v22, %v4284_v13  ;;  %vm4504_vm15 = vweird.f32 %v4421_v4  ;;  %v4614_v46 = vpop.permute.xlu0 %4613 }
 0xc67   :  { %v4511_v52 = vor.u32 1.1754944e-38, %v4510_v34  ;;  %vm4509_vm0 = vcmp.eq.f32.partialorder %v4508_v48, 8.507059e+37  ;;  %vm7826_vm13 = vcmask 523264  }
 0xc68   :  { %v4487_v51 = vmul.f32 %v5214_v43, %v4486_v21  ;;  %v7634_v57 = vadd.f32 %v4389_v15, %v4349_v17  ;;  %4593 = vmatmul.f32.gmra.mxu0 %v4547_v39 }
 0xc6a   :  { %v5216_v19 = vpop.eup %5215  ;;  %v4488_v58 = vadd.f32 %v5214_v43, %v4487_v51  ;;  %v4895_v62 = vmul.f32 -1.442695, %v7634_v57 }
 0xc6b   :  { %v5218_v3 = vpop.eup %5217  ;;  %v4422_v26 = vadd.f32 1.0, %v5216_v19 }
 0xc6c   :  { %v4492_v8 = vsel %vm4491_vm6, %v5214_v43, %v4488_v58  ;;  %v4500_v20 = vmul.f32 %v5218_v3, %v4421_v4  ;;  %5219 = vpow2.f32 %v4895_v62  ;;  %vm4505_vm9 = vweird.f32 %v5218_v3 }
 0xc6d   :  { %v4497_v27 = vsel %vm4494_vm7, %v4496_v60, %v4492_v8  ;;  %5221 = vrcp.f32 %v4422_v26  ;;  %vm4506_vm2 = vmor %vm4504_vm15, %vm4505_vm9  ;;  %v4525_v44 = vand.u32 2147483648, %v4422_v26  ;;  %v4523_v37 = vand.u32 2147483647, %v4422_v26 }
 0xc6e   :  { %v4548_v10 = vmul.f32 %v4497_v27, %v7622_v6  ;;  %v4501_v35 = vsub.f32 1.0, %v4500_v20  ;;  %vm4519_vm1 = vweird.f32 %v4422_v26  ;;  %vm4641_vm7 = vcmp.eq.s32.totalorder %v4640_v49, 0 }
 0xc6f   :  { %v4526_v28 = vor.u32 1.1754944e-38, %v4525_v44  ;;  %vm4524_vm4 = vcmp.eq.f32.partialorder %v4523_v37, 8.507059e+37 }
 0xc70   :  { %v4502_v50 = vmul.f32 %v5218_v3, %v4501_v35  ;;  %4596 = vmatmul.f32.gmra.mxu0 %v4548_v10 }
 0xc72   :  { %v5220_v63 = vpop.eup %5219  ;;  %v4503_v59 = vadd.f32 %v5218_v3, %v4502_v50 }
 0xc73   :  { %v5222_v45 = vpop.eup %5221  ;;  %v4423_v25 = vadd.f32 1.0, %v5220_v63 }
 0xc74   :  { %v4507_v36 = vsel %vm4506_vm2, %v5218_v3, %v4503_v59  ;;  %v4515_v16 = vmul.f32 %v5222_v45, %v4422_v26  ;;  %vm4520_vm12 = vweird.f32 %v5222_v45  ;;  %vm4662_vm2 = vcmask 13312  }
 0xc75   :  { %v4512_v14 = vsel %vm4509_vm0, %v4511_v52, %v4507_v36  ;;  %5223 = vrcp.f32 %v4423_v25  ;;  %vm4521_vm5 = vmor %vm4519_vm1, %vm4520_vm12  ;;  %v4540_v7 = vand.u32 2147483648, %v4423_v25  ;;  %v4538_v18 = vand.u32 2147483647, %v4423_v25 }
 0xc76   :  { %v4549_v6 = vmul.f32 %v4512_v14, %v7626_v2  ;;  %v4516_v5 = vsub.f32 1.0, %v4515_v16  ;;  %vm4534_vm14 = vweird.f32 %v4423_v25 }
 0xc77   :  { %v4541_v41 = vor.u32 1.1754944e-38, %v4540_v7  ;;  %vm4539_vm3 = vcmp.eq.f32.partialorder %v4538_v18, 8.507059e+37 }
 0xc78   :  { %v4517_v9 = vmul.f32 %v5222_v45, %v4516_v5  ;;  %4599 = vmatmul.f32.gmra.mxu0 %v4549_v6 }
 0xc7a   :  { %v4518_v61 = vadd.f32 %v5222_v45, %v4517_v9 }
 0xc7b   :  { %v5224_v1 = vpop.eup %5223 }
 0xc7c   :  { %v4522_v38 = vsel %vm4521_vm5, %v5222_v45, %v4518_v61  ;;  %v4530_v30 = vmul.f32 %v5224_v1, %v4423_v25  ;;  %vm4535_vm10 = vweird.f32 %v5224_v1 }
 0xc7d   :  { %v4527_v11 = vsel %vm4524_vm4, %v4526_v28, %v4522_v38  ;;  %vm4536_vm8 = vmor %vm4534_vm14, %vm4535_vm10 }
 0xc7e   :  { %v4550_v53 = vmul.f32 %v4527_v11, %v7630_v12  ;;  %v4531_v24 = vsub.f32 1.0, %v4530_v30 }
 0xc80   :  { %v4532_v2 = vmul.f32 %v5224_v1, %v4531_v24  ;;  %4602 = vmatmul.f32.gmra.mxu0 %v4550_v53 }
 0xc82   :  { %v4533_v42 = vadd.f32 %v5224_v1, %v4532_v2 }
 0xc84   :  { %v4537_v33 = vsel %vm4536_vm8, %v5224_v1, %v4533_v42 }
 0xc85   :  { %v4542_v54 = vsel %vm4539_vm3, %v4541_v41, %v4537_v33 }
 0xc86   :  { %v4551_v47 = vmul.f32 %v4542_v54, %v7634_v57 }
 0xc88   :  { %4605 = vmatmul.f32.gmra.mxu0 %v4551_v47 }
 0xccd   :  { %v4585_v55 = vpop.f32.mrf.mxu0 }
 0xcd5   :  { %v4588_v29 = vpop.f32.mrf.mxu0 }
 0xcdd   :  { %v4591_v0 = vpop.f32.mrf.mxu0 }
 0xce5   :  { %v4594_v12 = vpop.f32.mrf.mxu0 }
 0xced   :  { %v4597_v43 = vpop.f32.mrf.mxu0 }
 0xcf5   :  { %v4600_v32 = vpop.f32.mrf.mxu0 }
 0xcfd   :  { %v4603_v4 = vpop.f32.mrf.mxu0 }
 0xd05   :  { %v4606_v13 = vpop.f32.mrf.mxu0 }
 0xd06   :  { %4627 = vmatpush.msrb.mxu1 %v4606_v13 }
 0xd08   :  { %4628 = vmatpush.msrb.mxu1 %v4603_v4 }
 0xd0a   :  { %4629 = vmatpush.msrb.mxu1 %v4600_v32 }
 0xd0c   :  { %4630 = vmatpush.msrb.mxu1 %v4597_v43 }
 0xd0e   :  { %4631 = vmatpush.msrb.mxu1 %v4594_v12 }
 0xd10   :  { %4632 = vmatpush.msrb.mxu1 %v4591_v0 }
 0xd12   :  { %4633 = vmatpush.msrb.mxu1 %v4588_v29 }
 0xd14   :  { %4634 = vmatpush.msrb.mxu1 %v4585_v55 }
 0xd15   :  { %4896 = vmatmul.msk.f32.vlgmr.msrb.gmra.mxu1 %vm7826_vm13, %v4609_v56 }
 0xd92   :  { %v4636_v23 = vpop.f32.mrf.mxu1 }
 0xd93   :  { %v4637_v22 = vadd.f32 %v4636_v23, %v4614_v46 }
 0xd95   :  { %v4897_v15 = vmul.f32 -1.442695, %v4637_v22 }
 0xd97   :  { %5225 = vpow2.f32 %v4897_v15 }
 0xd9d   :  { %v5226_v39 = vpop.eup %5225 }
 0xd9e   :  { %v4645_v21 = vadd.f32 1.0, %v5226_v39 }
 0xda0   :  { %5227 = vrcp.f32 %v4645_v21  ;;  %v4657_v57 = vand.u32 2147483648, %v4645_v21  ;;  %v4655_v58 = vand.u32 2147483647, %v4645_v21  ;;  %vm4651_vm6 = vweird.f32 %v4645_v21 }
 0xda2   :  { %v4658_v3 = vor.u32 1.1754944e-38, %v4657_v57  ;;  %vm4656_vm15 = vcmp.eq.f32.partialorder %v4655_v58, 8.507059e+37 }
 0xda6   :  { %v5228_v17 = vpop.eup %5227 }
 0xda7   :  { %v4647_v40 = vmul.f32 %v5228_v17, %v4645_v21  ;;  %vm4652_vm11 = vweird.f32 %v5228_v17 }
 0xda8   :  { %vm4653_vm9 = vmor %vm4651_vm6, %vm4652_vm11 }
 0xda9   :  { %v4648_v51 = vsub.f32 1.0, %v4647_v40 }
 0xdab   :  { %v4649_v19 = vmul.f32 %v5228_v17, %v4648_v51 }
 0xdad   :  { %v4650_v62 = vadd.f32 %v5228_v17, %v4649_v19 }
 0xdaf   :  { %v4654_v60 = vsel %vm4653_vm9, %v5228_v17, %v4650_v62 }
 0xdb0   :  { %v4659_v26 = vsel %vm4656_vm15, %v4658_v3, %v4654_v60 }
 0xdb1   :  { %v4661_v8 = vsel %vm4641_vm7, %v4659_v26, %v4637_v22 }
 0xdb2   :  { %4663 = vst.msk [vmem:[%s4698_s14] sm:$0x3f] %vm4662_vm2, %v4661_v8 }

</bundles_post_ra>
